<compile_context>
chip_gen: v5e
topology: v5e:2x2
jax: 0.10.0
libtpu: 0.0.40
codegen_flags: <defaults>
</compile_context>

<pallas_src>
import functools
import numpy as np
import jax
import jax.numpy as jnp
from jax import lax
from jax.experimental import pallas as pl
from jax.experimental.pallas import tpu as pltpu


# ------------------------------ fused Pallas kernel ------------------------------

def _bottleneck_kernel(x_ref, pool_ref, up_ref, mask_ref,
                       s1_ref, b1_ref, wsc_ref, w1_ref, s2_ref, b2_ref,
                       w2_ref, s3_ref, b3_ref, w3_ref,
                       wt1_ref, ts_ref, tb_ref, wt2_ref,
                       o_ref, a1_scr, *, H, W):
    HW = H * W
    pad = 2 * W                       # vertical halo rows above/below the image
    f32 = jnp.float32

    xb = x_ref[0]                                                       # (HW, Cin)

    # ---- SPA gate: weighted pool pyramid -> 1x1 -> BN+ReLU -> 1x1 -> sigmoid ----
    pooled = jnp.dot(pool_ref[...], xb, preferred_element_type=f32)     # (16, Cin)
    h = jnp.dot(pooled, wt1_ref[...], preferred_element_type=f32)       # (16, mid)
    h = jnp.maximum(h * ts_ref[...] + tb_ref[...], 0.0)
    g16 = jax.nn.sigmoid(jnp.dot(h, wt2_ref[...],
                                 preferred_element_type=f32))           # (16, Cout)
    # nearest-neighbour F.interpolate(spa, (H, W)) as a tiny 0/1 matmul (no HBM gate_up)
    gate = jnp.dot(up_ref[...], g16, preferred_element_type=f32)        # (HW, Cout)

    # ---- main path ----
    xact = jnp.maximum(xb * s1_ref[...] + b1_ref[...], 0.0)             # relu(bn1(x))
    shortcut = jnp.dot(xact, wsc_ref[...], preferred_element_type=f32)  # (HW, Cout)

    a1 = jnp.dot(xact, w1_ref[...], preferred_element_type=f32)         # conv1 (HW, planes)
    a1 = jnp.maximum(a1 * s2_ref[...] + b2_ref[...], 0.0)               # relu(bn2(.))
    planes = a1.shape[1]

    # ---- 3x3 conv: 9 shifted + masked matmuls over a zero-haloed VMEM buffer ----
    a1_scr[0:pad, :] = jnp.zeros((pad, planes), f32)                    # top halo = 0
    a1_scr[pad + HW:pad + HW + pad, :] = jnp.zeros((pad, planes), f32)  # bottom halo = 0
    a1_scr[pad:pad + HW, :] = a1

    a2 = jnp.zeros((HW, planes), f32)
    k = 0
    for dy in (-1, 0, 1):
        for dx in (-1, 0, 1):
            s = dy * W + dx
            sh = a1_scr[pad + s:pad + s + HW, :]            # rows shifted by (dy, dx)
            sh = sh * mask_ref[:, k:k + 1]                  # zero out-of-image taps
            a2 = a2 + jnp.dot(sh, w2_ref[k], preferred_element_type=f32)
            k += 1
    a2 = jnp.maximum(a2 * s3_ref[...] + b3_ref[...], 0.0)               # relu(bn3(conv2))

    y = jnp.dot(a2, w3_ref[...], preferred_element_type=f32)            # conv3 (HW, Cout)
    o_ref[0] = y * gate + shortcut


# ------------------------------ precomputed constant matrices ------------------------------

def _build_pool_matrices(H, W):
    """P4, P2(upsampled), P1(upsampled) as (16, H*W) averaging matrices."""
    P4 = np.zeros((16, H * W), np.float32)
    P2 = np.zeros((16, H * W), np.float32)
    P1 = np.full((16, H * W), 1.0 / (H * W), np.float32)
    h4, w4 = H // 4, W // 4
    h2, w2 = H // 2, W // 2
    for bi in range(4):
        for bj in range(4):
            r = bi * 4 + bj
            for i in range(bi * h4, (bi + 1) * h4):
                for j in range(bj * w4, (bj + 1) * w4):
                    P4[r, i * W + j] = 1.0 / (h4 * w4)
            ci, cj = bi // 2, bj // 2
            for i in range(ci * h2, (ci + 1) * h2):
                for j in range(cj * w2, (cj + 1) * w2):
                    P2[r, i * W + j] = 1.0 / (h2 * w2)
    return jnp.asarray(P4), jnp.asarray(P2), jnp.asarray(P1)


def _build_upsample_matrix(H, W):
    """0/1 matrix (H*W, 16): nearest-neighbour upsample of a 4x4 map to HxW."""
    U = np.zeros((H * W, 16), np.float32)
    for i in range(H):
        for j in range(W):
            U[i * W + j, (i // (H // 4)) * 4 + (j // (W // 4))] = 1.0
    return jnp.asarray(U)


def _build_shift_masks(H, W):
    """(H*W, 9) masks: 1 where the (dy, dx) tap stays inside the image."""
    M = np.zeros((H * W, 9), np.float32)
    k = 0
    for dy in (-1, 0, 1):
        for dx in (-1, 0, 1):
            for i in range(H):
                for j in range(W):
                    if 0 <= i + dy < H and 0 <= j + dx < W:
                        M[i * W + j, k] = 1.0
            k += 1
    return jnp.asarray(M)


# ------------------------------ parameters & forward wrapper ------------------------------

def init_params(key, in_planes, planes, reduction=16):
    exp = 4
    cout = exp * planes
    mid = cout // reduction
    ks = jax.random.split(key, 10)

    def conv_w(k, co, ci, kh=1, kw=1):
        fan_in = ci * kh * kw
        return jax.random.normal(k, (co, ci, kh, kw), jnp.float32) / np.sqrt(fan_in)

    def bn_p(k, c):
        k1, k2, k3, k4 = jax.random.split(k, 4)
        gamma = 1.0 + 0.1 * jax.random.normal(k1, (c,), jnp.float32)
        beta = 0.1 * jax.random.normal(k2, (c,), jnp.float32)
        mean = 0.1 * jax.random.normal(k3, (c,), jnp.float32)
        var = 0.5 + 0.5 * jnp.abs(jax.random.normal(k4, (c,), jnp.float32))
        return (gamma, beta, mean, var)

    return dict(
        bn1=bn_p(ks[0], in_planes),
        w1=conv_w(ks[1], planes, in_planes),              # conv1 1x1
        bn2=bn_p(ks[2], planes),
        w2=conv_w(ks[3], planes, planes, 3, 3),           # conv2 3x3
        bn3=bn_p(ks[4], planes),
        w3=conv_w(ks[5], cout, planes),                   # conv3 1x1
        wsc=conv_w(ks[6], cout, in_planes),               # shortcut 1x1
        spa_weight=jnp.ones((3,), jnp.float32),           # Parameter(torch.ones(1,3,1,1,1))
        spa_w1=conv_w(ks[7], mid, in_planes),
        spa_bn=bn_p(ks[8], mid),
        spa_w2=conv_w(ks[9], cout, mid),
    )


def preact_bottleneck_forward(x_nchw, p):
    B, Cin, H, W = x_nchw.shape
    assert H % 4 == 0 and W % 4 == 0, "SPA pyramid / upsample assume H, W multiples of 4"
    planes = p['w1'].shape[0]
    cout = p['w3'].shape[0]
    mid = p['spa_w1'].shape[0]
    HW = H * W

    x = jnp.transpose(x_nchw, (0, 2, 3, 1)).astype(jnp.float32).reshape(B, HW, Cin)

    def fold(bn):   # inference-mode BN folded into per-channel scale / bias
        g, b, m, v = bn
        s = g / jnp.sqrt(v + 1e-5)
        return s.reshape(1, -1), (b - m * s).reshape(1, -1)

    s1, b1 = fold(p['bn1'])
    s2, b2 = fold(p['bn2'])
    s3, b3 = fold(p['bn3'])
    ts, tb = fold(p['spa_bn'])

    P4, P2, P1 = _build_pool_matrices(H, W)
    wsp = p['spa_weight']
    pool_mat = wsp[0] * P4 + wsp[1] * P2 + wsp[2] * P1        # (16, HW)
    up_mat = _build_upsample_matrix(H, W)                     # (HW, 16)
    masks = _build_shift_masks(H, W)                          # (HW, 9)

    w1 = p['w1'][:, :, 0, 0].T                                # (Cin, planes)
    wsc = p['wsc'][:, :, 0, 0].T                              # (Cin, Cout)
    w3 = p['w3'][:, :, 0, 0].T                                # (planes, Cout)
    w2 = jnp.transpose(p['w2'], (2, 3, 1, 0)).reshape(9, planes, planes)  # tap-major
    wt1 = p['spa_w1'][:, :, 0, 0].T                           # (Cin, mid)
    wt2 = p['spa_w2'][:, :, 0, 0].T                           # (mid, Cout)

    def cspec(shape):
        zeros = (0,) * len(shape)
        return pl.BlockSpec(shape, lambda b: zeros)

    kernel = functools.partial(_bottleneck_kernel, H=H, W=W)

    out = pl.pallas_call(
        kernel,
        out_shape=jax.ShapeDtypeStruct((B, HW, cout), jnp.float32),
        grid_spec=pltpu.PrefetchScalarGridSpec(
            num_scalar_prefetch=0,
            grid=(B,),
            in_specs=[
                pl.BlockSpec((1, HW, Cin), lambda b: (b, 0, 0)),  # x (per image)
                cspec((16, HW)),                                  # pool pyramid matrix
                cspec((HW, 16)),                                  # nearest-upsample matrix
                cspec((HW, 9)),                                   # 3x3 boundary masks
                cspec((1, Cin)), cspec((1, Cin)),                 # bn1 scale / bias
                cspec((Cin, cout)),                               # shortcut 1x1 weight
                cspec((Cin, planes)),                             # conv1 1x1 weight
                cspec((1, planes)), cspec((1, planes)),           # bn2 scale / bias
                cspec((9, planes, planes)),                       # conv2 3x3 taps
                cspec((1, planes)), cspec((1, planes)),           # bn3 scale / bias
                cspec((planes, cout)),                            # conv3 1x1 weight
                cspec((Cin, mid)),                                # spa conv1 weight
                cspec((1, mid)), cspec((1, mid)),                 # spa bn scale / bias
                cspec((mid, cout)),                               # spa conv2 weight
            ],
            out_specs=pl.BlockSpec((1, HW, cout), lambda b: (b, 0, 0)),
            scratch_shapes=[pltpu.VMEM((HW + 4 * W, planes), jnp.float32)]),
        compiler_params=pltpu.CompilerParams(
            dimension_semantics=("parallel",)),
    )(x, pool_mat, up_mat, masks, s1, b1, wsc, w1, s2, b2, w2, s3, b3, w3,
      wt1, ts, tb, wt2)

    return jnp.transpose(out.reshape(B, H, W, cout), (0, 3, 1, 2))       # back to NCHW


# ------------------------------ pure-JAX reference ------------------------------

def ref_forward(x, p):
    B, C, H, W = x.shape
    eps = 1e-5

    def bn(z, bnp):
        g, b, m, v = bnp
        s = g / jnp.sqrt(v + eps)
        return z * s[None, :, None, None] + (b - m * s)[None, :, None, None]

    def conv1x1(z, w):
        return jnp.einsum('bchw,oc->bohw', z, w[:, :, 0, 0])

    def apool(z, k):
        return z.reshape(B, z.shape[1], k, H // k, k, W // k).mean(axis=(3, 5))

    def up(z, fh, fw):
        return jnp.repeat(jnp.repeat(z, fh, axis=2), fw, axis=3)

    w = p['spa_weight']
    y = w[0] * apool(x, 4) + w[1] * up(apool(x, 2), 2, 2) + w[2] * up(apool(x, 1), 4, 4)
    h = jnp.maximum(bn(conv1x1(y, p['spa_w1']), p['spa_bn']), 0.0)
    spa = jax.nn.sigmoid(conv1x1(h, p['spa_w2']))

    out = jnp.maximum(bn(x, p['bn1']), 0.0)
    sc = conv1x1(out, p['wsc'])
    o = conv1x1(out, p['w1'])
    o = jnp.maximum(bn(o, p['bn2']), 0.0)
    o = lax.conv_general_dilated(o, p['w2'], (1, 1), 'SAME',
                                 dimension_numbers=('NCHW', 'OIHW', 'NCHW'))
    o = jnp.maximum(bn(o, p['bn3']), 0.0)
    o = conv1x1(o, p['w3'])
    return o * up(spa, H // 4, W // 4) + sc


# ------------------------------ main ------------------------------

if __name__ == "__main__":
    key = jax.random.PRNGKey(0)
    k_x, k_p = jax.random.split(key)
    B, in_planes, planes, H, W = 2, 16, 8, 16, 16          # expansion*planes = 32
    x = jax.random.normal(k_x, (B, in_planes, H, W), jnp.float32)
    params = init_params(k_p, in_planes, planes, reduction=16)

    out = jax.block_until_ready(preact_bottleneck_forward(x, params))
    assert out.shape == (B, 4 * planes, H, W)

    ref = jax.block_until_ready(ref_forward(x, params))
    err = float(jnp.max(jnp.abs(out - ref)))
    if not np.allclose(np.asarray(out), np.asarray(ref), atol=1e-2, rtol=1e-2):
        raise SystemExit("mismatch, max abs err = %e" % err)
    print("KERNEL_OK")
</pallas_src>

<mosaic_0001>
module attributes {stable_mosaic.version = 11 : i64} {
  func.func @_bottleneck_kernel(%arg0: i32, %arg1: memref<1x256x16xf32, #tpu.memory_space<vmem>>, %arg2: memref<16x256xf32, #tpu.memory_space<vmem>>, %arg3: memref<256x16xf32, #tpu.memory_space<vmem>>, %arg4: memref<256x9xf32, #tpu.memory_space<vmem>>, %arg5: memref<1x16xf32, #tpu.memory_space<vmem>>, %arg6: memref<1x16xf32, #tpu.memory_space<vmem>>, %arg7: memref<16x32xf32, #tpu.memory_space<vmem>>, %arg8: memref<16x8xf32, #tpu.memory_space<vmem>>, %arg9: memref<1x8xf32, #tpu.memory_space<vmem>>, %arg10: memref<1x8xf32, #tpu.memory_space<vmem>>, %arg11: memref<9x8x8xf32, #tpu.memory_space<vmem>>, %arg12: memref<1x8xf32, #tpu.memory_space<vmem>>, %arg13: memref<1x8xf32, #tpu.memory_space<vmem>>, %arg14: memref<8x32xf32, #tpu.memory_space<vmem>>, %arg15: memref<16x2xf32, #tpu.memory_space<vmem>>, %arg16: memref<1x2xf32, #tpu.memory_space<vmem>>, %arg17: memref<1x2xf32, #tpu.memory_space<vmem>>, %arg18: memref<2x32xf32, #tpu.memory_space<vmem>>, %arg19: memref<1x256x32xf32, #tpu.memory_space<vmem>>, %arg20: memref<320x8xf32, #tpu.memory_space<vmem>>) attributes {dimension_semantics = [#tpu.dimension_semantics<parallel>], iteration_bounds = array<i64: 2>, scalar_prefetch = 0 : i64, scratch_operands = 1 : i64, tpu.core_type = #tpu.core_type<tc>, window_params = [{transform_indices = @transform_0, window_bounds = array<i64: 1, 256, 16>}, {pipeline_mode = #tpu.pipeline_mode<synchronous>, transform_indices = @transform_1, window_bounds = array<i64: 16, 256>}, {pipeline_mode = #tpu.pipeline_mode<synchronous>, transform_indices = @transform_2, window_bounds = array<i64: 256, 16>}, {pipeline_mode = #tpu.pipeline_mode<synchronous>, transform_indices = @transform_3, window_bounds = array<i64: 256, 9>}, {pipeline_mode = #tpu.pipeline_mode<synchronous>, transform_indices = @transform_4, window_bounds = array<i64: 1, 16>}, {pipeline_mode = #tpu.pipeline_mode<synchronous>, transform_indices = @transform_5, window_bounds = array<i64: 1, 16>}, {pipeline_mode = #tpu.pipeline_mode<synchronous>, transform_indices = @transform_6, window_bounds = array<i64: 16, 32>}, {pipeline_mode = #tpu.pipeline_mode<synchronous>, transform_indices = @transform_7, window_bounds = array<i64: 16, 8>}, {pipeline_mode = #tpu.pipeline_mode<synchronous>, transform_indices = @transform_8, window_bounds = array<i64: 1, 8>}, {pipeline_mode = #tpu.pipeline_mode<synchronous>, transform_indices = @transform_9, window_bounds = array<i64: 1, 8>}, {pipeline_mode = #tpu.pipeline_mode<synchronous>, transform_indices = @transform_10, window_bounds = array<i64: 9, 8, 8>}, {pipeline_mode = #tpu.pipeline_mode<synchronous>, transform_indices = @transform_11, window_bounds = array<i64: 1, 8>}, {pipeline_mode = #tpu.pipeline_mode<synchronous>, transform_indices = @transform_12, window_bounds = array<i64: 1, 8>}, {pipeline_mode = #tpu.pipeline_mode<synchronous>, transform_indices = @transform_13, window_bounds = array<i64: 8, 32>}, {pipeline_mode = #tpu.pipeline_mode<synchronous>, transform_indices = @transform_14, window_bounds = array<i64: 16, 2>}, {pipeline_mode = #tpu.pipeline_mode<synchronous>, transform_indices = @transform_15, window_bounds = array<i64: 1, 2>}, {pipeline_mode = #tpu.pipeline_mode<synchronous>, transform_indices = @transform_16, window_bounds = array<i64: 1, 2>}, {pipeline_mode = #tpu.pipeline_mode<synchronous>, transform_indices = @transform_17, window_bounds = array<i64: 2, 32>}, {transform_indices = @transform_18, window_bounds = array<i64: 1, 256, 32>}]} {
    %c0 = arith.constant 0 : index
    %c0_0 = arith.constant 0 : index
    %c0_1 = arith.constant 0 : index
    %0 = vector.load %arg1[%c0, %c0_0, %c0_1] : memref<1x256x16xf32, #tpu.memory_space<vmem>>, vector<1x256x16xf32>
    %1 = vector.shape_cast %0 : vector<1x256x16xf32> to vector<256x16xf32>
    %c0_2 = arith.constant 0 : index
    %c0_3 = arith.constant 0 : index
    %2 = vector.load %arg2[%c0_2, %c0_3] : memref<16x256xf32, #tpu.memory_space<vmem>>, vector<16x256xf32>
    %cst = arith.constant dense<0.000000e+00> : vector<16x16xf32>
    %3 = tpu.matmul %2, %1, %cst {dimension_numbers = #tpu.dot_dimension_numbers<[1], [0], [0], [1], [0, 0, 1, 1], [], []>} : vector<16x256xf32>, vector<256x16xf32>, vector<16x16xf32> -> vector<16x16xf32>
    %c0_4 = arith.constant 0 : index
    %c0_5 = arith.constant 0 : index
    %4 = vector.load %arg15[%c0_4, %c0_5] : memref<16x2xf32, #tpu.memory_space<vmem>>, vector<16x2xf32>
    %cst_6 = arith.constant dense<0.000000e+00> : vector<16x2xf32>
    %5 = tpu.matmul %3, %4, %cst_6 {dimension_numbers = #tpu.dot_dimension_numbers<[1], [0], [0], [1], [0, 0, 1, 1], [], []>} : vector<16x16xf32>, vector<16x2xf32>, vector<16x2xf32> -> vector<16x2xf32>
    %c0_7 = arith.constant 0 : index
    %c0_8 = arith.constant 0 : index
    %6 = vector.load %arg16[%c0_7, %c0_8] : memref<1x2xf32, #tpu.memory_space<vmem>>, vector<1x2xf32>
    %7 = vector.broadcast %6 : vector<1x2xf32> to vector<16x2xf32>
    %8 = arith.mulf %5, %7 : vector<16x2xf32>
    %c0_9 = arith.constant 0 : index
    %c0_10 = arith.constant 0 : index
    %9 = vector.load %arg17[%c0_9, %c0_10] : memref<1x2xf32, #tpu.memory_space<vmem>>, vector<1x2xf32>
    %10 = vector.broadcast %9 : vector<1x2xf32> to vector<16x2xf32>
    %11 = arith.addf %8, %10 : vector<16x2xf32>
    %cst_11 = arith.constant 0.000000e+00 : f32
    %12 = vector.broadcast %cst_11 : f32 to vector<16x2xf32>
    %13 = arith.maximumf %11, %12 : vector<16x2xf32>
    %c0_12 = arith.constant 0 : index
    %c0_13 = arith.constant 0 : index
    %14 = vector.load %arg18[%c0_12, %c0_13] : memref<2x32xf32, #tpu.memory_space<vmem>>, vector<2x32xf32>
    %cst_14 = arith.constant dense<0.000000e+00> : vector<16x32xf32>
    %15 = tpu.matmul %13, %14, %cst_14 {dimension_numbers = #tpu.dot_dimension_numbers<[1], [0], [0], [1], [0, 0, 1, 1], [], []>} : vector<16x2xf32>, vector<2x32xf32>, vector<16x32xf32> -> vector<16x32xf32>
    %16 = arith.negf %15 : vector<16x32xf32>
    %17 = math.exp %16 : vector<16x32xf32>
    %cst_15 = arith.constant 1.000000e+00 : f32
    %18 = vector.broadcast %cst_15 : f32 to vector<16x32xf32>
    %19 = arith.addf %18, %17 : vector<16x32xf32>
    %20 = arith.divf %18, %19 : vector<16x32xf32>
    %c0_16 = arith.constant 0 : index
    %c0_17 = arith.constant 0 : index
    %21 = vector.load %arg3[%c0_16, %c0_17] : memref<256x16xf32, #tpu.memory_space<vmem>>, vector<256x16xf32>
    %cst_18 = arith.constant dense<0.000000e+00> : vector<256x32xf32>
    %22 = tpu.matmul %21, %20, %cst_18 {dimension_numbers = #tpu.dot_dimension_numbers<[1], [0], [0], [1], [0, 0, 1, 1], [], []>} : vector<256x16xf32>, vector<16x32xf32>, vector<256x32xf32> -> vector<256x32xf32>
    %c0_19 = arith.constant 0 : index
    %c0_20 = arith.constant 0 : index
    %23 = vector.load %arg5[%c0_19, %c0_20] : memref<1x16xf32, #tpu.memory_space<vmem>>, vector<1x16xf32>
    %24 = vector.broadcast %23 : vector<1x16xf32> to vector<256x16xf32>
    %25 = arith.mulf %1, %24 : vector<256x16xf32>
    %c0_21 = arith.constant 0 : index
    %c0_22 = arith.constant 0 : index
    %26 = vector.load %arg6[%c0_21, %c0_22] : memref<1x16xf32, #tpu.memory_space<vmem>>, vector<1x16xf32>
    %27 = vector.broadcast %26 : vector<1x16xf32> to vector<256x16xf32>
    %28 = arith.addf %25, %27 : vector<256x16xf32>
    %cst_23 = arith.constant 0.000000e+00 : f32
    %29 = vector.broadcast %cst_23 : f32 to vector<256x16xf32>
    %30 = arith.maximumf %28, %29 : vector<256x16xf32>
    %c0_24 = arith.constant 0 : index
    %c0_25 = arith.constant 0 : index
    %31 = vector.load %arg7[%c0_24, %c0_25] : memref<16x32xf32, #tpu.memory_space<vmem>>, vector<16x32xf32>
    %cst_26 = arith.constant dense<0.000000e+00> : vector<256x32xf32>
    %32 = tpu.matmul %30, %31, %cst_26 {dimension_numbers = #tpu.dot_dimension_numbers<[1], [0], [0], [1], [0, 0, 1, 1], [], []>} : vector<256x16xf32>, vector<16x32xf32>, vector<256x32xf32> -> vector<256x32xf32>
    %c0_27 = arith.constant 0 : index
    %c0_28 = arith.constant 0 : index
    %33 = vector.load %arg8[%c0_27, %c0_28] : memref<16x8xf32, #tpu.memory_space<vmem>>, vector<16x8xf32>
    %cst_29 = arith.constant dense<0.000000e+00> : vector<256x8xf32>
    %34 = tpu.matmul %30, %33, %cst_29 {dimension_numbers = #tpu.dot_dimension_numbers<[1], [0], [0], [1], [0, 0, 1, 1], [], []>} : vector<256x16xf32>, vector<16x8xf32>, vector<256x8xf32> -> vector<256x8xf32>
    %c0_30 = arith.constant 0 : index
    %c0_31 = arith.constant 0 : index
    %35 = vector.load %arg9[%c0_30, %c0_31] : memref<1x8xf32, #tpu.memory_space<vmem>>, vector<1x8xf32>
    %36 = vector.broadcast %35 : vector<1x8xf32> to vector<256x8xf32>
    %37 = arith.mulf %34, %36 : vector<256x8xf32>
    %c0_32 = arith.constant 0 : index
    %c0_33 = arith.constant 0 : index
    %38 = vector.load %arg10[%c0_32, %c0_33] : memref<1x8xf32, #tpu.memory_space<vmem>>, vector<1x8xf32>
    %39 = vector.broadcast %38 : vector<1x8xf32> to vector<256x8xf32>
    %40 = arith.addf %37, %39 : vector<256x8xf32>
    %cst_34 = arith.constant 0.000000e+00 : f32
    %41 = vector.broadcast %cst_34 : f32 to vector<256x8xf32>
    %42 = arith.maximumf %40, %41 : vector<256x8xf32>
    %cst_35 = arith.constant 0.000000e+00 : f32
    %43 = vector.broadcast %cst_35 : f32 to vector<32x8xf32>
    %c0_36 = arith.constant 0 : index
    %c0_37 = arith.constant 0 : index
    %44 = vector.load %arg20[%c0_36, %c0_37] : memref<320x8xf32, #tpu.memory_space<vmem>>, vector<32x8xf32>
    tpu.vector_store %arg20[%c0_36, %c0_37], %43 {strides = array<i32>} : memref<320x8xf32, #tpu.memory_space<vmem>>, vector<32x8xf32>,
    %cst_38 = arith.constant 0.000000e+00 : f32
    %45 = vector.broadcast %cst_38 : f32 to vector<32x8xf32>
    %c288 = arith.constant 288 : index
    %c0_39 = arith.constant 0 : index
    %46 = vector.load %arg20[%c288, %c0_39] : memref<320x8xf32, #tpu.memory_space<vmem>>, vector<32x8xf32>
    tpu.vector_store %arg20[%c288, %c0_39], %45 {strides = array<i32>} : memref<320x8xf32, #tpu.memory_space<vmem>>, vector<32x8xf32>,
    %c32 = arith.constant 32 : index
    %c0_40 = arith.constant 0 : index
    %47 = vector.load %arg20[%c32, %c0_40] : memref<320x8xf32, #tpu.memory_space<vmem>>, vector<256x8xf32>
    tpu.vector_store %arg20[%c32, %c0_40], %42 {strides = array<i32>} : memref<320x8xf32, #tpu.memory_space<vmem>>, vector<256x8xf32>,
    %cst_41 = arith.constant 0.000000e+00 : f32
    %48 = vector.broadcast %cst_41 : f32 to vector<256x8xf32>
    %c15 = arith.constant 15 : index
    %c0_42 = arith.constant 0 : index
    %49 = vector.load %arg20[%c15, %c0_42] : memref<320x8xf32, #tpu.memory_space<vmem>>, vector<256x8xf32>
    %c0_43 = arith.constant 0 : index
    %c0_44 = arith.constant 0 : index
    %50 = vector.load %arg4[%c0_43, %c0_44] : memref<256x9xf32, #tpu.memory_space<vmem>>, vector<256x1xf32>
    %51 = vector.broadcast %50 : vector<256x1xf32> to vector<256x8xf32>
    %52 = arith.mulf %49, %51 : vector<256x8xf32>
    %c0_45 = arith.constant 0 : index
    %c0_46 = arith.constant 0 : index
    %c0_47 = arith.constant 0 : index
    %53 = vector.load %arg11[%c0_45, %c0_46, %c0_47] : memref<9x8x8xf32, #tpu.memory_space<vmem>>, vector<1x8x8xf32>
    %54 = vector.shape_cast %53 : vector<1x8x8xf32> to vector<8x8xf32>
    %cst_48 = arith.constant dense<0.000000e+00> : vector<256x8xf32>
    %55 = tpu.matmul %52, %54, %cst_48 {dimension_numbers = #tpu.dot_dimension_numbers<[1], [0], [0], [1], [0, 0, 1, 1], [], []>} : vector<256x8xf32>, vector<8x8xf32>, vector<256x8xf32> -> vector<256x8xf32>
    %56 = arith.addf %48, %55 : vector<256x8xf32>
    %c16 = arith.constant 16 : index
    %c0_49 = arith.constant 0 : index
    %57 = vector.load %arg20[%c16, %c0_49] : memref<320x8xf32, #tpu.memory_space<vmem>>, vector<256x8xf32>
    %c0_50 = arith.constant 0 : index
    %c1 = arith.constant 1 : index
    %58 = vector.load %arg4[%c0_50, %c1] : memref<256x9xf32, #tpu.memory_space<vmem>>, vector<256x1xf32>
    %59 = vector.broadcast %58 : vector<256x1xf32> to vector<256x8xf32>
    %60 = arith.mulf %57, %59 : vector<256x8xf32>
    %c1_51 = arith.constant 1 : index
    %c0_52 = arith.constant 0 : index
    %c0_53 = arith.constant 0 : index
    %61 = vector.load %arg11[%c1_51, %c0_52, %c0_53] : memref<9x8x8xf32, #tpu.memory_space<vmem>>, vector<1x8x8xf32>
    %62 = vector.shape_cast %61 : vector<1x8x8xf32> to vector<8x8xf32>
    %cst_54 = arith.constant dense<0.000000e+00> : vector<256x8xf32>
    %63 = tpu.matmul %60, %62, %cst_54 {dimension_numbers = #tpu.dot_dimension_numbers<[1], [0], [0], [1], [0, 0, 1, 1], [], []>} : vector<256x8xf32>, vector<8x8xf32>, vector<256x8xf32> -> vector<256x8xf32>
    %64 = arith.addf %56, %63 : vector<256x8xf32>
    %c17 = arith.constant 17 : index
    %c0_55 = arith.constant 0 : index
    %65 = vector.load %arg20[%c17, %c0_55] : memref<320x8xf32, #tpu.memory_space<vmem>>, vector<256x8xf32>
    %c0_56 = arith.constant 0 : index
    %c2 = arith.constant 2 : index
    %66 = vector.load %arg4[%c0_56, %c2] : memref<256x9xf32, #tpu.memory_space<vmem>>, vector<256x1xf32>
    %67 = vector.broadcast %66 : vector<256x1xf32> to vector<256x8xf32>
    %68 = arith.mulf %65, %67 : vector<256x8xf32>
    %c2_57 = arith.constant 2 : index
    %c0_58 = arith.constant 0 : index
    %c0_59 = arith.constant 0 : index
    %69 = vector.load %arg11[%c2_57, %c0_58, %c0_59] : memref<9x8x8xf32, #tpu.memory_space<vmem>>, vector<1x8x8xf32>
    %70 = vector.shape_cast %69 : vector<1x8x8xf32> to vector<8x8xf32>
    %cst_60 = arith.constant dense<0.000000e+00> : vector<256x8xf32>
    %71 = tpu.matmul %68, %70, %cst_60 {dimension_numbers = #tpu.dot_dimension_numbers<[1], [0], [0], [1], [0, 0, 1, 1], [], []>} : vector<256x8xf32>, vector<8x8xf32>, vector<256x8xf32> -> vector<256x8xf32>
    %72 = arith.addf %64, %71 : vector<256x8xf32>
    %c31 = arith.constant 31 : index
    %c0_61 = arith.constant 0 : index
    %73 = vector.load %arg20[%c31, %c0_61] : memref<320x8xf32, #tpu.memory_space<vmem>>, vector<256x8xf32>
    %c0_62 = arith.constant 0 : index
    %c3 = arith.constant 3 : index
    %74 = vector.load %arg4[%c0_62, %c3] : memref<256x9xf32, #tpu.memory_space<vmem>>, vector<256x1xf32>
    %75 = vector.broadcast %74 : vector<256x1xf32> to vector<256x8xf32>
    %76 = arith.mulf %73, %75 : vector<256x8xf32>
    %c3_63 = arith.constant 3 : index
    %c0_64 = arith.constant 0 : index
    %c0_65 = arith.constant 0 : index
    %77 = vector.load %arg11[%c3_63, %c0_64, %c0_65] : memref<9x8x8xf32, #tpu.memory_space<vmem>>, vector<1x8x8xf32>
    %78 = vector.shape_cast %77 : vector<1x8x8xf32> to vector<8x8xf32>
    %cst_66 = arith.constant dense<0.000000e+00> : vector<256x8xf32>
    %79 = tpu.matmul %76, %78, %cst_66 {dimension_numbers = #tpu.dot_dimension_numbers<[1], [0], [0], [1], [0, 0, 1, 1], [], []>} : vector<256x8xf32>, vector<8x8xf32>, vector<256x8xf32> -> vector<256x8xf32>
    %80 = arith.addf %72, %79 : vector<256x8xf32>
    %c32_67 = arith.constant 32 : index
    %c0_68 = arith.constant 0 : index
    %81 = vector.load %arg20[%c32_67, %c0_68] : memref<320x8xf32, #tpu.memory_space<vmem>>, vector<256x8xf32>
    %c0_69 = arith.constant 0 : index
    %c4 = arith.constant 4 : index
    %82 = vector.load %arg4[%c0_69, %c4] : memref<256x9xf32, #tpu.memory_space<vmem>>, vector<256x1xf32>
    %83 = vector.broadcast %82 : vector<256x1xf32> to vector<256x8xf32>
    %84 = arith.mulf %81, %83 : vector<256x8xf32>
    %c4_70 = arith.constant 4 : index
    %c0_71 = arith.constant 0 : index
    %c0_72 = arith.constant 0 : index
    %85 = vector.load %arg11[%c4_70, %c0_71, %c0_72] : memref<9x8x8xf32, #tpu.memory_space<vmem>>, vector<1x8x8xf32>
    %86 = vector.shape_cast %85 : vector<1x8x8xf32> to vector<8x8xf32>
    %cst_73 = arith.constant dense<0.000000e+00> : vector<256x8xf32>
    %87 = tpu.matmul %84, %86, %cst_73 {dimension_numbers = #tpu.dot_dimension_numbers<[1], [0], [0], [1], [0, 0, 1, 1], [], []>} : vector<256x8xf32>, vector<8x8xf32>, vector<256x8xf32> -> vector<256x8xf32>
    %88 = arith.addf %80, %87 : vector<256x8xf32>
    %c33 = arith.constant 33 : index
    %c0_74 = arith.constant 0 : index
    %89 = vector.load %arg20[%c33, %c0_74] : memref<320x8xf32, #tpu.memory_space<vmem>>, vector<256x8xf32>
    %c0_75 = arith.constant 0 : index
    %c5 = arith.constant 5 : index
    %90 = vector.load %arg4[%c0_75, %c5] : memref<256x9xf32, #tpu.memory_space<vmem>>, vector<256x1xf32>
    %91 = vector.broadcast %90 : vector<256x1xf32> to vector<256x8xf32>
    %92 = arith.mulf %89, %91 : vector<256x8xf32>
    %c5_76 = arith.constant 5 : index
    %c0_77 = arith.constant 0 : index
    %c0_78 = arith.constant 0 : index
    %93 = vector.load %arg11[%c5_76, %c0_77, %c0_78] : memref<9x8x8xf32, #tpu.memory_space<vmem>>, vector<1x8x8xf32>
    %94 = vector.shape_cast %93 : vector<1x8x8xf32> to vector<8x8xf32>
    %cst_79 = arith.constant dense<0.000000e+00> : vector<256x8xf32>
    %95 = tpu.matmul %92, %94, %cst_79 {dimension_numbers = #tpu.dot_dimension_numbers<[1], [0], [0], [1], [0, 0, 1, 1], [], []>} : vector<256x8xf32>, vector<8x8xf32>, vector<256x8xf32> -> vector<256x8xf32>
    %96 = arith.addf %88, %95 : vector<256x8xf32>
    %c47 = arith.constant 47 : index
    %c0_80 = arith.constant 0 : index
    %97 = vector.load %arg20[%c47, %c0_80] : memref<320x8xf32, #tpu.memory_space<vmem>>, vector<256x8xf32>
    %c0_81 = arith.constant 0 : index
    %c6 = arith.constant 6 : index
    %98 = vector.load %arg4[%c0_81, %c6] : memref<256x9xf32, #tpu.memory_space<vmem>>, vector<256x1xf32>
    %99 = vector.broadcast %98 : vector<256x1xf32> to vector<256x8xf32>
    %100 = arith.mulf %97, %99 : vector<256x8xf32>
    %c6_82 = arith.constant 6 : index
    %c0_83 = arith.constant 0 : index
    %c0_84 = arith.constant 0 : index
    %101 = vector.load %arg11[%c6_82, %c0_83, %c0_84] : memref<9x8x8xf32, #tpu.memory_space<vmem>>, vector<1x8x8xf32>
    %102 = vector.shape_cast %101 : vector<1x8x8xf32> to vector<8x8xf32>
    %cst_85 = arith.constant dense<0.000000e+00> : vector<256x8xf32>
    %103 = tpu.matmul %100, %102, %cst_85 {dimension_numbers = #tpu.dot_dimension_numbers<[1], [0], [0], [1], [0, 0, 1, 1], [], []>} : vector<256x8xf32>, vector<8x8xf32>, vector<256x8xf32> -> vector<256x8xf32>
    %104 = arith.addf %96, %103 : vector<256x8xf32>
    %c48 = arith.constant 48 : index
    %c0_86 = arith.constant 0 : index
    %105 = vector.load %arg20[%c48, %c0_86] : memref<320x8xf32, #tpu.memory_space<vmem>>, vector<256x8xf32>
    %c0_87 = arith.constant 0 : index
    %c7 = arith.constant 7 : index
    %106 = vector.load %arg4[%c0_87, %c7] : memref<256x9xf32, #tpu.memory_space<vmem>>, vector<256x1xf32>
    %107 = vector.broadcast %106 : vector<256x1xf32> to vector<256x8xf32>
    %108 = arith.mulf %105, %107 : vector<256x8xf32>
    %c7_88 = arith.constant 7 : index
    %c0_89 = arith.constant 0 : index
    %c0_90 = arith.constant 0 : index
    %109 = vector.load %arg11[%c7_88, %c0_89, %c0_90] : memref<9x8x8xf32, #tpu.memory_space<vmem>>, vector<1x8x8xf32>
    %110 = vector.shape_cast %109 : vector<1x8x8xf32> to vector<8x8xf32>
    %cst_91 = arith.constant dense<0.000000e+00> : vector<256x8xf32>
    %111 = tpu.matmul %108, %110, %cst_91 {dimension_numbers = #tpu.dot_dimension_numbers<[1], [0], [0], [1], [0, 0, 1, 1], [], []>} : vector<256x8xf32>, vector<8x8xf32>, vector<256x8xf32> -> vector<256x8xf32>
    %112 = arith.addf %104, %111 : vector<256x8xf32>
    %c49 = arith.constant 49 : index
    %c0_92 = arith.constant 0 : index
    %113 = vector.load %arg20[%c49, %c0_92] : memref<320x8xf32, #tpu.memory_space<vmem>>, vector<256x8xf32>
    %c0_93 = arith.constant 0 : index
    %c8 = arith.constant 8 : index
    %114 = vector.load %arg4[%c0_93, %c8] : memref<256x9xf32, #tpu.memory_space<vmem>>, vector<256x1xf32>
    %115 = vector.broadcast %114 : vector<256x1xf32> to vector<256x8xf32>
    %116 = arith.mulf %113, %115 : vector<256x8xf32>
    %c8_94 = arith.constant 8 : index
    %c0_95 = arith.constant 0 : index
    %c0_96 = arith.constant 0 : index
    %117 = vector.load %arg11[%c8_94, %c0_95, %c0_96] : memref<9x8x8xf32, #tpu.memory_space<vmem>>, vector<1x8x8xf32>
    %118 = vector.shape_cast %117 : vector<1x8x8xf32> to vector<8x8xf32>
    %cst_97 = arith.constant dense<0.000000e+00> : vector<256x8xf32>
    %119 = tpu.matmul %116, %118, %cst_97 {dimension_numbers = #tpu.dot_dimension_numbers<[1], [0], [0], [1], [0, 0, 1, 1], [], []>} : vector<256x8xf32>, vector<8x8xf32>, vector<256x8xf32> -> vector<256x8xf32>
    %120 = arith.addf %112, %119 : vector<256x8xf32>
    %c0_98 = arith.constant 0 : index
    %c0_99 = arith.constant 0 : index
    %121 = vector.load %arg12[%c0_98, %c0_99] : memref<1x8xf32, #tpu.memory_space<vmem>>, vector<1x8xf32>
    %122 = vector.broadcast %121 : vector<1x8xf32> to vector<256x8xf32>
    %123 = arith.mulf %120, %122 : vector<256x8xf32>
    %c0_100 = arith.constant 0 : index
    %c0_101 = arith.constant 0 : index
    %124 = vector.load %arg13[%c0_100, %c0_101] : memref<1x8xf32, #tpu.memory_space<vmem>>, vector<1x8xf32>
    %125 = vector.broadcast %124 : vector<1x8xf32> to vector<256x8xf32>
    %126 = arith.addf %123, %125 : vector<256x8xf32>
    %cst_102 = arith.constant 0.000000e+00 : f32
    %127 = vector.broadcast %cst_102 : f32 to vector<256x8xf32>
    %128 = arith.maximumf %126, %127 : vector<256x8xf32>
    %c0_103 = arith.constant 0 : index
    %c0_104 = arith.constant 0 : index
    %129 = vector.load %arg14[%c0_103, %c0_104] : memref<8x32xf32, #tpu.memory_space<vmem>>, vector<8x32xf32>
    %cst_105 = arith.constant dense<0.000000e+00> : vector<256x32xf32>
    %130 = tpu.matmul %128, %129, %cst_105 {dimension_numbers = #tpu.dot_dimension_numbers<[1], [0], [0], [1], [0, 0, 1, 1], [], []>} : vector<256x8xf32>, vector<8x32xf32>, vector<256x32xf32> -> vector<256x32xf32>
    %131 = arith.mulf %130, %22 : vector<256x32xf32>
    %132 = arith.addf %131, %32 : vector<256x32xf32>
    %c0_106 = arith.constant 0 : index
    %c0_107 = arith.constant 0 : index
    %c0_108 = arith.constant 0 : index
    %133 = vector.load %arg19[%c0_106, %c0_107, %c0_108] : memref<1x256x32xf32, #tpu.memory_space<vmem>>, vector<1x256x32xf32>
    %134 = vector.shape_cast %133 : vector<1x256x32xf32> to vector<256x32xf32>
    %135 = vector.shape_cast %132 : vector<256x32xf32> to vector<1x256x32xf32>
    tpu.vector_store %arg19[%c0_106, %c0_107, %c0_108], %135 {strides = array<i32>} : memref<1x256x32xf32, #tpu.memory_space<vmem>>, vector<1x256x32xf32>,
    return
  }
  func.func @transform_0(%arg0: i32) -> (i32, i32, i32) {
    %c0_i32 = arith.constant 0 : i32
    %c0_i32_0 = arith.constant 0 : i32
    %c0_i32_1 = arith.constant 0 : i32
    return %arg0, %c0_i32, %c0_i32_0 : i32, i32, i32
  }
  func.func @transform_1(%arg0: i32) -> (i32, i32) {
    %c0_i32 = arith.constant 0 : i32
    %c0_i32_0 = arith.constant 0 : i32
    %c0_i32_1 = arith.constant 0 : i32
    return %c0_i32, %c0_i32_0 : i32, i32
  }
  func.func @transform_2(%arg0: i32) -> (i32, i32) {
    %c0_i32 = arith.constant 0 : i32
    %c0_i32_0 = arith.constant 0 : i32
    %c0_i32_1 = arith.constant 0 : i32
    return %c0_i32, %c0_i32_0 : i32, i32
  }
  func.func @transform_3(%arg0: i32) -> (i32, i32) {
    %c0_i32 = arith.constant 0 : i32
    %c0_i32_0 = arith.constant 0 : i32
    %c0_i32_1 = arith.constant 0 : i32
    return %c0_i32, %c0_i32_0 : i32, i32
  }
  func.func @transform_4(%arg0: i32) -> (i32, i32) {
    %c0_i32 = arith.constant 0 : i32
    %c0_i32_0 = arith.constant 0 : i32
    %c0_i32_1 = arith.constant 0 : i32
    return %c0_i32, %c0_i32_0 : i32, i32
  }
  func.func @transform_5(%arg0: i32) -> (i32, i32) {
    %c0_i32 = arith.constant 0 : i32
    %c0_i32_0 = arith.constant 0 : i32
    %c0_i32_1 = arith.constant 0 : i32
    return %c0_i32, %c0_i32_0 : i32, i32
  }
  func.func @transform_6(%arg0: i32) -> (i32, i32) {
    %c0_i32 = arith.constant 0 : i32
    %c0_i32_0 = arith.constant 0 : i32
    %c0_i32_1 = arith.constant 0 : i32
    return %c0_i32, %c0_i32_0 : i32, i32
  }
  func.func @transform_7(%arg0: i32) -> (i32, i32) {
    %c0_i32 = arith.constant 0 : i32
    %c0_i32_0 = arith.constant 0 : i32
    %c0_i32_1 = arith.constant 0 : i32
    return %c0_i32, %c0_i32_0 : i32, i32
  }
  func.func @transform_8(%arg0: i32) -> (i32, i32) {
    %c0_i32 = arith.constant 0 : i32
    %c0_i32_0 = arith.constant 0 : i32
    %c0_i32_1 = arith.constant 0 : i32
    return %c0_i32, %c0_i32_0 : i32, i32
  }
  func.func @transform_9(%arg0: i32) -> (i32, i32) {
    %c0_i32 = arith.constant 0 : i32
    %c0_i32_0 = arith.constant 0 : i32
    %c0_i32_1 = arith.constant 0 : i32
    return %c0_i32, %c0_i32_0 : i32, i32
  }
  func.func @transform_10(%arg0: i32) -> (i32, i32, i32) {
    %c0_i32 = arith.constant 0 : i32
    %c0_i32_0 = arith.constant 0 : i32
    %c0_i32_1 = arith.constant 0 : i32
    %c0_i32_2 = arith.constant 0 : i32
    return %c0_i32, %c0_i32_0, %c0_i32_1 : i32, i32, i32
  }
  func.func @transform_11(%arg0: i32) -> (i32, i32) {
    %c0_i32 = arith.constant 0 : i32
    %c0_i32_0 = arith.constant 0 : i32
    %c0_i32_1 = arith.constant 0 : i32
    return %c0_i32, %c0_i32_0 : i32, i32
  }
  func.func @transform_12(%arg0: i32) -> (i32, i32) {
    %c0_i32 = arith.constant 0 : i32
    %c0_i32_0 = arith.constant 0 : i32
    %c0_i32_1 = arith.constant 0 : i32
    return %c0_i32, %c0_i32_0 : i32, i32
  }
  func.func @transform_13(%arg0: i32) -> (i32, i32) {
    %c0_i32 = arith.constant 0 : i32
    %c0_i32_0 = arith.constant 0 : i32
    %c0_i32_1 = arith.constant 0 : i32
    return %c0_i32, %c0_i32_0 : i32, i32
  }
  func.func @transform_14(%arg0: i32) -> (i32, i32) {
    %c0_i32 = arith.constant 0 : i32
    %c0_i32_0 = arith.constant 0 : i32
    %c0_i32_1 = arith.constant 0 : i32
    return %c0_i32, %c0_i32_0 : i32, i32
  }
  func.func @transform_15(%arg0: i32) -> (i32, i32) {
    %c0_i32 = arith.constant 0 : i32
    %c0_i32_0 = arith.constant 0 : i32
    %c0_i32_1 = arith.constant 0 : i32
    return %c0_i32, %c0_i32_0 : i32, i32
  }
  func.func @transform_16(%arg0: i32) -> (i32, i32) {
    %c0_i32 = arith.constant 0 : i32
    %c0_i32_0 = arith.constant 0 : i32
    %c0_i32_1 = arith.constant 0 : i32
    return %c0_i32, %c0_i32_0 : i32, i32
  }
  func.func @transform_17(%arg0: i32) -> (i32, i32) {
    %c0_i32 = arith.constant 0 : i32
    %c0_i32_0 = arith.constant 0 : i32
    %c0_i32_1 = arith.constant 0 : i32
    return %c0_i32, %c0_i32_0 : i32, i32
  }
  func.func @transform_18(%arg0: i32) -> (i32, i32, i32) {
    %c0_i32 = arith.constant 0 : i32
    %c0_i32_0 = arith.constant 0 : i32
    %c0_i32_1 = arith.constant 0 : i32
    return %arg0, %c0_i32, %c0_i32_0 : i32, i32, i32
  }
}

</mosaic_0001>

<bundles_post_ra>
// kernel: tpu_custom_call.1
= control target key start
LH: loop header
LB: loop body
LE: loop exit
PB: predicated region body
PF: predicated region fallthrough
CT: control target
= control target key end

     0   :  { %s6707_s27 = smov 0   ;;  %s10324_s0 = inlined_call_operand.vmem [shape: f32[2,256,16], index: 0, kind: input, shape index: {}]   ;;  %s10325_s1 = inlined_call_operand.vmem [shape: f32[16,256], index: 1, kind: input, shape index: {}]   ;;  %s10326_s2 = inlined_call_operand.vmem [shape: f32[256,16], index: 2, kind: input, shape index: {}]   ;;  %s10327_s3 = inlined_call_operand.vmem [shape: f32[256,9], index: 3, kind: input, shape index: {}]   ;;  %s10328_s4 = inlined_call_operand.vmem [shape: f32[1,16], index: 4, kind: input, shape index: {}]   ;;  %s10329_s5 = inlined_call_operand.vmem [shape: f32[1,16], index: 5, kind: input, shape index: {}]   ;;  %s10330_s6 = inlined_call_operand.vmem [shape: f32[16,32], index: 6, kind: input, shape index: {}]   ;;  %s10331_s7 = inlined_call_operand.vmem [shape: f32[16,8], index: 7, kind: input, shape index: {}]   ;;  %s10332_s8 = inlined_call_operand.vmem [shape: f32[1,8], index: 8, kind: input, shape index: {}]   ;;  %s10333_s9 = inlined_call_operand.vmem [shape: f32[1,8], index: 9, kind: input, shape index: {}]   ;;  %s10334_s10 = inlined_call_operand.vmem [shape: f32[9,8,8], index: 10, kind: input, shape index: {}]   ;;  %s10335_s11 = inlined_call_operand.vmem [shape: f32[1,8], index: 11, kind: input, shape index: {}]   ;;  %s10336_s12 = inlined_call_operand.vmem [shape: f32[1,8], index: 12, kind: input, shape index: {}]   ;;  %s10337_s13 = inlined_call_operand.vmem [shape: f32[8,32], index: 13, kind: input, shape index: {}]   ;;  %s10338_s14 = inlined_call_operand.vmem [shape: f32[16,2], index: 14, kind: input, shape index: {}]   ;;  %s10339_s15 = inlined_call_operand.vmem [shape: f32[1,2], index: 15, kind: input, shape index: {}]   ;;  %s10340_s16 = inlined_call_operand.vmem [shape: f32[1,2], index: 16, kind: input, shape index: {}]   ;;  %s10341_s17 = inlined_call_operand.vmem [shape: f32[2,32], index: 17, kind: input, shape index: {}]   ;;  %s10342_s18 = inlined_call_operand.vmem [shape: f32[2,256,32], index: 18, kind: output, shape index: {}]  }
   0x1   :  { %10368 = sst [smem:[#allocation245_spill]] %s10324_s0 }
   0x2   :  { %10369 = sst [smem:[#allocation246_spill]] %s10325_s1 }
   0x3   :  { %10370 = sst [smem:[#allocation247_spill]] %s10326_s2 }
   0x4 LB: > { %s5973_s28 = sadd.s32 4294967295, %s6600_s27   ;;  %p5977_p0 = scmp.ge.s32.totalorder %s6600_s27, 1  ;;  %s6600_s27 = sphi %s6707_s27, %s28_s27  }
   0x5   : > { %p512_p1 = scmp.lt.s32.totalorder %s6600_s27, 3 }
   0x7   : > { %p513_p2 = pnand %p5977_p0, %p512_p1 }
   0x9   : > { %516 = sbr.rel (%p513_p2) target bundleno = 1777 (0x6f1), region = 92 }
   0xe   : > { %p566_p3 = scmp.lt.s32.totalorder %s5973_s28, 1  ;;  %s10371_s19 = sld [smem:[#allocation245_spill]]  ;;  %v6728_v0 = vld [vmem:[%s10328_s4] ss:$0 sm:$0xff]  ;;  %v6814_v40 = vld [vmem:[%s10327_s3 + $0x10] sm:$0xff]  ;;  %v6602_v48 = vmov 0  }
   0xf   : > { %v6733_v1 = vld [vmem:[%s10329_s5] ss:$0 sm:$0xff]  ;;  %6440 = vset.pattern.permute.xlu1 %v6602_v48  ;;  %6441 = vset.pattern.permute.xlu2 %v6602_v48  ;;  %s10383_s21 = sld [smem:[#allocation246_spill]]  ;;  %vm660_vm0 = vcmask 130048   ;;  %vm1552_vm1 = vcmask 64512   ;;  %vm712_vm2 = vcmask 1041408  }
  0x10   : > { %s11178_s28 = smov (!%p566_p3, %s5973_s28), 1  ;;  %1669 = vperm.xlu1 %6440, %v6814_v40   ;;  %6439 = vset.pattern.permute.xlu0 %v6602_v48  ;;  %vm705_vm3 = vcmask 15360   ;;  %s10501_s30 = sld [smem:[#allocation247_spill]]  ;;  %vm5885_vm12 = vcmask 261120  }
  0x11   : > { %s6415_s29 = sshll.u32 %s11178_s28, 8 }
  0x12   : > { %s10097_s20 = scalar_lea.vmem %s10342_s18, %s6415_s29 }
  0x14   : > { %s6723_s1 = scalar_lea.vmem %s10371_s19, %s6415_s29 }
  0x15   : > { %v591_v2 = vld [vmem:[%s6723_s1 + $0x78] sm:$0xff]  ;;  %v590_v3 = vld [vmem:[%s6723_s1 + $0x70] sm:$0xff]  ;;  %v589_v4 = vld [vmem:[%s6723_s1 + $0x68] sm:$0xff] }
  0x16   : > { %612 = vmatpush.msra.mxu1 %v591_v2  ;;  %v1037_v5 = vmul.f32 %v6728_v0, %v591_v2  ;;  %v1036_v6 = vmul.f32 %v6728_v0, %v590_v3  ;;  %v1035_v7 = vmul.f32 %v6728_v0, %v589_v4  ;;  %v588_v8 = vld [vmem:[%s6723_s1 + $0x60] sm:$0xff]  ;;  %v587_v9 = vld [vmem:[%s6723_s1 + $0x58] sm:$0xff]  ;;  %v586_v10 = vld [vmem:[%s6723_s1 + $0x50] sm:$0xff] }
  0x17   : > { %v1034_v11 = vmul.f32 %v6728_v0, %v588_v8  ;;  %v1033_v12 = vmul.f32 %v6728_v0, %v587_v9  ;;  %v1032_v13 = vmul.f32 %v6728_v0, %v586_v10  ;;  %v585_v14 = vld [vmem:[%s6723_s1 + $0x48] sm:$0xff]  ;;  %v584_v19 = vld [vmem:[%s6723_s1 + $0x40] sm:$0xff]  ;;  %v6776_v26 = vld [vmem:[%s6723_s1 + $0xf8] sm:$0xff] }
  0x18   : > { %v6749_v15 = vadd.f32 %v6733_v1, %v1037_v5  ;;  %613 = vmatpush.msra.mxu1 %v590_v3  ;;  %v6752_v16 = vadd.f32 %v6733_v1, %v1036_v6  ;;  %v6755_v17 = vadd.f32 %v6733_v1, %v1035_v7  ;;  %v1031_v18 = vmul.f32 %v6728_v0, %v585_v14  ;;  %v6779_v27 = vld [vmem:[%s6723_s1 + $0xf0] sm:$0xff]  ;;  %v6782_v28 = vld [vmem:[%s6723_s1 + $0xe8] sm:$0xff]  ;;  %v6789_v31 = vld [vmem:[%s6723_s1 + $0xe0] sm:$0xff] }
  0x19   : > { %v6760_v20 = vadd.f32 %v6733_v1, %v1034_v11  ;;  %v6763_v21 = vadd.f32 %v6733_v1, %v1033_v12  ;;  %v6766_v22 = vadd.f32 %v6733_v1, %v1032_v13  ;;  %v1030_v23 = vmul.f32 %v6728_v0, %v584_v19  ;;  %v6792_v32 = vld [vmem:[%s6723_s1 + $0xd8] sm:$0xff]  ;;  %v6795_v33 = vld [vmem:[%s6723_s1 + $0xd0] sm:$0xff]  ;;  %v6829_v45 = vld [vmem:[%s6723_s1 + $0xc8] sm:$0xff] }
  0x1a   : > { %614 = vmatpush.msra.mxu1 %v589_v4  ;;  %v6770_v24 = vadd.f32 %v6733_v1, %v1031_v18  ;;  %v1053_v29 = vmul.f32 %v6728_v0, %v6776_v26  ;;  %v1052_v30 = vmul.f32 %v6728_v0, %v6779_v27  ;;  %v1051_v34 = vmul.f32 %v6728_v0, %v6782_v28  ;;  %v6832_v46 = vld [vmem:[%s6723_s1 + $0xc0] sm:$0xff]  ;;  %v583_v47 = vld [vmem:[%s6723_s1 + $0x38] sm:$0xff]  ;;  %v582_v52 = vld [vmem:[%s6723_s1 + $0x30] sm:$0xff] }
  0x1b   : > { %v6773_v25 = vadd.f32 %v6733_v1, %v1030_v23  ;;  %v1050_v35 = vmul.f32 %v6728_v0, %v6789_v31  ;;  %v1049_v36 = vmul.f32 %v6728_v0, %v6792_v32  ;;  %v1048_v37 = vmul.f32 %v6728_v0, %v6795_v33  ;;  %v6841_v51 = vld [vmem:[%s6723_s1 + $0xb8] sm:$0xff]  ;;  %v598_v56 = vld [vmem:[%s6723_s1 + $0xb0] sm:$0xff]  ;;  %v581_v57 = vld [vmem:[%s6723_s1 + $0x28] sm:$0xff] }
  0x1c   : > { %615 = vmatpush.msra.mxu1 %v588_v8  ;;  %v6806_v38 = vadd.f32 %v6733_v1, %v1053_v29  ;;  %v6809_v39 = vadd.f32 %v6733_v1, %v1052_v30  ;;  %v6817_v41 = vadd.f32 %v6733_v1, %v1051_v34  ;;  %v1047_v49 = vmul.f32 %v6728_v0, %v6829_v45  ;;  %v597_v60 = vld [vmem:[%s6723_s1 + $0xa8] sm:$0xff]  ;;  %v580_v61 = vld [vmem:[%s6723_s1 + $0x20] sm:$0xff]  ;;  %v6867_v2 = vld [vmem:[%s10327_s3 + $0x18] sm:$0xff] }
  0x1d   : > { %v6820_v42 = vadd.f32 %v6733_v1, %v1050_v35  ;;  %v6823_v43 = vadd.f32 %v6733_v1, %v1049_v36  ;;  %v6826_v44 = vadd.f32 %v6733_v1, %v1048_v37  ;;  %v1046_v50 = vmul.f32 %v6728_v0, %v6832_v46  ;;  %v596_v3 = vld [vmem:[%s6723_s1 + $0xa0] sm:$0xff]  ;;  %v579_v4 = vld [vmem:[%s6723_s1 + $0x18] sm:$0xff]  ;;  %1674 = vperm.xlu1 %6440, %v6867_v2   ;;  %v578_v8 = vld [vmem:[%s6723_s1 + $0x10] sm:$0xff] }
  0x1e   : > { %616 = vmatpush.msra.mxu1 %v587_v9  ;;  %10372 = vst [vmem:[#allocation3_spill] sm:$0xff] %v6806_v38  ;;  %v6845_v53 = vadd.f32 %v6733_v1, %v1047_v49  ;;  %v1045_v55 = vmul.f32 %v6728_v0, %v6841_v51  ;;  %v1044_v59 = vmul.f32 %v6728_v0, %v598_v56  ;;  %v595_v7 = vld [vmem:[%s6723_s1 + $0x98] sm:$0xff]  ;;  %v594_v11 = vld [vmem:[%s6723_s1 + $0x90] sm:$0xff]  ;;  %v577_v12 = vld [vmem:[%s6723_s1 + $0x8] sm:$0xff] }
  0x1f   : > { %10373 = vst [vmem:[#allocation4_spill] sm:$0xff] %v6809_v39  ;;  %v6848_v54 = vadd.f32 %v6733_v1, %v1046_v50  ;;  %v1043_v63 = vmul.f32 %v6728_v0, %v597_v60  ;;  %v1042_v6 = vmul.f32 %v6728_v0, %v596_v3  ;;  %v593_v18 = vld [vmem:[%s6723_s1 + $0x88] sm:$0xff]  ;;  %v6897_v30 = vld [vmem:[%s10327_s3 + $0x38] sm:$0xff]  ;;  %v592_v34 = vld [vmem:[%s6723_s1 + $0x80] sm:$0xff] }
  0x20   : > { %617 = vmatpush.msra.mxu1 %v586_v10  ;;  %10374 = vst [vmem:[#allocation5_spill] sm:$0xff] %v6817_v41  ;;  %v6855_v58 = vadd.f32 %v6733_v1, %v1045_v55  ;;  %v6861_v62 = vadd.f32 %v6733_v1, %v1044_v59  ;;  %v1041_v10 = vmul.f32 %v6728_v0, %v595_v7  ;;  %v608_v35 = vld [vmem:[%s10383_s21] sm:$0xff]  ;;  %v611_v49 = vld [vmem:[%s10383_s21 + $0x18] sm:$0xff]  ;;  %v6986_v50 = vld [vmem:[%s10327_s3 + $0xb0] sm:$0xff] }
  0x21   : > { %10375 = vst [vmem:[#allocation6_spill] sm:$0xff] %v6820_v42  ;;  %v6872_v5 = vadd.f32 %v6733_v1, %v1043_v63  ;;  %v6879_v9 = vadd.f32 %v6733_v1, %v1042_v6  ;;  %v1039_v29 = vmul.f32 %v6728_v0, %v593_v18  ;;  %v1038_v37 = vmul.f32 %v6728_v0, %v592_v34  ;;  %v7004_v55 = vld [vmem:[%s10327_s3 + $0xc8] sm:$0xff]  ;;  %v7022_v59 = vld [vmem:[%s10327_s3 + $0xe0] sm:$0xff]  ;;  %v7040_v63 = vld [vmem:[%s10327_s3 + $0xf8] sm:$0xff] }
  0x22   : > { %618 = vmatpush.msra.mxu1 %v585_v14  ;;  %10376 = vst [vmem:[#allocation7_spill] sm:$0xff] %v6823_v43  ;;  %v6885_v13 = vadd.f32 %v6733_v1, %v1041_v10  ;;  %v1040_v14 = vmul.f32 %v6728_v0, %v594_v11  ;;  %v6923_v0 = vld [vmem:[%s10327_s3 + $0x50] sm:$0xff]  ;;  %v7058_v6 = vld [vmem:[%s10327_s3 + $0xe8] sm:$0xff]  ;;  %v7079_v10 = vld [vmem:[%s10327_s3 + $0x78] sm:$0xff] }
  0x23   : > { %10377 = vst [vmem:[#allocation8_spill] sm:$0xff] %v6826_v44  ;;  %v6904_v36 = vadd.f32 %v6733_v1, %v1039_v29  ;;  %v6915_v48 = vadd.f32 %v6733_v1, %v1038_v37  ;;  %v7137_v38 = vld [vmem:[%s10327_s3 + $0xd8] sm:$0xff] }
  0x24   : > { %619 = vmatpush.msra.mxu1 %v584_v19  ;;  %10378 = vst [vmem:[#allocation9_spill] sm:$0xff] %v6845_v53  ;;  %v576_v19 = vld [vmem:[%s6723_s1] sm:$0xff]  ;;  %v6891_v23 = vadd.f32 %v6733_v1, %v1040_v14  ;;  %v6933_v1 = vld [vmem:[%s10327_s3 + $0x28] sm:$0xff]  ;;  %v10395_v53 = vmov 1  }
  0x25   : > { %10379 = vst [vmem:[#allocation10_spill] sm:$0xff] %v6848_v54  ;;  %1694 = vperm.xlu1 %6440, %v6897_v30   ;;  %v659_v14 = vld [vmem:[%s10338_s14 + $0x8] sm:$0xff] }
  0x26   : > { %620 = vmatpush.msra.mxu1 %v583_v47  ;;  %10380 = vst [vmem:[#allocation11_spill] sm:$0xff] %v6855_v58  ;;  %v6911_v47 = vld [vmem:[%s10327_s3 + $0x20] sm:$0xff]  ;;  %681 = vmatpush.msra.mxu2 %v659_v14 }
  0x27   : > { %10381 = vst [vmem:[#allocation12_spill] sm:$0xff] %v6861_v62  ;;  %1679 = vperm.xlu2 %6441, %v6911_v47  }
  0x28   : > { %621 = vmatpush.msra.mxu1 %v582_v52  ;;  %10382 = vst [vmem:[#allocation13_spill] sm:$0xff] %v6872_v5  ;;  %v6998_v52 = vld [vmem:[%s10327_s3] sm:$0xff] }
  0x29   : > { %1659 = vperm.xlu0 %6439, %v6998_v52  }
  0x2a   : > { %622 = vmatpush.msra.mxu1 %v581_v57  ;;  %v7016_v57 = vld [vmem:[%s10327_s3 + $0x8] sm:$0xff] }
  0x2c   : > { %623 = vmatpush.msra.mxu1 %v580_v61  ;;  %v7034_v61 = vld [vmem:[%s10327_s3 + $0x30] sm:$0xff] }
  0x2d   : > { %1709 = vperm.xlu1 %6440, %v6923_v0  }
  0x2e   : > { %624 = vmatpush.msra.mxu1 %v579_v4  ;;  %v7052_v4 = vld [vmem:[%s10327_s3 + $0x48] sm:$0xff] }
  0x2f   : > { %1684 = vperm.xlu2 %6441, %v6933_v1  }
  0x30   : > { %625 = vmatpush.msra.mxu1 %v578_v8  ;;  %v7071_v8 = vld [vmem:[%s10327_s3 + $0x60] sm:$0xff] }
  0x31   : > { %1664 = vperm.xlu0 %6439, %v7016_v57  }
  0x32   : > { %626 = vmatpush.msra.mxu1 %v577_v12 }
  0x34   : > { %627 = vmatpush.msra.mxu1 %v576_v19  ;;  %v658_v19 = vld [vmem:[%s10338_s14] sm:$0xff] }
  0x35   : > { %628 = vmatmul.f32.vlgmr.msra.gmra.mxu1 %v608_v35  ;;  %682 = vmatpush.msra.mxu2 %v658_v19  ;;  %v7113_v35 = vld [vmem:[%s10327_s3 + $0xa8] sm:$0xff] }
  0x36   : > { %635 = vmatpush.msrb.mxu1 %v6776_v26  ;;  %v610_v26 = vld [vmem:[%s10383_s21 + $0x10] sm:$0xff] }
  0x38   : > { %636 = vmatpush.msrb.mxu1 %v6779_v27  ;;  %v6942_v27 = vld [vmem:[%s10327_s3 + $0x68] sm:$0xff] }
  0x39   : > { %1724 = vperm.xlu1 %6440, %v6942_v27   ;;  %1689 = vperm.xlu0 %6439, %v7034_v61  }
  0x3a   : > { %637 = vmatpush.msrb.mxu1 %v6782_v28  ;;  %v6947_v28 = vld [vmem:[%s10327_s3 + $0x40] sm:$0xff] }
  0x3b   : > { %1699 = vperm.xlu2 %6441, %v6947_v28  }
  0x3c   : > { %638 = vmatpush.msrb.mxu1 %v6789_v31  ;;  %v6956_v31 = vld [vmem:[%s10327_s3 + $0x80] sm:$0xff] }
  0x3d   : > { %631 = vmatmul.f32.gmra.mxu1 %v610_v26 }
  0x3e   : > { %639 = vmatpush.msrb.mxu1 %v6792_v32  ;;  %v6961_v32 = vld [vmem:[%s10327_s3 + $0x58] sm:$0xff] }
  0x40   : > { %640 = vmatpush.msrb.mxu1 %v6795_v33  ;;  %v609_v33 = vld [vmem:[%s10383_s21 + $0x8] sm:$0xff] }
  0x41   : > { %1739 = vperm.xlu1 %6440, %v6956_v31   ;;  %1704 = vperm.xlu0 %6439, %v7052_v4  }
  0x42   : > { %641 = vmatpush.msrb.mxu1 %v6829_v45  ;;  %v6971_v45 = vld [vmem:[%s10327_s3 + $0x98] sm:$0xff] }
  0x43   : > { %1714 = vperm.xlu2 %6441, %v6961_v32  }
  0x44   : > { %642 = vmatpush.msrb.mxu1 %v6832_v46  ;;  %v6976_v46 = vld [vmem:[%s10327_s3 + $0x70] sm:$0xff] }
  0x46   : > { %643 = vmatpush.msrb.mxu1 %v6841_v51  ;;  %v6991_v51 = vld [vmem:[%s10327_s3 + $0x88] sm:$0xff] }
  0x48   : > { %644 = vmatpush.msrb.mxu1 %v598_v56  ;;  %v7009_v56 = vld [vmem:[%s10327_s3 + $0xa0] sm:$0xff] }
  0x49   : > { %1754 = vperm.xlu1 %6440, %v6971_v45   ;;  %1719 = vperm.xlu0 %6439, %v7071_v8  }
  0x4a   : > { %645 = vmatpush.msrb.mxu1 %v597_v60  ;;  %v7027_v60 = vld [vmem:[%s10327_s3 + $0xb8] sm:$0xff] }
  0x4b   : > { %1729 = vperm.xlu2 %6441, %v6976_v46  }
  0x4c   : > { %646 = vmatpush.msrb.mxu1 %v596_v3  ;;  %v7045_v3 = vld [vmem:[%s10327_s3 + $0xd0] sm:$0xff] }
  0x4e   : > { %647 = vmatpush.msrb.mxu1 %v595_v7  ;;  %v10345_v7 = vmov 1  }
  0x50   : > { %648 = vmatpush.msrb.mxu1 %v594_v11 }
  0x51   : > { %1769 = vperm.xlu1 %6440, %v6986_v50   ;;  %1734 = vperm.xlu0 %6439, %v7079_v10  }
  0x52   : > { %649 = vmatpush.msrb.mxu1 %v593_v18  ;;  %v7098_v18 = vld [vmem:[%s10327_s3 + $0x90] sm:$0xff] }
  0x53   : > { %1744 = vperm.xlu2 %6441, %v6991_v51  }
  0x54   : > { %650 = vmatpush.msrb.mxu1 %v592_v34 }
  0x55   : > { %651 = vmatmul.f32.vlgmr.msrb.gmra.mxu1 %v609_v33 }
  0x59   : > { %1784 = vperm.xlu1 %6440, %v7004_v55   ;;  %1749 = vperm.xlu0 %6439, %v7098_v18  }
  0x5b   : > { %1759 = vperm.xlu2 %6441, %v7009_v56  }
  0x5d   : > { %654 = vmatmul.f32.gmra.mxu1 %v611_v49  ;;  %v7125_v49 = vld [vmem:[%s10327_s3 + $0xc0] sm:$0xff] }
  0x61   : > { %1799 = vperm.xlu1 %6440, %v7022_v59   ;;  %1764 = vperm.xlu0 %6439, %v7113_v35  }
  0x63   : > { %1774 = vperm.xlu2 %6441, %v7027_v60  }
  0x69   : > { %1814 = vperm.xlu1 %6440, %v7040_v63   ;;  %1779 = vperm.xlu0 %6439, %v7125_v49  }
  0x6b   : > { %1789 = vperm.xlu2 %6441, %v7045_v3  }
  0x71   : > { %6444 = vset.pattern.permute.xlu1 %v10345_v7  ;;  %1794 = vperm.xlu0 %6439, %v7137_v38  }
  0x72   : > { %1891 = vperm.xlu1 %6444, %v6814_v40  }
  0x73   : > { %1804 = vperm.xlu2 %6441, %v7058_v6  }
  0x7a   : > { %1899 = vperm.xlu1 %6444, %v6911_v47  }
  0x7b   : > { %6442 = vset.pattern.permute.xlu2 %v10345_v7 }
  0x7c   : > { %1883 = vperm.xlu2 %6442, %v6998_v52  }
  0x81   : > { %v7086_v11 = vpop.permute.xlu2 %1679 }
  0x82   : > { %1911 = vperm.xlu1 %6444, %v6897_v30   ;;  %10384 = vst [vmem:[#allocation14_spill] sm:$0xff] %v7086_v11  ;;  %v7088_v12 = vpop.permute.xlu1 %1669 }
  0x84   : > { %1895 = vperm.xlu2 %6442, %v6867_v2  }
  0x89   : > { %v7104_v29 = vpop.permute.xlu2 %1684 }
  0x8a   : > { %1923 = vperm.xlu1 %6444, %v6923_v0   ;;  %10385 = vst [vmem:[#allocation15_spill] sm:$0xff] %v7104_v29  ;;  %v10347_v29 = vmov 3  }
  0x8c   : > { %1903 = vperm.xlu2 %6442, %v6933_v1  }
  0x8f   : > { %v7106_v34 = vpop.permute.xlu1 %1674 }
  0x90   : > { %10386 = vst [vmem:[#allocation16_spill] sm:$0xff] %v7106_v34 }
  0x92   : > { %1935 = vperm.xlu1 %6444, %v6942_v27  }
  0x94   : > { %1915 = vperm.xlu2 %6442, %v6947_v28  }
  0x95   : > { %v7116_v37 = vpop.permute.xlu2 %1699 }
  0x96   : > { %10387 = vst [vmem:[#allocation17_spill] sm:$0xff] %v7116_v37 }
  0x97   : > { %v7118_v26 = vpop.permute.xlu1 %1694 }
  0x98   : > { %10388 = vst [vmem:[#allocation18_spill] sm:$0xff] %v7118_v26 }
  0x9a   : > { %1947 = vperm.xlu1 %6444, %v6956_v31  }
  0x9c   : > { %1927 = vperm.xlu2 %6442, %v6961_v32  }
  0x9d   : > { %v7128_v14 = vpop.permute.xlu2 %1714 }
  0x9e   : > { %10389 = vst [vmem:[#allocation19_spill] sm:$0xff] %v7128_v14  ;;  %v7149_v14 = vld [vmem:[%s10327_s3 + $0xf0] sm:$0xff] }
  0x9f   : > { %v7130_v19 = vpop.permute.xlu1 %1709  ;;  %1809 = vperm.xlu0 %6439, %v7149_v14  }
  0xa0   : > { %10390 = vst [vmem:[#allocation20_spill] sm:$0xff] %v7130_v19 }
  0xa2   : > { %1959 = vperm.xlu1 %6444, %v6971_v45  }
  0xa4   : > { %1939 = vperm.xlu2 %6442, %v6976_v46  }
  0xa5   : > { %v7140_v39 = vpop.permute.xlu2 %1729 }
  0xa6   : > { %10391 = vst [vmem:[#allocation21_spill] sm:$0xff] %v7140_v39  ;;  %v10346_v39 = vmov 2  }
  0xa7   : > { %6443 = vset.pattern.permute.xlu0 %v10395_v53 }
  0xa8   : > { %1887 = vperm.xlu0 %6443, %v7016_v57  }
  0xaa   : > { %1971 = vperm.xlu1 %6444, %v6986_v50  }
  0xab   : > { %v7142_v41 = vpop.permute.xlu1 %1724 }
  0xac   : > { %1951 = vperm.xlu2 %6442, %v6991_v51   ;;  %10392 = vst [vmem:[#allocation22_spill] sm:$0xff] %v7142_v41 }
  0xad   : > { %v7152_v43 = vpop.permute.xlu2 %1744 }
  0xae   : > { %10393 = vst [vmem:[#allocation23_spill] sm:$0xff] %v7152_v43 }
  0xb0   : > { %1907 = vperm.xlu0 %6443, %v7034_v61  }
  0xb2   : > { %v629_v33 = vpop.f32.mrf.mxu1  ;;  %1983 = vperm.xlu1 %6444, %v7004_v55  }
  0xb3   : > { %v7154_v44 = vpop.permute.xlu1 %1739 }
  0xb4   : > { %1963 = vperm.xlu2 %6442, %v7009_v56   ;;  %10394 = vst [vmem:[#allocation24_spill] sm:$0xff] %v7154_v44 }
  0xb8   : > { %1919 = vperm.xlu0 %6443, %v7052_v4  }
  0xba   : > { %1995 = vperm.xlu1 %6444, %v7022_v59   ;;  %v632_v7 = vpop.f32.mrf.mxu1 }
  0xbc   : > { %1975 = vperm.xlu2 %6442, %v7027_v60  }
  0xc0   : > { %1931 = vperm.xlu0 %6443, %v7071_v8  }
  0xc2   : > { %2007 = vperm.xlu1 %6444, %v7040_v63  }
  0xc4   : > { %1987 = vperm.xlu2 %6442, %v7045_v3  }
  0xc8   : > { %1943 = vperm.xlu0 %6443, %v7079_v10  }
  0xca   : > { %6447 = vset.pattern.permute.xlu1 %v10346_v39 }
  0xcb   : > { %2503 = vperm.xlu1 %6447, %v6814_v40  }
  0xcc   : > { %1999 = vperm.xlu2 %6442, %v7058_v6  }
  0xd0   : > { %1955 = vperm.xlu0 %6443, %v7098_v18  }
  0xd2   : > { %v652_v42 = vpop.f32.mrf.mxu1 }
  0xd3   : > { %v653_v19 = vadd.f32 %v652_v42, %v629_v33  ;;  %v7161_v42 = vpop.permute.xlu2 %1759  ;;  %v7163_v33 = vpop.permute.xlu1 %1754  ;;  %2511 = vperm.xlu1 %6447, %v6911_v47  }
  0xd4   : > { %10396 = vst [vmem:[#allocation25_spill] sm:$0xff] %v7161_v42  ;;  %6445 = vset.pattern.permute.xlu2 %v10346_v39  ;;  %v7188_v39 = vpop.permute.xlu0 %1659 }
  0xd5   : > { %5982 = vmatmul.msk.f32.vlgmr.msra.gmra.mxu2 %vm660_vm0, %v653_v19  ;;  %10397 = vst [vmem:[#allocation26_spill] sm:$0xff] %v7163_v33  ;;  %2495 = vperm.xlu2 %6445, %v6998_v52   ;;  %v6605_v19 = vmov 0.0  }
  0xd6   : > { %1555 = vst.msk [vmem:[#allocation2 + $0x10] sm:$0xff] %vm1552_vm1, %v6605_v19 }
  0xd7   : > { %1554 = vst.msk [vmem:[#allocation2 + $0x8] sm:$0xff] %vm1552_vm1, %v6605_v19 }
  0xd8   : > { %1556 = vst.msk [vmem:[#allocation2 + $0x18] sm:$0xff] %vm1552_vm1, %v6605_v19  ;;  %1967 = vperm.xlu0 %6443, %v7113_v35  }
  0xd9   : > { %1557 = vst.msk [vmem:[#allocation2 + $0x120] sm:$0xff] %vm1552_vm1, %v6605_v19 }
  0xda   : > { %v655_v41 = vpop.f32.mrf.mxu1  ;;  %1558 = vst.msk [vmem:[#allocation2 + $0x128] sm:$0xff] %vm1552_vm1, %v6605_v19 }
  0xdb   : > { %v656_v37 = vadd.f32 %v655_v41, %v632_v7  ;;  %v7171_v41 = vpop.permute.xlu2 %1774  ;;  %v7173_v53 = vpop.permute.xlu1 %1769  ;;  %2523 = vperm.xlu1 %6447, %v6897_v30   ;;  %1559 = vst.msk [vmem:[#allocation2 + $0x130] sm:$0xff] %vm1552_vm1, %v6605_v19 }
  0xdc   : > { %10398 = vst [vmem:[#allocation27_spill] sm:$0xff] %v7171_v41  ;;  %v7197_v19 = vpop.permute.xlu0 %1664 }
  0xdd   : > { %5983 = vmatmul.msk.f32.gmra.mxu2 %vm660_vm0, %v656_v37  ;;  %10399 = vst [vmem:[#allocation28_spill] sm:$0xff] %v7173_v53  ;;  %2507 = vperm.xlu2 %6445, %v6867_v2  }
  0xe0   : > { %1979 = vperm.xlu0 %6443, %v7125_v49  }
  0xe3   : > { %v7183_v7 = vpop.permute.xlu2 %1789  ;;  %v7185_v37 = vpop.permute.xlu1 %1784  ;;  %2535 = vperm.xlu1 %6447, %v6923_v0  }
  0xe4   : > { %10400 = vst [vmem:[#allocation29_spill] sm:$0xff] %v7183_v7 }
  0xe5   : > { %10401 = vst [vmem:[#allocation30_spill] sm:$0xff] %v7185_v37  ;;  %2515 = vperm.xlu2 %6445, %v6933_v1  }
  0xe8   : > { %1991 = vperm.xlu0 %6443, %v7137_v38  }
  0xeb   : > { %v7192_v41 = vpop.permute.xlu2 %1804  ;;  %v7194_v53 = vpop.permute.xlu1 %1799  ;;  %2547 = vperm.xlu1 %6447, %v6942_v27  }
  0xec   : > { %10402 = vst [vmem:[#allocation31_spill] sm:$0xff] %v7192_v41  ;;  %v7208_v41 = vpop.permute.xlu0 %1689 }
  0xed   : > { %10403 = vst [vmem:[#allocation32_spill] sm:$0xff] %v7194_v53  ;;  %2527 = vperm.xlu2 %6445, %v6947_v28  }
  0xee   : > { %10405 = vst [vmem:[#allocation34_spill] sm:$0xff] %v7208_v41 }
  0xf0   : > { %2003 = vperm.xlu0 %6443, %v7149_v14  }
  0xf3   : > { %v7201_v7 = vpop.permute.xlu1 %1814  ;;  %v7203_v37 = vpop.permute.xlu2 %1883  ;;  %2559 = vperm.xlu1 %6447, %v6956_v31  }
  0xf4   : > { %10404 = vst [vmem:[#allocation33_spill] sm:$0xff] %v7201_v7  ;;  %v7217_v7 = vpop.permute.xlu0 %1704 }
  0xf5   : > { %2539 = vperm.xlu2 %6445, %v6961_v32   ;;  %10406 = vst [vmem:[#allocation35_spill] sm:$0xff] %v7217_v7 }
  0xfb   : > { %v7210_v53 = vpop.permute.xlu1 %1891  ;;  %v7212_v42 = vpop.permute.xlu2 %1895  ;;  %2571 = vperm.xlu1 %6447, %v6971_v45  }
  0xfc   : > { %v7231_v54 = vpop.permute.xlu0 %1719 }
  0xfd   : > { %2551 = vperm.xlu2 %6445, %v6976_v46   ;;  %10411 = vst [vmem:[#allocation40_spill] sm:$0xff] %v7231_v54 }
 0x103   : > { %v7219_v33 = vpop.permute.xlu1 %1899  ;;  %v7221_v43 = vpop.permute.xlu2 %1903  ;;  %2583 = vperm.xlu1 %6447, %v6986_v50  }
 0x104   : > { %10407 = vst [vmem:[#allocation36_spill] sm:$0xff] %v7219_v33  ;;  %v7240_v58 = vpop.permute.xlu0 %1734 }
 0x105   : > { %10408 = vst [vmem:[#allocation37_spill] sm:$0xff] %v7221_v43  ;;  %2563 = vperm.xlu2 %6445, %v6991_v51  }
 0x106   : > { %10414 = vst [vmem:[#allocation43_spill] sm:$0xff] %v7240_v58  ;;  %v10420_v58 = vmov 2  }
 0x107   : > { %6446 = vset.pattern.permute.xlu0 %v10420_v58 }
 0x108   : > { %2499 = vperm.xlu0 %6446, %v7016_v57  }
 0x10b   : > { %v7226_v44 = vpop.permute.xlu1 %1911  ;;  %v7228_v26 = vpop.permute.xlu2 %1915  ;;  %2595 = vperm.xlu1 %6447, %v7004_v55  }
 0x10c   : > { %10409 = vst [vmem:[#allocation38_spill] sm:$0xff] %v7226_v44  ;;  %v7250_v54 = vpop.permute.xlu0 %1749 }
 0x10d   : > { %10410 = vst [vmem:[#allocation39_spill] sm:$0xff] %v7228_v26  ;;  %2575 = vperm.xlu2 %6445, %v7009_v56  }
 0x10e   : > { %10417 = vst [vmem:[#allocation46_spill] sm:$0xff] %v7250_v54 }
 0x110   : > { %2519 = vperm.xlu0 %6446, %v7034_v61  }
 0x113   : > { %v7235_v7 = vpop.permute.xlu1 %1923  ;;  %v7237_v41 = vpop.permute.xlu2 %1927  ;;  %2607 = vperm.xlu1 %6447, %v7022_v59  }
 0x114   : > { %10412 = vst [vmem:[#allocation41_spill] sm:$0xff] %v7235_v7 }
 0x115   : > { %10413 = vst [vmem:[#allocation42_spill] sm:$0xff] %v7237_v41  ;;  %2587 = vperm.xlu2 %6445, %v7027_v60  }
 0x118   : > { %2531 = vperm.xlu0 %6446, %v7052_v4  }
 0x11b   : > { %v7244_v26 = vpop.permute.xlu1 %1935  ;;  %v7246_v44 = vpop.permute.xlu2 %1939  ;;  %2619 = vperm.xlu1 %6447, %v7040_v63  }
 0x11c   : > { %10415 = vst [vmem:[#allocation44_spill] sm:$0xff] %v7244_v26 }
 0x11d   : > { %10416 = vst [vmem:[#allocation45_spill] sm:$0xff] %v7246_v44  ;;  %2599 = vperm.xlu2 %6445, %v7045_v3   ;;  %v7262_v44 = vpop.permute.xlu0 %1764 }
 0x11e   : > { %10421 = vst [vmem:[#allocation49_spill] sm:$0xff] %v7262_v44  ;;  %v704_v44 = vld [vmem:[%s10341_s17] sm:$0x3] }
 0x11f   : > { %5984 = vmatpush.msk.msra.mxu3 %vm712_vm2, %v704_v44 }
 0x120   : > { %2543 = vperm.xlu0 %6446, %v7071_v8  }
 0x123   : > { %v7253_v41 = vpop.permute.xlu1 %1947  ;;  %v7255_v7 = vpop.permute.xlu2 %1951  ;;  %6450 = vset.pattern.permute.xlu1 %v10347_v29 }
 0x124   : > { %10418 = vst [vmem:[#allocation47_spill] sm:$0xff] %v7253_v41  ;;  %2938 = vperm.xlu1 %6450, %v6814_v40  }
 0x125   : > { %10419 = vst [vmem:[#allocation48_spill] sm:$0xff] %v7255_v7  ;;  %2611 = vperm.xlu2 %6445, %v7058_v6  }
 0x128   : > { %2555 = vperm.xlu0 %6446, %v7079_v10  }
 0x12b   : > { %v7264_v54 = vpop.permute.xlu1 %1959  ;;  %v7266_v26 = vpop.permute.xlu2 %1963 }
 0x12c   : > { %10422 = vst [vmem:[#allocation50_spill] sm:$0xff] %v7264_v54  ;;  %2946 = vperm.xlu1 %6450, %v6911_v47   ;;  %v7279_v54 = vpop.permute.xlu0 %1779 }
 0x12d   : > { %10423 = vst [vmem:[#allocation51_spill] sm:$0xff] %v7266_v26  ;;  %6448 = vset.pattern.permute.xlu2 %v10347_v29 }
 0x12e   : > { %2930 = vperm.xlu2 %6448, %v6998_v52   ;;  %10426 = vst [vmem:[#allocation54_spill] sm:$0xff] %v7279_v54 }
 0x130   : > { %2567 = vperm.xlu0 %6446, %v7098_v18  }
 0x133   : > { %v7272_v58 = vpop.permute.xlu1 %1971  ;;  %v7274_v7 = vpop.permute.xlu2 %1975 }
 0x134   : > { %10424 = vst [vmem:[#allocation52_spill] sm:$0xff] %v7272_v58  ;;  %2958 = vperm.xlu1 %6450, %v6897_v30   ;;  %v7288_v58 = vpop.permute.xlu0 %1794 }
 0x135   : > { %10425 = vst [vmem:[#allocation53_spill] sm:$0xff] %v7274_v7 }
 0x136   : > { %2942 = vperm.xlu2 %6448, %v6867_v2   ;;  %10429 = vst [vmem:[#allocation57_spill] sm:$0xff] %v7288_v58 }
 0x138   : > { %2579 = vperm.xlu0 %6446, %v7113_v35  }
 0x13b   : > { %v7284_v29 = vpop.permute.xlu1 %1983  ;;  %v7286_v26 = vpop.permute.xlu2 %1987 }
 0x13c   : > { %10427 = vst [vmem:[#allocation55_spill] sm:$0xff] %v7284_v29  ;;  %2970 = vperm.xlu1 %6450, %v6923_v0   ;;  %v7297_v7 = vpop.permute.xlu0 %1809 }
 0x13d   : > { %10428 = vst [vmem:[#allocation56_spill] sm:$0xff] %v7286_v26 }
 0x13e   : > { %2950 = vperm.xlu2 %6448, %v6933_v1   ;;  %10432 = vst [vmem:[#allocation60_spill] sm:$0xff] %v7297_v7  ;;  %v6516_v7 = vld [vmem:[%s10340_s16] ss:$0 sm:$0xff] }
 0x140   : > { %2591 = vperm.xlu0 %6446, %v7125_v49  }
 0x143   : > { %v7293_v54 = vpop.permute.xlu1 %1995  ;;  %v7295_v44 = vpop.permute.xlu2 %1999 }
 0x144   : > { %10430 = vst [vmem:[#allocation58_spill] sm:$0xff] %v7293_v54  ;;  %2982 = vperm.xlu1 %6450, %v6942_v27   ;;  %v7306_v29 = vpop.permute.xlu0 %1887  ;;  %v6515_v54 = vld [vmem:[%s10339_s15] ss:$0 sm:$0xff] }
 0x145   : > { %10431 = vst [vmem:[#allocation59_spill] sm:$0xff] %v7295_v44 }
 0x146   : > { %2962 = vperm.xlu2 %6448, %v6947_v28  }
 0x148   : > { %2603 = vperm.xlu0 %6446, %v7137_v38  }
 0x14b   : > { %v7302_v26 = vpop.permute.xlu1 %2007  ;;  %v7304_v58 = vpop.permute.xlu2 %2495 }
 0x14c   : > { %10433 = vst [vmem:[#allocation61_spill] sm:$0xff] %v7302_v26  ;;  %2994 = vperm.xlu1 %6450, %v6956_v31   ;;  %v7321_v62 = vpop.permute.xlu0 %1907 }
 0x14d   : > { %10434 = vst [vmem:[#allocation62_spill] sm:$0xff] %v7304_v58 }
 0x14e   : > { %2974 = vperm.xlu2 %6448, %v6961_v32  }
 0x150   : > { %2615 = vperm.xlu0 %6446, %v7149_v14  }
 0x153   : > { %v7317_v58 = vpop.permute.xlu1 %2503  ;;  %v7319_v43 = vpop.permute.xlu2 %2507 }
 0x154   : > { %10435 = vst [vmem:[#allocation63_spill] sm:$0xff] %v7317_v58  ;;  %3006 = vperm.xlu1 %6450, %v6971_v45   ;;  %v7330_v58 = vpop.permute.xlu0 %1919 }
 0x155   : > { %10436 = vst [vmem:[#allocation64_spill] sm:$0xff] %v7319_v43 }
 0x156   : > { %2986 = vperm.xlu2 %6448, %v6976_v46   ;;  %10439 = vst [vmem:[#allocation67_spill] sm:$0xff] %v7330_v58 }
 0x158   : > { %v684_v44 = vpop.f32.mrf.mxu2 }
 0x159   : > { %v694_v41 = vmul.f32 %v6515_v54, %v684_v44 }
 0x15b   : > { %v700_v26 = vadd.f32 %v6516_v7, %v694_v41  ;;  %v7326_v34 = vpop.permute.xlu1 %2511  ;;  %v7328_v41 = vpop.permute.xlu2 %2515 }
 0x15c   : > { %10437 = vst [vmem:[#allocation65_spill] sm:$0xff] %v7326_v34  ;;  %3018 = vperm.xlu1 %6450, %v6986_v50  }
 0x15d   : > { %v702_v11 = vmax.f32 %v700_v26, 0.0  ;;  %10438 = vst [vmem:[#allocation66_spill] sm:$0xff] %v7328_v41  ;;  %v7339_v26 = vpop.permute.xlu0 %1931 }
 0x15e   : > { %2998 = vperm.xlu2 %6448, %v6991_v51   ;;  %10442 = vst [vmem:[#allocation70_spill] sm:$0xff] %v7339_v26 }
 0x15f   : > { %5985 = vmatmul.msk.f32.vlgmr.msra.gmra.mxu3 %vm705_vm3, %v702_v11 }
 0x160   : > { %v687_v33 = vpop.f32.mrf.mxu2 }
 0x161   : > { %v695_v5 = vmul.f32 %v6515_v54, %v687_v33 }
 0x163   : > { %v701_v44 = vadd.f32 %v6516_v7, %v695_v5  ;;  %v7335_v11 = vpop.permute.xlu1 %2523  ;;  %v7337_v54 = vpop.permute.xlu2 %2527 }
 0x164   : > { %10440 = vst [vmem:[#allocation68_spill] sm:$0xff] %v7335_v11  ;;  %3030 = vperm.xlu1 %6450, %v7004_v55   ;;  %v10449_v11 = vmov 3  }
 0x165   : > { %v703_v43 = vmax.f32 %v701_v44, 0.0  ;;  %10441 = vst [vmem:[#allocation69_spill] sm:$0xff] %v7337_v54  ;;  %6449 = vset.pattern.permute.xlu0 %v10449_v11 }
 0x166   : > { %3010 = vperm.xlu2 %6448, %v7009_v56   ;;  %2934 = vperm.xlu0 %6449, %v7016_v57  }
 0x167   : > { %5986 = vmatmul.msk.f32.gmra.mxu3 %vm705_vm3, %v703_v43  ;;  %v7348_v43 = vpop.permute.xlu0 %1943 }
 0x168   : > { %10445 = vst [vmem:[#allocation73_spill] sm:$0xff] %v7348_v43 }
 0x16b   : > { %v7344_v5 = vpop.permute.xlu1 %2535  ;;  %v7346_v33 = vpop.permute.xlu2 %2539 }
 0x16c   : > { %10443 = vst [vmem:[#allocation71_spill] sm:$0xff] %v7344_v5  ;;  %3042 = vperm.xlu1 %6450, %v7022_v59  }
 0x16d   : > { %10444 = vst [vmem:[#allocation72_spill] sm:$0xff] %v7346_v33 }
 0x16e   : > { %3022 = vperm.xlu2 %6448, %v7027_v60   ;;  %2954 = vperm.xlu0 %6449, %v7034_v61  }
 0x16f   : > { %v7357_v54 = vpop.permute.xlu0 %1955 }
 0x170   : > { %10448 = vst [vmem:[#allocation76_spill] sm:$0xff] %v7357_v54 }
 0x173   : > { %v7353_v7 = vpop.permute.xlu1 %2547  ;;  %v7355_v44 = vpop.permute.xlu2 %2551 }
 0x174   : > { %10446 = vst [vmem:[#allocation74_spill] sm:$0xff] %v7353_v7  ;;  %3054 = vperm.xlu1 %6450, %v7040_v63   ;;  %v6607_v7 = vmov 4  }
 0x175   : > { %10447 = vst [vmem:[#allocation75_spill] sm:$0xff] %v7355_v44 }
 0x176   : > { %3034 = vperm.xlu2 %6448, %v7045_v3   ;;  %2966 = vperm.xlu0 %6449, %v7052_v4  }
 0x177   : > { %v7367_v41 = vpop.permute.xlu0 %1967 }
 0x178   : > { %10452 = vst [vmem:[#allocation79_spill] sm:$0xff] %v7367_v41 }
 0x17b   : > { %v7363_v33 = vpop.permute.xlu1 %2559  ;;  %v7365_v5 = vpop.permute.xlu2 %2563 }
 0x17c   : > { %10450 = vst [vmem:[#allocation77_spill] sm:$0xff] %v7363_v33  ;;  %6453 = vset.pattern.permute.xlu1 %v6607_v7 }
 0x17d   : > { %10451 = vst [vmem:[#allocation78_spill] sm:$0xff] %v7365_v5  ;;  %3373 = vperm.xlu1 %6453, %v6814_v40  }
 0x17e   : > { %3046 = vperm.xlu2 %6448, %v7058_v6   ;;  %2978 = vperm.xlu0 %6449, %v7071_v8  }
 0x17f   : > { %v7376_v34 = vpop.permute.xlu0 %1979 }
 0x180   : > { %10455 = vst [vmem:[#allocation82_spill] sm:$0xff] %v7376_v34 }
 0x183   : > { %v7372_v11 = vpop.permute.xlu1 %2571  ;;  %v7374_v44 = vpop.permute.xlu2 %2575 }
 0x184   : > { %10453 = vst [vmem:[#allocation80_spill] sm:$0xff] %v7372_v11 }
 0x185   : > { %10454 = vst [vmem:[#allocation81_spill] sm:$0xff] %v7374_v44  ;;  %3381 = vperm.xlu1 %6453, %v6911_v47  }
 0x186   : > { %6451 = vset.pattern.permute.xlu2 %v6607_v7  ;;  %2990 = vperm.xlu0 %6449, %v7079_v10  }
 0x187   : > { %3365 = vperm.xlu2 %6451, %v6998_v52   ;;  %v7385_v41 = vpop.permute.xlu0 %1991 }
 0x188   : > { %10458 = vst [vmem:[#allocation85_spill] sm:$0xff] %v7385_v41 }
 0x18b   : > { %v7381_v5 = vpop.permute.xlu1 %2583  ;;  %v7383_v33 = vpop.permute.xlu2 %2587 }
 0x18c   : > { %10456 = vst [vmem:[#allocation83_spill] sm:$0xff] %v7381_v5 }
 0x18d   : > { %10457 = vst [vmem:[#allocation84_spill] sm:$0xff] %v7383_v33  ;;  %3393 = vperm.xlu1 %6453, %v6897_v30  }
 0x18e   : > { %3002 = vperm.xlu0 %6449, %v7098_v18  }
 0x18f   : > { %3377 = vperm.xlu2 %6451, %v6867_v2   ;;  %v7394_v34 = vpop.permute.xlu0 %2003 }
 0x190   : > { %10461 = vst [vmem:[#allocation88_spill] sm:$0xff] %v7394_v34 }
 0x193   : > { %v7390_v44 = vpop.permute.xlu1 %2595  ;;  %v7392_v11 = vpop.permute.xlu2 %2599 }
 0x194   : > { %10459 = vst [vmem:[#allocation86_spill] sm:$0xff] %v7390_v44 }
 0x195   : > { %10460 = vst [vmem:[#allocation87_spill] sm:$0xff] %v7392_v11  ;;  %3405 = vperm.xlu1 %6453, %v6923_v0  }
 0x196   : > { %3014 = vperm.xlu0 %6449, %v7113_v35  }
 0x197   : > { %3385 = vperm.xlu2 %6451, %v6933_v1   ;;  %v7403_v41 = vpop.permute.xlu0 %2499 }
 0x198   : > { %10464 = vst [vmem:[#allocation91_spill] sm:$0xff] %v7403_v41 }
 0x19b   : > { %v7399_v33 = vpop.permute.xlu1 %2607  ;;  %v7401_v5 = vpop.permute.xlu2 %2611 }
 0x19c   : > { %10462 = vst [vmem:[#allocation89_spill] sm:$0xff] %v7399_v33 }
 0x19d   : > { %10463 = vst [vmem:[#allocation90_spill] sm:$0xff] %v7401_v5  ;;  %3417 = vperm.xlu1 %6453, %v6942_v27  }
 0x19e   : > { %3026 = vperm.xlu0 %6449, %v7125_v49  }
 0x19f   : > { %3397 = vperm.xlu2 %6451, %v6947_v28   ;;  %v7412_v34 = vpop.permute.xlu0 %2519 }
 0x1a0   : > { %10467 = vst [vmem:[#allocation94_spill] sm:$0xff] %v7412_v34 }
 0x1a3   : > { %v7408_v11 = vpop.permute.xlu1 %2619  ;;  %v7410_v44 = vpop.permute.xlu2 %2930 }
 0x1a4   : > { %10465 = vst [vmem:[#allocation92_spill] sm:$0xff] %v7408_v11 }
 0x1a5   : > { %10466 = vst [vmem:[#allocation93_spill] sm:$0xff] %v7410_v44  ;;  %3429 = vperm.xlu1 %6453, %v6956_v31  }
 0x1a6   : > { %3038 = vperm.xlu0 %6449, %v7137_v38  }
 0x1a7   : > { %3409 = vperm.xlu2 %6451, %v6961_v32   ;;  %v7421_v54 = vpop.permute.xlu0 %2531 }
 0x1a8   : > { %10470 = vst [vmem:[#allocation97_spill] sm:$0xff] %v7421_v54 }
 0x1ab   : > { %v7417_v5 = vpop.permute.xlu1 %2938  ;;  %v7419_v33 = vpop.permute.xlu2 %2942 }
 0x1ac   : > { %10468 = vst [vmem:[#allocation95_spill] sm:$0xff] %v7417_v5 }
 0x1ad   : > { %10469 = vst [vmem:[#allocation96_spill] sm:$0xff] %v7419_v33  ;;  %3441 = vperm.xlu1 %6453, %v6971_v45  }
 0x1ae   : > { %3050 = vperm.xlu0 %6449, %v7149_v14  }
 0x1af   : > { %3421 = vperm.xlu2 %6451, %v6976_v46   ;;  %v7430_v44 = vpop.permute.xlu0 %2543 }
 0x1b0   : > { %10473 = vst [vmem:[#allocation100_spill] sm:$0xff] %v7430_v44 }
 0x1b3   : > { %v7426_v11 = vpop.permute.xlu1 %2946  ;;  %v7428_v34 = vpop.permute.xlu2 %2950 }
 0x1b4   : > { %10471 = vst [vmem:[#allocation98_spill] sm:$0xff] %v7426_v11 }
 0x1b5   : > { %10472 = vst [vmem:[#allocation99_spill] sm:$0xff] %v7428_v34  ;;  %3453 = vperm.xlu1 %6453, %v6986_v50  }
 0x1b6   : > { %6452 = vset.pattern.permute.xlu0 %v6607_v7 }
 0x1b7   : > { %3433 = vperm.xlu2 %6451, %v6991_v51   ;;  %v7439_v5 = vpop.permute.xlu0 %2555  ;;  %3369 = vperm.xlu0 %6452, %v7016_v57  }
 0x1b8   : > { %10476 = vst [vmem:[#allocation103_spill] sm:$0xff] %v7439_v5 }
 0x1bb   : > { %v7435_v33 = vpop.permute.xlu1 %2958  ;;  %v7437_v54 = vpop.permute.xlu2 %2962 }
 0x1bc   : > { %10474 = vst [vmem:[#allocation101_spill] sm:$0xff] %v7435_v33 }
 0x1bd   : > { %10475 = vst [vmem:[#allocation102_spill] sm:$0xff] %v7437_v54  ;;  %3465 = vperm.xlu1 %6453, %v7004_v55  }
 0x1bf   : > { %3445 = vperm.xlu2 %6451, %v7009_v56   ;;  %v7448_v11 = vpop.permute.xlu0 %2567  ;;  %3389 = vperm.xlu0 %6452, %v7034_v61  }
 0x1c0   : > { %10479 = vst [vmem:[#allocation106_spill] sm:$0xff] %v7448_v11 }
 0x1c3   : > { %v7444_v34 = vpop.permute.xlu1 %2970  ;;  %v7446_v44 = vpop.permute.xlu2 %2974 }
 0x1c4   : > { %10477 = vst [vmem:[#allocation104_spill] sm:$0xff] %v7444_v34  ;;  %v10348_v34 = vmov 5  }
 0x1c5   : > { %10478 = vst [vmem:[#allocation105_spill] sm:$0xff] %v7446_v44  ;;  %3477 = vperm.xlu1 %6453, %v7022_v59  }
 0x1c7   : > { %3457 = vperm.xlu2 %6451, %v7027_v60   ;;  %v7457_v33 = vpop.permute.xlu0 %2579  ;;  %3401 = vperm.xlu0 %6452, %v7052_v4  }
 0x1c8   : > { %10482 = vst [vmem:[#allocation109_spill] sm:$0xff] %v7457_v33 }
 0x1cb   : > { %v7453_v5 = vpop.permute.xlu1 %2982  ;;  %v7455_v54 = vpop.permute.xlu2 %2986 }
 0x1cc   : > { %10480 = vst [vmem:[#allocation107_spill] sm:$0xff] %v7453_v5 }
 0x1cd   : > { %10481 = vst [vmem:[#allocation108_spill] sm:$0xff] %v7455_v54  ;;  %3489 = vperm.xlu1 %6453, %v7040_v63  }
 0x1cf   : > { %3469 = vperm.xlu2 %6451, %v7045_v3   ;;  %v7466_v44 = vpop.permute.xlu0 %2591  ;;  %3413 = vperm.xlu0 %6452, %v7071_v8  }
 0x1d0   : > { %10485 = vst [vmem:[#allocation112_spill] sm:$0xff] %v7466_v44 }
 0x1d3   : > { %v7462_v11 = vpop.permute.xlu1 %2994  ;;  %v7464_v7 = vpop.permute.xlu2 %2998 }
 0x1d4   : > { %10483 = vst [vmem:[#allocation110_spill] sm:$0xff] %v7462_v11 }
 0x1d5   : > { %10484 = vst [vmem:[#allocation111_spill] sm:$0xff] %v7464_v7  ;;  %6456 = vset.pattern.permute.xlu1 %v10348_v34 }
 0x1d6   : > { %3808 = vperm.xlu1 %6456, %v6814_v40  }
 0x1d7   : > { %3481 = vperm.xlu2 %6451, %v7058_v6   ;;  %v7476_v11 = vpop.permute.xlu0 %2603  ;;  %3425 = vperm.xlu0 %6452, %v7079_v10  }
 0x1d8   : > { %10488 = vst [vmem:[#allocation115_spill] sm:$0xff] %v7476_v11 }
 0x1db   : > { %v7472_v5 = vpop.permute.xlu1 %3006  ;;  %v7474_v41 = vpop.permute.xlu2 %3010 }
 0x1dc   : > { %10486 = vst [vmem:[#allocation113_spill] sm:$0xff] %v7472_v5 }
 0x1dd   : > { %10487 = vst [vmem:[#allocation114_spill] sm:$0xff] %v7474_v41 }
 0x1de   : > { %3816 = vperm.xlu1 %6456, %v6911_v47  }
 0x1df   : > { %6454 = vset.pattern.permute.xlu2 %v10348_v34  ;;  %v7486_v41 = vpop.permute.xlu0 %2615  ;;  %3437 = vperm.xlu0 %6452, %v7098_v18  }
 0x1e0   : > { %3800 = vperm.xlu2 %6454, %v6998_v52   ;;  %10491 = vst [vmem:[#allocation118_spill] sm:$0xff] %v7486_v41 }
 0x1e2   : > { %v733_v54 = vpop.f32.mrf.mxu3 }
 0x1e3   : > { %v5987_v33 = vmul.f32 -1.442695, %v733_v54  ;;  %v7482_v54 = vpop.permute.xlu1 %3018 }
 0x1e4   : > { %10489 = vst [vmem:[#allocation116_spill] sm:$0xff] %v7482_v54 }
 0x1e5   : > { %6521 = vpow2.f32 %v5987_v33  ;;  %v7484_v33 = vpop.permute.xlu2 %3022 }
 0x1e6   : > { %10490 = vst [vmem:[#allocation117_spill] sm:$0xff] %v7484_v33  ;;  %3828 = vperm.xlu1 %6456, %v6897_v30  }
 0x1e7   : > { %3449 = vperm.xlu0 %6452, %v7113_v35  }
 0x1e8   : > { %3812 = vperm.xlu2 %6454, %v6867_v2  }
 0x1ea   : > { %v736_v44 = vpop.f32.mrf.mxu3 }
 0x1eb   : > { %v6522_v7 = vpop.eup %6521  ;;  %v5988_v43 = vmul.f32 -1.442695, %v736_v44  ;;  %v7491_v5 = vpop.permute.xlu1 %3030 }
 0x1ec   : > { %v745_v40 = vadd.f32 1.0, %v6522_v7  ;;  %10492 = vst [vmem:[#allocation119_spill] sm:$0xff] %v7491_v5  ;;  %v7495_v7 = vpop.permute.xlu0 %2934 }
 0x1ed   : > { %6523 = vpow2.f32 %v5988_v43  ;;  %v7493_v43 = vpop.permute.xlu2 %3034  ;;  %10494 = vst [vmem:[#allocation121_spill] sm:$0xff] %v7495_v7 }
 0x1ee   : > { %6525 = vrcp.f32 %v745_v40  ;;  %10493 = vst [vmem:[#allocation120_spill] sm:$0xff] %v7493_v43  ;;  %3840 = vperm.xlu1 %6456, %v6923_v0   ;;  %vm752_vm6 = vweird.f32 %v745_v40 }
 0x1ef   : > { %3461 = vperm.xlu0 %6452, %v7125_v49  }
 0x1f0   : > { %3820 = vperm.xlu2 %6454, %v6933_v1   ;;  %v758_v1 = vand.u32 2147483648, %v745_v40 }
 0x1f3   : > { %v6524_v47 = vpop.eup %6523  ;;  %v7500_v54 = vpop.permute.xlu1 %3042 }
 0x1f4   : > { %v6526_v34 = vpop.eup %6525  ;;  %v746_v44 = vadd.f32 1.0, %v6524_v47  ;;  %10495 = vst [vmem:[#allocation122_spill] sm:$0xff] %v7500_v54  ;;  %v7504_v5 = vpop.permute.xlu0 %2954 }
 0x1f5   : > { %v748_v11 = vmul.f32 %v6526_v34, %v745_v40  ;;  %v7502_v47 = vpop.permute.xlu2 %3046  ;;  %10497 = vst [vmem:[#allocation124_spill] sm:$0xff] %v7504_v5  ;;  %vm753_vm4 = vweird.f32 %v6526_v34 }
 0x1f6   : > { %6527 = vrcp.f32 %v746_v44  ;;  %10496 = vst [vmem:[#allocation123_spill] sm:$0xff] %v7502_v47  ;;  %v773_v7 = vand.u32 2147483648, %v746_v44  ;;  %3852 = vperm.xlu1 %6456, %v6942_v27   ;;  %vm767_vm7 = vweird.f32 %v746_v44  ;;  %vm7508_vm8 = vmor %vm752_vm6, %vm753_vm4  ;;  %v756_v47 = vand.u32 2147483647, %v745_v40 }
 0x1f7   : > { %v749_v41 = vsub.f32 1.0, %v748_v11  ;;  %v771_v11 = vand.u32 2147483647, %v746_v44  ;;  %3473 = vperm.xlu0 %6452, %v7137_v38  }
 0x1f8   : > { %3832 = vperm.xlu2 %6454, %v6947_v28   ;;  %vm757_vm11 = vcmp.eq.f32.partialorder %v756_v47, 8.507059e+37  ;;  %v777_v28 = vld [vmem:[%s10501_s30] sm:$0xff]  ;;  %v778_v47 = vld [vmem:[%s10501_s30 + $0x8] sm:$0xff] }
 0x1f9   : > { %v750_v2 = vmul.f32 %v6526_v34, %v749_v41  ;;  %vm772_vm10 = vcmp.eq.f32.partialorder %v771_v11, 8.507059e+37  ;;  %v790_v11 = vld [vmem:[%s10501_s30 + $0x68] sm:$0xff] }
 0x1fb   : > { %v751_v0 = vadd.f32 %v6526_v34, %v750_v2  ;;  %v7515_v2 = vpop.permute.xlu1 %3054 }
 0x1fc   : > { %v6528_v30 = vpop.eup %6527  ;;  %10500 = vst [vmem:[#allocation125_spill] sm:$0xff] %v7515_v2 }
 0x1fd   : > { %v763_v33 = vmul.f32 %v6528_v30, %v746_v44  ;;  %vm768_vm5 = vweird.f32 %v6528_v30  ;;  %v7517_v5 = vpop.permute.xlu2 %3365  ;;  %v7519_v44 = vpop.permute.xlu0 %2966 }
 0x1fe   : > { %vm769_vm9 = vmor %vm767_vm7, %vm768_vm5  ;;  %3864 = vperm.xlu1 %6456, %v6956_v31  }
 0x1ff   : > { %v764_v43 = vsub.f32 1.0, %v763_v33  ;;  %v774_v33 = vor.u32 1.1754944e-38, %v773_v7  ;;  %3485 = vperm.xlu0 %6452, %v7149_v14  }
 0x200   : > { %3844 = vperm.xlu2 %6454, %v6961_v32  }
 0x201   : > { %v765_v26 = vmul.f32 %v6528_v30, %v764_v43  ;;  %v755_v43 = vsel %vm7508_vm8, %v6526_v34, %v751_v0  ;;  %v789_v34 = vld [vmem:[%s10501_s30 + $0x60] sm:$0xff] }
 0x203   : > { %v766_v41 = vadd.f32 %v6528_v30, %v765_v26  ;;  %v759_v26 = vor.u32 1.1754944e-38, %v758_v1  ;;  %v7535_v54 = vpop.permute.xlu1 %3373  ;;  %v779_v1 = vld [vmem:[%s10501_s30 + $0x10] sm:$0xff] }
 0x205   : > { %v770_v58 = vsel %vm769_vm9, %v6528_v30, %v766_v41  ;;  %v760_v40 = vsel %vm757_vm11, %v759_v26, %v755_v43  ;;  %v7537_v7 = vpop.permute.xlu2 %3377  ;;  %v7539_v30 = vpop.permute.xlu0 %2978  ;;  %v791_v41 = vld [vmem:[%s10501_s30 + $0x70] sm:$0xff]  ;;  %v780_v26 = vld [vmem:[%s10501_s30 + $0x18] sm:$0xff] }
 0x206   : > { %v775_v27 = vsel %vm772_vm10, %v774_v33, %v770_v58  ;;  %v1334_v58 = vld [vmem:[%s10331_s7 + $0x8] sm:$0xff]  ;;  %3876 = vperm.xlu1 %6456, %v6971_v45   ;;  %v1333_v45 = vld [vmem:[%s10331_s7] sm:$0xff] }
 0x207   : > { %919 = vmatpush.msra.mxu0 %v775_v27  ;;  %6417 = vmatpush.msrb.mxu2 %v775_v27 }
 0x208   : > { %6418 = vmatpush.msrb.mxu3 %v775_v27  ;;  %3856 = vperm.xlu2 %6454, %v6976_v46   ;;  %v799_v46 = vld [vmem:[%s10501_s30 + $0xb0] sm:$0xff] }
 0x209   : > { %920 = vmatpush.msra.mxu0 %v760_v40  ;;  %6419 = vmatpush.msrb.mxu2 %v760_v40 }
 0x20a   : > { %6420 = vmatpush.msrb.mxu3 %v760_v40  ;;  %5989 = vmatmul.msk.f32.vlgmr.msra.gmra.mxu0 %vm660_vm0, %v777_v28  ;;  %v792_v28 = vld [vmem:[%s10501_s30 + $0x78] sm:$0xff] }
 0x20b   : > { %6001 = vmatmul.msk.f32.vlgmr.msrb.gmra.mxu2 %vm660_vm0, %v789_v34  ;;  %1349 = vmatpush.msrb.mxu0 %v1334_v58  ;;  %v7552_v31 = vpop.permute.xlu1 %3381 }
 0x20c   : > { %6011 = vmatmul.msk.f32.vlgmr.msrb.gmra.mxu3 %vm660_vm0, %v799_v46 }
 0x20d   : > { %v7554_v32 = vpop.permute.xlu2 %3385  ;;  %v7556_v0 = vpop.permute.xlu0 %2990  ;;  %1350 = vmatpush.msrb.mxu0 %v1333_v45  ;;  %v1122_v45 = vld [vmem:[%s10330_s6] sm:$0xff] }
 0x20e   : > { %3888 = vperm.xlu1 %6456, %v6986_v50   ;;  %v10504_v50 = vmov 5  }
 0x20f   : > { %6455 = vset.pattern.permute.xlu0 %v10504_v50  ;;  %v10349_v50 = vmov 6  }
 0x210   : > { %3868 = vperm.xlu2 %6454, %v6991_v51   ;;  %3804 = vperm.xlu0 %6455, %v7016_v57   ;;  %v800_v51 = vld [vmem:[%s10501_s30 + $0xb8] sm:$0xff]  ;;  %v781_v57 = vld [vmem:[%s10501_s30 + $0x20] sm:$0xff] }
 0x212   : > { %5990 = vmatmul.msk.f32.gmra.mxu0 %vm660_vm0, %v778_v47  ;;  %v793_v47 = vld [vmem:[%s10501_s30 + $0x80] sm:$0xff] }
 0x213   : > { %6002 = vmatmul.msk.f32.gmra.mxu2 %vm660_vm0, %v790_v11  ;;  %v7574_v33 = vpop.permute.xlu1 %3393 }
 0x214   : > { %10502 = vst [vmem:[#allocation126_spill] sm:$0xff] %v7574_v33  ;;  %6012 = vmatmul.msk.f32.gmra.mxu3 %vm660_vm0, %v800_v51  ;;  %v7668_v51 = vld [vmem:[%s10327_s3 + $0x10] sm:$0xff] }
 0x215   : > { %v7576_v43 = vpop.permute.xlu2 %3397  ;;  %v7580_v27 = vpop.permute.xlu0 %3002 }
 0x216   : > { %10503 = vst [vmem:[#allocation127_spill] sm:$0xff] %v7576_v43  ;;  %3900 = vperm.xlu1 %6456, %v7004_v55   ;;  %v801_v55 = vld [vmem:[%s10501_s30 + $0xc0] sm:$0xff] }
 0x218   : > { %3880 = vperm.xlu2 %6454, %v7009_v56   ;;  %3824 = vperm.xlu0 %6455, %v7034_v61   ;;  %v782_v61 = vld [vmem:[%s10501_s30 + $0x28] sm:$0xff] }
 0x21a   : > { %5991 = vmatmul.msk.f32.gmra.mxu0 %vm660_vm0, %v779_v1 }
 0x21b   : > { %6003 = vmatmul.msk.f32.gmra.mxu2 %vm660_vm0, %v791_v41  ;;  %v7596_v40 = vpop.permute.xlu1 %3405  ;;  %v794_v41 = vld [vmem:[%s10501_s30 + $0x88] sm:$0xff] }
 0x21c   : > { %10505 = vst [vmem:[#allocation128_spill] sm:$0xff] %v7596_v40  ;;  %6013 = vmatmul.msk.f32.gmra.mxu3 %vm660_vm0, %v801_v55  ;;  %v784_v55 = vld [vmem:[%s10501_s30 + $0x38] sm:$0xff] }
 0x21d   : > { %v7598_v34 = vpop.permute.xlu2 %3409  ;;  %v7602_v58 = vpop.permute.xlu0 %3014 }
 0x21e   : > { %10506 = vst [vmem:[#allocation129_spill] sm:$0xff] %v7598_v34  ;;  %3912 = vperm.xlu1 %6456, %v7022_v59   ;;  %v802_v59 = vld [vmem:[%s10501_s30 + $0xc8] sm:$0xff] }
 0x220   : > { %3892 = vperm.xlu2 %6454, %v7027_v60   ;;  %3836 = vperm.xlu0 %6455, %v7052_v4   ;;  %v1123_v60 = vld [vmem:[%s10330_s6 + $0x8] sm:$0xff] }
 0x221   : > { %1234 = vmatpush.msra.mxu2 %v1123_v60 }
 0x222   : > { %5992 = vmatmul.msk.f32.gmra.mxu0 %vm660_vm0, %v780_v26 }
 0x223   : > { %6004 = vmatmul.msk.f32.gmra.mxu2 %vm660_vm0, %v792_v28  ;;  %v7617_v56 = vpop.permute.xlu1 %3417  ;;  %v783_v28 = vld [vmem:[%s10501_s30 + $0x30] sm:$0xff] }
 0x224   : > { %10507 = vst [vmem:[#allocation130_spill] sm:$0xff] %v7617_v56  ;;  %6014 = vmatmul.msk.f32.gmra.mxu3 %vm660_vm0, %v802_v59  ;;  %1235 = vmatpush.msra.mxu2 %v1122_v45  ;;  %v10351_v59 = vmov 8   ;;  %v785_v45 = vld [vmem:[%s10501_s30 + $0x40] sm:$0xff] }
 0x225   : > { %v7619_v11 = vpop.permute.xlu2 %3421  ;;  %v7623_v1 = vpop.permute.xlu0 %3026  ;;  %v6540_v56 = vld [vmem:[%s6723_s1 + $0x20] sm:$0xff] }
 0x226   : > { %10508 = vst [vmem:[#allocation131_spill] sm:$0xff] %v7619_v11  ;;  %3924 = vperm.xlu1 %6456, %v7040_v63   ;;  %v795_v63 = vld [vmem:[%s10501_s30 + $0x90] sm:$0xff] }
 0x227   : > { %10509 = vst [vmem:[#allocation132_spill] sm:$0xff] %v7623_v1  ;;  %v1850_v11 = vld [vmem:[#allocation2 + $0x10] sm:$0xff] }
 0x228   : > { %3904 = vperm.xlu2 %6454, %v7045_v3   ;;  %3848 = vperm.xlu0 %6455, %v7071_v8   ;;  %v803_v3 = vld [vmem:[%s10501_s30 + $0xd0] sm:$0xff] }
 0x22a   : > { %5993 = vmatmul.msk.f32.gmra.mxu0 %vm660_vm0, %v781_v57 }
 0x22b   : > { %6005 = vmatmul.msk.f32.gmra.mxu2 %vm660_vm0, %v793_v47  ;;  %v7644_v4 = vpop.permute.xlu1 %3429 }
 0x22c   : > { %10510 = vst [vmem:[#allocation133_spill] sm:$0xff] %v7644_v4  ;;  %6015 = vmatmul.msk.f32.gmra.mxu3 %vm660_vm0, %v803_v3  ;;  %v6538_v4 = vld [vmem:[%s6723_s1 + $0x18] sm:$0xff] }
 0x22d   : > { %v7646_v46 = vpop.permute.xlu2 %3433  ;;  %v7650_v26 = vpop.permute.xlu0 %3038 }
 0x22e   : > { %10511 = vst [vmem:[#allocation134_spill] sm:$0xff] %v7646_v46  ;;  %6459 = vset.pattern.permute.xlu1 %v10349_v50 }
 0x22f   : > { %10512 = vst [vmem:[#allocation135_spill] sm:$0xff] %v7650_v26  ;;  %4243 = vperm.xlu1 %6459, %v7668_v51   ;;  %v6541_v26 = vld [vmem:[%s10327_s3 + $0x28] sm:$0xff] }
 0x230   : > { %3916 = vperm.xlu2 %6454, %v7058_v6   ;;  %3860 = vperm.xlu0 %6455, %v7079_v10  }
 0x232   : > { %5994 = vmatmul.msk.f32.gmra.mxu0 %vm660_vm0, %v782_v61  ;;  %v796_v61 = vld [vmem:[%s10501_s30 + $0x98] sm:$0xff] }
 0x233   : > { %6006 = vmatmul.msk.f32.gmra.mxu2 %vm660_vm0, %v794_v41  ;;  %v7671_v57 = vpop.permute.xlu1 %3441  ;;  %v804_v41 = vld [vmem:[%s10501_s30 + $0xd8] sm:$0xff] }
 0x234   : > { %10513 = vst [vmem:[#allocation136_spill] sm:$0xff] %v7671_v57  ;;  %6016 = vmatmul.msk.f32.gmra.mxu3 %vm660_vm0, %v804_v41 }
 0x235   : > { %v7673_v8 = vpop.permute.xlu2 %3445  ;;  %v7676_v47 = vpop.permute.xlu0 %3050 }
 0x236   : > { %10514 = vst [vmem:[#allocation137_spill] sm:$0xff] %v7673_v8  ;;  %v10523_v8 = vmov 8  }
 0x237   : > { %10515 = vst [vmem:[#allocation138_spill] sm:$0xff] %v7676_v47  ;;  %6461 = vset.pattern.permute.xlu1 %v10351_v59  ;;  %v806_v59 = vld [vmem:[%s10501_s30 + $0xe8] sm:$0xff] }
 0x238   : > { %5105 = vperm.xlu1 %6461, %v6998_v52   ;;  %6457 = vset.pattern.permute.xlu2 %v10349_v50 }
 0x239   : > { %4235 = vperm.xlu2 %6457, %v6998_v52   ;;  %3872 = vperm.xlu0 %6455, %v7098_v18   ;;  %v7725_v18 = vld [vmem:[%s10328_s4] ss:$0 sm:$0xff] }
 0x23a   : > { %5995 = vmatmul.msk.f32.gmra.mxu0 %vm660_vm0, %v783_v28  ;;  %v797_v28 = vld [vmem:[%s10501_s30 + $0xa0] sm:$0xff] }
 0x23b   : > { %6007 = vmatmul.msk.f32.gmra.mxu2 %vm660_vm0, %v795_v63  ;;  %v7692_v6 = vpop.permute.xlu1 %3453  ;;  %v805_v63 = vld [vmem:[%s10501_s30 + $0xe0] sm:$0xff] }
 0x23c   : > { %10516 = vst [vmem:[#allocation139_spill] sm:$0xff] %v7692_v6  ;;  %6017 = vmatmul.msk.f32.gmra.mxu3 %vm660_vm0, %v805_v63  ;;  %v798_v63 = vld [vmem:[%s10501_s30 + $0xa8] sm:$0xff] }
 0x23d   : > { %v7694_v60 = vpop.permute.xlu2 %3457  ;;  %v7698_v10 = vpop.permute.xlu0 %3369 }
 0x23e   : > { %10517 = vst [vmem:[#allocation140_spill] sm:$0xff] %v7694_v60 }
 0x240   : > { %6463 = vset.pattern.permute.xlu1 %v10349_v50 }
 0x241   : > { %3884 = vperm.xlu0 %6455, %v7113_v35   ;;  %v6534_v35 = vld [vmem:[%s10327_s3] sm:$0xff] }
 0x242   : > { %5996 = vmatmul.msk.f32.gmra.mxu0 %vm660_vm0, %v784_v55 }
 0x243   : > { %6008 = vmatmul.msk.f32.gmra.mxu2 %vm660_vm0, %v796_v61  ;;  %v7714_v3 = vpop.permute.xlu1 %3465  ;;  %v6531_v61 = vld [vmem:[%s6723_s1] sm:$0xff] }
 0x244   : > { %10518 = vst [vmem:[#allocation141_spill] sm:$0xff] %v7714_v3  ;;  %v1022_v41 = vmul.f32 %v6531_v61, %v7725_v18  ;;  %v7746_v61 = vld [vmem:[%s10329_s5] ss:$0 sm:$0xff]  ;;  %6018 = vmatmul.msk.f32.gmra.mxu3 %vm660_vm0, %v806_v59 }
 0x245   : > { %v7716_v55 = vpop.permute.xlu2 %3469  ;;  %v7720_v52 = vpop.permute.xlu0 %3389 }
 0x246   : > { %10519 = vst [vmem:[#allocation142_spill] sm:$0xff] %v7716_v55  ;;  %v1058_v50 = vadd.f32 %v7746_v61, %v1022_v41  ;;  %v10353_v55 = vmov 7  }
 0x247   : > { %6460 = vset.pattern.permute.xlu2 %v10353_v55  ;;  %v787_v55 = vld [vmem:[%s10501_s30 + $0x50] sm:$0xff] }
 0x248   : > { %4670 = vperm.xlu2 %6460, %v6534_v35   ;;  %v1090_v6 = vmax.f32 %v1058_v50, 0.0  ;;  %v807_v50 = vld [vmem:[%s10501_s30 + $0xf0] sm:$0xff]  ;;  %v7781_v35 = vld [vmem:[%s10327_s3 + $0x8] sm:$0xff] }
 0x249   : > { %3896 = vperm.xlu0 %6455, %v7125_v49  }
 0x24a   : > { %5997 = vmatmul.msk.f32.gmra.mxu0 %vm660_vm0, %v785_v45  ;;  %v786_v45 = vld [vmem:[%s10501_s30 + $0x48] sm:$0xff] }
 0x24b   : > { %6009 = vmatmul.msk.f32.gmra.mxu2 %vm660_vm0, %v797_v28  ;;  %v7735_v28 = vld [vmem:[%s10327_s3 + $0x18] sm:$0xff] }
 0x24c   : > { %4247 = vperm.xlu1 %6463, %v7735_v28   ;;  %6019 = vmatmul.msk.f32.gmra.mxu3 %vm660_vm0, %v807_v50 }
 0x24d   : > { %v7759_v3 = vpop.permute.xlu2 %3481  ;;  %v7762_v41 = vpop.permute.xlu0 %3401 }
 0x24e   : > { %10521 = vst [vmem:[#allocation144_spill] sm:$0xff] %v7759_v3 }
 0x24f   : > { %10522 = vst [vmem:[#allocation145_spill] sm:$0xff] %v7762_v41  ;;  %v10720_v41 = vld [vmem:[#allocation50_spill] sm:$0xff] }
 0x250   : > { %4674 = vperm.xlu2 %6460, %v7781_v35  }
 0x251   : > { %3908 = vperm.xlu0 %6455, %v7137_v38   ;;  %v808_v38 = vld [vmem:[%s10501_s30 + $0xf8] sm:$0xff] }
 0x252   : > { %5998 = vmatmul.msk.f32.gmra.mxu0 %vm660_vm0, %v786_v45  ;;  %v7757_v45 = vpop.permute.xlu1 %3477 }
 0x253   : > { %6010 = vmatmul.msk.f32.gmra.mxu2 %vm660_vm0, %v798_v63  ;;  %10520 = vst [vmem:[#allocation143_spill] sm:$0xff] %v7757_v45  ;;  %v6535_v63 = vld [vmem:[%s6723_s1 + $0x8] sm:$0xff]  ;;  %v788_v45 = vld [vmem:[%s10501_s30 + $0x58] sm:$0xff] }
 0x254   : > { %v1023_v60 = vmul.f32 %v6535_v63, %v7725_v18  ;;  %6464 = vset.pattern.permute.xlu1 %v10523_v8  ;;  %6020 = vmatmul.msk.f32.gmra.mxu3 %vm660_vm0, %v808_v38 }
 0x255   : > { %5113 = vperm.xlu1 %6464, %v7668_v51   ;;  %v7786_v49 = vpop.permute.xlu2 %3800 }
 0x256   : > { %v1059_v59 = vadd.f32 %v7746_v61, %v1023_v60  ;;  %v7789_v60 = vpop.permute.xlu0 %3413 }
 0x257   : > { %10525 = vst [vmem:[#allocation147_spill] sm:$0xff] %v7789_v60 }
 0x258   : > { %v1091_v57 = vmax.f32 %v1059_v59, 0.0  ;;  %4678 = vperm.xlu2 %6460, %v7668_v51   ;;  %v1025_v59 = vmul.f32 %v6538_v4, %v7725_v18  ;;  %v1593_v51 = vld [vmem:[#allocation2 + $0xf] sm:$0xff] }
 0x259   : > { %3920 = vperm.xlu0 %6455, %v7149_v14   ;;  %v1849_v14 = vld [vmem:[%s10334_s10] sm:$0xff] }
 0x25a   : > { %5999 = vmatmul.msk.f32.gmra.mxu0 %vm660_vm0, %v787_v55  ;;  %v7784_v63 = vpop.permute.xlu1 %3489  ;;  %v6537_v55 = vld [vmem:[%s6723_s1 + $0x10] sm:$0xff]  ;;  %v1061_v4 = vadd.f32 %v7746_v61, %v1025_v59  ;;  %2364 = vmatpush.msra.mxu3 %v1849_v14  ;;  %v6542_v14 = vld [vmem:[%s6723_s1 + $0x28] sm:$0xff] }
 0x25b   : > { %6021 = vmatmul.msk.f32.vlgmr.msra.gmra.mxu2 %vm660_vm0, %v1090_v6  ;;  %10524 = vst [vmem:[#allocation146_spill] sm:$0xff] %v7784_v63  ;;  %v1024_v3 = vmul.f32 %v6537_v55, %v7725_v18 }
 0x25c   : > { %v1093_v59 = vmax.f32 %v1061_v4, 0.0 }
 0x25d   : > { %5117 = vperm.xlu1 %6464, %v7735_v28   ;;  %v1060_v63 = vadd.f32 %v7746_v61, %v1024_v3  ;;  %v7804_v55 = vpop.permute.xlu2 %3812  ;;  %v6539_v3 = vld [vmem:[%s10327_s3 + $0x20] sm:$0xff] }
 0x25e   : > { %v7806_v46 = vpop.permute.xlu0 %3425 }
 0x25f   : > { %10526 = vst [vmem:[#allocation148_spill] sm:$0xff] %v7806_v46  ;;  %v1092_v2 = vmax.f32 %v1060_v63, 0.0  ;;  %v1817_v63 = vmul.f32 %v7188_v39, %v1593_v51  ;;  %v10528_v46 = vmov 6   ;;  %v2010_v39 = vmul.f32 %v7203_v37, %v1850_v11  ;;  %v1594_v51 = vld [vmem:[#allocation2 + $0x17] sm:$0xff]  ;;  %v6085_v37 = vld [vmem:[%s10334_s10 + $0x8] sm:$0xff] }
 0x260   : > { %6465 = vset.pattern.permute.xlu2 %v10528_v46  ;;  %v1818_v11 = vmul.f32 %v7197_v19, %v1594_v51  ;;  %2155 = vmatpush.msra.mxu1 %v6085_v37 }
 0x261   : > { %4251 = vperm.xlu2 %6465, %v6539_v3   ;;  %6118 = vmatmul.msk.f32.vlgmr.msra.gmra.mxu3 %vm1552_vm1, %v1817_v63 }
 0x262   : > { %6000 = vmatmul.msk.f32.gmra.mxu0 %vm660_vm0, %v788_v45  ;;  %v7802_v50 = vpop.permute.xlu1 %3808  ;;  %v10527_v45 = vmov 7   ;;  %6458 = vset.pattern.permute.xlu0 %v10528_v46 }
 0x263   : > { %6022 = vmatmul.msk.f32.gmra.mxu2 %vm660_vm0, %v1091_v57  ;;  %4239 = vperm.xlu0 %6458, %v7781_v35  }
 0x264   : > { %6086 = vmatmul.msk.f32.vlgmr.msra.gmra.mxu1 %vm1552_vm1, %v2010_v39  ;;  %v6543_v39 = vld [vmem:[%s10327_s3 + $0x38] sm:$0xff] }
 0x265   : > { %6466 = vset.pattern.permute.xlu1 %v10527_v45  ;;  %v7826_v38 = vpop.permute.xlu2 %3820 }
 0x266   : > { %4686 = vperm.xlu1 %6466, %v6539_v3   ;;  %v7833_v60 = vpop.permute.xlu0 %3437 }
 0x267   : > { %10529 = vst [vmem:[#allocation149_spill] sm:$0xff] %v7833_v60 }
 0x269   : > { %4255 = vperm.xlu2 %6465, %v6541_v26   ;;  %6119 = vmatmul.msk.f32.gmra.mxu3 %vm1552_vm1, %v1818_v11 }
 0x26a   : > { %6053 = vmatmul.msk.f32.vlgmr.msrb.gmra.mxu0 %vm660_vm0, %v1090_v6  ;;  %v7824_v47 = vpop.permute.xlu1 %3816  ;;  %v1026_v6 = vmul.f32 %v6540_v56, %v7725_v18 }
 0x26b   : > { %6023 = vmatmul.msk.f32.gmra.mxu2 %vm660_vm0, %v1092_v2  ;;  %6462 = vset.pattern.permute.xlu0 %v10523_v8 }
 0x26c   : > { %v1062_v56 = vadd.f32 %v7746_v61, %v1026_v6  ;;  %v1027_v6 = vmul.f32 %v6542_v14, %v7725_v18  ;;  %5109 = vperm.xlu0 %6462, %v7781_v35   ;;  %v6545_v35 = vld [vmem:[%s10327_s3 + $0x40] sm:$0xff]  ;;  %v6546_v14 = vld [vmem:[%s10327_s3 + $0x30] sm:$0xff] }
 0x26d   : > { %v7851_v63 = vpop.permute.xlu2 %3832 }
 0x26e   : > { %4690 = vperm.xlu1 %6466, %v6541_v26   ;;  %10531 = vst [vmem:[#allocation151_spill] sm:$0xff] %v7851_v63  ;;  %v1094_v60 = vmax.f32 %v1062_v56, 0.0  ;;  %v7860_v19 = vpop.permute.xlu0 %3449  ;;  %v1063_v51 = vadd.f32 %v7746_v61, %v1027_v6 }
 0x26f   : > { %10532 = vst [vmem:[#allocation152_spill] sm:$0xff] %v7860_v19 }
 0x270   : > { %v1095_v11 = vmax.f32 %v1063_v51, 0.0 }
 0x271   : > { %6467 = vset.pattern.permute.xlu2 %v10523_v8 }
 0x272   : > { %6054 = vmatmul.msk.f32.gmra.mxu0 %vm660_vm0, %v1091_v57  ;;  %v7849_v4 = vpop.permute.xlu1 %3828  ;;  %v1851_v57 = vld [vmem:[#allocation2 + $0x18] sm:$0xff]  ;;  %5121 = vperm.xlu2 %6467, %v6539_v3  }
 0x273   : > { %6024 = vmatmul.msk.f32.gmra.mxu2 %vm660_vm0, %v1093_v59  ;;  %10530 = vst [vmem:[#allocation150_spill] sm:$0xff] %v7849_v4  ;;  %v2011_v34 = vmul.f32 %v7306_v29, %v1851_v57 }
 0x274   : > { %5129 = vperm.xlu0 %6462, %v6546_v14  }
 0x275   : > { %v7871_v56 = vpop.permute.xlu2 %3844  ;;  %6087 = vmatmul.msk.f32.gmra.mxu1 %vm1552_vm1, %v2011_v34 }
 0x276   : > { %6468 = vset.pattern.permute.xlu1 %v10528_v46  ;;  %v7883_v34 = vpop.permute.xlu0 %3461 }
 0x277   : > { %4263 = vperm.xlu1 %6468, %v6543_v39   ;;  %10534 = vst [vmem:[#allocation154_spill] sm:$0xff] %v7883_v34 }
 0x27a   : > { %6055 = vmatmul.msk.f32.gmra.mxu0 %vm660_vm0, %v1092_v2  ;;  %v7869_v29 = vpop.permute.xlu1 %3840  ;;  %v6544_v2 = vld [vmem:[%s6723_s1 + $0x30] sm:$0xff]  ;;  %5125 = vperm.xlu2 %6467, %v6541_v26  }
 0x27b   : > { %6025 = vmatmul.msk.f32.gmra.mxu2 %vm660_vm0, %v1094_v60  ;;  %10533 = vst [vmem:[#allocation153_spill] sm:$0xff] %v7869_v29  ;;  %v1028_v37 = vmul.f32 %v6544_v2, %v7725_v18 }
 0x27c   : > { %6470 = vset.pattern.permute.xlu0 %v10527_v45 }
 0x27d   : > { %v1064_v57 = vadd.f32 %v7746_v61, %v1028_v37  ;;  %v7890_v3 = vpop.permute.xlu2 %3856  ;;  %4682 = vperm.xlu0 %6470, %v7735_v28  }
 0x27e   : > { %10536 = vst [vmem:[#allocation156_spill] sm:$0xff] %v7890_v3  ;;  %v7908_v26 = vpop.permute.xlu0 %3473 }
 0x27f   : > { %4267 = vperm.xlu1 %6468, %v6545_v35   ;;  %v1096_v19 = vmax.f32 %v1064_v57, 0.0  ;;  %10541 = vst [vmem:[#allocation161_spill] sm:$0xff] %v7908_v26 }
 0x282   : > { %6056 = vmatmul.msk.f32.gmra.mxu0 %vm660_vm0, %v1093_v59  ;;  %v7888_v6 = vpop.permute.xlu1 %3852  ;;  %v6547_v59 = vld [vmem:[%s6723_s1 + $0x38] sm:$0xff]  ;;  %6469 = vset.pattern.permute.xlu2 %v10527_v45 }
 0x283   : > { %6026 = vmatmul.msk.f32.gmra.mxu2 %vm660_vm0, %v1095_v11  ;;  %10535 = vst [vmem:[#allocation155_spill] sm:$0xff] %v7888_v6  ;;  %v1029_v51 = vmul.f32 %v6547_v59, %v7725_v18  ;;  %4694 = vperm.xlu2 %6469, %v6546_v14  }
 0x285   : > { %v1065_v37 = vadd.f32 %v7746_v61, %v1029_v51  ;;  %v7904_v18 = vpop.permute.xlu2 %3868  ;;  %4702 = vperm.xlu0 %6470, %v6545_v35  }
 0x286   : > { %10539 = vst [vmem:[#allocation159_spill] sm:$0xff] %v7904_v18 }
 0x287   : > { %v7894_v2 = vpop.f32.mrf.mxu0  ;;  %6471 = vset.pattern.permute.xlu1 %v10523_v8  ;;  %v1097_v57 = vmax.f32 %v1065_v37, 0.0  ;;  %v7924_v37 = vpop.permute.xlu0 %3485 }
 0x288   : > { %10537 = vst [vmem:[#allocation157_spill] sm:$0xff] %v7894_v2  ;;  %5133 = vperm.xlu1 %6471, %v6543_v39   ;;  %v6549_v2 = vld [vmem:[%s10327_s3 + $0x50] sm:$0xff] }
 0x289   : > { %10547 = vst [vmem:[#allocation167_spill] sm:$0xff] %v7924_v37  ;;  %v1100_v37 = vmax.f32 %v6766_v22, 0.0 }
 0x28a   : > { %6057 = vmatmul.msk.f32.gmra.mxu0 %vm660_vm0, %v1094_v60  ;;  %v7902_v34 = vpop.permute.xlu1 %3864 }
 0x28b   : > { %6027 = vmatmul.msk.f32.gmra.mxu2 %vm660_vm0, %v1096_v19  ;;  %10538 = vst [vmem:[#allocation158_spill] sm:$0xff] %v7902_v34  ;;  %4698 = vperm.xlu2 %6469, %v6543_v39  }
 0x28d   : > { %v7917_v61 = vpop.permute.xlu2 %3880  ;;  %6473 = vset.pattern.permute.xlu0 %v10528_v46 }
 0x28e   : > { %v7906_v59 = vpop.f32.mrf.mxu2  ;;  %10544 = vst [vmem:[#allocation164_spill] sm:$0xff] %v7917_v61  ;;  %4259 = vperm.xlu0 %6473, %v6546_v14   ;;  %v1104_v61 = vmax.f32 %v6752_v16, 0.0  ;;  %v6216_v16 = vld [vmem:[%s10334_s10 + $0x20] sm:$0xff] }
 0x28f   : > { %10540 = vst [vmem:[#allocation160_spill] sm:$0xff] %v7906_v59  ;;  %v7910_v60 = vpop.f32.mrf.mxu0  ;;  %3637 = vmatpush.msrb.mxu1 %v6216_v16 }
 0x290   : > { %10542 = vst [vmem:[#allocation162_spill] sm:$0xff] %v7910_v60  ;;  %5137 = vperm.xlu1 %6471, %v6545_v35   ;;  %v1098_v60 = vmax.f32 %v6773_v25, 0.0 }
 0x292   : > { %6058 = vmatmul.msk.f32.gmra.mxu0 %vm660_vm0, %v1095_v11  ;;  %v7915_v28 = vpop.permute.xlu1 %3876  ;;  %v6548_v11 = vld [vmem:[%s10327_s3 + $0x48] sm:$0xff] }
 0x293   : > { %6028 = vmatmul.msk.f32.gmra.mxu2 %vm660_vm0, %v1097_v57  ;;  %10543 = vst [vmem:[#allocation163_spill] sm:$0xff] %v7915_v28  ;;  %6472 = vset.pattern.permute.xlu2 %v10528_v46 }
 0x294   : > { %4271 = vperm.xlu2 %6472, %v6548_v11  }
 0x296   : > { %v7919_v51 = vpop.f32.mrf.mxu2 }
 0x297   : > { %10545 = vst [vmem:[#allocation165_spill] sm:$0xff] %v7919_v51  ;;  %v7921_v59 = vpop.f32.mrf.mxu0  ;;  %v7934_v51 = vpop.permute.xlu2 %3892 }
 0x298   : > { %10546 = vst [vmem:[#allocation166_spill] sm:$0xff] %v7921_v59  ;;  %6474 = vset.pattern.permute.xlu1 %v10527_v45  ;;  %v7944_v59 = vpop.permute.xlu0 %3804 }
 0x299   : > { %4706 = vperm.xlu1 %6474, %v6548_v11   ;;  %10549 = vst [vmem:[#allocation169_spill] sm:$0xff] %v7934_v51 }
 0x29a   : > { %6059 = vmatmul.msk.f32.gmra.mxu0 %vm660_vm0, %v1096_v19  ;;  %v7932_v35 = vpop.permute.xlu1 %3888  ;;  %v1099_v19 = vmax.f32 %v6770_v24, 0.0  ;;  %v6550_v24 = vld [vmem:[%s10327_s3 + $0x58] sm:$0xff] }
 0x29b   : > { %6029 = vmatmul.msk.f32.gmra.mxu2 %vm660_vm0, %v1098_v60  ;;  %10548 = vst [vmem:[#allocation168_spill] sm:$0xff] %v7932_v35  ;;  %4279 = vperm.xlu0 %6473, %v6550_v24  }
 0x29c   : > { %4275 = vperm.xlu2 %6472, %v6549_v2  }
 0x29e   : > { %v7937_v25 = vpop.f32.mrf.mxu2 }
 0x29f   : > { %10550 = vst [vmem:[#allocation170_spill] sm:$0xff] %v7937_v25  ;;  %v7939_v39 = vpop.f32.mrf.mxu0  ;;  %v7952_v14 = vpop.permute.xlu2 %3904 }
 0x2a0   : > { %10551 = vst [vmem:[#allocation171_spill] sm:$0xff] %v7939_v39  ;;  %v7964_v26 = vpop.permute.xlu0 %3824 }
 0x2a1   : > { %4710 = vperm.xlu1 %6474, %v6549_v2   ;;  %10553 = vst [vmem:[#allocation173_spill] sm:$0xff] %v7952_v14 }
 0x2a2   : > { %6060 = vmatmul.msk.f32.gmra.mxu0 %vm660_vm0, %v1097_v57  ;;  %v7950_v25 = vpop.permute.xlu1 %3900  ;;  %10556 = vst [vmem:[#allocation176_spill] sm:$0xff] %v7964_v26 }
 0x2a3   : > { %6030 = vmatmul.msk.f32.gmra.mxu2 %vm660_vm0, %v1099_v19  ;;  %10552 = vst [vmem:[#allocation172_spill] sm:$0xff] %v7950_v25  ;;  %6478 = vset.pattern.permute.xlu0 %v10523_v8 }
 0x2a4   : > { %5149 = vperm.xlu0 %6478, %v6550_v24   ;;  %6475 = vset.pattern.permute.xlu2 %v10523_v8 }
 0x2a5   : > { %5141 = vperm.xlu2 %6475, %v6548_v11  }
 0x2a6   : > { %v7954_v39 = vpop.f32.mrf.mxu2 }
 0x2a7   : > { %10554 = vst [vmem:[#allocation174_spill] sm:$0xff] %v7954_v39  ;;  %v7959_v57 = vpop.f32.mrf.mxu0  ;;  %v6551_v39 = vld [vmem:[%s10327_s3 + $0x60] sm:$0xff]  ;;  %v7972_v25 = vpop.permute.xlu2 %3916 }
 0x2a8   : > { %10555 = vst [vmem:[#allocation175_spill] sm:$0xff] %v7959_v57  ;;  %v7995_v35 = vpop.permute.xlu0 %3836 }
 0x2a9   : > { %6476 = vset.pattern.permute.xlu1 %v10528_v46  ;;  %10558 = vst [vmem:[#allocation178_spill] sm:$0xff] %v7972_v25  ;;  %v6552_v25 = vld [vmem:[%s10327_s3 + $0x68] sm:$0xff] }
 0x2aa   : > { %6061 = vmatmul.msk.f32.gmra.mxu0 %vm660_vm0, %v1098_v60  ;;  %4283 = vperm.xlu1 %6476, %v6551_v39   ;;  %v7970_v14 = vpop.permute.xlu1 %3912  ;;  %v1101_v60 = vmax.f32 %v6763_v21, 0.0  ;;  %v1102_v21 = vmax.f32 %v6760_v20, 0.0  ;;  %10565 = vst [vmem:[#allocation185_spill] sm:$0xff] %v7995_v35  ;;  %v6150_v20 = vld [vmem:[%s10334_s10 + $0x10] sm:$0xff] }
 0x2ab   : > { %6031 = vmatmul.msk.f32.gmra.mxu2 %vm660_vm0, %v1100_v37  ;;  %10557 = vst [vmem:[#allocation177_spill] sm:$0xff] %v7970_v14 }
 0x2ac   : > { %6481 = vset.pattern.permute.xlu0 %v10527_v45  ;;  %2767 = vmatpush.msrb.mxu2 %v6150_v20 }
 0x2ad   : > { %4722 = vperm.xlu0 %6481, %v6552_v25   ;;  %5145 = vperm.xlu2 %6475, %v6549_v2  }
 0x2ae   : > { %v7974_v57 = vpop.f32.mrf.mxu2 }
 0x2af   : > { %10559 = vst [vmem:[#allocation179_spill] sm:$0xff] %v7974_v57  ;;  %v7977_v22 = vpop.f32.mrf.mxu0  ;;  %v7988_v14 = vpop.permute.xlu2 %4235 }
 0x2b0   : > { %10560 = vst [vmem:[#allocation180_spill] sm:$0xff] %v7977_v22  ;;  %v8014_v2 = vpop.permute.xlu0 %3848 }
 0x2b1   : > { %10562 = vst [vmem:[#allocation182_spill] sm:$0xff] %v7988_v14 }
 0x2b2   : > { %6062 = vmatmul.msk.f32.gmra.mxu0 %vm660_vm0, %v1099_v19  ;;  %4287 = vperm.xlu1 %6476, %v6552_v25   ;;  %v7986_v57 = vpop.permute.xlu1 %3924  ;;  %10570 = vst [vmem:[#allocation190_spill] sm:$0xff] %v8014_v2 }
 0x2b3   : > { %6032 = vmatmul.msk.f32.gmra.mxu2 %vm660_vm0, %v1101_v60  ;;  %10561 = vst [vmem:[#allocation181_spill] sm:$0xff] %v7986_v57 }
 0x2b5   : > { %6484 = vset.pattern.permute.xlu0 %v10528_v46  ;;  %6477 = vset.pattern.permute.xlu2 %v10527_v45 }
 0x2b6   : > { %v7990_v22 = vpop.f32.mrf.mxu2  ;;  %4714 = vperm.xlu2 %6477, %v6550_v24  }
 0x2b7   : > { %10563 = vst [vmem:[#allocation183_spill] sm:$0xff] %v7990_v22  ;;  %v7993_v51 = vpop.f32.mrf.mxu0  ;;  %v8003_v19 = vpop.permute.xlu2 %4670 }
 0x2b8   : > { %10564 = vst [vmem:[#allocation184_spill] sm:$0xff] %v7993_v51  ;;  %v1103_v51 = vmax.f32 %v6755_v17, 0.0  ;;  %v8041_v24 = vpop.permute.xlu0 %3860 }
 0x2b9   : > { %10567 = vst [vmem:[#allocation187_spill] sm:$0xff] %v8003_v19 }
 0x2ba   : > { %6063 = vmatmul.msk.f32.gmra.mxu0 %vm660_vm0, %v1100_v37  ;;  %6479 = vset.pattern.permute.xlu1 %v10523_v8  ;;  %v8001_v11 = vpop.permute.xlu1 %4243  ;;  %v8019_v37 = vld [vmem:[%s10327_s3 + $0x80] sm:$0xff]  ;;  %10575 = vst [vmem:[#allocation195_spill] sm:$0xff] %v8041_v24 }
 0x2bb   : > { %6033 = vmatmul.msk.f32.gmra.mxu2 %vm660_vm0, %v1102_v21  ;;  %10566 = vst [vmem:[#allocation186_spill] sm:$0xff] %v8001_v11  ;;  %5153 = vperm.xlu1 %6479, %v6551_v39   ;;  %v10619_v11 = vld [vmem:[#allocation11_spill] sm:$0xff] }
 0x2bc   : > { %4299 = vperm.xlu0 %6484, %v8019_v37   ;;  %v1113_v19 = vmax.f32 %v10619_v11, 0.0  ;;  %v8286_v11 = vld [vmem:[%s10327_s3 + $0xb0] sm:$0xff] }
 0x2be   : > { %v8005_v22 = vpop.f32.mrf.mxu2  ;;  %4718 = vperm.xlu2 %6477, %v6551_v39  }
 0x2bf   : > { %10568 = vst [vmem:[#allocation188_spill] sm:$0xff] %v8005_v22  ;;  %v8011_v57 = vpop.f32.mrf.mxu0  ;;  %v8027_v20 = vpop.permute.xlu2 %4674 }
 0x2c0   : > { %10569 = vst [vmem:[#allocation189_spill] sm:$0xff] %v8011_v57  ;;  %v6183_v57 = vld [vmem:[%s10334_s10 + $0x18] sm:$0xff]  ;;  %v8069_v16 = vpop.permute.xlu0 %3872 }
 0x2c1   : > { %10572 = vst [vmem:[#allocation192_spill] sm:$0xff] %v8027_v20  ;;  %3202 = vmatpush.msra.mxu0 %v6183_v57 }
 0x2c2   : > { %6064 = vmatmul.msk.f32.gmra.mxu0 %vm660_vm0, %v1101_v60  ;;  %v8025_v17 = vpop.permute.xlu1 %5105  ;;  %v1105_v60 = vmax.f32 %v6749_v15, 0.0  ;;  %v8066_v15 = vld [vmem:[%s10327_s3 + $0x90] sm:$0xff]  ;;  %10580 = vst [vmem:[#allocation200_spill] sm:$0xff] %v8069_v16  ;;  %v8105_v16 = vld [vmem:[%s10327_s3 + $0x88] sm:$0xff] }
 0x2c3   : > { %6034 = vmatmul.msk.f32.gmra.mxu2 %vm660_vm0, %v1103_v51  ;;  %10571 = vst [vmem:[#allocation191_spill] sm:$0xff] %v8025_v17  ;;  %5157 = vperm.xlu1 %6479, %v6552_v25   ;;  %v6556_v17 = vld [vmem:[%s10327_s3 + $0x78] sm:$0xff] }
 0x2c4   : > { %6487 = vset.pattern.permute.xlu0 %v10523_v8 }
 0x2c5   : > { %5169 = vperm.xlu0 %6487, %v8019_v37  }
 0x2c6   : > { %v8029_v22 = vpop.f32.mrf.mxu2  ;;  %6480 = vset.pattern.permute.xlu2 %v10528_v46 }
 0x2c7   : > { %10573 = vst [vmem:[#allocation193_spill] sm:$0xff] %v8029_v22  ;;  %v8035_v28 = vpop.f32.mrf.mxu0  ;;  %v6554_v22 = vld [vmem:[%s10327_s3 + $0x70] sm:$0xff]  ;;  %v8057_v39 = vpop.permute.xlu2 %4678 }
 0x2c8   : > { %10574 = vst [vmem:[#allocation194_spill] sm:$0xff] %v8035_v28  ;;  %4291 = vperm.xlu2 %6480, %v6554_v22  }
 0x2c9   : > { %10579 = vst [vmem:[#allocation199_spill] sm:$0xff] %v8057_v39 }
 0x2ca   : > { %6065 = vmatmul.msk.f32.gmra.mxu0 %vm660_vm0, %v1102_v21  ;;  %v8049_v57 = vpop.permute.xlu1 %4247 }
 0x2cb   : > { %6035 = vmatmul.msk.f32.gmra.mxu2 %vm660_vm0, %v1104_v61  ;;  %6482 = vset.pattern.permute.xlu1 %v10527_v45  ;;  %10577 = vst [vmem:[#allocation197_spill] sm:$0xff] %v8049_v57  ;;  %v8108_v57 = vpop.permute.xlu0 %3884 }
 0x2cc   : > { %4726 = vperm.xlu1 %6482, %v6554_v22   ;;  %10589 = vst [vmem:[#allocation209_spill] sm:$0xff] %v8108_v57 }
 0x2cd   : > { %6490 = vset.pattern.permute.xlu0 %v10527_v45 }
 0x2ce   : > { %v8043_v25 = vpop.f32.mrf.mxu2  ;;  %4742 = vperm.xlu0 %6490, %v8066_v15  }
 0x2cf   : > { %10576 = vst [vmem:[#allocation196_spill] sm:$0xff] %v8043_v25  ;;  %v8052_v21 = vpop.f32.mrf.mxu0  ;;  %v8081_v39 = vpop.permute.xlu2 %4251 }
 0x2d0   : > { %10578 = vst [vmem:[#allocation198_spill] sm:$0xff] %v8052_v21  ;;  %4295 = vperm.xlu2 %6480, %v6556_v17  }
 0x2d1   : > { %10584 = vst [vmem:[#allocation204_spill] sm:$0xff] %v8081_v39 }
 0x2d2   : > { %6066 = vmatmul.msk.f32.gmra.mxu0 %vm660_vm0, %v1103_v51  ;;  %v8073_v21 = vpop.permute.xlu1 %5113  ;;  %v1106_v51 = vmax.f32 %v6915_v48, 0.0  ;;  %v8089_v48 = vld [vmem:[%s10327_s3 + $0xa8] sm:$0xff] }
 0x2d3   : > { %6036 = vmatmul.msk.f32.gmra.mxu2 %vm660_vm0, %v1105_v60  ;;  %10582 = vst [vmem:[#allocation202_spill] sm:$0xff] %v8073_v21  ;;  %v1107_v21 = vmax.f32 %v6904_v36, 0.0  ;;  %v8115_v36 = vld [vmem:[%s10332_s8] ss:$0 sm:$0xff]  ;;  %v8137_v20 = vpop.permute.xlu0 %3896 }
 0x2d4   : > { %4730 = vperm.xlu1 %6482, %v6556_v17   ;;  %10593 = vst [vmem:[#allocation213_spill] sm:$0xff] %v8137_v20 }
 0x2d6   : > { %v8071_v25 = vpop.f32.mrf.mxu2  ;;  %6493 = vset.pattern.permute.xlu0 %v10528_v46 }
 0x2d7   : > { %10581 = vst [vmem:[#allocation201_spill] sm:$0xff] %v8071_v25  ;;  %v8076_v28 = vpop.f32.mrf.mxu0  ;;  %4319 = vperm.xlu0 %6493, %v8089_v48  }
 0x2d8   : > { %10583 = vst [vmem:[#allocation203_spill] sm:$0xff] %v8076_v28  ;;  %6483 = vset.pattern.permute.xlu2 %v10523_v8 }
 0x2d9   : > { %5161 = vperm.xlu2 %6483, %v6554_v22  }
 0x2da   : > { %6067 = vmatmul.msk.f32.gmra.mxu0 %vm660_vm0, %v1104_v61  ;;  %v8094_v28 = vpop.permute.xlu1 %5117  ;;  %v8100_v61 = vpop.permute.xlu2 %4255 }
 0x2db   : > { %6037 = vmatmul.msk.f32.gmra.mxu2 %vm660_vm0, %v1106_v51  ;;  %10586 = vst [vmem:[#allocation206_spill] sm:$0xff] %v8094_v28  ;;  %v1108_v28 = vmax.f32 %v6891_v23, 0.0 }
 0x2dc   : > { %6485 = vset.pattern.permute.xlu1 %v10528_v46  ;;  %10588 = vst [vmem:[#allocation208_spill] sm:$0xff] %v8100_v61 }
 0x2dd   : > { %4303 = vperm.xlu1 %6485, %v8105_v16  }
 0x2de   : > { %v8092_v25 = vpop.f32.mrf.mxu2 }
 0x2df   : > { %10585 = vst [vmem:[#allocation205_spill] sm:$0xff] %v8092_v25  ;;  %v8097_v39 = vpop.f32.mrf.mxu0  ;;  %6496 = vset.pattern.permute.xlu0 %v10523_v8  ;;  %v8124_v25 = vld [vmem:[%s10333_s9] ss:$0 sm:$0xff] }
 0x2e0   : > { %10587 = vst [vmem:[#allocation207_spill] sm:$0xff] %v8097_v39  ;;  %5189 = vperm.xlu0 %6496, %v8089_v48  }
 0x2e1   : > { %5165 = vperm.xlu2 %6483, %v6556_v17  }
 0x2e2   : > { %6068 = vmatmul.msk.f32.gmra.mxu0 %vm660_vm0, %v1105_v60  ;;  %v8126_v60 = vpop.permute.xlu1 %4686  ;;  %v8130_v61 = vpop.permute.xlu2 %5121 }
 0x2e3   : > { %6038 = vmatmul.msk.f32.gmra.mxu2 %vm660_vm0, %v1107_v21  ;;  %10591 = vst [vmem:[#allocation211_spill] sm:$0xff] %v8126_v60 }
 0x2e4   : > { %10592 = vst [vmem:[#allocation212_spill] sm:$0xff] %v8130_v61 }
 0x2e5   : > { %4307 = vperm.xlu1 %6485, %v8066_v15  }
 0x2e6   : > { %v8119_v39 = vpop.f32.mrf.mxu2 }
 0x2e7   : > { %10590 = vst [vmem:[#allocation210_spill] sm:$0xff] %v8119_v39  ;;  %v1352_v57 = vpop.f32.mrf.mxu0 }
 0x2e8   : > { %v1452_v22 = vmul.f32 %v8115_v36, %v1352_v57  ;;  %6499 = vset.pattern.permute.xlu0 %v10527_v45  ;;  %v1109_v57 = vmax.f32 %v6885_v13, 0.0 }
 0x2e9   : > { %6486 = vset.pattern.permute.xlu2 %v10527_v45 }
 0x2ea   : > { %v1488_v39 = vadd.f32 %v8124_v25, %v1452_v22  ;;  %6069 = vmatmul.msk.f32.gmra.mxu0 %vm660_vm0, %v1106_v51  ;;  %v8142_v18 = vpop.permute.xlu1 %4690  ;;  %v8146_v22 = vpop.permute.xlu2 %5125  ;;  %v8151_v51 = vld [vmem:[%s10327_s3 + $0xb8] sm:$0xff]  ;;  %4734 = vperm.xlu2 %6486, %v8019_v37  }
 0x2eb   : > { %6039 = vmatmul.msk.f32.gmra.mxu2 %vm660_vm0, %v1108_v28  ;;  %10595 = vst [vmem:[#allocation215_spill] sm:$0xff] %v8142_v18  ;;  %4762 = vperm.xlu0 %6499, %v8151_v51  }
 0x2ec   : > { %v1520_v60 = vmax.f32 %v1488_v39, 0.0  ;;  %10596 = vst [vmem:[#allocation216_spill] sm:$0xff] %v8146_v22 }
 0x2ed   : > { %6488 = vset.pattern.permute.xlu1 %v10523_v8 }
 0x2ee   : > { %1561 = vst.msk [vmem:[#allocation2 + $0x20] sm:$0xff] %vm1552_vm1, %v1520_v60  ;;  %v8140_v23 = vpop.f32.mrf.mxu2  ;;  %5173 = vperm.xlu1 %6488, %v8105_v16   ;;  %v8160_v60 = vpop.permute.xlu0 %3908 }
 0x2ef   : > { %10594 = vst [vmem:[#allocation214_spill] sm:$0xff] %v8140_v23  ;;  %v1355_v61 = vpop.f32.mrf.mxu0 }
 0x2f0   : > { %v1453_v17 = vmul.f32 %v8115_v36, %v1355_v61  ;;  %10597 = vst [vmem:[#allocation217_spill] sm:$0xff] %v8160_v60 }
 0x2f2   : > { %v1489_v39 = vadd.f32 %v8124_v25, %v1453_v17  ;;  %6070 = vmatmul.msk.f32.gmra.mxu0 %vm660_vm0, %v1107_v21  ;;  %v8171_v21 = vpop.permute.xlu1 %4263  ;;  %v8175_v18 = vpop.permute.xlu2 %4694  ;;  %4738 = vperm.xlu2 %6486, %v8105_v16   ;;  %v8217_v16 = vld [vmem:[%s10327_s3 + $0x98] sm:$0xff] }
 0x2f3   : > { %6040 = vmatmul.msk.f32.gmra.mxu2 %vm660_vm0, %v1109_v57  ;;  %10599 = vst [vmem:[#allocation219_spill] sm:$0xff] %v8171_v21  ;;  %6502 = vset.pattern.permute.xlu0 %v10528_v46 }
 0x2f4   : > { %v1521_v13 = vmax.f32 %v1489_v39, 0.0  ;;  %v1110_v39 = vmax.f32 %v6879_v9, 0.0  ;;  %10600 = vst [vmem:[#allocation220_spill] sm:$0xff] %v8175_v18 }
 0x2f5   : > { %v1852_v23 = vld [vmem:[#allocation2 + $0x20] sm:$0xff] }
 0x2f6   : > { %v8162_v22 = vld [vmem:[#allocation2 + $0x1f] sm:$0xff]  ;;  %1562 = vst.msk [vmem:[#allocation2 + $0x28] sm:$0xff] %vm1552_vm1, %v1521_v13  ;;  %v8166_v61 = vpop.f32.mrf.mxu2  ;;  %v2012_v20 = vmul.f32 %v7210_v53, %v1852_v23  ;;  %5177 = vperm.xlu1 %6488, %v8066_v15  }
 0x2f7   : > { %10598 = vst [vmem:[#allocation218_spill] sm:$0xff] %v8166_v61  ;;  %v1819_v17 = vmul.f32 %v7088_v12, %v8162_v22  ;;  %v1358_v60 = vpop.f32.mrf.mxu0  ;;  %v8185_v12 = vld [vmem:[%s10327_s3 + $0xd0] sm:$0xff] }
 0x2f8   : > { %v1454_v13 = vmul.f32 %v8115_v36, %v1358_v60  ;;  %6088 = vmatmul.msk.f32.gmra.mxu1 %vm1552_vm1, %v2012_v20  ;;  %4339 = vperm.xlu0 %6502, %v8185_v12   ;;  %v10602_v60 = vld [vmem:[#allocation16_spill] sm:$0xff] }
 0x2f9   : > { %6120 = vmatmul.msk.f32.gmra.mxu3 %vm1552_vm1, %v1819_v17 }
 0x2fa   : > { %v1490_v9 = vadd.f32 %v8124_v25, %v1454_v13  ;;  %6071 = vmatmul.msk.f32.gmra.mxu0 %vm660_vm0, %v1108_v28  ;;  %v8199_v61 = vpop.permute.xlu1 %4267  ;;  %v10604_v28 = vld [vmem:[#allocation13_spill] sm:$0xff]  ;;  %6489 = vset.pattern.permute.xlu2 %v10528_v46 }
 0x2fb   : > { %6041 = vmatmul.msk.f32.gmra.mxu2 %vm660_vm0, %v1110_v39  ;;  %10603 = vst [vmem:[#allocation16_spill] sm:$0xff] %v8199_v61  ;;  %v1111_v13 = vmax.f32 %v10604_v28, 0.0  ;;  %v10610_v28 = vld [vmem:[#allocation14_spill] sm:$0xff]  ;;  %4311 = vperm.xlu2 %6489, %v8217_v16  }
 0x2fc   : > { %v1522_v53 = vmax.f32 %v1490_v9, 0.0  ;;  %v8203_v9 = vpop.permute.xlu2 %4698 }
 0x2fd   : > { %v1853_v37 = vld [vmem:[#allocation2 + $0x28] sm:$0xff]  ;;  %10605 = vst [vmem:[#allocation13_spill] sm:$0xff] %v8203_v9 }
 0x2fe   : > { %v8191_v20 = vld [vmem:[#allocation2 + $0x27] sm:$0xff]  ;;  %1563 = vst.msk [vmem:[#allocation2 + $0x30] sm:$0xff] %vm1552_vm1, %v1522_v53  ;;  %v8194_v15 = vpop.f32.mrf.mxu2  ;;  %v2013_v23 = vmul.f32 %v7212_v42, %v1853_v37  ;;  %v8208_v53 = vpop.permute.xlu0 %3920  ;;  %6491 = vset.pattern.permute.xlu1 %v10527_v45 }
 0x2ff   : > { %10601 = vst [vmem:[#allocation221_spill] sm:$0xff] %v8194_v15  ;;  %v1820_v17 = vmul.f32 %v10602_v60, %v8191_v20  ;;  %v1361_v18 = vpop.f32.mrf.mxu0  ;;  %4746 = vperm.xlu1 %6491, %v8217_v16   ;;  %v10612_v9 = vld [vmem:[#allocation12_spill] sm:$0xff] }
 0x300   : > { %v1455_v21 = vmul.f32 %v8115_v36, %v1361_v18  ;;  %6089 = vmatmul.msk.f32.gmra.mxu1 %vm1552_vm1, %v2013_v23  ;;  %10606 = vst [vmem:[#allocation222_spill] sm:$0xff] %v8208_v53  ;;  %6505 = vset.pattern.permute.xlu0 %v10523_v8  ;;  %v8222_v18 = vpop.f32.mrf.mxu3  ;;  %v1112_v61 = vmax.f32 %v10612_v9, 0.0 }
 0x301   : > { %6121 = vmatmul.msk.f32.gmra.mxu3 %vm1552_vm1, %v1820_v17  ;;  %5209 = vperm.xlu0 %6505, %v8185_v12   ;;  %10607 = vst [vmem:[#allocation223_spill] sm:$0xff] %v8222_v18 }
 0x302   : > { %v1491_v42 = vadd.f32 %v8124_v25, %v1455_v21  ;;  %6072 = vmatmul.msk.f32.gmra.mxu0 %vm660_vm0, %v1109_v57  ;;  %v10609_v21 = vld [vmem:[#allocation36_spill] sm:$0xff]  ;;  %v8232_v53 = vpop.permute.xlu1 %5133 }
 0x303   : > { %6042 = vmatmul.msk.f32.gmra.mxu2 %vm660_vm0, %v1111_v13  ;;  %10611 = vst [vmem:[#allocation36_spill] sm:$0xff] %v8232_v53 }
 0x304   : > { %v1523_v37 = vmax.f32 %v1491_v42, 0.0  ;;  %v8236_v42 = vpop.permute.xlu2 %4271 }
 0x305   : > { %v1854_v23 = vld [vmem:[#allocation2 + $0x30] sm:$0xff]  ;;  %10613 = vst [vmem:[#allocation14_spill] sm:$0xff] %v8236_v42  ;;  %v10618_v42 = vld [vmem:[#allocation15_spill] sm:$0xff] }
 0x306   : > { %v8224_v60 = vld [vmem:[#allocation2 + $0x2f] sm:$0xff]  ;;  %1564 = vst.msk [vmem:[#allocation2 + $0x38] sm:$0xff] %vm1552_vm1, %v1523_v37  ;;  %v8227_v57 = vpop.f32.mrf.mxu2  ;;  %v2014_v17 = vmul.f32 %v10609_v21, %v1854_v23  ;;  %v8247_v21 = vld [vmem:[%s10327_s3 + $0xa0] sm:$0xff]  ;;  %v8250_v9 = vpop.permute.xlu0 %4239 }
 0x307   : > { %10608 = vst [vmem:[#allocation224_spill] sm:$0xff] %v8227_v57  ;;  %v1821_v15 = vmul.f32 %v10610_v28, %v8224_v60  ;;  %v1364_v18 = vpop.f32.mrf.mxu0  ;;  %4750 = vperm.xlu1 %6491, %v8247_v21   ;;  %v10617_v57 = vld [vmem:[#allocation37_spill] sm:$0xff]  ;;  %4315 = vperm.xlu2 %6489, %v8247_v21  }
 0x308   : > { %v1456_v37 = vmul.f32 %v8115_v36, %v1364_v18  ;;  %6090 = vmatmul.msk.f32.gmra.mxu1 %vm1552_vm1, %v2014_v17  ;;  %10614 = vst [vmem:[#allocation12_spill] sm:$0xff] %v8250_v9  ;;  %v8262_v28 = vpop.f32.mrf.mxu3 }
 0x309   : > { %6122 = vmatmul.msk.f32.gmra.mxu3 %vm1552_vm1, %v1821_v15  ;;  %6508 = vset.pattern.permute.xlu0 %v10527_v45  ;;  %v8257_v15 = vld [vmem:[%s10327_s3 + $0xe0] sm:$0xff]  ;;  %10615 = vst [vmem:[#allocation225_spill] sm:$0xff] %v8262_v28 }
 0x30a   : > { %v1492_v23 = vadd.f32 %v8124_v25, %v1456_v37  ;;  %6073 = vmatmul.msk.f32.gmra.mxu0 %vm660_vm0, %v1110_v39  ;;  %4782 = vperm.xlu0 %6508, %v8257_v15  }
 0x30b   : > { %6043 = vmatmul.msk.f32.gmra.mxu2 %vm660_vm0, %v1112_v61 }
 0x30c   : > { %v1524_v18 = vmax.f32 %v1492_v23, 0.0  ;;  %v8271_v9 = vpop.permute.xlu2 %4275 }
 0x30d   : > { %v8260_v39 = vld [vmem:[#allocation2 + $0x37] sm:$0xff]  ;;  %10620 = vst [vmem:[#allocation37_spill] sm:$0xff] %v8271_v9 }
 0x30e   : > { %v1855_v17 = vld [vmem:[#allocation2 + $0x38] sm:$0xff]  ;;  %1565 = vst.msk [vmem:[#allocation2 + $0x40] sm:$0xff] %vm1552_vm1, %v1524_v18  ;;  %v8265_v37 = vpop.f32.mrf.mxu2  ;;  %v1822_v23 = vmul.f32 %v8260_v39, %v10618_v42  ;;  %v8277_v18 = vpop.permute.xlu1 %5137 }
 0x30f   : > { %10616 = vst [vmem:[#allocation226_spill] sm:$0xff] %v8265_v37  ;;  %v2015_v53 = vmul.f32 %v10617_v57, %v1855_v17  ;;  %v1367_v34 = vpop.f32.mrf.mxu0  ;;  %6494 = vset.pattern.permute.xlu1 %v10528_v46  ;;  %v10624_v37 = vld [vmem:[#allocation34_spill] sm:$0xff]  ;;  %6492 = vset.pattern.permute.xlu2 %v10523_v8 }
 0x310   : > { %v1457_v24 = vmul.f32 %v8115_v36, %v1367_v34  ;;  %10621 = vst [vmem:[#allocation15_spill] sm:$0xff] %v8277_v18  ;;  %4323 = vperm.xlu1 %6494, %v8286_v11   ;;  %v10625_v9 = vld [vmem:[#allocation10_spill] sm:$0xff]  ;;  %5181 = vperm.xlu2 %6492, %v8217_v16  }
 0x311   : > { %6091 = vmatmul.msk.f32.gmra.mxu1 %vm1552_vm1, %v2015_v53  ;;  %6123 = vmatmul.msk.f32.gmra.mxu3 %vm1552_vm1, %v1822_v23  ;;  %v5110_v53 = vpop.permute.xlu0 %5109  ;;  %v1114_v14 = vmax.f32 %v10625_v9, 0.0  ;;  %v10630_v16 = vld [vmem:[#allocation38_spill] sm:$0xff] }
 0x312   : > { %v1493_v57 = vadd.f32 %v8124_v25, %v1457_v24  ;;  %6074 = vmatmul.msk.f32.gmra.mxu0 %vm660_vm0, %v1111_v13  ;;  %6511 = vset.pattern.permute.xlu0 %v10528_v46  ;;  %v8297_v13 = vld [vmem:[%s10327_s3 + $0xf8] sm:$0xff] }
 0x313   : > { %6044 = vmatmul.msk.f32.gmra.mxu2 %vm660_vm0, %v1113_v19  ;;  %4359 = vperm.xlu0 %6511, %v8297_v13   ;;  %v8641_v35 = vld [vmem:[#allocation2 + $0x31] sm:$0xff] }
 0x314   : > { %v1525_v34 = vmax.f32 %v1493_v57, 0.0  ;;  %v8310_v6 = vpop.permute.xlu2 %5141 }
 0x315   : > { %v8290_v42 = vld [vmem:[#allocation2 + $0x39] sm:$0xff]  ;;  %10626 = vst [vmem:[#allocation34_spill] sm:$0xff] %v8310_v6 }
 0x316   : > { %v1856_v24 = vld [vmem:[#allocation2 + $0x40] sm:$0xff]  ;;  %v8301_v23 = vmul.f32 %v5110_v53, %v8290_v42  ;;  %1566 = vst.msk [vmem:[#allocation2 + $0x48] sm:$0xff] %vm1552_vm1, %v1525_v34  ;;  %v8304_v57 = vpop.f32.mrf.mxu2  ;;  %v8316_v34 = vpop.f32.mrf.mxu3 }
 0x317   : > { %v8292_v17 = vld [vmem:[#allocation2 + $0x3f] sm:$0xff]  ;;  %10623 = vst [vmem:[#allocation227_spill] sm:$0xff] %v8304_v57  ;;  %v2016_v28 = vmul.f32 %v7321_v62, %v1856_v24  ;;  %v1370_v3 = vpop.f32.mrf.mxu0  ;;  %v8322_v9 = vpop.permute.xlu1 %4706  ;;  %v10632_v24 = vld [vmem:[#allocation9_spill] sm:$0xff] }
 0x318   : > { %10622 = vst [vmem:[#allocation11_spill] sm:$0xff] %v8301_v23  ;;  %v1823_v18 = vmul.f32 %v10624_v37, %v8292_v17  ;;  %v1458_v2 = vmul.f32 %v8115_v36, %v1370_v3  ;;  %4327 = vperm.xlu1 %6494, %v8151_v51   ;;  %5185 = vperm.xlu2 %6492, %v8247_v21  }
 0x319   : > { %6092 = vmatmul.msk.f32.gmra.mxu1 %vm1552_vm1, %v2016_v28  ;;  %10627 = vst [vmem:[#allocation10_spill] sm:$0xff] %v8316_v34  ;;  %v1115_v34 = vmax.f32 %v10632_v24, 0.0 }
 0x31a   : > { %6124 = vmatmul.msk.f32.gmra.mxu3 %vm1552_vm1, %v1823_v18  ;;  %v1494_v62 = vadd.f32 %v8124_v25, %v1458_v2  ;;  %6075 = vmatmul.msk.f32.gmra.mxu0 %vm660_vm0, %v1112_v61  ;;  %10628 = vst [vmem:[#allocation228_spill] sm:$0xff] %v8322_v9  ;;  %v10631_v61 = vld [vmem:[#allocation18_spill] sm:$0xff] }
 0x31b   : > { %6045 = vmatmul.msk.f32.gmra.mxu2 %vm660_vm0, %v1114_v14  ;;  %6512 = vset.pattern.permute.xlu0 %v10523_v8 }
 0x31c   : > { %v1526_v37 = vmax.f32 %v1494_v62, 0.0  ;;  %v8338_v62 = vpop.permute.xlu2 %5145 }
 0x31d   : > { %v4640_v3 = vld [vmem:[#allocation2 + $0x48] sm:$0xff]  ;;  %10633 = vst [vmem:[#allocation38_spill] sm:$0xff] %v8338_v62 }
 0x31e   : > { %v8325_v53 = vld [vmem:[#allocation2 + $0x47] sm:$0xff]  ;;  %1567 = vst.msk [vmem:[#allocation2 + $0x50] sm:$0xff] %vm1552_vm1, %v1526_v37  ;;  %v8329_v28 = vpop.f32.mrf.mxu2  ;;  %v2017_v2 = vmul.f32 %v4640_v3, %v10630_v16  ;;  %v8343_v3 = vpop.f32.mrf.mxu3 }
 0x31f   : > { %10629 = vst [vmem:[#allocation229_spill] sm:$0xff] %v8329_v28  ;;  %v1824_v18 = vmul.f32 %v10631_v61, %v8325_v53  ;;  %v1373_v57 = vpop.f32.mrf.mxu0  ;;  %v8348_v61 = vpop.permute.xlu1 %4710  ;;  %v10640_v62 = vld [vmem:[#allocation8_spill] sm:$0xff] }
 0x320   : > { %v1459_v6 = vmul.f32 %v8115_v36, %v1373_v57  ;;  %10634 = vst [vmem:[#allocation18_spill] sm:$0xff] %v8343_v3  ;;  %6497 = vset.pattern.permute.xlu1 %v10523_v8  ;;  %v10639_v3 = vld [vmem:[#allocation124_spill] sm:$0xff]  ;;  %v1116_v23 = vmax.f32 %v10640_v62, 0.0  ;;  %6495 = vset.pattern.permute.xlu2 %v10527_v45 }
 0x321   : > { %6093 = vmatmul.msk.f32.gmra.mxu1 %vm1552_vm1, %v2017_v2  ;;  %5193 = vperm.xlu1 %6497, %v8286_v11   ;;  %10635 = vst [vmem:[#allocation9_spill] sm:$0xff] %v8348_v61 }
 0x322   : > { %6125 = vmatmul.msk.f32.gmra.mxu3 %vm1552_vm1, %v1824_v18  ;;  %v1495_v37 = vadd.f32 %v8124_v25, %v1459_v6  ;;  %6076 = vmatmul.msk.f32.gmra.mxu0 %vm660_vm0, %v1113_v19  ;;  %v10637_v6 = vld [vmem:[#allocation39_spill] sm:$0xff]  ;;  %v10638_v19 = vld [vmem:[#allocation17_spill] sm:$0xff] }
 0x323   : > { %6046 = vmatmul.msk.f32.gmra.mxu2 %vm660_vm0, %v1115_v34  ;;  %4754 = vperm.xlu2 %6495, %v8089_v48   ;;  %v10645_v48 = vld [vmem:[#allocation35_spill] sm:$0xff] }
 0x324   : > { %v1527_v16 = vmax.f32 %v1495_v37, 0.0 }
 0x325   : > { %v1858_v57 = vld [vmem:[#allocation2 + $0x50] sm:$0xff] }
 0x326   : > { %v1601_v2 = vld [vmem:[#allocation2 + $0x4f] sm:$0xff]  ;;  %1568 = vst.msk [vmem:[#allocation2 + $0x58] sm:$0xff] %vm1552_vm1, %v1527_v16  ;;  %v8351_v21 = vpop.f32.mrf.mxu2  ;;  %v2018_v18 = vmul.f32 %v10637_v6, %v1858_v57  ;;  %v8370_v57 = vpop.f32.mrf.mxu3 }
 0x327   : > { %10636 = vst [vmem:[#allocation230_spill] sm:$0xff] %v8351_v21  ;;  %v1825_v24 = vmul.f32 %v10638_v19, %v1601_v2  ;;  %v8356_v28 = vmul.f32 %v10639_v3, %v1601_v2  ;;  %v1376_v37 = vpop.f32.mrf.mxu0  ;;  %v8367_v3 = vpop.permute.xlu2 %4714 }
 0x328   : > { %v1460_v9 = vmul.f32 %v8115_v36, %v1376_v37  ;;  %10641 = vst [vmem:[#allocation39_spill] sm:$0xff] %v8367_v3 }
 0x329   : > { %6094 = vmatmul.msk.f32.gmra.mxu1 %vm1552_vm1, %v2018_v18  ;;  %5197 = vperm.xlu1 %6497, %v8151_v51   ;;  %10642 = vst [vmem:[#allocation17_spill] sm:$0xff] %v8370_v57  ;;  %v10653_v57 = vld [vmem:[#allocation6_spill] sm:$0xff] }
 0x32a   : > { %6126 = vmatmul.msk.f32.gmra.mxu3 %vm1552_vm1, %v1825_v24  ;;  %v1496_v16 = vadd.f32 %v8124_v25, %v1460_v9  ;;  %6077 = vmatmul.msk.f32.gmra.mxu0 %vm660_vm0, %v1114_v14  ;;  %v10644_v9 = vld [vmem:[#allocation67_spill] sm:$0xff] }
 0x32b   : > { %6047 = vmatmul.msk.f32.gmra.mxu2 %vm660_vm0, %v1116_v23  ;;  %v10646_v24 = vld [vmem:[#allocation7_spill] sm:$0xff]  ;;  %4758 = vperm.xlu2 %6495, %v8286_v11  }
 0x32c   : > { %v1528_v62 = vmax.f32 %v1496_v16, 0.0  ;;  %v1117_v37 = vmax.f32 %v10646_v24, 0.0  ;;  %v8381_v16 = vpop.permute.xlu1 %4283 }
 0x32d   : > { %v1859_v2 = vld [vmem:[#allocation2 + $0x58] sm:$0xff]  ;;  %10647 = vst [vmem:[#allocation8_spill] sm:$0xff] %v8381_v16 }
 0x32e   : > { %v8372_v6 = vld [vmem:[#allocation2 + $0x57] sm:$0xff]  ;;  %1569 = vst.msk [vmem:[#allocation2 + $0x60] sm:$0xff] %vm1552_vm1, %v1528_v62  ;;  %v8375_v18 = vpop.f32.mrf.mxu2  ;;  %v2019_v14 = vmul.f32 %v10644_v9, %v1859_v2  ;;  %v8390_v2 = vpop.permute.xlu0 %5129 }
 0x32f   : > { %10643 = vst [vmem:[#allocation124_spill] sm:$0xff] %v8375_v18  ;;  %v1826_v19 = vmul.f32 %v10645_v48, %v8372_v6  ;;  %v1379_v21 = vpop.f32.mrf.mxu0  ;;  %v8395_v24 = vpop.permute.xlu2 %4718  ;;  %v1118_v18 = vmax.f32 %v10653_v57, 0.0 }
 0x330   : > { %v1461_v51 = vmul.f32 %v8115_v36, %v1379_v21  ;;  %10648 = vst [vmem:[#allocation67_spill] sm:$0xff] %v8390_v2  ;;  %v8407_v2 = vpop.f32.mrf.mxu3 }
 0x331   : > { %6095 = vmatmul.msk.f32.gmra.mxu1 %vm1552_vm1, %v2019_v14  ;;  %6500 = vset.pattern.permute.xlu1 %v10527_v45  ;;  %10649 = vst [vmem:[#allocation35_spill] sm:$0xff] %v8395_v24  ;;  %v6566_v14 = vld [vmem:[%s10327_s3 + $0xc0] sm:$0xff] }
 0x332   : > { %6127 = vmatmul.msk.f32.gmra.mxu3 %vm1552_vm1, %v1826_v19  ;;  %v1497_v62 = vadd.f32 %v8124_v25, %v1461_v51  ;;  %6078 = vmatmul.msk.f32.gmra.mxu0 %vm660_vm0, %v1115_v34  ;;  %v10651_v34 = vld [vmem:[#allocation41_spill] sm:$0xff]  ;;  %v10652_v51 = vld [vmem:[#allocation20_spill] sm:$0xff] }
 0x333   : > { %6048 = vmatmul.msk.f32.gmra.mxu2 %vm660_vm0, %v1117_v37  ;;  %4766 = vperm.xlu1 %6500, %v6566_v14   ;;  %10654 = vst [vmem:[#allocation41_spill] sm:$0xff] %v8407_v2  ;;  %v10660_v2 = vld [vmem:[#allocation5_spill] sm:$0xff] }
 0x334   : > { %v1529_v9 = vmax.f32 %v1497_v62, 0.0  ;;  %v8412_v16 = vpop.permute.xlu1 %4287  ;;  %6498 = vset.pattern.permute.xlu2 %v10528_v46 }
 0x335   : > { %v8393_v48 = vld [vmem:[#allocation2 + $0x5f] sm:$0xff]  ;;  %10655 = vst [vmem:[#allocation20_spill] sm:$0xff] %v8412_v16  ;;  %4331 = vperm.xlu2 %6498, %v6566_v14  }
 0x336   : > { %v1860_v21 = vld [vmem:[#allocation2 + $0x60] sm:$0xff]  ;;  %1570 = vst.msk [vmem:[#allocation2 + $0x68] sm:$0xff] %vm1552_vm1, %v1529_v9  ;;  %v8401_v11 = vpop.f32.mrf.mxu2  ;;  %v1827_v62 = vmul.f32 %v8393_v48, %v10652_v51 }
 0x337   : > { %10650 = vst [vmem:[#allocation7_spill] sm:$0xff] %v8401_v11  ;;  %v2020_v19 = vmul.f32 %v10651_v34, %v1860_v21  ;;  %v1382_v3 = vpop.f32.mrf.mxu0  ;;  %v1119_v11 = vmax.f32 %v10660_v2, 0.0  ;;  %v8435_v61 = vpop.permute.xlu2 %4291 }
 0x338   : > { %v1462_v24 = vmul.f32 %v8115_v36, %v1382_v3  ;;  %v8423_v3 = vld [vmem:[%s10327_s3 + $0xc8] sm:$0xff] }
 0x339   : > { %6096 = vmatmul.msk.f32.gmra.mxu1 %vm1552_vm1, %v2020_v19  ;;  %v8426_v19 = vpop.permute.xlu0 %4682 }
 0x33a   : > { %6128 = vmatmul.msk.f32.gmra.mxu3 %vm1552_vm1, %v1827_v62  ;;  %v1498_v9 = vadd.f32 %v8124_v25, %v1462_v24  ;;  %6079 = vmatmul.msk.f32.gmra.mxu0 %vm660_vm0, %v1116_v23  ;;  %10656 = vst [vmem:[#allocation6_spill] sm:$0xff] %v8426_v19  ;;  %v10658_v24 = vld [vmem:[#allocation42_spill] sm:$0xff]  ;;  %v10659_v62 = vld [vmem:[#allocation19_spill] sm:$0xff]  ;;  %v8440_v19 = vpop.f32.mrf.mxu3 }
 0x33b   : > { %6049 = vmatmul.msk.f32.gmra.mxu2 %vm660_vm0, %v1118_v18  ;;  %4770 = vperm.xlu1 %6500, %v8423_v3   ;;  %10661 = vst [vmem:[#allocation42_spill] sm:$0xff] %v8435_v61 }
 0x33c   : > { %v1530_v57 = vmax.f32 %v1498_v9, 0.0  ;;  %10662 = vst [vmem:[#allocation19_spill] sm:$0xff] %v8440_v19  ;;  %v8460_v19 = vld [vmem:[%s10327_s3 + $0xd8] sm:$0xff] }
 0x33d   : > { %v1861_v21 = vld [vmem:[#allocation2 + $0x68] sm:$0xff]  ;;  %4335 = vperm.xlu2 %6498, %v8423_v3  }
 0x33e   : > { %v8418_v34 = vld [vmem:[#allocation2 + $0x67] sm:$0xff]  ;;  %1571 = vst.msk [vmem:[#allocation2 + $0x70] sm:$0xff] %vm1552_vm1, %v1530_v57  ;;  %v8429_v23 = vpop.f32.mrf.mxu2  ;;  %v2021_v51 = vmul.f32 %v10658_v24, %v1861_v21  ;;  %v8445_v21 = vpop.permute.xlu1 %5153 }
 0x33f   : > { %10657 = vst [vmem:[#allocation231_spill] sm:$0xff] %v8429_v23  ;;  %v1828_v9 = vmul.f32 %v10659_v62, %v8418_v34  ;;  %v1385_v16 = vpop.f32.mrf.mxu0 }
 0x340   : > { %v1463_v29 = vmul.f32 %v8115_v36, %v1385_v16  ;;  %10663 = vst [vmem:[#allocation5_spill] sm:$0xff] %v8445_v21 }
 0x341   : > { %6097 = vmatmul.msk.f32.gmra.mxu1 %vm1552_vm1, %v2021_v51  ;;  %v10665_v51 = vld [vmem:[#allocation70_spill] sm:$0xff]  ;;  %v8464_v21 = vpop.permute.xlu0 %4702 }
 0x342   : > { %6129 = vmatmul.msk.f32.gmra.mxu3 %vm1552_vm1, %v1828_v9  ;;  %v1499_v57 = vadd.f32 %v8124_v25, %v1463_v29  ;;  %6080 = vmatmul.msk.f32.gmra.mxu0 %vm660_vm0, %v1117_v37  ;;  %v10666_v37 = vld [vmem:[#allocation40_spill] sm:$0xff]  ;;  %10668 = vst [vmem:[#allocation70_spill] sm:$0xff] %v8464_v21 }
 0x343   : > { %6050 = vmatmul.msk.f32.gmra.mxu2 %vm660_vm0, %v1119_v11  ;;  %6503 = vset.pattern.permute.xlu1 %v10528_v46 }
 0x344   : > { %v1531_v2 = vmax.f32 %v1499_v57, 0.0  ;;  %4343 = vperm.xlu1 %6503, %v8460_v19   ;;  %v10667_v57 = vld [vmem:[#allocation4_spill] sm:$0xff] }
 0x345   : > { %v1862_v24 = vld [vmem:[#allocation2 + $0x70] sm:$0xff]  ;;  %v1120_v23 = vmax.f32 %v10667_v57, 0.0  ;;  %6501 = vset.pattern.permute.xlu2 %v10523_v8 }
 0x346   : > { %v8448_v62 = vld [vmem:[#allocation2 + $0x6f] sm:$0xff]  ;;  %1572 = vst.msk [vmem:[#allocation2 + $0x78] sm:$0xff] %vm1552_vm1, %v1531_v2  ;;  %v8452_v16 = vpop.f32.mrf.mxu2  ;;  %v2022_v29 = vmul.f32 %v10665_v51, %v1862_v24  ;;  %v8469_v24 = vpop.permute.xlu2 %4295  ;;  %5201 = vperm.xlu2 %6501, %v6566_v14  }
 0x347   : > { %10664 = vst [vmem:[#allocation232_spill] sm:$0xff] %v8452_v16  ;;  %v1829_v9 = vmul.f32 %v10666_v37, %v8448_v62  ;;  %v1388_v61 = vpop.f32.mrf.mxu0  ;;  %v8473_v37 = vpop.f32.mrf.mxu3  ;;  %v6249_v14 = vld [vmem:[%s10334_s10 + $0x28] sm:$0xff] }
 0x348   : > { %v1464_v2 = vmul.f32 %v8115_v36, %v1388_v61  ;;  %10669 = vst [vmem:[#allocation40_spill] sm:$0xff] %v8469_v24  ;;  %4072 = vmatpush.msrb.mxu3 %v6249_v14 }
 0x349   : > { %6098 = vmatmul.msk.f32.gmra.mxu1 %vm1552_vm1, %v2022_v29  ;;  %10670 = vst [vmem:[#allocation4_spill] sm:$0xff] %v8473_v37  ;;  %v8479_v29 = vpop.permute.xlu1 %5157 }
 0x34a   : > { %6130 = vmatmul.msk.f32.gmra.mxu3 %vm1552_vm1, %v1829_v9  ;;  %v1500_v51 = vadd.f32 %v8124_v25, %v1464_v2  ;;  %6081 = vmatmul.msk.f32.gmra.mxu0 %vm660_vm0, %v1118_v18  ;;  %10671 = vst [vmem:[#allocation233_spill] sm:$0xff] %v8479_v29  ;;  %v10673_v2 = vld [vmem:[#allocation44_spill] sm:$0xff]  ;;  %v10674_v18 = vld [vmem:[#allocation22_spill] sm:$0xff] }
 0x34b   : > { %6051 = vmatmul.msk.f32.gmra.mxu2 %vm660_vm0, %v1120_v23 }
 0x34c   : > { %v1532_v57 = vmax.f32 %v1500_v51, 0.0  ;;  %4347 = vperm.xlu1 %6503, %v8257_v15   ;;  %v10675_v51 = vld [vmem:[#allocation3_spill] sm:$0xff] }
 0x34d   : > { %v1863_v16 = vld [vmem:[#allocation2 + $0x78] sm:$0xff]  ;;  %v1121_v21 = vmax.f32 %v10675_v51, 0.0 }
 0x34e   : > { %v8477_v61 = vld [vmem:[#allocation2 + $0x77] sm:$0xff]  ;;  %1573 = vst.msk [vmem:[#allocation2 + $0x80] sm:$0xff] %vm1552_vm1, %v1532_v57  ;;  %v8482_v9 = vpop.f32.mrf.mxu2  ;;  %v2023_v24 = vmul.f32 %v10673_v2, %v1863_v16  ;;  %v8495_v16 = vpop.permute.xlu0 %4259  ;;  %5205 = vperm.xlu2 %6501, %v8423_v3  }
 0x34f   : > { %10672 = vst [vmem:[#allocation234_spill] sm:$0xff] %v8482_v9  ;;  %v1830_v37 = vmul.f32 %v10674_v18, %v8477_v61  ;;  %v1391_v40 = vpop.f32.mrf.mxu0  ;;  %v8500_v2 = vpop.permute.xlu2 %5161 }
 0x350   : > { %v1465_v29 = vmul.f32 %v8115_v36, %v1391_v40  ;;  %10676 = vst [vmem:[#allocation44_spill] sm:$0xff] %v8495_v16  ;;  %v8503_v14 = vpop.f32.mrf.mxu3  ;;  %v10681_v16 = vld [vmem:[#allocation21_spill] sm:$0xff] }
 0x351   : > { %6099 = vmatmul.msk.f32.gmra.mxu1 %vm1552_vm1, %v2023_v24  ;;  %10677 = vst [vmem:[#allocation22_spill] sm:$0xff] %v8500_v2 }
 0x352   : > { %6131 = vmatmul.msk.f32.gmra.mxu3 %vm1552_vm1, %v1830_v37  ;;  %v1501_v57 = vadd.f32 %v8124_v25, %v1465_v29  ;;  %6082 = vmatmul.msk.f32.gmra.mxu0 %vm660_vm0, %v1119_v11  ;;  %10678 = vst [vmem:[#allocation3_spill] sm:$0xff] %v8503_v14  ;;  %v2462_v37 = vld [vmem:[#allocation2 + $0x11] sm:$0xff] }
 0x353   : > { %6052 = vmatmul.msk.f32.gmra.mxu2 %vm660_vm0, %v1121_v21  ;;  %v10680_v11 = vld [vmem:[#allocation45_spill] sm:$0xff] }
 0x354   : > { %v1533_v18 = vmax.f32 %v1501_v57, 0.0  ;;  %6506 = vset.pattern.permute.xlu1 %v10523_v8  ;;  %v8516_v57 = vpop.permute.xlu1 %4726 }
 0x355   : > { %v1864_v40 = vld [vmem:[#allocation2 + $0x80] sm:$0xff]  ;;  %10682 = vst [vmem:[#allocation45_spill] sm:$0xff] %v8516_v57  ;;  %5213 = vperm.xlu1 %6506, %v8460_v19  }
 0x356   : > { %v8505_v51 = vld [vmem:[#allocation2 + $0x7f] sm:$0xff]  ;;  %1574 = vst.msk [vmem:[#allocation2 + $0x88] sm:$0xff] %vm1552_vm1, %v1533_v18  ;;  %v8510_v29 = vpop.f32.mrf.mxu2  ;;  %v2024_v9 = vmul.f32 %v10680_v11, %v1864_v40  ;;  %6504 = vset.pattern.permute.xlu2 %v10527_v45 }
 0x357   : > { %v8507_v24 = vld [vmem:[#allocation2 + $0x79] sm:$0xff]  ;;  %10679 = vst [vmem:[#allocation235_spill] sm:$0xff] %v8510_v29  ;;  %v1831_v2 = vmul.f32 %v10681_v16, %v8505_v51  ;;  %v1394_v3 = vpop.f32.mrf.mxu0  ;;  %v8527_v16 = vpop.permute.xlu0 %4279  ;;  %4774 = vperm.xlu2 %6504, %v8185_v12  }
 0x358   : > { %v8521_v14 = vmul.f32 %v7871_v56, %v8507_v24  ;;  %v1466_v18 = vmul.f32 %v8115_v36, %v1394_v3  ;;  %v10684_v40 = vld [vmem:[#allocation62_spill] sm:$0xff]  ;;  %v10691_v12 = vld [vmem:[#allocation91_spill] sm:$0xff] }
 0x359   : > { %6100 = vmatmul.msk.f32.gmra.mxu1 %vm1552_vm1, %v2024_v9  ;;  %v2622_v11 = vmul.f32 %v10684_v40, %v2462_v37  ;;  %10685 = vst [vmem:[#allocation62_spill] sm:$0xff] %v8527_v16  ;;  %v2463_v40 = vld [vmem:[#allocation2 + $0x19] sm:$0xff] }
 0x35a   : > { %10683 = vst [vmem:[#allocation21_spill] sm:$0xff] %v8521_v14  ;;  %6132 = vmatmul.msk.f32.gmra.mxu3 %vm1552_vm1, %v1831_v2  ;;  %v1502_v29 = vadd.f32 %v8124_v25, %v1466_v18  ;;  %6083 = vmatmul.msk.f32.gmra.mxu0 %vm660_vm0, %v1120_v23  ;;  %v8535_v14 = vpop.permute.xlu2 %5165  ;;  %v10688_v2 = vld [vmem:[#allocation73_spill] sm:$0xff]  ;;  %v10689_v18 = vld [vmem:[#allocation43_spill] sm:$0xff] }
 0x35b   : > { %6151 = vmatmul.msk.f32.vlgmr.msrb.gmra.mxu2 %vm1552_vm1, %v2622_v11  ;;  %10686 = vst [vmem:[#allocation236_spill] sm:$0xff] %v8535_v14 }
 0x35c   : > { %v1534_v57 = vmax.f32 %v1502_v29, 0.0  ;;  %v8544_v29 = vpop.f32.mrf.mxu3 }
 0x35d   : > { %v8533_v56 = vld [vmem:[#allocation2 + $0x87] sm:$0xff]  ;;  %10690 = vst [vmem:[#allocation73_spill] sm:$0xff] %v8544_v29  ;;  %5217 = vperm.xlu1 %6506, %v8257_v15  }
 0x35e   : > { %v1865_v3 = vld [vmem:[#allocation2 + $0x88] sm:$0xff]  ;;  %1575 = vst.msk [vmem:[#allocation2 + $0x90] sm:$0xff] %vm1552_vm1, %v1534_v57  ;;  %v8539_v9 = vpop.f32.mrf.mxu2  ;;  %v1832_v23 = vmul.f32 %v8533_v56, %v10689_v18  ;;  %v2623_v57 = vmul.f32 %v10691_v12, %v2463_v40 }
 0x35f   : > { %10687 = vst [vmem:[#allocation237_spill] sm:$0xff] %v8539_v9  ;;  %v2025_v37 = vmul.f32 %v10688_v2, %v1865_v3  ;;  %v1397_v11 = vpop.f32.mrf.mxu0  ;;  %v8551_v9 = vpop.permute.xlu1 %4730  ;;  %4778 = vperm.xlu2 %6504, %v8460_v19   ;;  %v10697_v12 = vld [vmem:[#allocation24_spill] sm:$0xff] }
 0x360   : > { %v1467_v16 = vmul.f32 %v8115_v36, %v1397_v11  ;;  %10692 = vst [vmem:[#allocation43_spill] sm:$0xff] %v8551_v9  ;;  %v8555_v2 = vpop.f32.mrf.mxu1  ;;  %v5150_v18 = vpop.permute.xlu0 %5149 }
 0x361   : > { %6101 = vmatmul.msk.f32.gmra.mxu1 %vm1552_vm1, %v2025_v37  ;;  %10693 = vst [vmem:[#allocation91_spill] sm:$0xff] %v8555_v2 }
 0x362   : > { %6133 = vmatmul.msk.f32.gmra.mxu3 %vm1552_vm1, %v1832_v23  ;;  %v1503_v3 = vadd.f32 %v8124_v25, %v1467_v16  ;;  %6084 = vmatmul.msk.f32.gmra.mxu0 %vm660_vm0, %v1121_v21  ;;  %v10696_v21 = vld [vmem:[#allocation47_spill] sm:$0xff]  ;;  %v8574_v9 = vpop.permute.xlu2 %4734 }
 0x363   : > { %6152 = vmatmul.msk.f32.gmra.mxu2 %vm1552_vm1, %v2623_v57  ;;  %10698 = vst [vmem:[#allocation47_spill] sm:$0xff] %v8574_v9 }
 0x364   : > { %v1535_v15 = vmax.f32 %v1503_v3, 0.0  ;;  %v8572_v3 = vld [vmem:[#allocation2 + $0x21] sm:$0xff] }
 0x365   : > { %v8558_v29 = vld [vmem:[#allocation2 + $0x89] sm:$0xff]  ;;  %6509 = vset.pattern.permute.xlu1 %v10527_v45 }
 0x366   : > { %v1866_v11 = vld [vmem:[#allocation2 + $0x90] sm:$0xff]  ;;  %1576 = vst.msk [vmem:[#allocation2 + $0x98] sm:$0xff] %vm1552_vm1, %v1535_v15  ;;  %v8565_v23 = vmul.f32 %v5150_v18, %v8558_v29  ;;  %v8567_v16 = vpop.f32.mrf.mxu2 }
 0x367   : > { %v8560_v37 = vld [vmem:[#allocation2 + $0x8f] sm:$0xff]  ;;  %10695 = vst [vmem:[#allocation239_spill] sm:$0xff] %v8567_v16  ;;  %v2026_v40 = vmul.f32 %v10696_v21, %v1866_v11  ;;  %v1400_v14 = vpop.f32.mrf.mxu0  ;;  %v8582_v11 = vpop.f32.mrf.mxu3  ;;  %v10701_v21 = vld [vmem:[#allocation63_spill] sm:$0xff]  ;;  %6507 = vset.pattern.permute.xlu2 %v10528_v46 }
 0x368   : > { %10694 = vst [vmem:[#allocation238_spill] sm:$0xff] %v8565_v23  ;;  %v1833_v57 = vmul.f32 %v10697_v12, %v8560_v37  ;;  %v1468_v19 = vmul.f32 %v8115_v36, %v1400_v14  ;;  %v10699_v18 = vld [vmem:[#allocation93_spill] sm:$0xff]  ;;  %v2624_v12 = vmul.f32 %v10701_v21, %v8572_v3  ;;  %v8589_v16 = vld [vmem:[%s10327_s3 + $0xe8] sm:$0xff]  ;;  %v8595_v14 = vpop.permute.xlu1 %4303 }
 0x369   : > { %6102 = vmatmul.msk.f32.gmra.mxu1 %vm1552_vm1, %v2026_v40  ;;  %v3057_v15 = vmul.f32 %v10699_v18, %v8162_v22  ;;  %10700 = vst [vmem:[#allocation24_spill] sm:$0xff] %v8582_v11  ;;  %4786 = vperm.xlu1 %6509, %v8589_v16   ;;  %v8597_v40 = vpop.f32.mrf.mxu1  ;;  %v10705_v23 = vld [vmem:[#allocation48_spill] sm:$0xff]  ;;  %v10707_v46 = vld [vmem:[#allocation121_spill] sm:$0xff] }
 0x36a   : > { %6134 = vmatmul.msk.f32.gmra.mxu3 %vm1552_vm1, %v1833_v57  ;;  %v1504_v45 = vadd.f32 %v8124_v25, %v1468_v19  ;;  %10702 = vst [vmem:[#allocation93_spill] sm:$0xff] %v8595_v14  ;;  %4351 = vperm.xlu2 %6507, %v8589_v16   ;;  %v10713_v11 = vld [vmem:[#allocation76_spill] sm:$0xff] }
 0x36b   : > { %6184 = vmatmul.msk.f32.vlgmr.msra.gmra.mxu0 %vm1552_vm1, %v3057_v15  ;;  %6153 = vmatmul.msk.f32.gmra.mxu2 %vm1552_vm1, %v2624_v12  ;;  %10703 = vst [vmem:[#allocation63_spill] sm:$0xff] %v8597_v40  ;;  %v10706_v15 = vld [vmem:[#allocation23_spill] sm:$0xff]  ;;  %v8608_v12 = vld [vmem:[#allocation2 + $0x29] sm:$0xff] }
 0x36c   : > { %v1536_v22 = vmax.f32 %v1504_v45, 0.0 }
 0x36d   : > { %v4650_v57 = vld [vmem:[#allocation2 + $0x98] sm:$0xff] }
 0x36e   : > { %v8599_v18 = vld [vmem:[#allocation2 + $0x97] sm:$0xff]  ;;  %1577 = vst.msk [vmem:[#allocation2 + $0xa0] sm:$0xff] %vm1552_vm1, %v1536_v22  ;;  %v8603_v21 = vpop.f32.mrf.mxu2  ;;  %v2027_v19 = vmul.f32 %v4650_v57, %v10705_v23  ;;  %v3058_v22 = vmul.f32 %v10707_v46, %v8191_v20  ;;  %v8618_v57 = vpop.permute.xlu2 %4738 }
 0x36f   : > { %10704 = vst [vmem:[#allocation240_spill] sm:$0xff] %v8603_v21  ;;  %v1834_v9 = vmul.f32 %v10706_v15, %v8599_v18  ;;  %v1403_v14 = vpop.f32.mrf.mxu0  ;;  %v10708_v21 = vld [vmem:[#allocation64_spill] sm:$0xff]  ;;  %v8623_v15 = vld [vmem:[%s10327_s3 + $0xf0] sm:$0xff] }
 0x370   : > { %v1469_v45 = vmul.f32 %v8115_v36, %v1403_v14  ;;  %v2625_v23 = vmul.f32 %v10708_v21, %v8608_v12  ;;  %10709 = vst [vmem:[#allocation48_spill] sm:$0xff] %v8618_v57  ;;  %v8633_v57 = vpop.permute.xlu1 %4307 }
 0x371   : > { %6103 = vmatmul.msk.f32.gmra.mxu1 %vm1552_vm1, %v2027_v19  ;;  %4790 = vperm.xlu1 %6509, %v8623_v15   ;;  %10711 = vst [vmem:[#allocation121_spill] sm:$0xff] %v8633_v57 }
 0x372   : > { %6135 = vmatmul.msk.f32.gmra.mxu3 %vm1552_vm1, %v1834_v9  ;;  %v1505_v14 = vadd.f32 %v8124_v25, %v1469_v45  ;;  %v8628_v9 = vpop.f32.mrf.mxu3  ;;  %v10714_v45 = vld [vmem:[#allocation46_spill] sm:$0xff]  ;;  %4355 = vperm.xlu2 %6507, %v8623_v15  }
 0x373   : > { %6185 = vmatmul.msk.f32.gmra.mxu0 %vm1552_vm1, %v3058_v22  ;;  %10710 = vst [vmem:[#allocation23_spill] sm:$0xff] %v8628_v9  ;;  %6154 = vmatmul.msk.f32.gmra.mxu2 %vm1552_vm1, %v2625_v23 }
 0x374   : > { %v1537_v20 = vmax.f32 %v1505_v14, 0.0  ;;  %v10715_v14 = vld [vmem:[#allocation95_spill] sm:$0xff] }
 0x375   : > { %v2163_v19 = vpop.f32.mrf.mxu1  ;;  %v1868_v21 = vld [vmem:[#allocation2 + $0xa0] sm:$0xff] }
 0x376   : > { %v8631_v46 = vld [vmem:[#allocation2 + $0x9f] sm:$0xff]  ;;  %1578 = vst.msk [vmem:[#allocation2 + $0xa8] sm:$0xff] %vm1552_vm1, %v1537_v20  ;;  %v8636_v40 = vpop.f32.mrf.mxu2  ;;  %v2028_v2 = vmul.f32 %v10713_v11, %v1868_v21  ;;  %v3059_v20 = vmul.f32 %v10715_v14, %v8224_v60  ;;  %v10717_v11 = vld [vmem:[#allocation65_spill] sm:$0xff] }
 0x377   : > { %10712 = vst [vmem:[#allocation64_spill] sm:$0xff] %v8636_v40  ;;  %v1835_v22 = vmul.f32 %v10714_v45, %v8631_v46  ;;  %v1406_v9 = vpop.f32.mrf.mxu0  ;;  %v8649_v40 = vpop.permute.xlu0 %4722  ;;  %v2626_v21 = vmul.f32 %v10717_v11, %v8641_v35 }
 0x378   : > { %v1470_v23 = vmul.f32 %v8115_v36, %v1406_v9  ;;  %10716 = vst [vmem:[#allocation76_spill] sm:$0xff] %v8649_v40  ;;  %v8669_v63 = vpop.permute.xlu1 %5173 }
 0x379   : > { %6104 = vmatmul.msk.f32.gmra.mxu1 %vm1552_vm1, %v2028_v2  ;;  %4794 = vperm.xlu1 %6509, %v8297_v13   ;;  %v8657_v2 = vpop.permute.xlu2 %4311  ;;  %10722 = vst [vmem:[#allocation65_spill] sm:$0xff] %v8669_v63 }
 0x37a   : > { %6136 = vmatmul.msk.f32.gmra.mxu3 %vm1552_vm1, %v1835_v22  ;;  %v1506_v45 = vadd.f32 %v8124_v25, %v1470_v23  ;;  %10718 = vst [vmem:[#allocation46_spill] sm:$0xff] %v8657_v2  ;;  %6510 = vset.pattern.permute.xlu2 %v10523_v8 }
 0x37b   : > { %6186 = vmatmul.msk.f32.gmra.mxu0 %vm1552_vm1, %v3059_v20  ;;  %6155 = vmatmul.msk.f32.gmra.mxu2 %vm1552_vm1, %v2626_v21  ;;  %v10721_v20 = vld [vmem:[#allocation26_spill] sm:$0xff] }
 0x37c   : > { %v2372_v9 = vpop.f32.mrf.mxu3  ;;  %v1538_v22 = vmax.f32 %v1506_v45, 0.0  ;;  %v10723_v45 = vld [vmem:[#allocation96_spill] sm:$0xff]  ;;  %5221 = vperm.xlu2 %6510, %v8589_v16   ;;  %v10728_v16 = vld [vmem:[#allocation51_spill] sm:$0xff] }
 0x37d   : > { %v8659_v57 = vadd.f32 %v2372_v9, %v2163_v19  ;;  %v2166_v60 = vpop.f32.mrf.mxu1  ;;  %v1869_v14 = vld [vmem:[#allocation2 + $0xa8] sm:$0xff]  ;;  %v3060_v9 = vmul.f32 %v8260_v39, %v10723_v45 }
 0x37e   : > { %v8661_v40 = vld [vmem:[#allocation2 + $0xa7] sm:$0xff]  ;;  %1579 = vst.msk [vmem:[#allocation2 + $0xb0] sm:$0xff] %vm1552_vm1, %v1538_v22  ;;  %v8664_v11 = vpop.f32.mrf.mxu2  ;;  %v2029_v23 = vmul.f32 %v10720_v41, %v1869_v14  ;;  %v10724_v22 = vld [vmem:[#allocation66_spill] sm:$0xff] }
 0x37f   : > { %10719 = vst [vmem:[#allocation95_spill] sm:$0xff] %v8664_v11  ;;  %v1836_v1 = vmul.f32 %v10721_v20, %v8661_v40  ;;  %v1409_v21 = vpop.f32.mrf.mxu0  ;;  %v2627_v41 = vmul.f32 %v8290_v42, %v10724_v22  ;;  %v8679_v14 = vpop.permute.xlu0 %4299  ;;  %v10729_v22 = vld [vmem:[#allocation25_spill] sm:$0xff] }
 0x380   : > { %v1471_v19 = vmul.f32 %v8115_v36, %v1409_v21  ;;  %10725 = vst [vmem:[#allocation50_spill] sm:$0xff] %v8679_v14 }
 0x381   : > { %6105 = vmatmul.msk.f32.gmra.mxu1 %vm1552_vm1, %v2029_v23  ;;  %v8689_v11 = vpop.permute.xlu2 %4315 }
 0x382   : > { %6137 = vmatmul.msk.f32.gmra.mxu3 %vm1552_vm1, %v1836_v1  ;;  %v1507_v20 = vadd.f32 %v8124_v25, %v1471_v19  ;;  %10726 = vst [vmem:[#allocation26_spill] sm:$0xff] %v8689_v11  ;;  %v8706_v11 = vpop.permute.xlu1 %5177 }
 0x383   : > { %6187 = vmatmul.msk.f32.gmra.mxu0 %vm1552_vm1, %v3060_v9  ;;  %6156 = vmatmul.msk.f32.gmra.mxu2 %vm1552_vm1, %v2627_v41  ;;  %v8697_v41 = vld [vmem:[#allocation2 + $0x41] sm:$0xff]  ;;  %10732 = vst [vmem:[#allocation66_spill] sm:$0xff] %v8706_v11  ;;  %v10736_v11 = vld [vmem:[#allocation49_spill] sm:$0xff] }
 0x384   : > { %v2375_v8 = vpop.f32.mrf.mxu3  ;;  %v1539_v23 = vmax.f32 %v1507_v20, 0.0  ;;  %5225 = vperm.xlu2 %6510, %v8623_v15  }
 0x385   : > { %v8685_v21 = vadd.f32 %v2375_v8, %v2166_v60  ;;  %v8687_v1 = vld [vmem:[#allocation2 + $0xaf] sm:$0xff]  ;;  %v2169_v39 = vpop.f32.mrf.mxu1  ;;  %v10730_v8 = vld [vmem:[#allocation98_spill] sm:$0xff] }
 0x386   : > { %v1870_v45 = vld [vmem:[#allocation2 + $0xb0] sm:$0xff]  ;;  %1580 = vst.msk [vmem:[#allocation2 + $0xb8] sm:$0xff] %vm1552_vm1, %v1539_v23  ;;  %v8692_v42 = vpop.f32.mrf.mxu2  ;;  %v1837_v9 = vmul.f32 %v8687_v1, %v10729_v22  ;;  %v3061_v63 = vmul.f32 %v10730_v8, %v8292_v17  ;;  %v10731_v23 = vld [vmem:[#allocation94_spill] sm:$0xff] }
 0x387   : > { %10727 = vst [vmem:[#allocation96_spill] sm:$0xff] %v8692_v42  ;;  %v2030_v19 = vmul.f32 %v10728_v16, %v1870_v45  ;;  %v1412_v20 = vpop.f32.mrf.mxu0  ;;  %v2628_v42 = vmul.f32 %v10731_v23, %v8697_v41 }
 0x388   : > { %v1472_v60 = vmul.f32 %v8115_v36, %v1412_v20 }
 0x389   : > { %6106 = vmatmul.msk.f32.gmra.mxu1 %vm1552_vm1, %v2030_v19  ;;  %v5170_v19 = vpop.permute.xlu0 %5169  ;;  %v8729_v2 = vpop.permute.xlu2 %5181 }
 0x38a   : > { %6138 = vmatmul.msk.f32.gmra.mxu3 %vm1552_vm1, %v1837_v9  ;;  %v1508_v45 = vadd.f32 %v8124_v25, %v1472_v60  ;;  %10737 = vst [vmem:[#allocation98_spill] sm:$0xff] %v8729_v2 }
 0x38b   : > { %6188 = vmatmul.msk.f32.gmra.mxu0 %vm1552_vm1, %v3061_v63  ;;  %6157 = vmatmul.msk.f32.gmra.mxu2 %vm1552_vm1, %v2628_v42  ;;  %v10735_v63 = vld [vmem:[#allocation79_spill] sm:$0xff] }
 0x38c   : > { %v2378_v16 = vpop.f32.mrf.mxu3  ;;  %v1540_v22 = vmax.f32 %v1508_v45, 0.0  ;;  %5229 = vperm.xlu2 %6510, %v8297_v13   ;;  %v10742_v13 = vld [vmem:[#allocation52_spill] sm:$0xff] }
 0x38d   : > { %v8712_v9 = vadd.f32 %v2378_v16, %v2169_v39  ;;  %v8714_v20 = vld [vmem:[#allocation2 + $0xb1] sm:$0xff]  ;;  %v8727_v39 = vld [vmem:[#allocation2 + $0x49] sm:$0xff] }
 0x38e   : > { %v2172_v17 = vpop.f32.mrf.mxu1  ;;  %v1871_v8 = vld [vmem:[#allocation2 + $0xb8] sm:$0xff]  ;;  %1581 = vst.msk [vmem:[#allocation2 + $0xc0] sm:$0xff] %vm1552_vm1, %v1540_v22  ;;  %v8720_v15 = vmul.f32 %v5170_v19, %v8714_v20  ;;  %v8722_v60 = vpop.f32.mrf.mxu2  ;;  %v10738_v19 = vld [vmem:[#allocation99_spill] sm:$0xff] }
 0x38f   : > { %v8716_v23 = vld [vmem:[#allocation2 + $0xb7] sm:$0xff]  ;;  %10734 = vst [vmem:[#allocation25_spill] sm:$0xff] %v8722_v60  ;;  %v2031_v42 = vmul.f32 %v10735_v63, %v1871_v8  ;;  %v1415_v16 = vpop.f32.mrf.mxu0  ;;  %v3062_v22 = vmul.f32 %v10738_v19, %v8325_v53  ;;  %v10739_v60 = vld [vmem:[#allocation68_spill] sm:$0xff] }
 0x390   : > { %10733 = vst [vmem:[#allocation51_spill] sm:$0xff] %v8720_v15  ;;  %v1838_v45 = vmul.f32 %v10736_v11, %v8716_v23  ;;  %v1473_v14 = vmul.f32 %v8115_v36, %v1415_v16  ;;  %v2629_v8 = vmul.f32 %v10739_v60, %v8727_v39  ;;  %v8742_v16 = vpop.permute.xlu1 %4746  ;;  %v10743_v19 = vld [vmem:[#allocation28_spill] sm:$0xff] }
 0x391   : > { %6107 = vmatmul.msk.f32.gmra.mxu1 %vm1552_vm1, %v2031_v42  ;;  %10740 = vst [vmem:[#allocation94_spill] sm:$0xff] %v8742_v16 }
 0x392   : > { %6139 = vmatmul.msk.f32.gmra.mxu3 %vm1552_vm1, %v1838_v45  ;;  %v1509_v11 = vadd.f32 %v8124_v25, %v1473_v14 }
 0x393   : > { %6189 = vmatmul.msk.f32.gmra.mxu0 %vm1552_vm1, %v3062_v22  ;;  %6158 = vmatmul.msk.f32.gmra.mxu2 %vm1552_vm1, %v2629_v8  ;;  %v8754_v8 = vld [vmem:[#allocation2 + $0x51] sm:$0xff] }
 0x394   : > { %v2381_v63 = vpop.f32.mrf.mxu3  ;;  %v1541_v42 = vmax.f32 %v1509_v11, 0.0 }
 0x395   : > { %v8744_v2 = vadd.f32 %v2381_v63, %v2172_v17  ;;  %v4655_v45 = vld [vmem:[#allocation2 + $0xc0] sm:$0xff]  ;;  %v10744_v17 = vld [vmem:[#allocation69_spill] sm:$0xff] }
 0x396   : > { %v2175_v15 = vpop.f32.mrf.mxu1  ;;  %v8746_v53 = vld [vmem:[#allocation2 + $0xbf] sm:$0xff]  ;;  %1582 = vst.msk [vmem:[#allocation2 + $0xc8] sm:$0xff] %vm1552_vm1, %v1541_v42  ;;  %v8749_v60 = vpop.f32.mrf.mxu2  ;;  %v2032_v14 = vmul.f32 %v4655_v45, %v10742_v13  ;;  %v2630_v63 = vmul.f32 %v10744_v17, %v8754_v8 }
 0x397   : > { %10741 = vst [vmem:[#allocation79_spill] sm:$0xff] %v8749_v60  ;;  %v1839_v22 = vmul.f32 %v10743_v19, %v8746_v53  ;;  %v1418_v43 = vpop.f32.mrf.mxu0  ;;  %v8761_v42 = vpop.permute.xlu2 %5185 }
 0x398   : > { %v1474_v11 = vmul.f32 %v8115_v36, %v1418_v43  ;;  %10745 = vst [vmem:[#allocation49_spill] sm:$0xff] %v8761_v42  ;;  %v8769_v36 = vpop.permute.xlu1 %4750 }
 0x399   : > { %6108 = vmatmul.msk.f32.gmra.mxu1 %vm1552_vm1, %v2032_v14  ;;  %10746 = vst [vmem:[#allocation99_spill] sm:$0xff] %v8769_v36  ;;  %v8798_v36 = vld [vmem:[%s10333_s9] ss:$0 sm:$0xff] }
 0x39a   : > { %6140 = vmatmul.msk.f32.gmra.mxu3 %vm1552_vm1, %v1839_v22  ;;  %v1510_v60 = vadd.f32 %v8124_v25, %v1474_v11  ;;  %v10748_v25 = vld [vmem:[#allocation53_spill] sm:$0xff] }
 0x39b   : > { %6190 = vmatmul.msk.f32.gmra.mxu0 %vm1552_vm1, %v8356_v28  ;;  %6159 = vmatmul.msk.f32.gmra.mxu2 %vm1552_vm1, %v2630_v63  ;;  %v10749_v28 = vld [vmem:[#allocation27_spill] sm:$0xff] }
 0x39c   : > { %v1542_v13 = vmax.f32 %v1510_v60, 0.0  ;;  %v8779_v63 = vld [vmem:[#allocation2 + $0x59] sm:$0xff] }
 0x39d   : > { %v2384_v45 = vpop.f32.mrf.mxu3  ;;  %v4656_v43 = vld [vmem:[#allocation2 + $0xc8] sm:$0xff]  ;;  %10750 = vst [vmem:[#allocation52_spill] sm:$0xff] %v8779_v63 }
 0x39e   : > { %v8767_v19 = vadd.f32 %v2384_v45, %v2175_v15  ;;  %v2178_v14 = vpop.f32.mrf.mxu1  ;;  %v8771_v22 = vld [vmem:[#allocation2 + $0xc7] sm:$0xff]  ;;  %1583 = vst.msk [vmem:[#allocation2 + $0xd0] sm:$0xff] %vm1552_vm1, %v1542_v13  ;;  %v8774_v17 = vpop.f32.mrf.mxu2  ;;  %v2033_v11 = vmul.f32 %v4656_v43, %v10748_v25  ;;  %v8784_v15 = vld [vmem:[%s10332_s8] ss:$0 sm:$0xff]  ;;  %v10751_v13 = vld [vmem:[#allocation101_spill] sm:$0xff] }
 0x39f   : > { %10747 = vst [vmem:[#allocation68_spill] sm:$0xff] %v8774_v17  ;;  %v1840_v42 = vmul.f32 %v10749_v28, %v8771_v22  ;;  %v1421_v60 = vpop.f32.mrf.mxu0  ;;  %v3064_v43 = vmul.f32 %v10751_v13, %v8372_v6  ;;  %v8791_v25 = vpop.permute.xlu0 %4742  ;;  %v10753_v28 = vld [vmem:[#allocation97_spill] sm:$0xff] }
 0x3a0   : > { %v1475_v45 = vmul.f32 %v8784_v15, %v1421_v60  ;;  %10752 = vst [vmem:[#allocation28_spill] sm:$0xff] %v8791_v25  ;;  %v2631_v17 = vmul.f32 %v10753_v28, %v8779_v63  ;;  %v10757_v63 = vld [vmem:[#allocation82_spill] sm:$0xff]  ;;  %v8817_v26 = vpop.permute.xlu1 %4323 }
 0x3a1   : > { %6109 = vmatmul.msk.f32.gmra.mxu1 %vm1552_vm1, %v2033_v11  ;;  %v8803_v11 = vpop.permute.xlu2 %4754  ;;  %10760 = vst [vmem:[#allocation97_spill] sm:$0xff] %v8817_v26 }
 0x3a2   : > { %6141 = vmatmul.msk.f32.gmra.mxu3 %vm1552_vm1, %v1840_v42  ;;  %v1511_v16 = vadd.f32 %v8798_v36, %v1475_v45  ;;  %10754 = vst [vmem:[#allocation69_spill] sm:$0xff] %v8803_v11 }
 0x3a3   : > { %6191 = vmatmul.msk.f32.gmra.mxu0 %vm1552_vm1, %v3064_v43  ;;  %6160 = vmatmul.msk.f32.gmra.mxu2 %vm1552_vm1, %v2631_v17  ;;  %v10758_v43 = vld [vmem:[#allocation54_spill] sm:$0xff]  ;;  %v8815_v17 = vld [vmem:[#allocation2 + $0x61] sm:$0xff] }
 0x3a4   : > { %v1543_v6 = vmax.f32 %v1511_v16, 0.0  ;;  %10759 = vst [vmem:[#allocation101_spill] sm:$0xff] %v8815_v17 }
 0x3a5   : > { %v2387_v42 = vpop.f32.mrf.mxu3  ;;  %v4657_v13 = vld [vmem:[#allocation2 + $0xd0] sm:$0xff] }
 0x3a6   : > { %v8805_v60 = vadd.f32 %v2387_v42, %v2178_v14  ;;  %v2181_v25 = vpop.f32.mrf.mxu1  ;;  %v8807_v28 = vld [vmem:[#allocation2 + $0xcf] sm:$0xff]  ;;  %1584 = vst.msk [vmem:[#allocation2 + $0xd8] sm:$0xff] %vm1552_vm1, %v1543_v6  ;;  %v8810_v4 = vpop.f32.mrf.mxu2  ;;  %v2034_v45 = vmul.f32 %v4657_v13, %v10757_v63  ;;  %v10761_v42 = vld [vmem:[#allocation102_spill] sm:$0xff] }
 0x3a7   : > { %10755 = vst [vmem:[#allocation53_spill] sm:$0xff] %v8807_v28  ;;  %v1841_v33 = vmul.f32 %v10758_v43, %v8807_v28  ;;  %v1424_v16 = vpop.f32.mrf.mxu0  ;;  %v3065_v6 = vmul.f32 %v8393_v48, %v10761_v42  ;;  %v8826_v13 = vpop.permute.xlu0 %4319  ;;  %v10766_v42 = vld [vmem:[#allocation55_spill] sm:$0xff] }
 0x3a8   : > { %10756 = vst [vmem:[#allocation27_spill] sm:$0xff] %v8810_v4  ;;  %v1476_v14 = vmul.f32 %v8784_v15, %v1424_v16  ;;  %v10762_v4 = vld [vmem:[#allocation71_spill] sm:$0xff] }
 0x3a9   : > { %6110 = vmatmul.msk.f32.gmra.mxu1 %vm1552_vm1, %v2034_v45  ;;  %v2632_v63 = vmul.f32 %v10762_v4, %v8815_v17  ;;  %10763 = vst [vmem:[#allocation82_spill] sm:$0xff] %v8826_v13  ;;  %v10767_v13 = vld [vmem:[#allocation30_spill] sm:$0xff] }
 0x3aa   : > { %6142 = vmatmul.msk.f32.gmra.mxu3 %vm1552_vm1, %v1841_v33  ;;  %v1512_v43 = vadd.f32 %v8798_v36, %v1476_v14  ;;  %v8833_v33 = vpop.permute.xlu2 %4758 }
 0x3ab   : > { %6192 = vmatmul.msk.f32.gmra.mxu0 %vm1552_vm1, %v3065_v6  ;;  %6161 = vmatmul.msk.f32.gmra.mxu2 %vm1552_vm1, %v2632_v63  ;;  %10764 = vst [vmem:[#allocation54_spill] sm:$0xff] %v8833_v33  ;;  %v8843_v63 = vld [vmem:[#allocation2 + $0x69] sm:$0xff] }
 0x3ac   : > { %v1544_v16 = vmax.f32 %v1512_v43, 0.0  ;;  %10768 = vst [vmem:[#allocation71_spill] sm:$0xff] %v8843_v63 }
 0x3ad   : > { %v2390_v11 = vpop.f32.mrf.mxu3  ;;  %v4658_v45 = vld [vmem:[#allocation2 + $0xd8] sm:$0xff] }
 0x3ae   : > { %v8831_v26 = vadd.f32 %v2390_v11, %v2181_v25  ;;  %v8835_v28 = vld [vmem:[#allocation2 + $0xd7] sm:$0xff]  ;;  %v2184_v48 = vpop.f32.mrf.mxu1  ;;  %1585 = vst.msk [vmem:[#allocation2 + $0xe0] sm:$0xff] %vm1552_vm1, %v1544_v16  ;;  %v8838_v4 = vpop.f32.mrf.mxu2  ;;  %v2035_v14 = vmul.f32 %v4658_v45, %v10766_v42  ;;  %v3066_v11 = vmul.f32 %v7519_v44, %v8418_v34 }
 0x3af   : > { %10765 = vst [vmem:[#allocation102_spill] sm:$0xff] %v8838_v4  ;;  %v1842_v6 = vmul.f32 %v8835_v28, %v10767_v13  ;;  %v1427_v43 = vpop.f32.mrf.mxu0  ;;  %v8850_v16 = vpop.permute.xlu1 %4327  ;;  %v10770_v4 = vld [vmem:[#allocation72_spill] sm:$0xff] }
 0x3b0   : > { %v1477_v25 = vmul.f32 %v8784_v15, %v1427_v43  ;;  %10769 = vst [vmem:[#allocation55_spill] sm:$0xff] %v8850_v16  ;;  %v2633_v45 = vmul.f32 %v10770_v4, %v8843_v63  ;;  %v5190_v43 = vpop.permute.xlu0 %5189  ;;  %v10777_v16 = vld [vmem:[#allocation29_spill] sm:$0xff] }
 0x3b1   : > { %6111 = vmatmul.msk.f32.gmra.mxu1 %vm1552_vm1, %v2035_v14 }
 0x3b2   : > { %6143 = vmatmul.msk.f32.gmra.mxu3 %vm1552_vm1, %v1842_v6  ;;  %v1513_v42 = vadd.f32 %v8798_v36, %v1477_v25 }
 0x3b3   : > { %6193 = vmatmul.msk.f32.gmra.mxu0 %vm1552_vm1, %v3066_v11  ;;  %6162 = vmatmul.msk.f32.gmra.mxu2 %vm1552_vm1, %v2633_v45  ;;  %v10776_v11 = vld [vmem:[#allocation56_spill] sm:$0xff] }
 0x3b4   : > { %v1545_v33 = vmax.f32 %v1513_v42, 0.0 }
 0x3b5   : > { %v2393_v13 = vpop.f32.mrf.mxu3  ;;  %v4659_v6 = vld [vmem:[#allocation2 + $0xe0] sm:$0xff] }
 0x3b6   : > { %v8857_v14 = vadd.f32 %v2393_v13, %v2184_v48  ;;  %v8859_v17 = vld [vmem:[#allocation2 + $0xd9] sm:$0xff]  ;;  %v2187_v44 = vpop.f32.mrf.mxu1  ;;  %1586 = vst.msk [vmem:[#allocation2 + $0xe8] sm:$0xff] %vm1552_vm1, %v1545_v33  ;;  %v8867_v25 = vpop.f32.mrf.mxu2  ;;  %v2036_v45 = vmul.f32 %v4659_v6, %v10776_v11  ;;  %v8872_v48 = vld [vmem:[#allocation2 + $0x71] sm:$0xff]  ;;  %v10780_v33 = vld [vmem:[#allocation104_spill] sm:$0xff] }
 0x3b7   : > { %10772 = vst [vmem:[#allocation72_spill] sm:$0xff] %v8859_v17  ;;  %v8861_v34 = vld [vmem:[#allocation2 + $0xdf] sm:$0xff]  ;;  %v8865_v4 = vmul.f32 %v5190_v43, %v8859_v17  ;;  %v8874_v13 = vpop.permute.xlu2 %4331  ;;  %v1430_v63 = vpop.f32.mrf.mxu0  ;;  %v3067_v43 = vmul.f32 %v10780_v33, %v8448_v62 }
 0x3b8   : > { %10771 = vst [vmem:[#allocation30_spill] sm:$0xff] %v8857_v14  ;;  %v1843_v42 = vmul.f32 %v10777_v16, %v8861_v34  ;;  %v1478_v14 = vmul.f32 %v8784_v15, %v1430_v63  ;;  %v5194_v16 = vpop.permute.xlu1 %5193 }
 0x3b9   : > { %10773 = vst [vmem:[#allocation241_spill] sm:$0xff] %v8861_v34  ;;  %6112 = vmatmul.msk.f32.gmra.mxu1 %vm1552_vm1, %v2036_v45 }
 0x3ba   : > { %10774 = vst [vmem:[#allocation242_spill] sm:$0xff] %v8865_v4  ;;  %6144 = vmatmul.msk.f32.gmra.mxu3 %vm1552_vm1, %v1843_v42  ;;  %v1514_v11 = vadd.f32 %v8798_v36, %v1478_v14 }
 0x3bb   : > { %10775 = vst [vmem:[#allocation243_spill] sm:$0xff] %v8867_v25  ;;  %v10781_v25 = vld [vmem:[#allocation100_spill] sm:$0xff]  ;;  %6194 = vmatmul.msk.f32.gmra.mxu0 %vm1552_vm1, %v3067_v43  ;;  %v10785_v43 = vld [vmem:[#allocation57_spill] sm:$0xff] }
 0x3bc   : > { %10778 = vst [vmem:[#allocation56_spill] sm:$0xff] %v8872_v48  ;;  %v2634_v6 = vmul.f32 %v10781_v25, %v8872_v48  ;;  %v10784_v25 = vld [vmem:[#allocation85_spill] sm:$0xff] }
 0x3bd   : > { %10779 = vst [vmem:[#allocation29_spill] sm:$0xff] %v8874_v13  ;;  %v2396_v4 = vpop.f32.mrf.mxu3  ;;  %v1546_v13 = vmax.f32 %v1514_v11, 0.0  ;;  %v8888_v45 = vld [vmem:[#allocation2 + $0xe1] sm:$0xff]  ;;  %v10786_v11 = vld [vmem:[#allocation105_spill] sm:$0xff] }
 0x3be   : > { %6163 = vmatmul.msk.f32.gmra.mxu2 %vm1552_vm1, %v2634_v6  ;;  %v8886_v63 = vadd.f32 %v2396_v4, %v2187_v44  ;;  %v4660_v42 = vld [vmem:[#allocation2 + $0xe8] sm:$0xff]  ;;  %v2190_v34 = vpop.f32.mrf.mxu1  ;;  %v8893_v62 = vmul.f32 %v5194_v16, %v8888_v45  ;;  %v8896_v14 = vpop.f32.mrf.mxu2  ;;  %v3068_v16 = vmul.f32 %v10786_v11, %v8477_v61 }
 0x3bf   : > { %v8890_v17 = vld [vmem:[#allocation2 + $0xe7] sm:$0xff]  ;;  %1587 = vst.msk [vmem:[#allocation2 + $0xf0] sm:$0xff] %vm1552_vm1, %v1546_v13  ;;  %v2037_v33 = vmul.f32 %v4660_v42, %v10784_v25  ;;  %v1433_v44 = vpop.f32.mrf.mxu0  ;;  %v10788_v13 = vld [vmem:[#allocation74_spill] sm:$0xff] }
 0x3c0   : > { %10782 = vst [vmem:[#allocation104_spill] sm:$0xff] %v8893_v62  ;;  %v1844_v6 = vmul.f32 %v10785_v43, %v8890_v17  ;;  %v1479_v4 = vmul.f32 %v8784_v15, %v1433_v44  ;;  %v8906_v62 = vpop.permute.xlu2 %4335 }
 0x3c1   : > { %10783 = vst [vmem:[#allocation100_spill] sm:$0xff] %v8896_v14  ;;  %6113 = vmatmul.msk.f32.gmra.mxu1 %vm1552_vm1, %v2037_v33  ;;  %v2635_v14 = vmul.f32 %v10788_v13, %v8507_v24  ;;  %v5198_v33 = vpop.permute.xlu1 %5197  ;;  %v8928_v13 = vld [vmem:[#allocation2 + $0x81] sm:$0xff] }
 0x3c2   : > { %6145 = vmatmul.msk.f32.gmra.mxu3 %vm1552_vm1, %v1844_v6  ;;  %10787 = vst [vmem:[#allocation85_spill] sm:$0xff] %v8906_v62  ;;  %v1515_v42 = vadd.f32 %v8798_v36, %v1479_v4  ;;  %v10791_v4 = vld [vmem:[#allocation58_spill] sm:$0xff] }
 0x3c3   : > { %6195 = vmatmul.msk.f32.gmra.mxu0 %vm1552_vm1, %v3068_v16  ;;  %v10792_v16 = vld [vmem:[#allocation32_spill] sm:$0xff]  ;;  %10793 = vst [vmem:[#allocation74_spill] sm:$0xff] %v8928_v13 }
 0x3c4   : > { %v1547_v43 = vmax.f32 %v1515_v42, 0.0  ;;  %v6282_v42 = vld [vmem:[%s10334_s10 + $0x30] sm:$0xff] }
 0x3c5   : > { %v2399_v25 = vpop.f32.mrf.mxu3  ;;  %4507 = vmatpush.msra.mxu2 %v6282_v42  ;;  %v6348_v42 = vld [vmem:[%s10334_s10 + $0x40] sm:$0xff] }
 0x3c6   : > { %6164 = vmatmul.msk.f32.gmra.mxu2 %vm1552_vm1, %v2635_v14  ;;  %v8913_v44 = vadd.f32 %v2399_v25, %v2190_v34  ;;  %v8915_v6 = vld [vmem:[#allocation2 + $0xe9] sm:$0xff]  ;;  %v2193_v61 = vpop.f32.mrf.mxu1  ;;  %1588 = vst.msk [vmem:[#allocation2 + $0xf8] sm:$0xff] %vm1552_vm1, %v1547_v43  ;;  %v8923_v24 = vpop.f32.mrf.mxu2  ;;  %5377 = vmatpush.msra.mxu1 %v6348_v42 }
 0x3c7   : > { %v4661_v48 = vld [vmem:[#allocation2 + $0xf0] sm:$0xff]  ;;  %v8920_v62 = vmul.f32 %v5198_v33, %v8915_v6  ;;  %10790 = vst [vmem:[#allocation105_spill] sm:$0xff] %v8923_v24  ;;  %v1436_v25 = vpop.f32.mrf.mxu0  ;;  %v6315_v33 = vld [vmem:[%s10334_s10 + $0x38] sm:$0xff] }
 0x3c8   : > { %v8917_v11 = vld [vmem:[#allocation2 + $0xef] sm:$0xff]  ;;  %v2038_v14 = vmul.f32 %v4661_v48, %v10791_v4  ;;  %v1480_v43 = vmul.f32 %v8784_v15, %v1436_v25  ;;  %v3069_v48 = vmul.f32 %v7539_v30, %v8505_v51  ;;  %v10794_v4 = vld [vmem:[#allocation75_spill] sm:$0xff]  ;;  %4942 = vmatpush.msrb.mxu0 %v6315_v33  ;;  %v5202_v25 = vpop.permute.xlu2 %5201 }
 0x3c9   : > { %10789 = vst [vmem:[#allocation57_spill] sm:$0xff] %v8920_v62  ;;  %v1845_v34 = vmul.f32 %v10792_v16, %v8917_v11  ;;  %v2636_v16 = vmul.f32 %v10794_v4, %v8928_v13 }
 0x3ca   : > { %6114 = vmatmul.msk.f32.gmra.mxu1 %vm1552_vm1, %v2038_v14  ;;  %v1516_v24 = vadd.f32 %v8798_v36, %v1480_v43 }
 0x3cb   : > { %6146 = vmatmul.msk.f32.gmra.mxu3 %vm1552_vm1, %v1845_v34  ;;  %6196 = vmatmul.msk.f32.gmra.mxu0 %vm1552_vm1, %v3069_v48  ;;  %v10799_v48 = vld [vmem:[#allocation59_spill] sm:$0xff] }
 0x3cc   : > { %v1548_v34 = vmax.f32 %v1516_v24, 0.0 }
 0x3cd   : > { %v2402_v14 = vpop.f32.mrf.mxu3  ;;  %v8951_v30 = vld [vmem:[#allocation2 + $0xf1] sm:$0xff] }
 0x3ce   : > { %6165 = vmatmul.msk.f32.gmra.mxu2 %vm1552_vm1, %v2636_v16  ;;  %v8949_v62 = vadd.f32 %v2402_v14, %v2193_v61  ;;  %v4662_v51 = vld [vmem:[#allocation2 + $0xf8] sm:$0xff]  ;;  %v2196_v33 = vpop.f32.mrf.mxu1  ;;  %v8956_v13 = vmul.f32 %v5202_v25, %v8951_v30  ;;  %1589 = vst.msk [vmem:[#allocation2 + $0x100] sm:$0xff] %vm1552_vm1, %v1548_v34  ;;  %v8959_v43 = vpop.f32.mrf.mxu2  ;;  %v10800_v16 = vld [vmem:[#allocation31_spill] sm:$0xff] }
 0x3cf   : > { %v8953_v4 = vld [vmem:[#allocation2 + $0xf7] sm:$0xff]  ;;  %10798 = vst [vmem:[#allocation244_spill] sm:$0xff] %v8959_v43  ;;  %v2039_v42 = vmul.f32 %v4662_v51, %v10799_v48  ;;  %v1439_v61 = vpop.f32.mrf.mxu0 }
 0x3d0   : > { %10795 = vst [vmem:[#allocation58_spill] sm:$0xff] %v8949_v62  ;;  %v1846_v24 = vmul.f32 %v10800_v16, %v8953_v4  ;;  %v1481_v14 = vmul.f32 %v8784_v15, %v1439_v61  ;;  %v10801_v62 = vld [vmem:[#allocation107_spill] sm:$0xff]  ;;  %v5206_v61 = vpop.permute.xlu2 %5205 }
 0x3d1   : > { %10796 = vst [vmem:[#allocation32_spill] sm:$0xff] %v8953_v4  ;;  %v3070_v25 = vmul.f32 %v8533_v56, %v10801_v62 }
 0x3d2   : > { %10797 = vst [vmem:[#allocation75_spill] sm:$0xff] %v8956_v13  ;;  %6115 = vmatmul.msk.f32.gmra.mxu1 %vm1552_vm1, %v2039_v42  ;;  %v10802_v13 = vld [vmem:[#allocation103_spill] sm:$0xff]  ;;  %v1517_v43 = vadd.f32 %v8798_v36, %v1481_v14 }
 0x3d3   : > { %6147 = vmatmul.msk.f32.gmra.mxu3 %vm1552_vm1, %v1846_v24  ;;  %v2637_v34 = vmul.f32 %v8558_v29, %v10802_v13  ;;  %6197 = vmatmul.msk.f32.gmra.mxu0 %vm1552_vm1, %v3070_v25  ;;  %v10807_v13 = vld [vmem:[#allocation88_spill] sm:$0xff]  ;;  %v8987_v25 = vld [vmem:[#allocation2 + $0x91] sm:$0xff] }
 0x3d4   : > { %v1549_v48 = vmax.f32 %v1517_v43, 0.0  ;;  %v10808_v43 = vld [vmem:[#allocation60_spill] sm:$0xff] }
 0x3d5   : > { %v2405_v51 = vpop.f32.mrf.mxu3  ;;  %v8976_v42 = vld [vmem:[#allocation2 + $0xf9] sm:$0xff] }
 0x3d6   : > { %6166 = vmatmul.msk.f32.gmra.mxu2 %vm1552_vm1, %v2637_v34  ;;  %v8974_v16 = vadd.f32 %v2405_v51, %v2196_v33  ;;  %v4663_v24 = vld [vmem:[#allocation2 + $0x100] sm:$0xff]  ;;  %v2199_v56 = vpop.f32.mrf.mxu1  ;;  %v8981_v62 = vmul.f32 %v5206_v61, %v8976_v42  ;;  %1590 = vst.msk [vmem:[#allocation2 + $0x108] sm:$0xff] %vm1552_vm1, %v1549_v48  ;;  %v8984_v29 = vpop.f32.mrf.mxu2  ;;  %v10810_v48 = vld [vmem:[#allocation77_spill] sm:$0xff] }
 0x3d7   : > { %v8978_v4 = vld [vmem:[#allocation2 + $0xff] sm:$0xff]  ;;  %10806 = vst [vmem:[#allocation103_spill] sm:$0xff] %v8984_v29  ;;  %v2040_v14 = vmul.f32 %v4663_v24, %v10807_v13  ;;  %v1442_v33 = vpop.f32.mrf.mxu0  ;;  %v2638_v29 = vmul.f32 %v10810_v48, %v8987_v25 }
 0x3d8   : > { %10803 = vst [vmem:[#allocation59_spill] sm:$0xff] %v8974_v16  ;;  %v1847_v34 = vmul.f32 %v8978_v4, %v10808_v43  ;;  %v1482_v51 = vmul.f32 %v8784_v15, %v1442_v33  ;;  %v10809_v16 = vld [vmem:[#allocation108_spill] sm:$0xff]  ;;  %v9009_v48 = vld [vmem:[#allocation2 + $0x99] sm:$0xff] }
 0x3d9   : > { %10804 = vst [vmem:[#allocation31_spill] sm:$0xff] %v8978_v4  ;;  %v3071_v61 = vmul.f32 %v10809_v16, %v8560_v37  ;;  %v10812_v16 = vld [vmem:[#allocation61_spill] sm:$0xff] }
 0x3da   : > { %10805 = vst [vmem:[#allocation107_spill] sm:$0xff] %v8981_v62  ;;  %6116 = vmatmul.msk.f32.gmra.mxu1 %vm1552_vm1, %v2040_v14  ;;  %v1518_v24 = vadd.f32 %v8798_v36, %v1482_v51 }
 0x3db   : > { %6148 = vmatmul.msk.f32.gmra.mxu3 %vm1552_vm1, %v1847_v34  ;;  %6198 = vmatmul.msk.f32.gmra.mxu0 %vm1552_vm1, %v3071_v61  ;;  %v10813_v61 = vld [vmem:[#allocation33_spill] sm:$0xff] }
 0x3dc   : > { %v1550_v43 = vmax.f32 %v1518_v24, 0.0 }
 0x3dd   : > { %v2408_v13 = vpop.f32.mrf.mxu3  ;;  %v9003_v33 = vld [vmem:[#allocation2 + $0x107] sm:$0xff] }
 0x3de   : > { %6167 = vmatmul.msk.f32.gmra.mxu2 %vm1552_vm1, %v2638_v29  ;;  %v9001_v62 = vadd.f32 %v2408_v13, %v2199_v56  ;;  %v4664_v14 = vld [vmem:[#allocation2 + $0x108] sm:$0xff]  ;;  %v2202_v4 = vpop.f32.mrf.mxu1  ;;  %1591 = vst.msk [vmem:[#allocation2 + $0x110] sm:$0xff] %vm1552_vm1, %v1550_v43  ;;  %v9006_v37 = vpop.f32.mrf.mxu2  ;;  %v1848_v29 = vmul.f32 %v9003_v33, %v10813_v61  ;;  %v3072_v56 = vmul.f32 %v7556_v0, %v8599_v18  ;;  %v10814_v13 = vld [vmem:[#allocation78_spill] sm:$0xff]  ;;  %v3332_v61 = vld [vmem:[#allocation2 + $0x20] sm:$0xff] }
 0x3df   : > { %10811 = vst [vmem:[#allocation88_spill] sm:$0xff] %v9006_v37  ;;  %v2041_v34 = vmul.f32 %v4664_v14, %v10812_v16  ;;  %v1445_v51 = vpop.f32.mrf.mxu0  ;;  %v2639_v43 = vmul.f32 %v10814_v13, %v9009_v48  ;;  %v3492_v18 = vmul.f32 %v7517_v5, %v3332_v61  ;;  %v3333_v13 = vld [vmem:[#allocation2 + $0x28] sm:$0xff] }
 0x3e0   : > { %v1483_v24 = vmul.f32 %v8784_v15, %v1445_v51  ;;  %v9029_v51 = vld [vmem:[#allocation2 + $0xa1] sm:$0xff] }
 0x3e2   : > { %6117 = vmatmul.msk.f32.gmra.mxu1 %vm1552_vm1, %v2041_v34  ;;  %v1519_v14 = vadd.f32 %v8798_v36, %v1483_v24  ;;  %v3927_v36 = vmul.f32 %v7786_v49, %v8572_v3  ;;  %v10815_v24 = vld [vmem:[#allocation110_spill] sm:$0xff]  ;;  %v3493_v3 = vmul.f32 %v7698_v10, %v3333_v13  ;;  %v3929_v13 = vmul.f32 %v7802_v50, %v8641_v35 }
 0x3e3   : > { %6149 = vmatmul.msk.f32.gmra.mxu3 %vm1552_vm1, %v1848_v29  ;;  %6199 = vmatmul.msk.f32.gmra.mxu0 %vm1552_vm1, %v3072_v56  ;;  %v3770_v50 = vld [vmem:[#allocation2 + $0x39] sm:$0xff] }
 0x3e4   : > { %v1551_v37 = vmax.f32 %v1519_v14, 0.0 }
 0x3e5   : > { %v2411_v16 = vpop.f32.mrf.mxu3 }
 0x3e6   : > { %6168 = vmatmul.msk.f32.gmra.mxu2 %vm1552_vm1, %v2639_v43  ;;  %v9023_v15 = vadd.f32 %v2411_v16, %v2202_v4  ;;  %v2205_v34 = vpop.f32.mrf.mxu1  ;;  %1592 = vst.msk [vmem:[#allocation2 + $0x118] sm:$0xff] %vm1552_vm1, %v1551_v37  ;;  %v9026_v0 = vpop.f32.mrf.mxu2  ;;  %v3073_v4 = vmul.f32 %v10815_v24, %v8631_v46  ;;  %v10816_v37 = vld [vmem:[#allocation106_spill] sm:$0xff]  ;;  %v9046_v16 = vld [vmem:[#allocation2 + $0xa9] sm:$0xff] }
 0x3e7   : > { %v2640_v56 = vmul.f32 %v10816_v37, %v9029_v51  ;;  %v10818_v24 = vld [vmem:[#allocation80_spill] sm:$0xff] }
 0x3e8   : > { %v9031_v29 = vpop.f32.mrf.mxu0  ;;  %v2641_v10 = vmul.f32 %v10818_v24, %v9046_v16  ;;  %v3930_v24 = vmul.f32 %v7804_v55, %v3770_v50  ;;  %v10822_v50 = vld [vmem:[#allocation114_spill] sm:$0xff] }
 0x3ea   : > { %6217 = vmatmul.msk.f32.vlgmr.msrb.gmra.mxu1 %vm1552_vm1, %v3492_v18  ;;  %v3928_v18 = vmul.f32 %v7944_v59, %v8608_v12 }
 0x3eb   : > { %6250 = vmatmul.msk.f32.vlgmr.msrb.gmra.mxu3 %vm1552_vm1, %v3927_v36  ;;  %6200 = vmatmul.msk.f32.gmra.mxu0 %vm1552_vm1, %v3073_v4  ;;  %v10817_v36 = vld [vmem:[#allocation111_spill] sm:$0xff]  ;;  %v9063_v4 = vld [vmem:[#allocation2 + $0x30] sm:$0xff] }
 0x3ed   : > { %v2414_v5 = vpop.f32.mrf.mxu3 }
 0x3ee   : > { %6169 = vmatmul.msk.f32.gmra.mxu2 %vm1552_vm1, %v2640_v56  ;;  %v9043_v43 = vadd.f32 %v2414_v5, %v2205_v34  ;;  %v2208_v14 = vpop.f32.mrf.mxu1  ;;  %v2775_v49 = vpop.f32.mrf.mxu2  ;;  %v3074_v34 = vmul.f32 %v10817_v36, %v8661_v40  ;;  %v3494_v56 = vmul.f32 %v7535_v54, %v9063_v4 }
 0x3ef   : > { %v9049_v46 = vadd.f32 %v2775_v49, %v8659_v57  ;;  %v3075_v49 = vmul.f32 %v8687_v1, %v7580_v27  ;;  %v9090_v1 = vld [vmem:[#allocation2 + $0xb9] sm:$0xff] }
 0x3f0   : > { %v9051_v61 = vpop.f32.mrf.mxu0 }
 0x3f2   : > { %6218 = vmatmul.msk.f32.gmra.mxu1 %vm1552_vm1, %v3493_v3 }
 0x3f3   : > { %6251 = vmatmul.msk.f32.gmra.mxu3 %vm1552_vm1, %v3928_v18  ;;  %6201 = vmatmul.msk.f32.gmra.mxu0 %vm1552_vm1, %v3074_v34 }
 0x3f5   : > { %v2417_v57 = vpop.f32.mrf.mxu3 }
 0x3f6   : > { %6170 = vmatmul.msk.f32.gmra.mxu2 %vm1552_vm1, %v2641_v10  ;;  %v9065_v37 = vadd.f32 %v2417_v57, %v2208_v14  ;;  %v2211_v59 = vpop.f32.mrf.mxu1  ;;  %v2778_v12 = vpop.f32.mrf.mxu2  ;;  %v10819_v14 = vld [vmem:[#allocation81_spill] sm:$0xff] }
 0x3f7   : > { %v9070_v40 = vadd.f32 %v2778_v12, %v8685_v21  ;;  %v2642_v3 = vmul.f32 %v8714_v20, %v10819_v14  ;;  %v9084_v21 = vld [vmem:[#allocation2 + $0x38] sm:$0xff]  ;;  %v10820_v10 = vld [vmem:[#allocation113_spill] sm:$0xff] }
 0x3f8   : > { %v9072_v5 = vpop.f32.mrf.mxu0  ;;  %v3495_v27 = vmul.f32 %v7537_v7, %v9084_v21  ;;  %v3076_v57 = vmul.f32 %v10820_v10, %v8716_v23  ;;  %v9112_v23 = vld [vmem:[#allocation2 + $0xc1] sm:$0xff] }
 0x3fa   : > { %6219 = vmatmul.msk.f32.gmra.mxu1 %vm1552_vm1, %v3494_v56 }
 0x3fb   : > { %6252 = vmatmul.msk.f32.gmra.mxu3 %vm1552_vm1, %v3929_v13  ;;  %6202 = vmatmul.msk.f32.gmra.mxu0 %vm1552_vm1, %v3075_v49 }
 0x3fd   : > { %v2420_v54 = vpop.f32.mrf.mxu3 }
 0x3fe   : > { %6171 = vmatmul.msk.f32.gmra.mxu2 %vm1552_vm1, %v2642_v3  ;;  %v9086_v18 = vadd.f32 %v2420_v54, %v2211_v59  ;;  %v2214_v35 = vpop.f32.mrf.mxu1  ;;  %v2781_v36 = vpop.f32.mrf.mxu2  ;;  %v10821_v59 = vld [vmem:[#allocation109_spill] sm:$0xff]  ;;  %v3931_v54 = vmul.f32 %v7824_v47, %v8697_v41 }
 0x3ff   : > { %v9093_v34 = vadd.f32 %v2781_v36, %v8712_v9  ;;  %v2643_v12 = vmul.f32 %v10821_v59, %v9090_v1  ;;  %v9106_v9 = vld [vmem:[#allocation2 + $0x40] sm:$0xff] }
 0x400   : > { %v9095_v20 = vpop.f32.mrf.mxu0  ;;  %v3496_v49 = vmul.f32 %v7552_v31, %v9106_v9  ;;  %v10823_v36 = vld [vmem:[#allocation83_spill] sm:$0xff] }
 0x401   : > { %v2644_v31 = vmul.f32 %v10823_v36, %v9112_v23 }
 0x402   : > { %6220 = vmatmul.msk.f32.gmra.mxu1 %vm1552_vm1, %v3495_v27  ;;  %v3337_v27 = vld [vmem:[#allocation2 + $0x48] sm:$0xff] }
 0x403   : > { %6253 = vmatmul.msk.f32.gmra.mxu3 %vm1552_vm1, %v3930_v24  ;;  %6203 = vmatmul.msk.f32.gmra.mxu0 %vm1552_vm1, %v3076_v57  ;;  %v3497_v41 = vmul.f32 %v7554_v32, %v3337_v27  ;;  %v9132_v57 = vld [vmem:[#allocation2 + $0xc9] sm:$0xff] }
 0x404   : > { %v10825_v32 = vld [vmem:[#allocation84_spill] sm:$0xff] }
 0x405   : > { %v2423_v7 = vpop.f32.mrf.mxu3  ;;  %v10828_v27 = vld [vmem:[#allocation116_spill] sm:$0xff] }
 0x406   : > { %6172 = vmatmul.msk.f32.gmra.mxu2 %vm1552_vm1, %v2643_v12  ;;  %v9108_v56 = vadd.f32 %v2423_v7, %v2214_v35  ;;  %v2217_v55 = vpop.f32.mrf.mxu1  ;;  %v2784_v13 = vpop.f32.mrf.mxu2  ;;  %v3077_v35 = vmul.f32 %v10822_v50, %v8746_v53  ;;  %v3932_v12 = vmul.f32 %v7826_v38, %v8727_v39  ;;  %v3078_v7 = vmul.f32 %v7602_v58, %v8771_v22  ;;  %v9157_v22 = vld [vmem:[#allocation2 + $0xd1] sm:$0xff] }
 0x407   : > { %v9115_v14 = vadd.f32 %v2784_v13, %v8744_v2  ;;  %v2645_v13 = vmul.f32 %v10825_v32, %v9132_v57 }
 0x408   : > { %v9117_v3 = vpop.f32.mrf.mxu0 }
 0x40a   : > { %6221 = vmatmul.msk.f32.gmra.mxu1 %vm1552_vm1, %v3496_v49  ;;  %v9151_v49 = vld [vmem:[#allocation2 + $0x50] sm:$0xff] }
 0x40b   : > { %6254 = vmatmul.msk.f32.gmra.mxu3 %vm1552_vm1, %v3931_v54  ;;  %6204 = vmatmul.msk.f32.gmra.mxu0 %vm1552_vm1, %v3077_v35  ;;  %v3498_v58 = vmul.f32 %v7720_v52, %v9151_v49  ;;  %v10826_v35 = vld [vmem:[#allocation176_spill] sm:$0xff] }
 0x40c   : > { %v3933_v36 = vmul.f32 %v10826_v35, %v8754_v8  ;;  %v9176_v8 = vld [vmem:[#allocation2 + $0x58] sm:$0xff] }
 0x40d   : > { %v2426_v2 = vpop.f32.mrf.mxu3  ;;  %v10834_v35 = vld [vmem:[#allocation150_spill] sm:$0xff] }
 0x40e   : > { %6173 = vmatmul.msk.f32.gmra.mxu2 %vm1552_vm1, %v2644_v31  ;;  %v9129_v24 = vadd.f32 %v2426_v2, %v2217_v55  ;;  %v2220_v10 = vpop.f32.mrf.mxu1  ;;  %v2787_v47 = vpop.f32.mrf.mxu2  ;;  %v10827_v2 = vld [vmem:[#allocation53_spill] sm:$0xff] }
 0x40f   : > { %v9135_v53 = vadd.f32 %v2787_v47, %v8767_v19  ;;  %v9144_v55 = vpop.permute.xlu1 %4766  ;;  %v10829_v47 = vld [vmem:[#allocation112_spill] sm:$0xff] }
 0x410   : > { %v9137_v59 = vpop.f32.mrf.mxu0  ;;  %10824 = vst [vmem:[#allocation60_spill] sm:$0xff] %v9144_v55  ;;  %v2646_v52 = vmul.f32 %v10829_v47, %v9157_v22 }
 0x412   : > { %6222 = vmatmul.msk.f32.gmra.mxu1 %vm1552_vm1, %v3497_v41 }
 0x413   : > { %6255 = vmatmul.msk.f32.gmra.mxu3 %vm1552_vm1, %v3932_v12  ;;  %6205 = vmatmul.msk.f32.gmra.mxu0 %vm1552_vm1, %v3078_v7 }
 0x415   : > { %v2429_v19 = vpop.f32.mrf.mxu3 }
 0x416   : > { %6174 = vmatmul.msk.f32.gmra.mxu2 %vm1552_vm1, %v2645_v13  ;;  %v9153_v38 = vadd.f32 %v2429_v19, %v2220_v10  ;;  %v2223_v39 = vpop.f32.mrf.mxu1  ;;  %v2790_v54 = vpop.f32.mrf.mxu2  ;;  %v3079_v10 = vmul.f32 %v10828_v27, %v10827_v2  ;;  %v10831_v13 = vld [vmem:[#allocation126_spill] sm:$0xff]  ;;  %v10835_v2 = vld [vmem:[#allocation117_spill] sm:$0xff] }
 0x417   : > { %v9160_v50 = vadd.f32 %v2790_v54, %v8805_v60  ;;  %v9173_v41 = vpop.permute.xlu1 %4770  ;;  %v3499_v19 = vmul.f32 %v10831_v13, %v9176_v8  ;;  %v3080_v27 = vmul.f32 %v8835_v28, %v10835_v2 }
 0x418   : > { %v9164_v31 = vpop.f32.mrf.mxu0  ;;  %10830 = vst [vmem:[#allocation108_spill] sm:$0xff] %v9173_v41 }
 0x41a   : > { %6223 = vmatmul.msk.f32.gmra.mxu1 %vm1552_vm1, %v3498_v58  ;;  %v10833_v58 = vld [vmem:[#allocation52_spill] sm:$0xff] }
 0x41b   : > { %6256 = vmatmul.msk.f32.gmra.mxu3 %vm1552_vm1, %v3933_v36  ;;  %6206 = vmatmul.msk.f32.gmra.mxu0 %vm1552_vm1, %v3079_v10  ;;  %v3934_v36 = vmul.f32 %v10834_v35, %v10833_v58  ;;  %v10837_v10 = vld [vmem:[#allocation72_spill] sm:$0xff]  ;;  %v10839_v58 = vld [vmem:[#allocation127_spill] sm:$0xff] }
 0x41d   : > { %v2432_v60 = vpop.f32.mrf.mxu3 }
 0x41e   : > { %6175 = vmatmul.msk.f32.gmra.mxu2 %vm1552_vm1, %v2646_v52  ;;  %v9178_v12 = vadd.f32 %v2432_v60, %v2223_v39  ;;  %v2226_v7 = vpop.f32.mrf.mxu1  ;;  %v2793_v32 = vpop.f32.mrf.mxu2  ;;  %v10836_v39 = vld [vmem:[#allocation86_spill] sm:$0xff]  ;;  %v9197_v60 = vld [vmem:[#allocation2 + $0x60] sm:$0xff] }
 0x41f   : > { %v9183_v54 = vadd.f32 %v2793_v32, %v8831_v26  ;;  %v2647_v47 = vmul.f32 %v10837_v10, %v10836_v39  ;;  %v9201_v13 = vpop.permute.xlu1 %4343  ;;  %v3500_v35 = vmul.f32 %v10839_v58, %v9197_v60  ;;  %v10842_v39 = vld [vmem:[#allocation101_spill] sm:$0xff]  ;;  %v10843_v10 = vld [vmem:[#allocation151_spill] sm:$0xff] }
 0x420   : > { %v9193_v52 = vpop.f32.mrf.mxu0  ;;  %10838 = vst [vmem:[#allocation61_spill] sm:$0xff] %v9201_v13  ;;  %v10877_v13 = vld [vmem:[#allocation190_spill] sm:$0xff] }
 0x421   : > { %10832 = vst [vmem:[#allocation77_spill] sm:$0xff] %v9183_v54  ;;  %v10845_v54 = vld [vmem:[#allocation132_spill] sm:$0xff] }
 0x422   : > { %6224 = vmatmul.msk.f32.gmra.mxu1 %vm1552_vm1, %v3499_v19 }
 0x423   : > { %6257 = vmatmul.msk.f32.gmra.mxu3 %vm1552_vm1, %v3934_v36  ;;  %6207 = vmatmul.msk.f32.gmra.mxu0 %vm1552_vm1, %v3080_v27  ;;  %v10840_v36 = vld [vmem:[#allocation30_spill] sm:$0xff]  ;;  %v3935_v27 = vmul.f32 %v10843_v10, %v10842_v39 }
 0x425   : > { %v2435_v26 = vpop.f32.mrf.mxu3 }
 0x426   : > { %6176 = vmatmul.msk.f32.gmra.mxu2 %vm1552_vm1, %v2647_v47  ;;  %v9199_v32 = vadd.f32 %v2435_v26, %v2226_v7  ;;  %v2229_v19 = vpop.f32.mrf.mxu1  ;;  %v2796_v28 = vpop.f32.mrf.mxu2  ;;  %v10844_v47 = vld [vmem:[#allocation241_spill] sm:$0xff]  ;;  %v10846_v7 = vld [vmem:[#allocation87_spill] sm:$0xff] }
 0x427   : > { %v9206_v2 = vadd.f32 %v2796_v28, %v10840_v36  ;;  %v3081_v41 = vmul.f32 %v10845_v54, %v10844_v47  ;;  %v2648_v26 = vmul.f32 %v8888_v45, %v10846_v7  ;;  %v9218_v28 = vld [vmem:[#allocation2 + $0x68] sm:$0xff]  ;;  %v10848_v54 = vld [vmem:[#allocation145_spill] sm:$0xff] }
 0x428   : > { %v9220_v36 = vpop.f32.mrf.mxu0  ;;  %v3501_v47 = vmul.f32 %v10848_v54, %v9218_v28  ;;  %v10852_v7 = vld [vmem:[#allocation185_spill] sm:$0xff] }
 0x429   : > { %10841 = vst [vmem:[#allocation33_spill] sm:$0xff] %v9206_v2  ;;  %v10853_v2 = vld [vmem:[#allocation119_spill] sm:$0xff] }
 0x42a   : > { %6225 = vmatmul.msk.f32.gmra.mxu1 %vm1552_vm1, %v3500_v35  ;;  %10847 = vst [vmem:[#allocation78_spill] sm:$0xff] %v9220_v36  ;;  %v3082_v36 = vmul.f32 %v10853_v2, %v8890_v17  ;;  %v10856_v17 = vld [vmem:[#allocation128_spill] sm:$0xff] }
 0x42b   : > { %6258 = vmatmul.msk.f32.gmra.mxu3 %vm1552_vm1, %v3935_v27  ;;  %6208 = vmatmul.msk.f32.gmra.mxu0 %vm1552_vm1, %v3081_v41  ;;  %v9226_v27 = vpop.permute.xlu1 %4347  ;;  %v10851_v41 = vld [vmem:[#allocation71_spill] sm:$0xff] }
 0x42c   : > { %10849 = vst [vmem:[#allocation110_spill] sm:$0xff] %v9226_v27  ;;  %v9282_v27 = vld [vmem:[#allocation2 + $0x111] sm:$0xff] }
 0x42d   : > { %v2438_v58 = vpop.f32.mrf.mxu3  ;;  %10871 = vst [vmem:[#allocation114_spill] sm:$0xff] %v9282_v27 }
 0x42e   : > { %6177 = vmatmul.msk.f32.gmra.mxu2 %vm1552_vm1, %v2648_v26  ;;  %v9222_v39 = vadd.f32 %v2438_v58, %v2229_v19  ;;  %v2232_v35 = vpop.f32.mrf.mxu1  ;;  %v2799_v10 = vpop.f32.mrf.mxu2  ;;  %v3936_v26 = vmul.f32 %v10852_v7, %v10851_v41  ;;  %v10854_v19 = vld [vmem:[#allocation115_spill] sm:$0xff] }
 0x42f   : > { %v9229_v45 = vadd.f32 %v2799_v10, %v8886_v63  ;;  %v2649_v58 = vmul.f32 %v8915_v6, %v10854_v19  ;;  %v9241_v63 = vld [vmem:[#allocation2 + $0x70] sm:$0xff]  ;;  %v10858_v6 = vld [vmem:[#allocation56_spill] sm:$0xff] }
 0x430   : > { %v9245_v7 = vpop.f32.mrf.mxu0  ;;  %v3502_v2 = vmul.f32 %v10856_v17, %v9241_v63  ;;  %v10859_v19 = vld [vmem:[#allocation153_spill] sm:$0xff] }
 0x431   : > { %10850 = vst [vmem:[#allocation106_spill] sm:$0xff] %v9229_v45 }
 0x432   : > { %6226 = vmatmul.msk.f32.gmra.mxu1 %vm1552_vm1, %v3501_v47  ;;  %10855 = vst [vmem:[#allocation111_spill] sm:$0xff] %v9245_v7 }
 0x433   : > { %6259 = vmatmul.msk.f32.gmra.mxu3 %vm1552_vm1, %v3936_v26  ;;  %6209 = vmatmul.msk.f32.gmra.mxu0 %vm1552_vm1, %v3082_v36  ;;  %v3937_v36 = vmul.f32 %v10859_v19, %v10858_v6 }
 0x435   : > { %v2441_v54 = vpop.f32.mrf.mxu3 }
 0x436   : > { %6178 = vmatmul.msk.f32.gmra.mxu2 %vm1552_vm1, %v2649_v58  ;;  %v9243_v10 = vadd.f32 %v2441_v54, %v2232_v35  ;;  %v2235_v41 = vpop.f32.mrf.mxu1  ;;  %v2802_v47 = vpop.f32.mrf.mxu2  ;;  %v10860_v58 = vld [vmem:[#allocation120_spill] sm:$0xff]  ;;  %v10862_v54 = vld [vmem:[#allocation89_spill] sm:$0xff] }
 0x437   : > { %v9250_v26 = vadd.f32 %v2802_v47, %v8913_v44  ;;  %v3083_v45 = vmul.f32 %v10860_v58, %v8917_v11  ;;  %v9257_v35 = vpop.permute.xlu1 %5213  ;;  %v2650_v7 = vmul.f32 %v8951_v30, %v10862_v54  ;;  %v9264_v47 = vld [vmem:[#allocation2 + $0x78] sm:$0xff]  ;;  %v10863_v11 = vld [vmem:[#allocation129_spill] sm:$0xff]  ;;  %v10867_v30 = vld [vmem:[#allocation32_spill] sm:$0xff] }
 0x438   : > { %10861 = vst [vmem:[#allocation81_spill] sm:$0xff] %v9257_v35  ;;  %v3503_v19 = vmul.f32 %v10863_v11, %v9264_v47  ;;  %v10864_v58 = vld [vmem:[#allocation58_spill] sm:$0xff]  ;;  %v10869_v54 = vld [vmem:[#allocation21_spill] sm:$0xff] }
 0x439   : > { %10857 = vst [vmem:[#allocation80_spill] sm:$0xff] %v9250_v26 }
 0x43a   : > { %6227 = vmatmul.msk.f32.gmra.mxu1 %vm1552_vm1, %v3502_v2 }
 0x43b   : > { %6260 = vmatmul.msk.f32.gmra.mxu3 %vm1552_vm1, %v3937_v36  ;;  %6210 = vmatmul.msk.f32.gmra.mxu0 %vm1552_vm1, %v3083_v45  ;;  %v9273_v36 = vpop.f32.mrf.mxu0  ;;  %v10868_v45 = vld [vmem:[#allocation135_spill] sm:$0xff] }
 0x43c   : > { %10866 = vst [vmem:[#allocation109_spill] sm:$0xff] %v9273_v36 }
 0x43d   : > { %v2444_v44 = vpop.f32.mrf.mxu3 }
 0x43e   : > { %6179 = vmatmul.msk.f32.gmra.mxu2 %vm1552_vm1, %v2650_v7  ;;  %v9266_v17 = vadd.f32 %v2444_v44, %v2235_v41  ;;  %v2238_v2 = vpop.f32.mrf.mxu1  ;;  %v3084_v7 = vmul.f32 %v10868_v45, %v10867_v30  ;;  %v10870_v41 = vld [vmem:[#allocation90_spill] sm:$0xff]  ;;  %v5098_v45 = vld [vmem:[#allocation2 + $0x101] sm:$0xff] }
 0x43f   : > { %v2651_v44 = vmul.f32 %v8976_v42, %v10870_v41  ;;  %v5218_v26 = vpop.permute.xlu1 %5217  ;;  %v10873_v42 = vld [vmem:[#allocation147_spill] sm:$0xff] }
 0x441   : > { %v2805_v6 = vpop.f32.mrf.mxu2 }
 0x442   : > { %v9271_v35 = vadd.f32 %v2805_v6, %v10864_v58  ;;  %6228 = vmatmul.msk.f32.gmra.mxu1 %vm1552_vm1, %v3503_v19  ;;  %v9286_v6 = vmul.f32 %v5218_v26, %v9282_v27  ;;  %v9289_v19 = vld [vmem:[#allocation2 + $0x80] sm:$0xff] }
 0x443   : > { %6261 = vmatmul.msk.f32.gmra.mxu3 %vm1552_vm1, %v10869_v54  ;;  %6211 = vmatmul.msk.f32.gmra.mxu0 %vm1552_vm1, %v3084_v7  ;;  %v3504_v41 = vmul.f32 %v10873_v42, %v9289_v19  ;;  %v10876_v7 = vld [vmem:[#allocation74_spill] sm:$0xff]  ;;  %v9305_v27 = vpop.f32.mrf.mxu0 }
 0x444   : > { %10865 = vst [vmem:[#allocation113_spill] sm:$0xff] %v9271_v35  ;;  %v10874_v35 = vld [vmem:[#allocation59_spill] sm:$0xff]  ;;  %v3939_v26 = vmul.f32 %v10877_v13, %v10876_v7  ;;  %v3780_v13 = vld [vmem:[#allocation2 + $0x89] sm:$0xff] }
 0x445   : > { %10872 = vst [vmem:[#allocation83_spill] sm:$0xff] %v9286_v6  ;;  %v2447_v11 = vpop.f32.mrf.mxu3  ;;  %v10879_v6 = vld [vmem:[#allocation31_spill] sm:$0xff]  ;;  %v5099_v7 = vld [vmem:[#allocation2 + $0x109] sm:$0xff] }
 0x446   : > { %6180 = vmatmul.msk.f32.gmra.mxu2 %vm1552_vm1, %v2651_v44  ;;  %v9291_v58 = vadd.f32 %v2447_v11, %v2238_v2  ;;  %v10878_v44 = vld [vmem:[#allocation122_spill] sm:$0xff]  ;;  %10881 = vst [vmem:[#allocation176_spill] sm:$0xff] %v9305_v27 }
 0x447   : > { %v2241_v30 = vpop.f32.mrf.mxu1  ;;  %v3085_v55 = vmul.f32 %v10879_v6, %v10878_v44  ;;  %v10880_v2 = vld [vmem:[#allocation118_spill] sm:$0xff]  ;;  %v10884_v44 = vld [vmem:[#allocation155_spill] sm:$0xff] }
 0x448   : > { %v2652_v11 = vmul.f32 %v5098_v45, %v10880_v2  ;;  %v10882_v6 = vld [vmem:[#allocation130_spill] sm:$0xff]  ;;  %v3940_v2 = vmul.f32 %v10884_v44, %v3780_v13 }
 0x449   : > { %v2808_v54 = vpop.f32.mrf.mxu2 }
 0x44a   : > { %v9296_v36 = vadd.f32 %v2808_v54, %v10874_v35  ;;  %6229 = vmatmul.msk.f32.gmra.mxu1 %vm1552_vm1, %v3504_v41  ;;  %v9309_v54 = vld [vmem:[#allocation2 + $0x88] sm:$0xff] }
 0x44b   : > { %6262 = vmatmul.msk.f32.gmra.mxu3 %vm1552_vm1, %v3939_v26  ;;  %6212 = vmatmul.msk.f32.gmra.mxu0 %vm1552_vm1, %v3085_v55  ;;  %v3505_v26 = vmul.f32 %v10882_v6, %v9309_v54  ;;  %v5611_v55 = vld [vmem:[%s10337_s13] sm:$0xff]  ;;  %v9331_v13 = vpop.f32.mrf.mxu0 }
 0x44c   : > { %10875 = vst [vmem:[#allocation84_spill] sm:$0xff] %v9296_v36  ;;  %5723 = vmatpush.msra.mxu3 %v5611_v55  ;;  %v10889_v55 = vld [vmem:[#allocation131_spill] sm:$0xff] }
 0x44d   : > { %10887 = vst [vmem:[#allocation116_spill] sm:$0xff] %v9331_v13 }
 0x44e   : > { %6181 = vmatmul.msk.f32.gmra.mxu2 %vm1552_vm1, %v2652_v11  ;;  %v2450_v35 = vpop.f32.mrf.mxu3 }
 0x44f   : > { %v9311_v42 = vadd.f32 %v2450_v35, %v2241_v30  ;;  %v2244_v41 = vpop.f32.mrf.mxu1  ;;  %v10885_v30 = vld [vmem:[#allocation123_spill] sm:$0xff]  ;;  %v10886_v35 = vld [vmem:[#allocation92_spill] sm:$0xff] }
 0x450   : > { %v3086_v11 = vmul.f32 %v9003_v33, %v10885_v30  ;;  %v2653_v27 = vmul.f32 %v5099_v7, %v10886_v35  ;;  %v4202_v30 = vld [vmem:[#allocation2 + $0x2f] sm:$0xff]  ;;  %v10892_v35 = vld [vmem:[#allocation138_spill] sm:$0xff] }
 0x451   : > { %v2811_v36 = vpop.f32.mrf.mxu2 }
 0x452   : > { %v9316_v45 = vadd.f32 %v2811_v36, %v9001_v62  ;;  %6230 = vmatmul.msk.f32.gmra.mxu1 %vm1552_vm1, %v3505_v26  ;;  %v9329_v36 = vld [vmem:[#allocation2 + $0x90] sm:$0xff] }
 0x453   : > { %6263 = vmatmul.msk.f32.gmra.mxu3 %vm1552_vm1, %v3940_v2  ;;  %6213 = vmatmul.msk.f32.gmra.mxu0 %vm1552_vm1, %v3086_v11  ;;  %v9335_v26 = vld [vmem:[#allocation2 + $0x10f] sm:$0xff]  ;;  %v3506_v2 = vmul.f32 %v10889_v55, %v9329_v36  ;;  %v3347_v55 = vld [vmem:[#allocation2 + $0x98] sm:$0xff] }
 0x454   : > { %10883 = vst [vmem:[#allocation53_spill] sm:$0xff] %v9316_v45 }
 0x455   : > { %10888 = vst [vmem:[#allocation112_spill] sm:$0xff] %v9335_v26 }
 0x456   : > { %6182 = vmatmul.msk.f32.gmra.mxu2 %vm1552_vm1, %v2653_v27  ;;  %v2453_v62 = vpop.f32.mrf.mxu3  ;;  %v10891_v27 = vld [vmem:[#allocation156_spill] sm:$0xff] }
 0x457   : > { %v9333_v6 = vadd.f32 %v2453_v62, %v2244_v41  ;;  %v2247_v44 = vpop.f32.mrf.mxu1  ;;  %v3941_v11 = vmul.f32 %v10891_v27, %v8987_v25  ;;  %v3087_v41 = vmul.f32 %v9335_v26, %v10892_v35  ;;  %v10893_v62 = vld [vmem:[#allocation182_spill] sm:$0xff]  ;;  %v9355_v27 = vpop.f32.mrf.mxu0 }
 0x458   : > { %v4362_v45 = vmul.f32 %v10893_v62, %v4202_v30  ;;  %10896 = vst [vmem:[#allocation117_spill] sm:$0xff] %v9355_v27  ;;  %v10899_v30 = vld [vmem:[#allocation195_spill] sm:$0xff]  ;;  %v6573_v26 = vld [vmem:[#allocation2 + $0x37] sm:$0xff] }
 0x459   : > { %v2814_v33 = vpop.f32.mrf.mxu2 }
 0x45a   : > { %v9340_v7 = vadd.f32 %v2814_v33, %v9023_v15  ;;  %6231 = vmatmul.msk.f32.gmra.mxu1 %vm1552_vm1, %v3506_v2  ;;  %v9351_v15 = vld [vmem:[#allocation2 + $0x117] sm:$0xff] }
 0x45b   : > { %6264 = vmatmul.msk.f32.gmra.mxu3 %vm1552_vm1, %v3941_v11  ;;  %6214 = vmatmul.msk.f32.gmra.mxu0 %vm1552_vm1, %v3087_v41  ;;  %10894 = vst [vmem:[#allocation52_spill] sm:$0xff] %v9351_v15  ;;  %v3942_v41 = vmul.f32 %v10899_v30, %v9009_v48 }
 0x45c   : > { %10890 = vst [vmem:[#allocation126_spill] sm:$0xff] %v9340_v7  ;;  %v10897_v7 = vld [vmem:[#allocation148_spill] sm:$0xff] }
 0x45d   : > { %v3507_v35 = vmul.f32 %v10897_v7, %v3347_v55  ;;  %v9370_v7 = vld [vmem:[#allocation2 + $0xa0] sm:$0xff] }
 0x45e   : > { %6283 = vmatmul.msk.f32.vlgmr.msra.gmra.mxu2 %vm1552_vm1, %v4362_v45  ;;  %v2456_v13 = vpop.f32.mrf.mxu3  ;;  %v10900_v45 = vld [vmem:[#allocation125_spill] sm:$0xff]  ;;  %v10902_v55 = vld [vmem:[#allocation91_spill] sm:$0xff] }
 0x45f   : > { %v9353_v33 = vadd.f32 %v2456_v13, %v2247_v44  ;;  %v2250_v25 = vpop.f32.mrf.mxu1  ;;  %v3088_v62 = vmul.f32 %v9351_v15, %v10900_v45  ;;  %v10901_v13 = vld [vmem:[#allocation12_spill] sm:$0xff]  ;;  %v10904_v45 = vld [vmem:[#allocation133_spill] sm:$0xff] }
 0x460   : > { %v4363_v44 = vmul.f32 %v6573_v26, %v10901_v13  ;;  %v3508_v27 = vmul.f32 %v10904_v45, %v9370_v7  ;;  %v4204_v26 = vld [vmem:[#allocation2 + $0x3f] sm:$0xff]  ;;  %v10905_v13 = vld [vmem:[#allocation88_spill] sm:$0xff] }
 0x461   : > { %10895 = vst [vmem:[#allocation150_spill] sm:$0xff] %v9353_v33  ;;  %v2817_v2 = vpop.f32.mrf.mxu2  ;;  %v9384_v33 = vpop.f32.mrf.mxu0 }
 0x462   : > { %v9359_v11 = vadd.f32 %v2817_v2, %v9043_v43  ;;  %6232 = vmatmul.msk.f32.gmra.mxu1 %vm1552_vm1, %v3507_v35  ;;  %v10903_v2 = vld [vmem:[#allocation24_spill] sm:$0xff] }
 0x463   : > { %6265 = vmatmul.msk.f32.gmra.mxu3 %vm1552_vm1, %v3942_v41  ;;  %6215 = vmatmul.msk.f32.gmra.mxu0 %vm1552_vm1, %v3088_v62  ;;  %v2367_v48 = vadd.f32 %v10903_v2, %v10902_v55  ;;  %v10908_v2 = vld [vmem:[#allocation186_spill] sm:$0xff] }
 0x464   : > { %10898 = vst [vmem:[#allocation86_spill] sm:$0xff] %v9359_v11  ;;  %v4364_v45 = vmul.f32 %v10908_v2, %v4204_v26  ;;  %v10913_v2 = vld [vmem:[#allocation192_spill] sm:$0xff] }
 0x465   : > { %v2865_v41 = vadd.f32 %v10905_v13, %v2367_v48  ;;  %v10909_v48 = vld [vmem:[#allocation63_spill] sm:$0xff] }
 0x466   : > { %6284 = vmatmul.msk.f32.gmra.mxu2 %vm1552_vm1, %v4363_v44  ;;  %v2459_v43 = vpop.f32.mrf.mxu3  ;;  %v10906_v44 = vld [vmem:[#allocation158_spill] sm:$0xff]  ;;  %v10910_v13 = vld [vmem:[#allocation23_spill] sm:$0xff] }
 0x467   : > { %v9374_v30 = vadd.f32 %v2459_v43, %v2250_v25  ;;  %v3639_v35 = vpop.f32.mrf.mxu1  ;;  %v3943_v15 = vmul.f32 %v10906_v44, %v9029_v51  ;;  %v10907_v25 = vld [vmem:[#allocation187_spill] sm:$0xff]  ;;  %v3300_v55 = vadd.f32 %v9031_v29, %v2865_v41  ;;  %v10911_v29 = vld [vmem:[#allocation134_spill] sm:$0xff] }
 0x468   : > { %v4797_v43 = vmul.f32 %v10907_v25, %v9063_v4  ;;  %v4205_v41 = vld [vmem:[#allocation2 + $0x47] sm:$0xff] }
 0x469   : > { %v2820_v11 = vpop.f32.mrf.mxu2 }
 0x46a   : > { %v9380_v62 = vadd.f32 %v2820_v11, %v9065_v37  ;;  %6233 = vmatmul.msk.f32.gmra.mxu1 %vm1552_vm1, %v3508_v27  ;;  %v3735_v37 = vadd.f32 %v3639_v35, %v3300_v55  ;;  %v9394_v11 = vld [vmem:[#allocation2 + $0xa8] sm:$0xff]  ;;  %v2370_v27 = vadd.f32 %v10910_v13, %v10909_v48  ;;  %v9414_v13 = vpop.f32.mrf.mxu0 }
 0x46b   : > { %6266 = vmatmul.msk.f32.gmra.mxu3 %vm1552_vm1, %v3943_v15  ;;  %6316 = vmatmul.msk.f32.vlgmr.msrb.gmra.mxu0 %vm1552_vm1, %v4797_v43  ;;  %v3509_v15 = vmul.f32 %v10911_v29, %v9394_v11  ;;  %v10912_v43 = vld [vmem:[#allocation159_spill] sm:$0xff] }
 0x46c   : > { %v2866_v26 = vadd.f32 %v9026_v0, %v2370_v27  ;;  %v3944_v55 = vmul.f32 %v10912_v43, %v9046_v16  ;;  %v3785_v27 = vld [vmem:[#allocation2 + $0xb1] sm:$0xff]  ;;  %v10916_v43 = vld [vmem:[#allocation200_spill] sm:$0xff] }
 0x46e   : > { %6285 = vmatmul.msk.f32.gmra.mxu2 %vm1552_vm1, %v4364_v45  ;;  %v4074_v51 = vpop.f32.mrf.mxu3  ;;  %v4798_v45 = vmul.f32 %v10913_v2, %v9084_v21 }
 0x46f   : > { %v9398_v44 = vadd.f32 %v4074_v51, %v3735_v37  ;;  %v3642_v4 = vpop.f32.mrf.mxu1  ;;  %v3301_v37 = vadd.f32 %v9051_v61, %v2866_v26  ;;  %v10914_v51 = vld [vmem:[#allocation197_spill] sm:$0xff] }
 0x470   : > { %v4365_v48 = vmul.f32 %v10914_v51, %v4205_v41  ;;  %v10915_v61 = vld [vmem:[#allocation149_spill] sm:$0xff] }
 0x471   : > { %v2823_v25 = vpop.f32.mrf.mxu2  ;;  %v3736_v0 = vadd.f32 %v3642_v4, %v3301_v37  ;;  %v4206_v26 = vld [vmem:[#allocation2 + $0x4f] sm:$0xff]  ;;  %v10917_v4 = vld [vmem:[#allocation199_spill] sm:$0xff] }
 0x472   : > { %v9404_v35 = vadd.f32 %v2823_v25, %v9086_v18  ;;  %6234 = vmatmul.msk.f32.gmra.mxu1 %vm1552_vm1, %v3509_v15  ;;  %v9418_v18 = vld [vmem:[#allocation2 + $0xb0] sm:$0xff]  ;;  %v4799_v2 = vmul.f32 %v10917_v4, %v9106_v9  ;;  %v10918_v37 = vld [vmem:[#allocation204_spill] sm:$0xff] }
 0x473   : > { %6267 = vmatmul.msk.f32.gmra.mxu3 %vm1552_vm1, %v3944_v55  ;;  %6317 = vmatmul.msk.f32.gmra.mxu0 %vm1552_vm1, %v4798_v45  ;;  %v3510_v15 = vmul.f32 %v10915_v61, %v9418_v18  ;;  %v3945_v55 = vmul.f32 %v10916_v43, %v3785_v27  ;;  %v3302_v45 = vadd.f32 %v9072_v5, %v9049_v46  ;;  %v10919_v46 = vld [vmem:[#allocation136_spill] sm:$0xff]  ;;  %v4207_v61 = vld [vmem:[#allocation2 + $0x57] sm:$0xff] }
 0x474   : > { %v4366_v51 = vmul.f32 %v10918_v37, %v4206_v26  ;;  %v6574_v43 = vld [vmem:[#allocation2 + $0x48] sm:$0xff] }
 0x476   : > { %6286 = vmatmul.msk.f32.gmra.mxu2 %vm1552_vm1, %v4365_v48  ;;  %v4077_v16 = vpop.f32.mrf.mxu3 }
 0x477   : > { %v9420_v25 = vadd.f32 %v4077_v16, %v3736_v0  ;;  %v3645_v21 = vpop.f32.mrf.mxu1  ;;  %v9439_v0 = vpop.f32.mrf.mxu0 }
 0x478   : > { %v3737_v48 = vadd.f32 %v3645_v21, %v3302_v45  ;;  %v10921_v21 = vld [vmem:[#allocation163_spill] sm:$0xff]  ;;  %v10923_v45 = vld [vmem:[#allocation208_spill] sm:$0xff] }
 0x479   : > { %v2826_v29 = vpop.f32.mrf.mxu2  ;;  %v3946_v26 = vmul.f32 %v10921_v21, %v9090_v1  ;;  %v4367_v37 = vmul.f32 %v10923_v45, %v4207_v61  ;;  %v3353_v45 = vld [vmem:[#allocation2 + $0xc8] sm:$0xff] }
 0x47a   : > { %v9425_v41 = vadd.f32 %v2826_v29, %v9108_v56  ;;  %6235 = vmatmul.msk.f32.gmra.mxu1 %vm1552_vm1, %v3510_v15  ;;  %v9437_v56 = vld [vmem:[#allocation2 + $0xb8] sm:$0xff] }
 0x47b   : > { %6268 = vmatmul.msk.f32.gmra.mxu3 %vm1552_vm1, %v3945_v55  ;;  %6318 = vmatmul.msk.f32.gmra.mxu0 %vm1552_vm1, %v4799_v2  ;;  %v3511_v5 = vmul.f32 %v10919_v46, %v9437_v56  ;;  %v10922_v55 = vld [vmem:[#allocation6_spill] sm:$0xff]  ;;  %v3303_v2 = vadd.f32 %v9095_v20, %v9070_v40  ;;  %v10926_v20 = vld [vmem:[#allocation164_spill] sm:$0xff] }
 0x47c   : > { %v4800_v4 = vmul.f32 %v6574_v43, %v10922_v55  ;;  %v3947_v61 = vmul.f32 %v10926_v20, %v9112_v23  ;;  %v6575_v43 = vld [vmem:[#allocation2 + $0x5f] sm:$0xff]  ;;  %v10928_v55 = vld [vmem:[#allocation44_spill] sm:$0xff] }
 0x47e   : > { %6287 = vmatmul.msk.f32.gmra.mxu2 %vm1552_vm1, %v4366_v51  ;;  %v4080_v16 = vpop.f32.mrf.mxu3 }
 0x47f   : > { %v9441_v27 = vadd.f32 %v4080_v16, %v3737_v48  ;;  %v3648_v9 = vpop.f32.mrf.mxu1 }
 0x480   : > { %v3738_v51 = vadd.f32 %v3648_v9, %v3303_v2  ;;  %v10927_v9 = vld [vmem:[#allocation211_spill] sm:$0xff]  ;;  %v3304_v2 = vadd.f32 %v9117_v3, %v9093_v34  ;;  %v10931_v34 = vld [vmem:[#allocation209_spill] sm:$0xff] }
 0x481   : > { %v2829_v29 = vpop.f32.mrf.mxu2  ;;  %v3948_v3 = vmul.f32 %v10931_v34, %v9132_v57  ;;  %v3354_v57 = vld [vmem:[#allocation2 + $0xd0] sm:$0xff] }
 0x482   : > { %v9446_v15 = vadd.f32 %v2829_v29, %v9129_v24  ;;  %6236 = vmatmul.msk.f32.gmra.mxu1 %vm1552_vm1, %v3511_v5  ;;  %v3352_v24 = vld [vmem:[#allocation2 + $0xc0] sm:$0xff]  ;;  %v9460_v29 = vpop.f32.mrf.mxu0  ;;  %v10924_v5 = vld [vmem:[#allocation137_spill] sm:$0xff] }
 0x483   : > { %6269 = vmatmul.msk.f32.gmra.mxu3 %vm1552_vm1, %v3946_v26  ;;  %6319 = vmatmul.msk.f32.gmra.mxu0 %vm1552_vm1, %v4800_v4  ;;  %v3512_v21 = vmul.f32 %v10924_v5, %v3352_v24  ;;  %v4801_v26 = vmul.f32 %v10927_v9, %v9151_v49  ;;  %v4368_v4 = vmul.f32 %v6575_v43, %v10928_v55  ;;  %v10929_v49 = vld [vmem:[#allocation152_spill] sm:$0xff]  ;;  %v10933_v9 = vld [vmem:[#allocation219_spill] sm:$0xff] }
 0x484   : > { %10920 = vst [vmem:[#allocation72_spill] sm:$0xff] %v9446_v15  ;;  %v5091_v15 = vld [vmem:[#allocation2 + $0xc9] sm:$0xff] }
 0x486   : > { %6288 = vmatmul.msk.f32.gmra.mxu2 %vm1552_vm1, %v4367_v37  ;;  %v4083_v48 = vpop.f32.mrf.mxu3 }
 0x487   : > { %v9458_v1 = vadd.f32 %v4083_v48, %v3738_v51  ;;  %v3651_v16 = vpop.f32.mrf.mxu1  ;;  %v3513_v48 = vmul.f32 %v10929_v49, %v3353_v45  ;;  %v4210_v45 = vld [vmem:[#allocation2 + $0x6f] sm:$0xff]  ;;  %v3306_v49 = vadd.f32 %v9164_v31, %v9135_v53  ;;  %v4211_v31 = vld [vmem:[#allocation2 + $0x77] sm:$0xff] }
 0x489   : > { %v2832_v46 = vpop.f32.mrf.mxu2 }
 0x48a   : > { %v9464_v40 = vadd.f32 %v2832_v46, %v9153_v38  ;;  %6237 = vmatmul.msk.f32.gmra.mxu1 %vm1552_vm1, %v3512_v21  ;;  %v3739_v38 = vadd.f32 %v3651_v16, %v3304_v2  ;;  %v4209_v46 = vld [vmem:[#allocation2 + $0x67] sm:$0xff]  ;;  %v9485_v21 = vpop.f32.mrf.mxu0 }
 0x48b   : > { %6270 = vmatmul.msk.f32.gmra.mxu3 %vm1552_vm1, %v3947_v61  ;;  %6320 = vmatmul.msk.f32.gmra.mxu0 %vm1552_vm1, %v4801_v26  ;;  %v10932_v16 = vld [vmem:[#allocation215_spill] sm:$0xff]  ;;  %v3305_v61 = vadd.f32 %v9137_v59, %v9115_v14  ;;  %v4369_v26 = vmul.f32 %v10933_v9, %v4209_v46  ;;  %v10936_v59 = vld [vmem:[#allocation168_spill] sm:$0xff] }
 0x48c   : > { %10925 = vst [vmem:[#allocation127_spill] sm:$0xff] %v9464_v40  ;;  %v4802_v20 = vmul.f32 %v10932_v16, %v9176_v8  ;;  %v3790_v16 = vld [vmem:[#allocation2 + $0xd9] sm:$0xff]  ;;  %v10939_v9 = vld [vmem:[#allocation140_spill] sm:$0xff] }
 0x48d   : > { %v11043_v40 = vld [vmem:[#allocation22_spill] sm:$0xff] }
 0x48e   : > { %6289 = vmatmul.msk.f32.gmra.mxu2 %vm1552_vm1, %v4368_v4  ;;  %v4086_v23 = vpop.f32.mrf.mxu3 }
 0x48f   : > { %v9477_v37 = vadd.f32 %v4086_v23, %v3739_v38  ;;  %v3654_v51 = vpop.f32.mrf.mxu1  ;;  %v10934_v38 = vld [vmem:[#allocation139_spill] sm:$0xff]  ;;  %v3949_v23 = vmul.f32 %v10936_v59, %v9157_v22  ;;  %v3355_v22 = vld [vmem:[#allocation2 + $0xd8] sm:$0xff] }
 0x490   : > { %v3514_v8 = vmul.f32 %v10934_v38, %v3354_v57  ;;  %v3515_v53 = vmul.f32 %v10939_v9, %v3355_v22  ;;  %v10943_v38 = vld [vmem:[#allocation14_spill] sm:$0xff]  ;;  %v3357_v9 = vld [vmem:[#allocation2 + $0xe8] sm:$0xff] }
 0x491   : > { %v2835_v24 = vpop.f32.mrf.mxu2 }
 0x492   : > { %v9481_v5 = vadd.f32 %v2835_v24, %v9178_v12  ;;  %6238 = vmatmul.msk.f32.gmra.mxu1 %vm1552_vm1, %v3513_v48  ;;  %v3740_v12 = vadd.f32 %v3654_v51, %v3305_v61  ;;  %v10937_v51 = vld [vmem:[#allocation220_spill] sm:$0xff]  ;;  %v9511_v34 = vpop.f32.mrf.mxu0 }
 0x493   : > { %6271 = vmatmul.msk.f32.gmra.mxu3 %vm1552_vm1, %v3948_v3  ;;  %6321 = vmatmul.msk.f32.gmra.mxu0 %vm1552_vm1, %v4802_v20  ;;  %v4803_v24 = vmul.f32 %v10937_v51, %v9197_v60  ;;  %v10938_v48 = vld [vmem:[#allocation16_spill] sm:$0xff] }
 0x494   : > { %10930 = vst [vmem:[#allocation30_spill] sm:$0xff] %v9481_v5  ;;  %v4370_v46 = vmul.f32 %v10938_v48, %v4210_v45  ;;  %v3791_v51 = vld [vmem:[#allocation2 + $0xe1] sm:$0xff] }
 0x495   : > { %v4212_v48 = vld [vmem:[#allocation2 + $0x7f] sm:$0xff] }
 0x496   : > { %6290 = vmatmul.msk.f32.gmra.mxu2 %vm1552_vm1, %v4369_v26  ;;  %v4089_v43 = vpop.f32.mrf.mxu3 }
 0x497   : > { %v9496_v55 = vadd.f32 %v4089_v43, %v3740_v12  ;;  %v3657_v4 = vpop.f32.mrf.mxu1  ;;  %v10941_v12 = vld [vmem:[#allocation169_spill] sm:$0xff] }
 0x498   : > { %v3950_v57 = vmul.f32 %v10941_v12, %v3790_v16  ;;  %v10942_v43 = vld [vmem:[#allocation13_spill] sm:$0xff] }
 0x499   : > { %v2838_v2 = vpop.f32.mrf.mxu2 }
 0x49a   : > { %v9500_v14 = vadd.f32 %v2838_v2, %v9199_v32  ;;  %6239 = vmatmul.msk.f32.gmra.mxu1 %vm1552_vm1, %v3514_v8  ;;  %v3741_v32 = vadd.f32 %v3657_v4, %v3306_v49  ;;  %v4804_v4 = vmul.f32 %v10942_v43, %v9218_v28  ;;  %v3307_v2 = vadd.f32 %v9193_v52, %v9160_v50  ;;  %v9531_v59 = vpop.f32.mrf.mxu0  ;;  %v10945_v50 = vld [vmem:[#allocation154_spill] sm:$0xff] }
 0x49b   : > { %6272 = vmatmul.msk.f32.gmra.mxu3 %vm1552_vm1, %v3949_v23  ;;  %6322 = vmatmul.msk.f32.gmra.mxu0 %vm1552_vm1, %v4803_v24  ;;  %v4371_v8 = vmul.f32 %v10943_v38, %v4211_v31  ;;  %10944 = vst [vmem:[#allocation241_spill] sm:$0xff] %v9531_v59  ;;  %v10954_v38 = vld [vmem:[#allocation228_spill] sm:$0xff] }
 0x49c   : > { %10935 = vst [vmem:[#allocation101_spill] sm:$0xff] %v9500_v14  ;;  %v11034_v14 = vld [vmem:[#allocation110_spill] sm:$0xff] }
 0x49e   : > { %6291 = vmatmul.msk.f32.gmra.mxu2 %vm1552_vm1, %v4370_v46  ;;  %v4092_v3 = vpop.f32.mrf.mxu3 }
 0x49f   : > { %v9515_v20 = vadd.f32 %v4092_v3, %v3741_v32  ;;  %v3660_v60 = vpop.f32.mrf.mxu1  ;;  %v10947_v32 = vld [vmem:[#allocation213_spill] sm:$0xff]  ;;  %v10948_v3 = vld [vmem:[#allocation70_spill] sm:$0xff] }
 0x4a0   : > { %v3742_v45 = vadd.f32 %v3660_v60, %v3307_v2  ;;  %v3951_v22 = vmul.f32 %v10947_v32, %v3791_v51  ;;  %v4805_v16 = vmul.f32 %v10948_v3, %v9241_v63  ;;  %v10949_v60 = vld [vmem:[#allocation37_spill] sm:$0xff]  ;;  %v10953_v63 = vld [vmem:[#allocation172_spill] sm:$0xff] }
 0x4a1   : > { %v2841_v61 = vpop.f32.mrf.mxu2  ;;  %v3358_v51 = vld [vmem:[#allocation2 + $0xf0] sm:$0xff] }
 0x4a2   : > { %v9519_v26 = vadd.f32 %v2841_v61, %v9222_v39  ;;  %6240 = vmatmul.msk.f32.gmra.mxu1 %vm1552_vm1, %v3515_v53  ;;  %v3356_v39 = vld [vmem:[#allocation2 + $0xe0] sm:$0xff]  ;;  %v4372_v61 = vmul.f32 %v10949_v60, %v4212_v48  ;;  %v3792_v53 = vld [vmem:[#allocation2 + $0xe9] sm:$0xff] }
 0x4a3   : > { %6273 = vmatmul.msk.f32.gmra.mxu3 %vm1552_vm1, %v3950_v57  ;;  %6323 = vmatmul.msk.f32.gmra.mxu0 %vm1552_vm1, %v4804_v4  ;;  %v3516_v52 = vmul.f32 %v10945_v50, %v3356_v39  ;;  %v10951_v57 = vld [vmem:[#allocation141_spill] sm:$0xff]  ;;  %v3952_v2 = vmul.f32 %v10953_v63, %v3792_v53  ;;  %v10955_v39 = vld [vmem:[#allocation62_spill] sm:$0xff] }
 0x4a4   : > { %10940 = vst [vmem:[#allocation151_spill] sm:$0xff] %v9519_v26  ;;  %v3517_v43 = vmul.f32 %v10951_v57, %v3357_v9  ;;  %v4214_v32 = vld [vmem:[#allocation2 + $0x8f] sm:$0xff] }
 0x4a5   : > { %v10960_v60 = vld [vmem:[#allocation9_spill] sm:$0xff]  ;;  %v10961_v9 = vld [vmem:[#allocation8_spill] sm:$0xff] }
 0x4a6   : > { %6292 = vmatmul.msk.f32.gmra.mxu2 %vm1552_vm1, %v4371_v8  ;;  %v4095_v23 = vpop.f32.mrf.mxu3  ;;  %v4806_v8 = vmul.f32 %v10954_v38, %v9264_v47  ;;  %v10958_v47 = vld [vmem:[#allocation173_spill] sm:$0xff]  ;;  %v4374_v53 = vmul.f32 %v10961_v9, %v4214_v32 }
 0x4a7   : > { %v9533_v24 = vadd.f32 %v4095_v23, %v3742_v45  ;;  %v9535_v28 = vpop.f32.mrf.mxu1  ;;  %v6576_v45 = vld [vmem:[#allocation2 + $0x87] sm:$0xff]  ;;  %v10962_v63 = vld [vmem:[#allocation161_spill] sm:$0xff] }
 0x4a8   : > { %v4373_v23 = vmul.f32 %v6576_v45, %v10955_v39  ;;  %v4215_v38 = vld [vmem:[#allocation2 + $0x97] sm:$0xff]  ;;  %v10965_v39 = vld [vmem:[#allocation39_spill] sm:$0xff] }
 0x4a9   : > { %v2844_v49 = vpop.f32.mrf.mxu2 }
 0x4aa   : > { %v9539_v46 = vadd.f32 %v2844_v49, %v9243_v10  ;;  %6241 = vmatmul.msk.f32.gmra.mxu1 %vm1552_vm1, %v3516_v52  ;;  %v9551_v10 = vpop.f32.mrf.mxu0  ;;  %v3793_v49 = vld [vmem:[#allocation2 + $0xf1] sm:$0xff] }
 0x4ab   : > { %6274 = vmatmul.msk.f32.gmra.mxu3 %vm1552_vm1, %v3951_v22  ;;  %6324 = vmatmul.msk.f32.gmra.mxu0 %vm1552_vm1, %v4805_v16  ;;  %10950 = vst [vmem:[#allocation87_spill] sm:$0xff] %v9551_v10  ;;  %v10956_v52 = vld [vmem:[#allocation142_spill] sm:$0xff]  ;;  %v3953_v3 = vmul.f32 %v10958_v47, %v3793_v49  ;;  %v10968_v47 = vld [vmem:[#allocation143_spill] sm:$0xff] }
 0x4ac   : > { %10946 = vst [vmem:[#allocation132_spill] sm:$0xff] %v9539_v46  ;;  %v3518_v48 = vmul.f32 %v10956_v52, %v3358_v51  ;;  %v10966_v51 = vld [vmem:[#allocation20_spill] sm:$0xff]  ;;  %v3360_v52 = vld [vmem:[#allocation2 + $0x100] sm:$0xff] }
 0x4ad   : > { %v4375_v49 = vmul.f32 %v10966_v51, %v4215_v38  ;;  %v10975_v51 = vld [vmem:[#allocation150_spill] sm:$0xff] }
 0x4ae   : > { %6293 = vmatmul.msk.f32.gmra.mxu2 %vm1552_vm1, %v4372_v61  ;;  %v4807_v61 = vmul.f32 %v10960_v60, %v9289_v19  ;;  %v10964_v19 = vld [vmem:[#allocation217_spill] sm:$0xff]  ;;  %v4216_v60 = vld [vmem:[#allocation2 + $0x9f] sm:$0xff] }
 0x4af   : > { %v9549_v31 = vpop.f32.mrf.mxu1 }
 0x4b1   : > { %v2847_v12 = vpop.f32.mrf.mxu2 }
 0x4b2   : > { %v9555_v4 = vadd.f32 %v2847_v12, %v9266_v17  ;;  %6242 = vmatmul.msk.f32.gmra.mxu1 %vm1552_vm1, %v3517_v43  ;;  %v9572_v16 = vpop.f32.mrf.mxu0  ;;  %v3359_v12 = vld [vmem:[#allocation2 + $0xf8] sm:$0xff] }
 0x4b3   : > { %6275 = vmatmul.msk.f32.gmra.mxu3 %vm1552_vm1, %v3952_v2  ;;  %6325 = vmatmul.msk.f32.gmra.mxu0 %vm1552_vm1, %v4806_v8  ;;  %10959 = vst [vmem:[#allocation185_spill] sm:$0xff] %v9572_v16  ;;  %v3519_v2 = vmul.f32 %v10962_v63, %v3359_v12  ;;  %v3361_v63 = vld [vmem:[#allocation2 + $0x108] sm:$0xff]  ;;  %v11039_v16 = vld [vmem:[#allocation5_spill] sm:$0xff] }
 0x4b4   : > { %10952 = vst [vmem:[#allocation145_spill] sm:$0xff] %v9555_v4  ;;  %v4763_v4 = vpop.permute.xlu0 %4762 }
 0x4b6   : > { %6294 = vmatmul.msk.f32.gmra.mxu2 %vm1552_vm1, %v4373_v23  ;;  %v4808_v23 = vmul.f32 %v10965_v39, %v9309_v54 }
 0x4b7   : > { %v9565_v17 = vpop.f32.mrf.mxu1 }
 0x4b9   : > { %v2850_v50 = vpop.f32.mrf.mxu2 }
 0x4ba   : > { %v9569_v22 = vadd.f32 %v2850_v50, %v9291_v58  ;;  %6243 = vmatmul.msk.f32.gmra.mxu1 %vm1552_vm1, %v3518_v48  ;;  %v3794_v58 = vld [vmem:[#allocation2 + $0xf9] sm:$0xff]  ;;  %v9593_v50 = vpop.f32.mrf.mxu0 }
 0x4bb   : > { %6276 = vmatmul.msk.f32.gmra.mxu3 %vm1552_vm1, %v3953_v3  ;;  %6326 = vmatmul.msk.f32.gmra.mxu0 %vm1552_vm1, %v4807_v61  ;;  %v3954_v45 = vmul.f32 %v10964_v19, %v3794_v58  ;;  %10967 = vst [vmem:[#allocation115_spill] sm:$0xff] %v9593_v50  ;;  %v3520_v3 = vmul.f32 %v10968_v47, %v3360_v52  ;;  %v10970_v61 = vld [vmem:[#allocation177_spill] sm:$0xff]  ;;  %v10972_v58 = vld [vmem:[#allocation42_spill] sm:$0xff] }
 0x4bc   : > { %10957 = vst [vmem:[#allocation71_spill] sm:$0xff] %v9569_v22 }
 0x4be   : > { %6295 = vmatmul.msk.f32.gmra.mxu2 %vm1552_vm1, %v4374_v53  ;;  %v10971_v53 = vld [vmem:[#allocation35_spill] sm:$0xff] }
 0x4bf   : > { %v9581_v57 = vpop.f32.mrf.mxu1  ;;  %v4809_v12 = vmul.f32 %v10971_v53, %v9329_v36 }
 0x4c1   : > { %v2853_v43 = vpop.f32.mrf.mxu2 }
 0x4c2   : > { %v9585_v8 = vadd.f32 %v2853_v43, %v9311_v42  ;;  %6244 = vmatmul.msk.f32.gmra.mxu1 %vm1552_vm1, %v3519_v2  ;;  %v3795_v42 = vld [vmem:[#allocation2 + $0x101] sm:$0xff]  ;;  %v4376_v43 = vmul.f32 %v10972_v58, %v4216_v60  ;;  %v9611_v2 = vpop.f32.mrf.mxu0 }
 0x4c3   : > { %6277 = vmatmul.msk.f32.gmra.mxu3 %vm1552_vm1, %v3954_v45  ;;  %6327 = vmatmul.msk.f32.gmra.mxu0 %vm1552_vm1, %v4808_v23  ;;  %v3955_v9 = vmul.f32 %v10970_v61, %v3795_v42  ;;  %10973 = vst [vmem:[#allocation56_spill] sm:$0xff] %v9611_v2  ;;  %v10974_v45 = vld [vmem:[#allocation144_spill] sm:$0xff]  ;;  %v6577_v42 = vld [vmem:[#allocation2 + $0x98] sm:$0xff]  ;;  %v9625_v61 = vld [vmem:[#allocation2 + $0x110] sm:$0xff] }
 0x4c4   : > { %10963 = vst [vmem:[#allocation119_spill] sm:$0xff] %v9585_v8  ;;  %v3521_v39 = vmul.f32 %v10974_v45, %v3361_v63  ;;  %v4217_v23 = vld [vmem:[#allocation2 + $0xa7] sm:$0xff]  ;;  %v6586_v2 = vld [vmem:[#allocation2 + $0xf0] sm:$0xff] }
 0x4c5   : > { %v10981_v58 = vld [vmem:[#allocation167_spill] sm:$0xff] }
 0x4c6   : > { %6296 = vmatmul.msk.f32.gmra.mxu2 %vm1552_vm1, %v4375_v49  ;;  %v10977_v49 = vld [vmem:[#allocation178_spill] sm:$0xff] }
 0x4c7   : > { %v9597_v48 = vpop.f32.mrf.mxu1 }
 0x4c9   : > { %v2856_v32 = vpop.f32.mrf.mxu2 }
 0x4ca   : > { %v9601_v54 = vadd.f32 %v2856_v32, %v9333_v6  ;;  %6245 = vmatmul.msk.f32.gmra.mxu1 %vm1552_vm1, %v3520_v3  ;;  %v3796_v6 = vld [vmem:[#allocation2 + $0x109] sm:$0xff]  ;;  %v9630_v53 = vpop.f32.mrf.mxu0 }
 0x4cb   : > { %6278 = vmatmul.msk.f32.gmra.mxu3 %vm1552_vm1, %v3955_v9  ;;  %6328 = vmatmul.msk.f32.gmra.mxu0 %vm1552_vm1, %v4809_v12  ;;  %v3956_v52 = vmul.f32 %v10977_v49, %v3796_v6  ;;  %v10978_v32 = vld [vmem:[#allocation76_spill] sm:$0xff]  ;;  %10980 = vst [vmem:[#allocation120_spill] sm:$0xff] %v9630_v53  ;;  %v10983_v6 = vld [vmem:[#allocation222_spill] sm:$0xff] }
 0x4cc   : > { %10969 = vst [vmem:[#allocation128_spill] sm:$0xff] %v9601_v54  ;;  %v4810_v47 = vmul.f32 %v6577_v42, %v10978_v32  ;;  %v10979_v3 = vld [vmem:[#allocation40_spill] sm:$0xff]  ;;  %v10986_v49 = vld [vmem:[#allocation50_spill] sm:$0xff] }
 0x4cd   : > { %v4377_v60 = vmul.f32 %v10979_v3, %v4217_v23  ;;  %v9645_v42 = vld [vmem:[#allocation2 + $0x118] sm:$0xff]  ;;  %v6585_v53 = vld [vmem:[#allocation2 + $0xe8] sm:$0xff] }
 0x4ce   : > { %6297 = vmatmul.msk.f32.gmra.mxu2 %vm1552_vm1, %v4376_v43  ;;  %v3522_v43 = vmul.f32 %v9625_v61, %v10981_v58  ;;  %v10987_v3 = vld [vmem:[#allocation146_spill] sm:$0xff]  ;;  %v10988_v58 = vld [vmem:[#allocation181_spill] sm:$0xff]  ;;  %v4820_v46 = vmul.f32 %v6585_v53, %v4763_v4  ;;  %v11026_v4 = vld [vmem:[#allocation60_spill] sm:$0xff] }
 0x4cf   : > { %v9613_v38 = vpop.f32.mrf.mxu1  ;;  %v4821_v53 = vmul.f32 %v6586_v2, %v11026_v4 }
 0x4d1   : > { %v2859_v19 = vpop.f32.mrf.mxu2 }
 0x4d2   : > { %v9617_v36 = vadd.f32 %v2859_v19, %v10975_v51  ;;  %6246 = vmatmul.msk.f32.gmra.mxu1 %vm1552_vm1, %v3521_v39  ;;  %v10984_v19 = vld [vmem:[#allocation114_spill] sm:$0xff]  ;;  %v10985_v39 = vld [vmem:[#allocation45_spill] sm:$0xff] }
 0x4d3   : > { %6279 = vmatmul.msk.f32.gmra.mxu3 %vm1552_vm1, %v3956_v52  ;;  %6329 = vmatmul.msk.f32.gmra.mxu0 %vm1552_vm1, %v4810_v47  ;;  %v3957_v45 = vmul.f32 %v10984_v19, %v10983_v6  ;;  %v4811_v23 = vmul.f32 %v10985_v39, %v9370_v7  ;;  %v6578_v51 = vld [vmem:[#allocation2 + $0xaf] sm:$0xff]  ;;  %v4219_v7 = vld [vmem:[#allocation2 + $0xb7] sm:$0xff]  ;;  %v9659_v6 = vpop.f32.mrf.mxu0  ;;  %v10990_v19 = vld [vmem:[#allocation43_spill] sm:$0xff] }
 0x4d4   : > { %10976 = vst [vmem:[#allocation153_spill] sm:$0xff] %v9617_v36  ;;  %v4378_v52 = vmul.f32 %v6578_v51, %v10986_v49  ;;  %v10991_v39 = vld [vmem:[#allocation93_spill] sm:$0xff] }
 0x4d5   : > { %10989 = vst [vmem:[#allocation129_spill] sm:$0xff] %v9659_v6  ;;  %v4226_v6 = vld [vmem:[#allocation2 + $0xef] sm:$0xff] }
 0x4d6   : > { %6298 = vmatmul.msk.f32.gmra.mxu2 %vm1552_vm1, %v4377_v60  ;;  %v3523_v60 = vmul.f32 %v9645_v42, %v10987_v3  ;;  %v4220_v3 = vld [vmem:[#allocation2 + $0xbf] sm:$0xff] }
 0x4d7   : > { %v9628_v9 = vpop.f32.mrf.mxu1 }
 0x4d9   : > { %v2862_v12 = vpop.f32.mrf.mxu2 }
 0x4da   : > { %v9635_v63 = vadd.f32 %v2862_v12, %v9374_v30  ;;  %6247 = vmatmul.msk.f32.gmra.mxu1 %vm1552_vm1, %v3522_v43  ;;  %v9648_v30 = vld [vmem:[#allocation2 + $0x119] sm:$0xff] }
 0x4db   : > { %6280 = vmatmul.msk.f32.gmra.mxu3 %vm1552_vm1, %v3957_v45  ;;  %6330 = vmatmul.msk.f32.gmra.mxu0 %vm1552_vm1, %v4811_v23  ;;  %v3958_v43 = vmul.f32 %v9648_v30, %v10988_v58  ;;  %v4812_v45 = vmul.f32 %v10990_v19, %v9394_v11  ;;  %v4379_v23 = vmul.f32 %v10991_v39, %v4219_v7  ;;  %v10993_v11 = vld [vmem:[#allocation47_spill] sm:$0xff]  ;;  %v10994_v7 = vld [vmem:[#allocation121_spill] sm:$0xff]  ;;  %v9678_v19 = vpop.f32.mrf.mxu0 }
 0x4dc   : > { %10982 = vst [vmem:[#allocation89_spill] sm:$0xff] %v9635_v63  ;;  %v4813_v58 = vmul.f32 %v10993_v11, %v9418_v18  ;;  %v10997_v18 = vld [vmem:[#allocation48_spill] sm:$0xff]  ;;  %v6579_v63 = vld [vmem:[#allocation2 + $0xc0] sm:$0xff] }
 0x4dd   : > { %10995 = vst [vmem:[#allocation58_spill] sm:$0xff] %v9678_v19  ;;  %v4225_v19 = vld [vmem:[#allocation2 + $0xe7] sm:$0xff] }
 0x4de   : > { %6299 = vmatmul.msk.f32.gmra.mxu2 %vm1552_vm1, %v4378_v52  ;;  %v10992_v52 = vld [vmem:[#allocation191_spill] sm:$0xff] }
 0x4df   : > { %v9650_v32 = vpop.f32.mrf.mxu1 }
 0x4e1   : > { %v4509_v47 = vpop.f32.mrf.mxu2 }
 0x4e2   : > { %v9655_v12 = vadd.f32 %v4509_v47, %v9398_v44  ;;  %6248 = vmatmul.msk.f32.gmra.mxu1 %vm1552_vm1, %v3523_v60  ;;  %v5072_v44 = vld [vmem:[#allocation2 + $0x31] sm:$0xff] }
 0x4e3   : > { %6281 = vmatmul.msk.f32.gmra.mxu3 %vm1552_vm1, %v3958_v43  ;;  %6331 = vmatmul.msk.f32.gmra.mxu0 %vm1552_vm1, %v4812_v45  ;;  %v5232_v47 = vmul.f32 %v10992_v52, %v5072_v44  ;;  %v4380_v43 = vmul.f32 %v10994_v7, %v4220_v3  ;;  %v10996_v44 = vld [vmem:[#allocation11_spill] sm:$0xff]  ;;  %v10998_v52 = vld [vmem:[#allocation46_spill] sm:$0xff]  ;;  %v9694_v11 = vpop.f32.mrf.mxu0 }
 0x4e4   : > { %v5074_v3 = vld [vmem:[#allocation2 + $0x41] sm:$0xff]  ;;  %10999 = vst [vmem:[#allocation32_spill] sm:$0xff] %v9694_v11 }
 0x4e6   : > { %6300 = vmatmul.msk.f32.gmra.mxu2 %vm1552_vm1, %v4379_v23  ;;  %v4221_v23 = vld [vmem:[#allocation2 + $0xc7] sm:$0xff] }
 0x4e7   : > { %v9668_v51 = vpop.f32.mrf.mxu1 }
 0x4e9   : > { %v4512_v49 = vpop.f32.mrf.mxu2 }
 0x4ea   : > { %v9672_v60 = vadd.f32 %v4512_v49, %v9420_v25  ;;  %6349 = vmatmul.msk.f32.vlgmr.msra.gmra.mxu1 %vm1552_vm1, %v5232_v47  ;;  %v4814_v49 = vmul.f32 %v10997_v18, %v9437_v56  ;;  %v4381_v47 = vmul.f32 %v10998_v52, %v4221_v23  ;;  %v11001_v56 = vld [vmem:[#allocation28_spill] sm:$0xff]  ;;  %v11002_v23 = vld [vmem:[#allocation26_spill] sm:$0xff] }
 0x4eb   : > { %6332 = vmatmul.msk.f32.gmra.mxu0 %vm1552_vm1, %v4813_v58  ;;  %v4815_v18 = vmul.f32 %v6579_v63, %v11001_v56  ;;  %v5075_v52 = vld [vmem:[#allocation2 + $0x49] sm:$0xff]  ;;  %v9709_v36 = vpop.f32.mrf.mxu0  ;;  %v11005_v56 = vld [vmem:[#allocation94_spill] sm:$0xff] }
 0x4ec   : > { %11003 = vst [vmem:[#allocation135_spill] sm:$0xff] %v9709_v36  ;;  %v6580_v63 = vld [vmem:[#allocation2 + $0xc8] sm:$0xff]  ;;  %v5076_v36 = vld [vmem:[#allocation2 + $0x51] sm:$0xff] }
 0x4ee   : > { %6301 = vmatmul.msk.f32.gmra.mxu2 %vm1552_vm1, %v4380_v43 }
 0x4ef   : > { %v9682_v45 = vpop.f32.mrf.mxu1 }
 0x4f1   : > { %v4515_v39 = vpop.f32.mrf.mxu2 }
 0x4f2   : > { %v9685_v25 = vadd.f32 %v4515_v39, %v9441_v27  ;;  %6350 = vmatmul.msk.f32.gmra.mxu1 %vm1552_vm1, %v10996_v44  ;;  %v11000_v27 = vld [vmem:[#allocation202_spill] sm:$0xff]  ;;  %v4222_v39 = vld [vmem:[#allocation2 + $0xcf] sm:$0xff] }
 0x4f3   : > { %6333 = vmatmul.msk.f32.gmra.mxu0 %vm1552_vm1, %v4814_v49  ;;  %v5234_v43 = vmul.f32 %v11000_v27, %v5074_v3  ;;  %v4382_v49 = vmul.f32 %v11002_v23, %v4222_v39  ;;  %v11004_v27 = vld [vmem:[#allocation206_spill] sm:$0xff] }
 0x4f4   : > { %v6581_v39 = vld [vmem:[#allocation2 + $0xd7] sm:$0xff] }
 0x4f6   : > { %6302 = vmatmul.msk.f32.gmra.mxu2 %vm1552_vm1, %v4381_v47 }
 0x4f7   : > { %v9696_v58 = vpop.f32.mrf.mxu1 }
 0x4f9   : > { %v4518_v7 = vpop.f32.mrf.mxu2 }
 0x4fa   : > { %v9700_v44 = vadd.f32 %v4518_v7, %v9458_v1  ;;  %6351 = vmatmul.msk.f32.gmra.mxu1 %vm1552_vm1, %v5234_v43  ;;  %v5235_v1 = vmul.f32 %v11004_v27, %v5075_v52  ;;  %v4816_v43 = vmul.f32 %v6580_v63, %v11005_v56  ;;  %v4224_v27 = vld [vmem:[#allocation2 + $0xdf] sm:$0xff] }
 0x4fb   : > { %6334 = vmatmul.msk.f32.gmra.mxu0 %vm1552_vm1, %v4815_v18  ;;  %v11006_v18 = vld [vmem:[#allocation82_spill] sm:$0xff]  ;;  %v11009_v56 = vld [vmem:[#allocation99_spill] sm:$0xff] }
 0x4fc   : > { %v4383_v23 = vmul.f32 %v6581_v39, %v11006_v18  ;;  %v9729_v39 = vpop.f32.mrf.mxu0 }
 0x4fd   : > { %11010 = vst [vmem:[#allocation90_spill] sm:$0xff] %v9729_v39 }
 0x4fe   : > { %6303 = vmatmul.msk.f32.gmra.mxu2 %vm1552_vm1, %v4382_v49  ;;  %v9718_v49 = vpop.f32.mrf.mxu3 }
 0x4ff   : > { %v9707_v47 = vpop.f32.mrf.mxu1 }
 0x501   : > { %v4521_v3 = vpop.f32.mrf.mxu2 }
 0x502   : > { %v9713_v7 = vadd.f32 %v4521_v3, %v9477_v37  ;;  %6352 = vmatmul.msk.f32.gmra.mxu1 %vm1552_vm1, %v5235_v1  ;;  %v11008_v37 = vld [vmem:[#allocation212_spill] sm:$0xff]  ;;  %v6582_v1 = vld [vmem:[#allocation2 + $0xd0] sm:$0xff] }
 0x503   : > { %6335 = vmatmul.msk.f32.gmra.mxu0 %vm1552_vm1, %v4816_v43  ;;  %v5236_v3 = vmul.f32 %v11008_v37, %v5076_v36  ;;  %v4817_v11 = vmul.f32 %v6582_v1, %v11009_v56  ;;  %v11011_v43 = vld [vmem:[#allocation97_spill] sm:$0xff]  ;;  %v6583_v56 = vld [vmem:[#allocation2 + $0xd8] sm:$0xff] }
 0x504   : > { %v4384_v18 = vmul.f32 %v11011_v43, %v4224_v27  ;;  %v9746_v43 = vpop.f32.mrf.mxu0 }
 0x505   : > { %11016 = vst [vmem:[#allocation59_spill] sm:$0xff] %v9746_v43 }
 0x506   : > { %6304 = vmatmul.msk.f32.gmra.mxu2 %vm1552_vm1, %v4383_v23  ;;  %v5077_v23 = vld [vmem:[#allocation2 + $0x59] sm:$0xff]  ;;  %v9735_v8 = vpop.f32.mrf.mxu3 }
 0x507   : > { %v9722_v54 = vpop.f32.mrf.mxu1 }
 0x508   : > { %11007 = vst [vmem:[#allocation21_spill] sm:$0xff] %v9722_v54 }
 0x509   : > { %v4524_v52 = vpop.f32.mrf.mxu2 }
 0x50a   : > { %v9726_v63 = vadd.f32 %v4524_v52, %v9496_v55  ;;  %6353 = vmatmul.msk.f32.gmra.mxu1 %vm1552_vm1, %v5236_v3  ;;  %v11013_v52 = vld [vmem:[#allocation216_spill] sm:$0xff]  ;;  %v11014_v3 = vld [vmem:[#allocation69_spill] sm:$0xff] }
 0x50b   : > { %6336 = vmatmul.msk.f32.gmra.mxu0 %vm1552_vm1, %v4817_v11  ;;  %v5237_v37 = vmul.f32 %v11013_v52, %v5077_v23  ;;  %v4818_v39 = vmul.f32 %v6583_v56, %v11014_v3  ;;  %v11015_v11 = vld [vmem:[#allocation55_spill] sm:$0xff] }
 0x50c   : > { %v4385_v27 = vmul.f32 %v11015_v11, %v4225_v19  ;;  %v11019_v19 = vld [vmem:[#allocation54_spill] sm:$0xff]  ;;  %v9763_v43 = vpop.f32.mrf.mxu0 }
 0x50e   : > { %6305 = vmatmul.msk.f32.gmra.mxu2 %vm1552_vm1, %v4384_v18  ;;  %v5078_v18 = vld [vmem:[#allocation2 + $0x61] sm:$0xff]  ;;  %v9752_v23 = vpop.f32.mrf.mxu3 }
 0x50f   : > { %v9737_v36 = vpop.f32.mrf.mxu1 }
 0x510   : > { %11012 = vst [vmem:[#allocation147_spill] sm:$0xff] %v9737_v36 }
 0x511   : > { %v4527_v55 = vpop.f32.mrf.mxu2 }
 0x512   : > { %v9741_v1 = vadd.f32 %v4527_v55, %v9515_v20  ;;  %6354 = vmatmul.msk.f32.gmra.mxu1 %vm1552_vm1, %v5237_v37  ;;  %v11018_v55 = vld [vmem:[#allocation67_spill] sm:$0xff] }
 0x513   : > { %6337 = vmatmul.msk.f32.gmra.mxu0 %vm1552_vm1, %v4818_v39  ;;  %v5238_v52 = vmul.f32 %v11018_v55, %v5078_v18  ;;  %v6584_v37 = vld [vmem:[#allocation2 + $0xe0] sm:$0xff]  ;;  %v11020_v39 = vld [vmem:[#allocation29_spill] sm:$0xff]  ;;  %v11022_v55 = vld [vmem:[#allocation36_spill] sm:$0xff] }
 0x514   : > { %v4819_v3 = vmul.f32 %v6584_v37, %v11019_v19  ;;  %v4386_v11 = vmul.f32 %v11020_v39, %v4226_v6  ;;  %v11023_v6 = vld [vmem:[#allocation85_spill] sm:$0xff]  ;;  %v4340_v39 = vpop.permute.xlu0 %4339 }
 0x515   : > { %v5080_v19 = vld [vmem:[#allocation2 + $0x71] sm:$0xff] }
 0x516   : > { %6306 = vmatmul.msk.f32.gmra.mxu2 %vm1552_vm1, %v4385_v27  ;;  %v5079_v27 = vld [vmem:[#allocation2 + $0x69] sm:$0xff]  ;;  %v9768_v37 = vpop.f32.mrf.mxu3 }
 0x517   : > { %v9750_v22 = vpop.f32.mrf.mxu1 }
 0x518   : > { %11017 = vst [vmem:[#allocation74_spill] sm:$0xff] %v9750_v22 }
 0x519   : > { %v4530_v20 = vpop.f32.mrf.mxu2 }
 0x51a   : > { %v9756_v56 = vadd.f32 %v4530_v20, %v9533_v24  ;;  %6355 = vmatmul.msk.f32.gmra.mxu1 %vm1552_vm1, %v5238_v52  ;;  %v5239_v24 = vmul.f32 %v11022_v55, %v5079_v27  ;;  %v4227_v20 = vld [vmem:[#allocation2 + $0xf7] sm:$0xff]  ;;  %v11025_v27 = vld [vmem:[#allocation15_spill] sm:$0xff] }
 0x51b   : > { %6338 = vmatmul.msk.f32.gmra.mxu0 %vm1552_vm1, %v4819_v3  ;;  %v4387_v52 = vmul.f32 %v11023_v6, %v4227_v20  ;;  %v5240_v55 = vmul.f32 %v11025_v27, %v5080_v19  ;;  %v4775_v6 = vpop.permute.xlu2 %4774  ;;  %v6588_v19 = vld [vmem:[#allocation2 + $0xf8] sm:$0xff]  ;;  %v11029_v27 = vld [vmem:[#allocation108_spill] sm:$0xff] }
 0x51c   : > { %v4822_v50 = vmul.f32 %v6588_v19, %v11029_v27  ;;  %v6590_v19 = vld [vmem:[#allocation2 + $0x100] sm:$0xff] }
 0x51d   : > { %v4823_v27 = vmul.f32 %v6590_v19, %v4775_v6  ;;  %v5084_v19 = vld [vmem:[#allocation2 + $0x91] sm:$0xff] }
 0x51e   : > { %6307 = vmatmul.msk.f32.gmra.mxu2 %vm1552_vm1, %v4386_v11  ;;  %v9776_v11 = vpop.f32.mrf.mxu0  ;;  %v9781_v20 = vpop.f32.mrf.mxu3  ;;  %v5244_v5 = vmul.f32 %v11039_v16, %v5084_v19  ;;  %v11041_v16 = vld [vmem:[#allocation233_spill] sm:$0xff] }
 0x51f   : > { %v9765_v18 = vpop.f32.mrf.mxu1 }
 0x520   : > { %11021 = vst [vmem:[#allocation190_spill] sm:$0xff] %v9765_v18 }
 0x522   : > { %6356 = vmatmul.msk.f32.gmra.mxu1 %vm1552_vm1, %v5239_v24  ;;  %v6587_v24 = vld [vmem:[#allocation2 + $0xff] sm:$0xff] }
 0x523   : > { %6339 = vmatmul.msk.f32.gmra.mxu0 %vm1552_vm1, %v4820_v46  ;;  %v4388_v26 = vmul.f32 %v6587_v24, %v4340_v39  ;;  %v5081_v46 = vld [vmem:[#allocation2 + $0x79] sm:$0xff]  ;;  %v6589_v39 = vld [vmem:[#allocation2 + $0x107] sm:$0xff] }
 0x526   : > { %6308 = vmatmul.msk.f32.gmra.mxu2 %vm1552_vm1, %v4387_v52  ;;  %v9789_v2 = vpop.f32.mrf.mxu0 }
 0x527   : > { %v9774_v3 = vpop.f32.mrf.mxu1 }
 0x528   : > { %11024 = vst [vmem:[#allocation122_spill] sm:$0xff] %v9774_v3  ;;  %v11028_v3 = vld [vmem:[#allocation34_spill] sm:$0xff] }
 0x529   : > { %v5241_v18 = vmul.f32 %v11028_v3, %v5081_v46  ;;  %v4779_v3 = vpop.permute.xlu2 %4778  ;;  %v11032_v46 = vld [vmem:[#allocation38_spill] sm:$0xff] }
 0x52a   : > { %6357 = vmatmul.msk.f32.gmra.mxu1 %vm1552_vm1, %v5240_v55  ;;  %v11030_v55 = vld [vmem:[#allocation61_spill] sm:$0xff] }
 0x52b   : > { %6340 = vmatmul.msk.f32.gmra.mxu0 %vm1552_vm1, %v4821_v53  ;;  %v4389_v4 = vmul.f32 %v6589_v39, %v11030_v55  ;;  %v9795_v53 = vpop.f32.mrf.mxu3 }
 0x52e   : > { %6309 = vmatmul.msk.f32.gmra.mxu2 %vm1552_vm1, %v4388_v26  ;;  %v5082_v26 = vld [vmem:[#allocation2 + $0x81] sm:$0xff]  ;;  %v9803_v39 = vpop.f32.mrf.mxu0 }
 0x52f   : > { %v9785_v52 = vpop.f32.mrf.mxu1 }
 0x530   : > { %11027 = vst [vmem:[#allocation31_spill] sm:$0xff] %v9785_v52  ;;  %v5242_v52 = vmul.f32 %v11032_v46, %v5082_v26  ;;  %v6591_v26 = vld [vmem:[#allocation2 + $0x108] sm:$0xff]  ;;  %v11036_v46 = vld [vmem:[#allocation238_spill] sm:$0xff] }
 0x531   : > { %v4824_v6 = vmul.f32 %v6591_v26, %v4779_v3 }
 0x532   : > { %6358 = vmatmul.msk.f32.gmra.mxu1 %vm1552_vm1, %v5241_v18  ;;  %v11033_v18 = vld [vmem:[#allocation112_spill] sm:$0xff] }
 0x533   : > { %6341 = vmatmul.msk.f32.gmra.mxu0 %vm1552_vm1, %v4822_v50  ;;  %v4390_v22 = vmul.f32 %v11034_v14, %v11033_v18  ;;  %v9807_v50 = vpop.permute.xlu0 %5209 }
 0x536   : > { %6310 = vmatmul.msk.f32.gmra.mxu2 %vm1552_vm1, %v4389_v4  ;;  %v4352_v4 = vpop.permute.xlu2 %4351 }
 0x537   : > { %v9797_v24 = vpop.f32.mrf.mxu1 }
 0x538   : > { %11031 = vst [vmem:[#allocation118_spill] sm:$0xff] %v9797_v24  ;;  %v9811_v24 = vpop.f32.mrf.mxu3 }
 0x53a   : > { %6359 = vmatmul.msk.f32.gmra.mxu1 %vm1552_vm1, %v5242_v52  ;;  %v11037_v52 = vld [vmem:[#allocation52_spill] sm:$0xff] }
 0x53b   : > { %6342 = vmatmul.msk.f32.gmra.mxu0 %vm1552_vm1, %v4823_v27  ;;  %v4391_v14 = vmul.f32 %v4352_v4, %v11037_v52  ;;  %v9818_v27 = vpop.f32.mrf.mxu0 }
 0x53e   : > { %6311 = vmatmul.msk.f32.gmra.mxu2 %vm1552_vm1, %v4390_v22  ;;  %v4783_v22 = vpop.permute.xlu0 %4782  ;;  %v4356_v36 = vpop.permute.xlu2 %4355 }
 0x53f   : > { %v9809_v55 = vpop.f32.mrf.mxu1  ;;  %v4825_v3 = vmul.f32 %v4783_v22, %v9625_v61 }
 0x540   : > { %11035 = vst [vmem:[#allocation130_spill] sm:$0xff] %v9809_v55  ;;  %v4232_v55 = vld [vmem:[#allocation2 + $0x11f] sm:$0xff]  ;;  %v9824_v26 = vpop.f32.mrf.mxu3 }
 0x541   : > { %v4392_v4 = vmul.f32 %v4356_v36, %v4232_v55  ;;  %v4667_v55 = vld [vmem:[#allocation2 + $0x120] sm:$0xff] }
 0x542   : > { %6360 = vmatmul.msk.f32.gmra.mxu1 %vm1552_vm1, %v11036_v46  ;;  %v5085_v46 = vld [vmem:[#allocation2 + $0x99] sm:$0xff] }
 0x543   : > { %6343 = vmatmul.msk.f32.gmra.mxu0 %vm1552_vm1, %v4824_v6  ;;  %v4787_v6 = vpop.permute.xlu1 %4786  ;;  %v9831_v10 = vpop.f32.mrf.mxu0  ;;  %v5245_v19 = vmul.f32 %v11041_v16, %v5085_v46 }
 0x544   : > { %v4826_v22 = vmul.f32 %v4787_v6, %v9645_v42  ;;  %v4668_v6 = vld [vmem:[#allocation2 + $0x128] sm:$0xff] }
 0x546   : > { %6312 = vmatmul.msk.f32.gmra.mxu2 %vm1552_vm1, %v4391_v14  ;;  %v4360_v52 = vpop.permute.xlu0 %4359  ;;  %v4233_v14 = vld [vmem:[#allocation2 + $0x127] sm:$0xff] }
 0x547   : > { %v9820_v18 = vpop.f32.mrf.mxu1  ;;  %v4393_v61 = vmul.f32 %v4360_v52, %v4233_v14  ;;  %v5087_v52 = vld [vmem:[#allocation2 + $0xa9] sm:$0xff] }
 0x548   : > { %11038 = vst [vmem:[#allocation155_spill] sm:$0xff] %v9820_v18  ;;  %v9836_v36 = vpop.f32.mrf.mxu3 }
 0x54a   : > { %6361 = vmatmul.msk.f32.gmra.mxu1 %vm1552_vm1, %v5244_v5 }
 0x54b   : > { %6344 = vmatmul.msk.f32.gmra.mxu0 %vm1552_vm1, %v4825_v3  ;;  %v4791_v5 = vpop.permute.xlu1 %4790  ;;  %v5086_v3 = vld [vmem:[#allocation2 + $0xa1] sm:$0xff]  ;;  %v9843_v46 = vpop.f32.mrf.mxu0 }
 0x54c   : > { %v5246_v54 = vmul.f32 %v11043_v40, %v5086_v3  ;;  %v5040_v40 = vadd.f32 %v9763_v43, %v9655_v12  ;;  %v5089_v43 = vld [vmem:[#allocation2 + $0xb9] sm:$0xff] }
 0x54e   : > { %6313 = vmatmul.msk.f32.gmra.mxu2 %vm1552_vm1, %v4392_v4 }
 0x54f   : > { %v9829_v18 = vpop.f32.mrf.mxu1 }
 0x550   : > { %11040 = vst [vmem:[#allocation123_spill] sm:$0xff] %v9829_v18  ;;  %v4827_v18 = vmul.f32 %v4791_v5, %v4667_v55  ;;  %v9847_v14 = vpop.f32.mrf.mxu3 }
 0x552   : > { %6362 = vmatmul.msk.f32.gmra.mxu1 %vm1552_vm1, %v5245_v19 }
 0x553   : > { %6345 = vmatmul.msk.f32.gmra.mxu0 %vm1552_vm1, %v4826_v22  ;;  %v4795_v42 = vpop.permute.xlu1 %4794  ;;  %v9853_v5 = vpop.f32.mrf.mxu0 }
 0x554   : > { %v4828_v19 = vmul.f32 %v4795_v42, %v4668_v6  ;;  %v9868_v42 = vld [vmem:[%s10336_s12] ss:$0 sm:$0xff] }
 0x556   : > { %6314 = vmatmul.msk.f32.gmra.mxu2 %vm1552_vm1, %v4393_v61  ;;  %v11045_v61 = vld [vmem:[#allocation236_spill] sm:$0xff] }
 0x557   : > { %v9840_v4 = vpop.f32.mrf.mxu1  ;;  %v5247_v22 = vmul.f32 %v11045_v61, %v5087_v52  ;;  %v11046_v52 = vld [vmem:[#allocation51_spill] sm:$0xff] }
 0x558   : > { %11042 = vst [vmem:[#allocation92_spill] sm:$0xff] %v9840_v4  ;;  %v9863_v55 = vpop.f32.mrf.mxu3 }
 0x55a   : > { %6363 = vmatmul.msk.f32.gmra.mxu1 %vm1552_vm1, %v5246_v54  ;;  %v9861_v54 = vld [vmem:[%s10335_s11] ss:$0 sm:$0xff] }
 0x55b   : > { %6346 = vmatmul.msk.f32.gmra.mxu0 %vm1552_vm1, %v4827_v18  ;;  %v9885_v59 = vpop.f32.mrf.mxu0 }
 0x55f   : > { %v9849_v16 = vpop.f32.mrf.mxu1 }
 0x560   : > { %11044 = vst [vmem:[#allocation131_spill] sm:$0xff] %v9849_v16  ;;  %v9878_v4 = vpop.f32.mrf.mxu3 }
 0x562   : > { %6364 = vmatmul.msk.f32.gmra.mxu1 %vm1552_vm1, %v5247_v22 }
 0x563   : > { %6347 = vmatmul.msk.f32.gmra.mxu0 %vm1552_vm1, %v4828_v19  ;;  %v5041_v19 = vadd.f32 %v9776_v11, %v9672_v60  ;;  %v5090_v60 = vld [vmem:[#allocation2 + $0xc1] sm:$0xff]  ;;  %v5042_v11 = vadd.f32 %v9789_v2, %v9685_v25  ;;  %v5043_v25 = vadd.f32 %v9803_v39, %v9700_v44 }
 0x567   : > { %v5379_v18 = vpop.f32.mrf.mxu1 }
 0x568   : > { %v5475_v3 = vadd.f32 %v5379_v18, %v5040_v40  ;;  %v11047_v40 = vld [vmem:[#allocation65_spill] sm:$0xff] }
 0x569   : > { %v5249_v18 = vmul.f32 %v11047_v40, %v5089_v43  ;;  %v11048_v43 = vld [vmem:[#allocation66_spill] sm:$0xff]  ;;  %v9893_v40 = vpop.f32.mrf.mxu3 }
 0x56a   : > { %v5511_v6 = vmul.f32 %v9861_v54, %v5475_v3  ;;  %6365 = vmatmul.msk.f32.gmra.mxu1 %vm1552_vm1, %v11046_v52  ;;  %v9882_v52 = vpop.f32.mrf.mxu2 }
 0x56c   : > { %v5547_v12 = vadd.f32 %v9868_v42, %v5511_v6 }
 0x56e   : > { %v5579_v61 = vmax.f32 %v5547_v12, 0.0 }
 0x56f   : > { %v5382_v22 = vpop.f32.mrf.mxu1 }
 0x570   : > { %v5476_v16 = vadd.f32 %v5382_v22, %v5041_v19  ;;  %6381 = vmatmul.msk.f32.vlgmr.msra.gmra.mxu3 %vm1552_vm1, %v5579_v61  ;;  %v5250_v22 = vmul.f32 %v11048_v43, %v5090_v60  ;;  %v11049_v60 = vld [vmem:[#allocation98_spill] sm:$0xff] }
 0x571   : > { %v9909_v44 = vpop.f32.mrf.mxu3 }
 0x572   : > { %v5512_v3 = vmul.f32 %v9861_v54, %v5476_v16  ;;  %6366 = vmatmul.msk.f32.gmra.mxu1 %vm1552_vm1, %v5249_v18 }
 0x574   : > { %v5548_v6 = vadd.f32 %v9868_v42, %v5512_v3  ;;  %v9896_v3 = vpop.f32.mrf.mxu2 }
 0x576   : > { %v5580_v12 = vmax.f32 %v5548_v6, 0.0  ;;  %v9900_v6 = vpop.f32.mrf.mxu0 }
 0x577   : > { %v5385_v19 = vpop.f32.mrf.mxu1 }
 0x578   : > { %v5477_v61 = vadd.f32 %v5385_v19, %v5042_v11  ;;  %6382 = vmatmul.msk.f32.gmra.mxu3 %vm1552_vm1, %v5580_v12  ;;  %v5251_v19 = vmul.f32 %v11049_v60, %v5091_v15  ;;  %v11050_v15 = vld [vmem:[#allocation49_spill] sm:$0xff] }
 0x57a   : > { %v5513_v16 = vmul.f32 %v9861_v54, %v5477_v61  ;;  %6367 = vmatmul.msk.f32.gmra.mxu1 %vm1552_vm1, %v5250_v22  ;;  %v5092_v22 = vld [vmem:[#allocation2 + $0xd1] sm:$0xff] }
 0x57c   : > { %v5549_v18 = vadd.f32 %v9868_v42, %v5513_v16  ;;  %v5044_v16 = vadd.f32 %v9818_v27, %v9713_v7  ;;  %v5045_v7 = vadd.f32 %v9831_v10, %v9726_v63  ;;  %v5046_v10 = vadd.f32 %v9843_v46, %v9741_v1  ;;  %v11056_v1 = vld [vmem:[#allocation78_spill] sm:$0xff] }
 0x57e   : > { %v5581_v2 = vmax.f32 %v5549_v18, 0.0  ;;  %v9911_v18 = vpop.f32.mrf.mxu2 }
 0x57f   : > { %v5388_v11 = vpop.f32.mrf.mxu1 }
 0x580   : > { %v5478_v12 = vadd.f32 %v5388_v11, %v5043_v25  ;;  %6383 = vmatmul.msk.f32.gmra.mxu3 %vm1552_vm1, %v5581_v2  ;;  %v5252_v2 = vmul.f32 %v11050_v15, %v5092_v22 }
 0x582   : > { %v5514_v61 = vmul.f32 %v9861_v54, %v5478_v12  ;;  %6368 = vmatmul.msk.f32.gmra.mxu1 %vm1552_vm1, %v5251_v19  ;;  %v9915_v12 = vpop.f32.mrf.mxu0 }
 0x584   : > { %v5550_v43 = vadd.f32 %v9868_v42, %v5514_v61 }
 0x586   : > { %v5582_v39 = vmax.f32 %v5550_v43, 0.0  ;;  %v9922_v43 = vpop.f32.mrf.mxu3 }
 0x587   : > { %v5391_v25 = vpop.f32.mrf.mxu1  ;;  %11051 = vst [vmem:[#allocation156_spill] sm:$0xff] %v9922_v43 }
 0x588   : > { %v5479_v11 = vadd.f32 %v5391_v25, %v5044_v16  ;;  %6384 = vmatmul.msk.f32.gmra.mxu3 %vm1552_vm1, %v5582_v39  ;;  %v9925_v39 = vpop.f32.mrf.mxu2  ;;  %v11052_v25 = vld [vmem:[#allocation242_spill] sm:$0xff] }
 0x58a   : > { %v5515_v60 = vmul.f32 %v9861_v54, %v5479_v11  ;;  %6369 = vmatmul.msk.f32.gmra.mxu1 %vm1552_vm1, %v5252_v2  ;;  %v9930_v11 = vpop.f32.mrf.mxu0 }
 0x58c   : > { %v5551_v19 = vadd.f32 %v9868_v42, %v5515_v60 }
 0x58e   : > { %v5583_v27 = vmax.f32 %v5551_v19, 0.0  ;;  %v9936_v19 = vpop.f32.mrf.mxu3 }
 0x58f   : > { %v5394_v61 = vpop.f32.mrf.mxu1  ;;  %11053 = vst [vmem:[#allocation138_spill] sm:$0xff] %v9936_v19 }
 0x590   : > { %v5480_v16 = vadd.f32 %v5394_v61, %v5045_v7  ;;  %6385 = vmatmul.msk.f32.gmra.mxu3 %vm1552_vm1, %v5583_v27  ;;  %v11054_v27 = vld [vmem:[#allocation104_spill] sm:$0xff]  ;;  %v9941_v61 = vpop.f32.mrf.mxu2 }
 0x592   : > { %v5516_v22 = vmul.f32 %v9861_v54, %v5480_v16  ;;  %6370 = vmatmul.msk.f32.gmra.mxu1 %vm1552_vm1, %v11052_v25  ;;  %v11055_v25 = vld [vmem:[#allocation77_spill] sm:$0xff] }
 0x593   : > { %v3308_v46 = vadd.f32 %v11056_v1, %v11055_v25 }
 0x594   : > { %v5552_v15 = vadd.f32 %v9868_v42, %v5516_v22  ;;  %v9944_v22 = vpop.f32.mrf.mxu0 }
 0x596   : > { %v5584_v63 = vmax.f32 %v5552_v15, 0.0  ;;  %v5047_v15 = vadd.f32 %v9853_v5, %v9756_v56  ;;  %v9957_v25 = vpop.f32.mrf.mxu3 }
 0x597   : > { %v5397_v2 = vpop.f32.mrf.mxu1 }
 0x598   : > { %v5481_v60 = vadd.f32 %v5397_v2, %v5046_v10  ;;  %6386 = vmatmul.msk.f32.gmra.mxu3 %vm1552_vm1, %v5584_v63  ;;  %v3743_v2 = vadd.f32 %v9535_v28, %v3308_v46  ;;  %v9960_v5 = vpop.f32.mrf.mxu2  ;;  %v11059_v28 = vld [vmem:[#allocation111_spill] sm:$0xff] }
 0x59a   : > { %v5517_v7 = vmul.f32 %v9861_v54, %v5481_v60  ;;  %6371 = vmatmul.msk.f32.gmra.mxu1 %vm1552_vm1, %v11054_v27  ;;  %v4178_v27 = vadd.f32 %v9718_v49, %v3743_v2 }
 0x59c   : > { %v5553_v16 = vadd.f32 %v9868_v42, %v5517_v7  ;;  %v11057_v7 = vld [vmem:[#allocation57_spill] sm:$0xff]  ;;  %v4613_v43 = vadd.f32 %v9882_v52, %v4178_v27  ;;  %v9965_v49 = vpop.f32.mrf.mxu0 }
 0x59e   : > { %v5585_v10 = vmax.f32 %v5553_v16, 0.0  ;;  %v11058_v16 = vld [vmem:[#allocation33_spill] sm:$0xff]  ;;  %v5048_v46 = vadd.f32 %v9885_v59, %v4613_v43  ;;  %v11061_v43 = vld [vmem:[#allocation106_spill] sm:$0xff] }
 0x59f   : > { %v5400_v63 = vpop.f32.mrf.mxu1  ;;  %v3309_v1 = vadd.f32 %v11059_v28, %v11058_v16 }
 0x5a0   : > { %v5482_v60 = vadd.f32 %v5400_v63, %v5047_v15  ;;  %6387 = vmatmul.msk.f32.gmra.mxu3 %vm1552_vm1, %v5585_v10 }
 0x5a1   : > { %v3744_v63 = vadd.f32 %v9549_v31, %v3309_v1  ;;  %v9978_v31 = vpop.f32.mrf.mxu3  ;;  %v9980_v1 = vpop.f32.mrf.mxu2 }
 0x5a2   : > { %v5518_v19 = vmul.f32 %v9861_v54, %v5482_v60  ;;  %6372 = vmatmul.msk.f32.gmra.mxu1 %vm1552_vm1, %v11057_v7  ;;  %v11060_v60 = vld [vmem:[#allocation75_spill] sm:$0xff]  ;;  %v11062_v7 = vld [vmem:[#allocation109_spill] sm:$0xff] }
 0x5a3   : > { %v4179_v52 = vadd.f32 %v9735_v8, %v3744_v63 }
 0x5a4   : > { %v5554_v56 = vadd.f32 %v9868_v42, %v5518_v19 }
 0x5a5   : > { %v4614_v27 = vadd.f32 %v9896_v3, %v4179_v52 }
 0x5a6   : > { %v5586_v15 = vmax.f32 %v5554_v56, 0.0  ;;  %v3310_v56 = vadd.f32 %v11062_v7, %v11061_v43  ;;  %v6592_v7 = vld [vmem:[#allocation2 + $0x101] sm:$0xff] }
 0x5a7   : > { %v5403_v10 = vpop.f32.mrf.mxu1  ;;  %v5049_v16 = vadd.f32 %v9900_v6, %v4614_v27 }
 0x5a8   : > { %v5483_v2 = vadd.f32 %v5403_v10, %v5048_v46  ;;  %6388 = vmatmul.msk.f32.gmra.mxu3 %vm1552_vm1, %v5586_v15  ;;  %v3745_v46 = vadd.f32 %v9565_v17, %v3310_v56  ;;  %v9984_v10 = vpop.f32.mrf.mxu0  ;;  %v5258_v56 = vmul.f32 %v6592_v7, %v9807_v50 }
 0x5aa   : > { %v5519_v19 = vmul.f32 %v9861_v54, %v5483_v2  ;;  %6373 = vmatmul.msk.f32.gmra.mxu1 %vm1552_vm1, %v11060_v60  ;;  %v4180_v3 = vadd.f32 %v9752_v23, %v3745_v46  ;;  %v11063_v2 = vld [vmem:[#allocation107_spill] sm:$0xff]  ;;  %v11065_v60 = vld [vmem:[#allocation176_spill] sm:$0xff] }
 0x5ac   : > { %v5555_v59 = vadd.f32 %v9868_v42, %v5519_v19  ;;  %v4615_v6 = vadd.f32 %v9911_v18, %v4180_v3  ;;  %v11064_v19 = vld [vmem:[#allocation80_spill] sm:$0xff]  ;;  %v10000_v18 = vpop.f32.mrf.mxu2 }
 0x5ad   : > { %v3311_v27 = vadd.f32 %v11065_v60, %v11064_v19  ;;  %v11067_v3 = vld [vmem:[#allocation116_spill] sm:$0xff]  ;;  %v11068_v60 = vld [vmem:[#allocation81_spill] sm:$0xff] }
 0x5ae   : > { %v5587_v28 = vmax.f32 %v5555_v59, 0.0  ;;  %v5050_v17 = vadd.f32 %v9915_v12, %v4615_v6  ;;  %v6593_v19 = vld [vmem:[#allocation2 + $0x109] sm:$0xff] }
 0x5af   : > { %v5406_v8 = vpop.f32.mrf.mxu1  ;;  %v3746_v23 = vadd.f32 %v9581_v57, %v3311_v27  ;;  %v11066_v57 = vld [vmem:[#allocation113_spill] sm:$0xff] }
 0x5b0   : > { %v5484_v15 = vadd.f32 %v5406_v8, %v5049_v16  ;;  %6389 = vmatmul.msk.f32.gmra.mxu3 %vm1552_vm1, %v5587_v28  ;;  %v9997_v16 = vpop.f32.mrf.mxu3  ;;  %v10005_v12 = vpop.f32.mrf.mxu0 }
 0x5b1   : > { %v4181_v8 = vadd.f32 %v9768_v37, %v3746_v23  ;;  %v5259_v37 = vmul.f32 %v6593_v19, %v11068_v60  ;;  %v11072_v60 = vld [vmem:[#allocation53_spill] sm:$0xff] }
 0x5b2   : > { %v5520_v63 = vmul.f32 %v9861_v54, %v5484_v15  ;;  %6374 = vmatmul.msk.f32.gmra.mxu1 %vm1552_vm1, %v11063_v2 }
 0x5b3   : > { %v4616_v15 = vadd.f32 %v9925_v39, %v4181_v8 }
 0x5b4   : > { %v5556_v52 = vadd.f32 %v9868_v42, %v5520_v63  ;;  %v3312_v63 = vadd.f32 %v11067_v3, %v11066_v57  ;;  %v10020_v7 = vpop.f32.mrf.mxu2 }
 0x5b5   : > { %v5051_v2 = vadd.f32 %v9930_v11, %v4616_v15 }
 0x5b6   : > { %v5588_v59 = vmax.f32 %v5556_v52, 0.0  ;;  %v3747_v27 = vadd.f32 %v9597_v48, %v3312_v63  ;;  %v11069_v48 = vld [vmem:[#allocation84_spill] sm:$0xff]  ;;  %v11071_v63 = vld [vmem:[#allocation83_spill] sm:$0xff] }
 0x5b7   : > { %v5409_v43 = vpop.f32.mrf.mxu1 }
 0x5b8   : > { %v5485_v28 = vadd.f32 %v5409_v43, %v5050_v17  ;;  %6390 = vmatmul.msk.f32.gmra.mxu3 %vm1552_vm1, %v5588_v59  ;;  %v4182_v59 = vadd.f32 %v9781_v20, %v3747_v27  ;;  %v10016_v39 = vpop.f32.mrf.mxu3  ;;  %v10024_v23 = vpop.f32.mrf.mxu0 }
 0x5ba   : > { %v5521_v46 = vmul.f32 %v9861_v54, %v5485_v28  ;;  %6375 = vmatmul.msk.f32.gmra.mxu1 %vm1552_vm1, %v5258_v56  ;;  %v4617_v11 = vadd.f32 %v9941_v61, %v4182_v59  ;;  %v11070_v28 = vld [vmem:[#allocation117_spill] sm:$0xff] }
 0x5bb   : > { %v3313_v8 = vadd.f32 %v11070_v28, %v11069_v48  ;;  %v5102_v28 = vld [vmem:[#allocation2 + $0x121] sm:$0xff] }
 0x5bc   : > { %v5557_v50 = vadd.f32 %v9868_v42, %v5521_v46  ;;  %v5052_v46 = vadd.f32 %v9944_v22, %v4617_v11  ;;  %v4560_v19 = vpop.f32.mrf.mxu2 }
 0x5be   : > { %v5589_v6 = vmax.f32 %v5557_v50, 0.0  ;;  %v3748_v50 = vadd.f32 %v9613_v38, %v3313_v8  ;;  %v3314_v38 = vadd.f32 %v9384_v33, %v11072_v60  ;;  %v11073_v8 = vld [vmem:[#allocation126_spill] sm:$0xff] }
 0x5bf   : > { %v5412_v52 = vpop.f32.mrf.mxu1 }
 0x5c0   : > { %v5486_v17 = vadd.f32 %v5412_v52, %v5051_v2  ;;  %6391 = vmatmul.msk.f32.gmra.mxu3 %vm1552_vm1, %v5589_v6  ;;  %v4183_v3 = vadd.f32 %v9795_v53, %v3748_v50  ;;  %v5222_v2 = vpop.permute.xlu2 %5221  ;;  %v10036_v52 = vpop.f32.mrf.mxu3 }
 0x5c1   : > { %v4995_v53 = vpop.f32.mrf.mxu0  ;;  %v5261_v59 = vmul.f32 %v5222_v2, %v9648_v30  ;;  %v3315_v30 = vadd.f32 %v9414_v13, %v11073_v8 }
 0x5c2   : > { %v5522_v43 = vmul.f32 %v9861_v54, %v5486_v17  ;;  %6376 = vmatmul.msk.f32.gmra.mxu1 %vm1552_vm1, %v5259_v37  ;;  %v4618_v6 = vadd.f32 %v9960_v5, %v4183_v3 }
 0x5c3   : > { %v3750_v50 = vadd.f32 %v9650_v32, %v3315_v30 }
 0x5c4   : > { %v5558_v56 = vadd.f32 %v9868_v42, %v5522_v43  ;;  %v5053_v37 = vadd.f32 %v9965_v49, %v4618_v6  ;;  %v3749_v43 = vadd.f32 %v9628_v9, %v3314_v38  ;;  %v5103_v6 = vld [vmem:[#allocation2 + $0x129] sm:$0xff] }
 0x5c6   : > { %v5590_v20 = vmax.f32 %v5558_v56, 0.0  ;;  %v4184_v5 = vadd.f32 %v9811_v24, %v3749_v43 }
 0x5c7   : > { %v5415_v15 = vpop.f32.mrf.mxu1 }
 0x5c8   : > { %v5487_v57 = vadd.f32 %v5415_v15, %v5052_v46  ;;  %6392 = vmatmul.msk.f32.gmra.mxu3 %vm1552_vm1, %v5590_v20  ;;  %v5226_v48 = vpop.permute.xlu2 %5225  ;;  %v4619_v33 = vadd.f32 %v9980_v1, %v4184_v5  ;;  %v10052_v46 = vpop.f32.mrf.mxu3 }
 0x5c9   : > { %v4563_v15 = vpop.f32.mrf.mxu2  ;;  %v4998_v1 = vpop.f32.mrf.mxu0 }
 0x5ca   : > { %v5523_v61 = vmul.f32 %v9861_v54, %v5487_v57  ;;  %6377 = vmatmul.msk.f32.gmra.mxu1 %vm1552_vm1, %v11071_v63  ;;  %v5054_v9 = vadd.f32 %v9984_v10, %v4619_v33  ;;  %v5262_v57 = vmul.f32 %v5226_v48, %v5102_v28 }
 0x5cc   : > { %v5559_v22 = vadd.f32 %v9868_v42, %v5523_v61  ;;  %v4185_v61 = vadd.f32 %v9824_v26, %v3750_v50 }
 0x5ce   : > { %v5591_v27 = vmax.f32 %v5559_v22, 0.0  ;;  %v4620_v13 = vadd.f32 %v10000_v18, %v4185_v61  ;;  %v11074_v22 = vld [vmem:[#allocation86_spill] sm:$0xff] }
 0x5cf   : > { %v5418_v17 = vpop.f32.mrf.mxu1  ;;  %v3316_v32 = vadd.f32 %v9439_v0, %v11074_v22 }
 0x5d0   : > { %v5488_v11 = vadd.f32 %v5418_v17, %v5053_v37  ;;  %6393 = vmatmul.msk.f32.gmra.mxu3 %vm1552_vm1, %v5591_v27  ;;  %v5230_v2 = vpop.permute.xlu2 %5229  ;;  %v5055_v60 = vadd.f32 %v10005_v12, %v4620_v13  ;;  %v11075_v13 = vld [vmem:[#allocation157_spill] sm:$0xff] }
 0x5d1   : > { %v3751_v27 = vadd.f32 %v9668_v51, %v3316_v32  ;;  %v5263_v26 = vmul.f32 %v5230_v2, %v5103_v6  ;;  %v4566_v18 = vpop.f32.mrf.mxu2  ;;  %v5001_v0 = vpop.f32.mrf.mxu0  ;;  %v3317_v51 = vadd.f32 %v9460_v29, %v9380_v62  ;;  %v3318_v29 = vadd.f32 %v9485_v21, %v9404_v35 }
 0x5d2   : > { %v5524_v56 = vmul.f32 %v9861_v54, %v5488_v11  ;;  %6378 = vmatmul.msk.f32.gmra.mxu1 %vm1552_vm1, %v5261_v59  ;;  %v10067_v59 = vpop.f32.mrf.mxu3  ;;  %v3319_v35 = vadd.f32 %v9511_v34, %v9425_v41 }
 0x5d3   : > { %v4186_v43 = vadd.f32 %v9836_v36, %v3751_v27  ;;  %v3753_v50 = vadd.f32 %v9696_v58, %v3318_v29  ;;  %v11083_v29 = vld [vmem:[#allocation127_spill] sm:$0xff] }
 0x5d4   : > { %v5560_v49 = vadd.f32 %v9868_v42, %v5524_v56  ;;  %v3754_v22 = vadd.f32 %v9707_v47, %v3319_v35 }
 0x5d5   : > { %v4621_v12 = vadd.f32 %v10020_v7, %v4186_v43 }
 0x5d6   : > { %v5592_v20 = vmax.f32 %v5560_v49, 0.0  ;;  %v3752_v49 = vadd.f32 %v9682_v45, %v3317_v51 }
 0x5d7   : > { %v5421_v24 = vpop.f32.mrf.mxu1  ;;  %v5056_v56 = vadd.f32 %v10024_v23, %v4621_v12  ;;  %v11080_v12 = vld [vmem:[#allocation210_spill] sm:$0xff] }
 0x5d8   : > { %v5489_v3 = vadd.f32 %v5421_v24, %v5054_v9  ;;  %6394 = vmatmul.msk.f32.gmra.mxu3 %vm1552_vm1, %v5592_v20  ;;  %v4187_v36 = vadd.f32 %v9847_v14, %v3752_v49  ;;  %v4188_v14 = vadd.f32 %v9863_v55, %v3753_v50  ;;  %v11076_v55 = vld [vmem:[#allocation205_spill] sm:$0xff] }
 0x5d9   : > { %v4569_v7 = vpop.f32.mrf.mxu2  ;;  %v5004_v62 = vpop.f32.mrf.mxu0 }
 0x5da   : > { %v5525_v63 = vmul.f32 %v9861_v54, %v5489_v3  ;;  %6379 = vmatmul.msk.f32.gmra.mxu1 %vm1552_vm1, %v5262_v57  ;;  %v10081_v30 = vpop.f32.mrf.mxu3  ;;  %v4622_v9 = vadd.f32 %v4560_v19, %v4187_v36  ;;  %v4623_v61 = vadd.f32 %v4563_v15, %v4188_v14 }
 0x5dc   : > { %v5561_v10 = vadd.f32 %v9868_v42, %v5525_v63  ;;  %v5057_v23 = vadd.f32 %v4995_v53, %v4622_v9  ;;  %v5058_v21 = vadd.f32 %v4998_v1, %v4623_v61  ;;  %v11077_v1 = vld [vmem:[#allocation162_spill] sm:$0xff] }
 0x5dd   : > { %v11082_v9 = vld [vmem:[#allocation166_spill] sm:$0xff] }
 0x5de   : > { %v5593_v38 = vmax.f32 %v5561_v10, 0.0 }
 0x5df   : > { %v5424_v37 = vpop.f32.mrf.mxu1 }
 0x5e0   : > { %v5490_v17 = vadd.f32 %v5424_v37, %v5055_v60  ;;  %6395 = vmatmul.msk.f32.gmra.mxu3 %vm1552_vm1, %v5593_v38  ;;  %v4189_v60 = vadd.f32 %v9878_v4, %v3754_v22 }
 0x5e1   : > { %v4572_v2 = vpop.f32.mrf.mxu2  ;;  %v5007_v15 = vpop.f32.mrf.mxu0 }
 0x5e2   : > { %v5526_v11 = vmul.f32 %v9861_v54, %v5490_v17  ;;  %6380 = vmatmul.msk.f32.gmra.mxu1 %vm1552_vm1, %v5263_v26  ;;  %v4624_v41 = vadd.f32 %v4566_v18, %v4189_v60  ;;  %v11078_v26 = vld [vmem:[#allocation72_spill] sm:$0xff]  ;;  %v11079_v17 = vld [vmem:[#allocation241_spill] sm:$0xff] }
 0x5e3   : > { %v3320_v43 = vadd.f32 %v11079_v17, %v11078_v26 }
 0x5e4   : > { %v5562_v5 = vadd.f32 %v9868_v42, %v5526_v11  ;;  %v5059_v47 = vadd.f32 %v5001_v0, %v4624_v41 }
 0x5e6   : > { %v5594_v48 = vmax.f32 %v5562_v5, 0.0 }
 0x5e7   : > { %v5427_v33 = vpop.f32.mrf.mxu1 }
 0x5e8   : > { %v5491_v28 = vadd.f32 %v5427_v33, %v5056_v56  ;;  %6396 = vmatmul.msk.f32.gmra.mxu3 %vm1552_vm1, %v5594_v48  ;;  %v11081_v48 = vld [vmem:[#allocation21_spill] sm:$0xff] }
 0x5e9   : > { %v4575_v51 = vpop.f32.mrf.mxu2  ;;  %v3755_v33 = vadd.f32 %v11081_v48, %v3320_v43  ;;  %v5010_v18 = vpop.f32.mrf.mxu0  ;;  %v11095_v48 = vld [vmem:[#allocation115_spill] sm:$0xff] }
 0x5ea   : > { %v5527_v8 = vmul.f32 %v9861_v54, %v5491_v28 }
 0x5eb   : > { %v4190_v49 = vadd.f32 %v9893_v40, %v3755_v33 }
 0x5ec   : > { %v5563_v20 = vadd.f32 %v9868_v42, %v5527_v8 }
 0x5ed   : > { %v4625_v0 = vadd.f32 %v4569_v7, %v4190_v49 }
 0x5ee   : > { %v5595_v45 = vmax.f32 %v5563_v20, 0.0 }
 0x5ef   : > { %v5430_v24 = vpop.f32.mrf.mxu1 }
 0x5f0   : > { %v5492_v57 = vadd.f32 %v5430_v24, %v5057_v23  ;;  %6397 = vmatmul.msk.f32.gmra.mxu3 %vm1552_vm1, %v5595_v45  ;;  %v11084_v23 = vld [vmem:[#allocation87_spill] sm:$0xff]  ;;  %v5060_v24 = vadd.f32 %v5004_v62, %v4625_v0 }
 0x5f1   : > { %v3321_v45 = vadd.f32 %v11084_v23, %v11083_v29  ;;  %v4578_v7 = vpop.f32.mrf.mxu2 }
 0x5f2   : > { %v5528_v3 = vmul.f32 %v9861_v54, %v5492_v57  ;;  %v11085_v57 = vld [vmem:[#allocation214_spill] sm:$0xff] }
 0x5f3   : > { %v5725_v19 = vpop.f32.mrf.mxu3 }
 0x5f4   : > { %v5564_v63 = vadd.f32 %v9868_v42, %v5528_v3  ;;  %v5821_v10 = vmul.f32 %v5725_v19, %v11075_v13  ;;  %v11086_v19 = vld [vmem:[#allocation147_spill] sm:$0xff] }
 0x5f5   : > { %v3756_v61 = vadd.f32 %v11086_v19, %v3321_v45  ;;  %v11101_v19 = vld [vmem:[#allocation56_spill] sm:$0xff] }
 0x5f6   : > { %v5596_v58 = vmax.f32 %v5564_v63, 0.0  ;;  %v5853_v53 = vadd.f32 %v5821_v10, %v11076_v55  ;;  %v5013_v10 = vpop.f32.mrf.mxu0 }
 0x5f7   : > { %v5433_v6 = vpop.f32.mrf.mxu1  ;;  %v4191_v63 = vadd.f32 %v9909_v44, %v3756_v61 }
 0x5f8   : > { %5886 = vst.msk [vmem:[%s10097_s20] sm:$0xff] %vm5885_vm12, %v5853_v53  ;;  %v5493_v32 = vadd.f32 %v5433_v6, %v5058_v21  ;;  %6398 = vmatmul.msk.f32.gmra.mxu3 %vm1552_vm1, %v5596_v58  ;;  %v11087_v58 = vld [vmem:[#allocation171_spill] sm:$0xff]  ;;  %v11088_v53 = vld [vmem:[#allocation30_spill] sm:$0xff]  ;;  %v11089_v6 = vld [vmem:[#allocation185_spill] sm:$0xff] }
 0x5f9   : > { %v4626_v62 = vadd.f32 %v4572_v2, %v4191_v63  ;;  %v3322_v22 = vadd.f32 %v11089_v6, %v11088_v53  ;;  %v11092_v2 = vld [vmem:[#allocation156_spill] sm:$0xff]  ;;  %v4581_v17 = vpop.f32.mrf.mxu2 }
 0x5fa   : > { %v5529_v38 = vmul.f32 %v9861_v54, %v5493_v32 }
 0x5fb   : > { %v5728_v37 = vpop.f32.mrf.mxu3  ;;  %v5061_v32 = vadd.f32 %v5007_v15, %v4626_v62 }
 0x5fc   : > { %v5565_v34 = vadd.f32 %v9868_v42, %v5529_v38  ;;  %v5822_v27 = vmul.f32 %v5728_v37, %v11077_v1  ;;  %v11090_v38 = vld [vmem:[#allocation218_spill] sm:$0xff] }
 0x5fe   : > { %v5597_v11 = vmax.f32 %v5565_v34, 0.0  ;;  %v5854_v5 = vadd.f32 %v5822_v27, %v11080_v12  ;;  %v11091_v34 = vld [vmem:[#allocation74_spill] sm:$0xff] }
 0x5ff   : > { %v5436_v56 = vpop.f32.mrf.mxu1  ;;  %v3757_v1 = vadd.f32 %v11091_v34, %v3322_v22 }
 0x600   : > { %5887 = vst.msk [vmem:[%s10097_s20 + $0x8] sm:$0xff] %vm5885_vm12, %v5854_v5  ;;  %v5494_v4 = vadd.f32 %v5436_v56, %v5059_v47  ;;  %6399 = vmatmul.msk.f32.gmra.mxu3 %vm1552_vm1, %v5597_v11  ;;  %v11093_v11 = vld [vmem:[#allocation175_spill] sm:$0xff]  ;;  %v5016_v5 = vpop.f32.mrf.mxu0  ;;  %v11094_v56 = vld [vmem:[#allocation101_spill] sm:$0xff] }
 0x601   : > { %v4192_v27 = vadd.f32 %v11092_v2, %v3757_v1  ;;  %v3323_v33 = vadd.f32 %v11095_v48, %v11094_v56  ;;  %v11107_v2 = vld [vmem:[#allocation226_spill] sm:$0xff] }
 0x602   : > { %v5530_v28 = vmul.f32 %v9861_v54, %v5494_v4 }
 0x603   : > { %v5731_v36 = vpop.f32.mrf.mxu3  ;;  %v4627_v47 = vadd.f32 %v4575_v51, %v4192_v27  ;;  %v11098_v51 = vld [vmem:[#allocation138_spill] sm:$0xff] }
 0x604   : > { %v5566_v8 = vadd.f32 %v9868_v42, %v5530_v28  ;;  %v5823_v20 = vmul.f32 %v5731_v36, %v11082_v9  ;;  %v11096_v28 = vld [vmem:[#allocation221_spill] sm:$0xff] }
 0x605   : > { %v5062_v4 = vadd.f32 %v5010_v18, %v4627_v47  ;;  %v11108_v47 = vld [vmem:[#allocation31_spill] sm:$0xff] }
 0x606   : > { %v5598_v50 = vmax.f32 %v5566_v8, 0.0  ;;  %v5855_v14 = vadd.f32 %v5823_v20, %v11085_v57  ;;  %v11097_v8 = vld [vmem:[#allocation190_spill] sm:$0xff] }
 0x607   : > { %v5439_v3 = vpop.f32.mrf.mxu1  ;;  %v3758_v9 = vadd.f32 %v11097_v8, %v3323_v33  ;;  %v11109_v33 = vld [vmem:[#allocation189_spill] sm:$0xff] }
 0x608   : > { %5888 = vst.msk [vmem:[%s10097_s20 + $0x10] sm:$0xff] %vm5885_vm12, %v5855_v14  ;;  %v5495_v40 = vadd.f32 %v5439_v3, %v5060_v24  ;;  %6400 = vmatmul.msk.f32.gmra.mxu3 %vm1552_vm1, %v5598_v50  ;;  %v11099_v50 = vld [vmem:[#allocation180_spill] sm:$0xff]  ;;  %v4584_v14 = vpop.f32.mrf.mxu2  ;;  %v11100_v3 = vld [vmem:[#allocation151_spill] sm:$0xff]  ;;  %v5019_v62 = vpop.f32.mrf.mxu0 }
 0x609   : > { %v4193_v29 = vadd.f32 %v11098_v51, %v3758_v9  ;;  %v3324_v61 = vadd.f32 %v11101_v19, %v11100_v3  ;;  %v11112_v9 = vld [vmem:[#allocation227_spill] sm:$0xff]  ;;  %v11114_v19 = vld [vmem:[#allocation194_spill] sm:$0xff] }
 0x60a   : > { %v5531_v13 = vmul.f32 %v9861_v54, %v5495_v40 }
 0x60b   : > { %v5734_v35 = vpop.f32.mrf.mxu3  ;;  %v4628_v24 = vadd.f32 %v4578_v7, %v4193_v29  ;;  %v11113_v29 = vld [vmem:[#allocation118_spill] sm:$0xff] }
 0x60c   : > { %v5567_v21 = vadd.f32 %v9868_v42, %v5531_v13  ;;  %v5824_v55 = vmul.f32 %v5734_v35, %v11087_v58  ;;  %v11102_v13 = vld [vmem:[#allocation224_spill] sm:$0xff]  ;;  %v11103_v58 = vld [vmem:[#allocation122_spill] sm:$0xff] }
 0x60d   : > { %v5063_v40 = vadd.f32 %v5013_v10, %v4628_v24 }
 0x60e   : > { %v5599_v60 = vmax.f32 %v5567_v21, 0.0  ;;  %v5856_v37 = vadd.f32 %v5824_v55, %v11090_v38  ;;  %v3759_v55 = vadd.f32 %v11103_v58, %v3324_v61 }
 0x60f   : > { %v5442_v41 = vpop.f32.mrf.mxu1 }
 0x610   : > { %5889 = vst.msk [vmem:[%s10097_s20 + $0x18] sm:$0xff] %vm5885_vm12, %v5856_v37  ;;  %v5496_v44 = vadd.f32 %v5442_v41, %v5061_v32  ;;  %6401 = vmatmul.msk.f32.gmra.mxu3 %vm1552_vm1, %v5599_v60  ;;  %v4194_v53 = vadd.f32 %v9957_v25, %v3759_v55  ;;  %v11104_v60 = vld [vmem:[#allocation184_spill] sm:$0xff] }
 0x611   : > { %v11105_v37 = vld [vmem:[#allocation132_spill] sm:$0xff] }
 0x612   : > { %v5532_v26 = vmul.f32 %v9861_v54, %v5496_v44  ;;  %v4629_v32 = vadd.f32 %v4581_v17, %v4194_v53  ;;  %v11106_v41 = vld [vmem:[#allocation120_spill] sm:$0xff]  ;;  %v5022_v17 = vpop.f32.mrf.mxu0 }
 0x613   : > { %v5737_v43 = vpop.f32.mrf.mxu3  ;;  %v3325_v34 = vadd.f32 %v11106_v41, %v11105_v37  ;;  %v11119_v37 = vld [vmem:[#allocation198_spill] sm:$0xff] }
 0x614   : > { %v5568_v15 = vadd.f32 %v9868_v42, %v5532_v26  ;;  %v5825_v12 = vmul.f32 %v5737_v43, %v11093_v11  ;;  %v5064_v1 = vadd.f32 %v5016_v5, %v4629_v32  ;;  %v4587_v26 = vpop.f32.mrf.mxu2 }
 0x616   : > { %v5600_v49 = vmax.f32 %v5568_v15, 0.0  ;;  %v5857_v36 = vadd.f32 %v5825_v12, %v11096_v28  ;;  %v3760_v15 = vadd.f32 %v11108_v47, %v3325_v34  ;;  %v11111_v28 = vld [vmem:[#allocation129_spill] sm:$0xff] }
 0x617   : > { %v5445_v0 = vpop.f32.mrf.mxu1 }
 0x618   : > { %5890 = vst.msk [vmem:[%s10097_s20 + $0x20] sm:$0xff] %vm5885_vm12, %v5857_v36  ;;  %v5497_v20 = vadd.f32 %v5445_v0, %v5062_v4  ;;  %6402 = vmatmul.msk.f32.gmra.mxu3 %vm1552_vm1, %v5600_v49  ;;  %v4195_v11 = vadd.f32 %v9978_v31, %v3760_v15  ;;  %v11110_v49 = vld [vmem:[#allocation145_spill] sm:$0xff] }
 0x619   : > { %v3326_v36 = vadd.f32 %v11111_v28, %v11110_v49  ;;  %v11125_v28 = vld [vmem:[#allocation128_spill] sm:$0xff] }
 0x61a   : > { %v5533_v23 = vmul.f32 %v9861_v54, %v5497_v20  ;;  %v4630_v5 = vadd.f32 %v4584_v14, %v4195_v11 }
 0x61b   : > { %v5740_v45 = vpop.f32.mrf.mxu3 }
 0x61c   : > { %v5569_v18 = vadd.f32 %v9868_v42, %v5533_v23  ;;  %v5826_v57 = vmul.f32 %v5740_v45, %v11099_v50  ;;  %v5065_v0 = vadd.f32 %v5019_v62, %v4630_v5  ;;  %v3761_v23 = vadd.f32 %v11113_v29, %v3326_v36  ;;  %v4590_v45 = vpop.f32.mrf.mxu2  ;;  %v5025_v50 = vpop.f32.mrf.mxu0  ;;  %v11126_v36 = vld [vmem:[#allocation135_spill] sm:$0xff] }
 0x61e   : > { %v5601_v63 = vmax.f32 %v5569_v18, 0.0  ;;  %v5858_v35 = vadd.f32 %v5826_v57, %v11102_v13  ;;  %v4196_v24 = vadd.f32 %v9997_v16, %v3761_v23 }
 0x61f   : > { %v5448_v21 = vpop.f32.mrf.mxu1 }
 0x620   : > { %5891 = vst.msk [vmem:[%s10097_s20 + $0x28] sm:$0xff] %vm5885_vm12, %v5858_v35  ;;  %v5498_v7 = vadd.f32 %v5448_v21, %v5063_v40  ;;  %6403 = vmatmul.msk.f32.gmra.mxu3 %vm1552_vm1, %v5601_v63  ;;  %v4631_v14 = vadd.f32 %v4587_v26, %v4196_v24  ;;  %v11115_v40 = vld [vmem:[#allocation71_spill] sm:$0xff]  ;;  %v11116_v63 = vld [vmem:[#allocation58_spill] sm:$0xff]  ;;  %v11117_v21 = vld [vmem:[#allocation229_spill] sm:$0xff] }
 0x621   : > { %v3327_v13 = vadd.f32 %v11116_v63, %v11115_v40  ;;  %v11131_v40 = vld [vmem:[#allocation90_spill] sm:$0xff] }
 0x622   : > { %v5534_v6 = vmul.f32 %v9861_v54, %v5498_v7  ;;  %v5066_v35 = vadd.f32 %v5022_v17, %v4631_v14  ;;  %v11118_v7 = vld [vmem:[#allocation130_spill] sm:$0xff] }
 0x623   : > { %v5743_v22 = vpop.f32.mrf.mxu3  ;;  %v3762_v53 = vadd.f32 %v11118_v7, %v3327_v13  ;;  %v11133_v7 = vld [vmem:[#allocation92_spill] sm:$0xff] }
 0x624   : > { %v5570_v10 = vadd.f32 %v9868_v42, %v5534_v6  ;;  %v5827_v38 = vmul.f32 %v5743_v22, %v11104_v60  ;;  %v4593_v32 = vpop.f32.mrf.mxu2  ;;  %v5028_v34 = vpop.f32.mrf.mxu0 }
 0x625   : > { %v4197_v6 = vadd.f32 %v10016_v39, %v3762_v53 }
 0x626   : > { %v5602_v44 = vmax.f32 %v5570_v10, 0.0  ;;  %v5859_v27 = vadd.f32 %v5827_v38, %v11107_v2 }
 0x627   : > { %v5451_v43 = vpop.f32.mrf.mxu1  ;;  %v4632_v60 = vadd.f32 %v4590_v45, %v4197_v6 }
 0x628   : > { %5892 = vst.msk [vmem:[%s10097_s20 + $0x30] sm:$0xff] %vm5885_vm12, %v5859_v27  ;;  %v5499_v25 = vadd.f32 %v5451_v43, %v5064_v1  ;;  %6404 = vmatmul.msk.f32.gmra.mxu3 %vm1552_vm1, %v5602_v44  ;;  %v11120_v1 = vld [vmem:[#allocation119_spill] sm:$0xff]  ;;  %v11121_v44 = vld [vmem:[#allocation32_spill] sm:$0xff]  ;;  %v11122_v43 = vld [vmem:[#allocation230_spill] sm:$0xff] }
 0x629   : > { %v3328_v2 = vadd.f32 %v11121_v44, %v11120_v1  ;;  %v5067_v27 = vadd.f32 %v5025_v50, %v4632_v60 }
 0x62a   : > { %v5535_v12 = vmul.f32 %v9861_v54, %v5499_v25  ;;  %v11123_v25 = vld [vmem:[#allocation155_spill] sm:$0xff] }
 0x62b   : > { %v5746_v56 = vpop.f32.mrf.mxu3  ;;  %v3763_v39 = vadd.f32 %v11123_v25, %v3328_v2 }
 0x62c   : > { %v5571_v48 = vadd.f32 %v9868_v42, %v5535_v12  ;;  %v5828_v4 = vmul.f32 %v5746_v56, %v11109_v33  ;;  %v11124_v33 = vld [vmem:[#allocation203_spill] sm:$0xff]  ;;  %v4596_v49 = vpop.f32.mrf.mxu2  ;;  %v5031_v29 = vpop.f32.mrf.mxu0 }
 0x62d   : > { %v4198_v11 = vadd.f32 %v10036_v52, %v3763_v39 }
 0x62e   : > { %v5603_v8 = vmax.f32 %v5571_v48, 0.0  ;;  %v5860_v20 = vadd.f32 %v5828_v4, %v11112_v9 }
 0x62f   : > { %v5454_v51 = vpop.f32.mrf.mxu1  ;;  %v4633_v5 = vadd.f32 %v4593_v32, %v4198_v11 }
 0x630   : > { %5893 = vst.msk [vmem:[%s10097_s20 + $0x38] sm:$0xff] %vm5885_vm12, %v5860_v20  ;;  %v5500_v31 = vadd.f32 %v5454_v51, %v5065_v0  ;;  %6405 = vmatmul.msk.f32.gmra.mxu3 %vm1552_vm1, %v5603_v8  ;;  %v3329_v0 = vadd.f32 %v11126_v36, %v11125_v28  ;;  %v11127_v20 = vld [vmem:[#allocation124_spill] sm:$0xff] }
 0x631   : > { %v5068_v8 = vadd.f32 %v5028_v34, %v4633_v5  ;;  %v11136_v34 = vld [vmem:[#allocation59_spill] sm:$0xff]  ;;  %v11140_v28 = vld [vmem:[#allocation232_spill] sm:$0xff] }
 0x632   : > { %v5536_v18 = vmul.f32 %v9861_v54, %v5500_v31  ;;  %v11128_v31 = vld [vmem:[#allocation123_spill] sm:$0xff] }
 0x633   : > { %v5749_v57 = vpop.f32.mrf.mxu3  ;;  %v3764_v52 = vadd.f32 %v11128_v31, %v3329_v0  ;;  %v11142_v31 = vld [vmem:[#allocation234_spill] sm:$0xff] }
 0x634   : > { %v5572_v3 = vadd.f32 %v9868_v42, %v5536_v18  ;;  %v5829_v61 = vmul.f32 %v5749_v57, %v11114_v19 }
 0x635   : > { %v4199_v24 = vadd.f32 %v10052_v46, %v3764_v52 }
 0x636   : > { %v5604_v62 = vmax.f32 %v5572_v3, 0.0  ;;  %v5861_v58 = vadd.f32 %v5829_v61, %v11117_v21  ;;  %v11129_v3 = vld [vmem:[#allocation207_spill] sm:$0xff]  ;;  %v11130_v61 = vld [vmem:[#allocation153_spill] sm:$0xff] }
 0x637   : > { %v5457_v55 = vpop.f32.mrf.mxu1  ;;  %v4634_v57 = vadd.f32 %v4596_v49, %v4199_v24  ;;  %v3330_v63 = vadd.f32 %v11131_v40, %v11130_v61  ;;  %v11143_v24 = vld [vmem:[#allocation174_spill] sm:$0xff]  ;;  %v11147_v40 = vld [vmem:[#allocation183_spill] sm:$0xff] }
 0x638   : > { %5894 = vst.msk [vmem:[%s10097_s20 + $0x40] sm:$0xff] %vm5885_vm12, %v5861_v58  ;;  %v5501_v16 = vadd.f32 %v5457_v55, %v5066_v35  ;;  %6406 = vmatmul.msk.f32.gmra.mxu3 %vm1552_vm1, %v5604_v62  ;;  %v11132_v62 = vld [vmem:[#allocation7_spill] sm:$0xff]  ;;  %v4599_v58 = vpop.f32.mrf.mxu2 }
 0x639   : > { %v5069_v13 = vadd.f32 %v5031_v29, %v4634_v57  ;;  %v3765_v53 = vadd.f32 %v11133_v7, %v3330_v63 }
 0x63a   : > { %v5537_v22 = vmul.f32 %v9861_v54, %v5501_v16  ;;  %v5034_v16 = vpop.f32.mrf.mxu0 }
 0x63b   : > { %v5752_v10 = vpop.f32.mrf.mxu3  ;;  %v4200_v6 = vadd.f32 %v10067_v59, %v3765_v53 }
 0x63c   : > { %v5573_v38 = vadd.f32 %v9868_v42, %v5537_v22  ;;  %v5830_v41 = vmul.f32 %v5752_v10, %v11119_v37 }
 0x63d   : > { %v4635_v10 = vadd.f32 %v4599_v58, %v4200_v6  ;;  %v11152_v6 = vld [vmem:[#allocation64_spill] sm:$0xff] }
 0x63e   : > { %v5605_v26 = vmax.f32 %v5573_v38, 0.0  ;;  %v5862_v47 = vadd.f32 %v5830_v41, %v11122_v43  ;;  %v11134_v38 = vld [vmem:[#allocation160_spill] sm:$0xff]  ;;  %v11135_v41 = vld [vmem:[#allocation89_spill] sm:$0xff] }
 0x63f   : > { %v5460_v15 = vpop.f32.mrf.mxu1  ;;  %v3331_v1 = vadd.f32 %v11136_v34, %v11135_v41  ;;  %v5070_v44 = vadd.f32 %v5034_v16, %v4635_v10  ;;  %v11153_v10 = vld [vmem:[#allocation196_spill] sm:$0xff]  ;;  %v11155_v34 = vld [vmem:[#allocation201_spill] sm:$0xff] }
 0x640   : > { %5895 = vst.msk [vmem:[%s10097_s20 + $0x48] sm:$0xff] %vm5885_vm12, %v5862_v47  ;;  %v5502_v17 = vadd.f32 %v5460_v15, %v5067_v27  ;;  %6407 = vmatmul.msk.f32.gmra.mxu3 %vm1552_vm1, %v5605_v26  ;;  %v11137_v27 = vld [vmem:[#allocation231_spill] sm:$0xff]  ;;  %v4602_v25 = vpop.f32.mrf.mxu2 }
 0x641   : > { %v11138_v47 = vld [vmem:[#allocation131_spill] sm:$0xff] }
 0x642   : > { %v5538_v12 = vmul.f32 %v9861_v54, %v5502_v17  ;;  %v3766_v15 = vadd.f32 %v11138_v47, %v3331_v1  ;;  %v5037_v11 = vpop.f32.mrf.mxu0  ;;  %v11158_v47 = vld [vmem:[#allocation25_spill] sm:$0xff] }
 0x643   : > { %v5755_v56 = vpop.f32.mrf.mxu3 }
 0x644   : > { %v5574_v48 = vadd.f32 %v9868_v42, %v5538_v12  ;;  %v5831_v4 = vmul.f32 %v5755_v56, %v11124_v33  ;;  %v4201_v39 = vadd.f32 %v10081_v30, %v3766_v15 }
 0x646   : > { %v5606_v9 = vmax.f32 %v5574_v48, 0.0  ;;  %v5863_v51 = vadd.f32 %v5831_v4, %v11127_v20  ;;  %v4636_v56 = vadd.f32 %v4602_v25, %v4201_v39  ;;  %v11139_v48 = vld [vmem:[#allocation165_spill] sm:$0xff] }
 0x647   : > { %v5463_v23 = vpop.f32.mrf.mxu1  ;;  %v11159_v25 = vld [vmem:[#allocation225_spill] sm:$0xff] }
 0x648   : > { %5896 = vst.msk [vmem:[%s10097_s20 + $0x50] sm:$0xff] %vm5885_vm12, %v5863_v51  ;;  %v5503_v45 = vadd.f32 %v5463_v23, %v5068_v8  ;;  %6408 = vmatmul.msk.f32.gmra.mxu3 %vm1552_vm1, %v5606_v9  ;;  %v5071_v4 = vadd.f32 %v5037_v11, %v4636_v56  ;;  %v11141_v51 = vld [vmem:[#allocation170_spill] sm:$0xff] }
 0x649   : > { %v11161_v56 = vld [vmem:[#allocation10_spill] sm:$0xff] }
 0x64a   : > { %v5539_v18 = vmul.f32 %v9861_v54, %v5503_v45 }
 0x64b   : > { %v5758_v50 = vpop.f32.mrf.mxu3 }
 0x64c   : > { %v5575_v14 = vadd.f32 %v9868_v42, %v5539_v18  ;;  %v5832_v19 = vmul.f32 %v5758_v50, %v11129_v3  ;;  %v11144_v50 = vld [vmem:[#allocation235_spill] sm:$0xff]  ;;  %v11146_v3 = vld [vmem:[#allocation237_spill] sm:$0xff] }
 0x64e   : > { %v5607_v35 = vmax.f32 %v5575_v14, 0.0  ;;  %v5864_v21 = vadd.f32 %v5832_v19, %v11132_v62 }
 0x64f   : > { %v5466_v55 = vpop.f32.mrf.mxu1 }
 0x650   : > { %5897 = vst.msk [vmem:[%s10097_s20 + $0x58] sm:$0xff] %vm5885_vm12, %v5864_v21  ;;  %v5504_v46 = vadd.f32 %v5466_v55, %v5069_v13  ;;  %6409 = vmatmul.msk.f32.gmra.mxu3 %vm1552_vm1, %v5607_v35  ;;  %v11148_v13 = vld [vmem:[#allocation239_spill] sm:$0xff]  ;;  %v11149_v21 = vld [vmem:[#allocation188_spill] sm:$0xff] }
 0x651   : > { %v11150_v55 = vld [vmem:[#allocation240_spill] sm:$0xff] }
 0x652   : > { %v5540_v22 = vmul.f32 %v9861_v54, %v5504_v46  ;;  %v11151_v46 = vld [vmem:[#allocation193_spill] sm:$0xff] }
 0x653   : > { %v5761_v32 = vpop.f32.mrf.mxu3 }
 0x654   : > { %v5576_v60 = vadd.f32 %v9868_v42, %v5540_v22  ;;  %v5833_v37 = vmul.f32 %v5761_v32, %v11134_v38  ;;  %v11154_v38 = vld [vmem:[#allocation95_spill] sm:$0xff] }
 0x656   : > { %v5608_v2 = vmax.f32 %v5576_v60, 0.0  ;;  %v5865_v26 = vadd.f32 %v5833_v37, %v11137_v27 }
 0x657   : > { %v5469_v43 = vpop.f32.mrf.mxu1 }
 0x658   : > { %5898 = vst.msk [vmem:[%s10097_s20 + $0x60] sm:$0xff] %vm5885_vm12, %v5865_v26  ;;  %v5505_v59 = vadd.f32 %v5469_v43, %v5070_v44  ;;  %6410 = vmatmul.msk.f32.gmra.mxu3 %vm1552_vm1, %v5608_v2  ;;  %v11156_v44 = vld [vmem:[#allocation96_spill] sm:$0xff]  ;;  %v11157_v26 = vld [vmem:[#allocation223_spill] sm:$0xff] }
 0x65a   : > { %v5541_v17 = vmul.f32 %v9861_v54, %v5505_v59 }
 0x65b   : > { %v5764_v12 = vpop.f32.mrf.mxu3 }
 0x65c   : > { %v5577_v5 = vadd.f32 %v9868_v42, %v5541_v17  ;;  %v5834_v33 = vmul.f32 %v5764_v12, %v11139_v48  ;;  %v11160_v17 = vld [vmem:[#allocation79_spill] sm:$0xff]  ;;  %v11162_v48 = vld [vmem:[#allocation68_spill] sm:$0xff] }
 0x65e   : > { %v5609_v49 = vmax.f32 %v5577_v5, 0.0  ;;  %v5866_v36 = vadd.f32 %v5834_v33, %v11140_v28 }
 0x65f   : > { %v5472_v0 = vpop.f32.mrf.mxu1 }
 0x660   : > { %5899 = vst.msk [vmem:[%s10097_s20 + $0x68] sm:$0xff] %vm5885_vm12, %v5866_v36  ;;  %v5506_v8 = vadd.f32 %v5472_v0, %v5071_v4  ;;  %6411 = vmatmul.msk.f32.gmra.mxu3 %vm1552_vm1, %v5609_v49  ;;  %v11163_v49 = vld [vmem:[#allocation18_spill] sm:$0xff]  ;;  %v11164_v36 = vld [vmem:[#allocation27_spill] sm:$0xff] }
 0x662   : > { %v5542_v30 = vmul.f32 %v9861_v54, %v5506_v8 }
 0x663   : > { %v5767_v9 = vpop.f32.mrf.mxu3 }
 0x664   : > { %v5578_v20 = vadd.f32 %v9868_v42, %v5542_v30  ;;  %v5835_v29 = vmul.f32 %v5767_v9, %v11141_v51  ;;  %v11145_v42 = vld [vmem:[#allocation179_spill] sm:$0xff]  ;;  %v11165_v30 = vld [vmem:[#allocation17_spill] sm:$0xff] }
 0x666   : > { %v5610_v23 = vmax.f32 %v5578_v20, 0.0  ;;  %v5867_v52 = vadd.f32 %v5835_v29, %v11142_v31  ;;  %v11166_v20 = vld [vmem:[#allocation102_spill] sm:$0xff] }
 0x668   : > { %5900 = vst.msk [vmem:[%s10097_s20 + $0x70] sm:$0xff] %vm5885_vm12, %v5867_v52  ;;  %6412 = vmatmul.msk.f32.gmra.mxu3 %vm1552_vm1, %v5610_v23  ;;  %v11167_v23 = vld [vmem:[#allocation41_spill] sm:$0xff]  ;;  %v11168_v52 = vld [vmem:[#allocation243_spill] sm:$0xff] }
 0x66b   : > { %v5770_v45 = vpop.f32.mrf.mxu3 }
 0x66c   : > { %v5836_v18 = vmul.f32 %v5770_v45, %v11143_v24 }
 0x66e   : > { %v5868_v57 = vadd.f32 %v5836_v18, %v11144_v50  ;;  %v11169_v18 = vld [vmem:[#allocation19_spill] sm:$0xff] }
 0x670   : > { %5901 = vst.msk [vmem:[%s10097_s20 + $0x78] sm:$0xff] %vm5885_vm12, %v5868_v57  ;;  %v11170_v57 = vld [vmem:[#allocation100_spill] sm:$0xff] }
 0x673   : > { %v5773_v54 = vpop.f32.mrf.mxu3 }
 0x674   : > { %v5837_v14 = vmul.f32 %v5773_v54, %v11145_v42 }
 0x676   : > { %v5869_v19 = vadd.f32 %v5837_v14, %v11146_v3  ;;  %v11171_v14 = vld [vmem:[#allocation4_spill] sm:$0xff] }
 0x678   : > { %5902 = vst.msk [vmem:[%s10097_s20 + $0x80] sm:$0xff] %vm5885_vm12, %v5869_v19  ;;  %v11172_v19 = vld [vmem:[#allocation105_spill] sm:$0xff] }
 0x67b   : > { %v5776_v61 = vpop.f32.mrf.mxu3 }
 0x67c   : > { %v5838_v63 = vmul.f32 %v5776_v61, %v11147_v40 }
 0x67e   : > { %v5870_v35 = vadd.f32 %v5838_v63, %v11148_v13  ;;  %v11173_v63 = vld [vmem:[#allocation3_spill] sm:$0xff] }
 0x680   : > { %5903 = vst.msk [vmem:[%s10097_s20 + $0x88] sm:$0xff] %vm5885_vm12, %v5870_v35  ;;  %v11174_v35 = vld [vmem:[#allocation244_spill] sm:$0xff] }
 0x683   : > { %v5779_v62 = vpop.f32.mrf.mxu3 }
 0x684   : > { %v5839_v58 = vmul.f32 %v5779_v62, %v11149_v21 }
 0x686   : > { %v5871_v7 = vadd.f32 %v5839_v58, %v11150_v55  ;;  %v11175_v58 = vld [vmem:[#allocation73_spill] sm:$0xff] }
 0x688   : > { %5904 = vst.msk [vmem:[%s10097_s20 + $0x90] sm:$0xff] %vm5885_vm12, %v5871_v7  ;;  %v11176_v7 = vld [vmem:[#allocation103_spill] sm:$0xff] }
 0x68b   : > { %v5782_v53 = vpop.f32.mrf.mxu3 }
 0x68c   : > { %v5840_v16 = vmul.f32 %v5782_v53, %v11151_v46 }
 0x68e   : > { %v5872_v22 = vadd.f32 %v5840_v16, %v11152_v6 }
 0x690   : > { %5905 = vst.msk [vmem:[%s10097_s20 + $0x98] sm:$0xff] %vm5885_vm12, %v5872_v22 }
 0x693   : > { %v5785_v32 = vpop.f32.mrf.mxu3 }
 0x694   : > { %v5841_v60 = vmul.f32 %v5785_v32, %v11153_v10 }
 0x696   : > { %v5873_v37 = vadd.f32 %v5841_v60, %v11154_v38 }
 0x698   : > { %5906 = vst.msk [vmem:[%s10097_s20 + $0xa0] sm:$0xff] %vm5885_vm12, %v5873_v37 }
 0x69b   : > { %v5788_v41 = vpop.f32.mrf.mxu3 }
 0x69c   : > { %v5842_v1 = vmul.f32 %v5788_v41, %v11155_v34 }
 0x69e   : > { %v5874_v2 = vadd.f32 %v5842_v1, %v11156_v44 }
 0x6a0   : > { %5907 = vst.msk [vmem:[%s10097_s20 + $0xa8] sm:$0xff] %vm5885_vm12, %v5874_v2 }
 0x6a3   : > { %v5791_v27 = vpop.f32.mrf.mxu3 }
 0x6a4   : > { %v5843_v43 = vmul.f32 %v5791_v27, %v11157_v26 }
 0x6a6   : > { %v5875_v15 = vadd.f32 %v5843_v43, %v11158_v47 }
 0x6a8   : > { %5908 = vst.msk [vmem:[%s10097_s20 + $0xb0] sm:$0xff] %vm5885_vm12, %v5875_v15 }
 0x6ab   : > { %v5794_v59 = vpop.f32.mrf.mxu3 }
 0x6ac   : > { %v5844_v39 = vmul.f32 %v5794_v59, %v11159_v25 }
 0x6ae   : > { %v5876_v11 = vadd.f32 %v5844_v39, %v11160_v17 }
 0x6b0   : > { %5909 = vst.msk [vmem:[%s10097_s20 + $0xb8] sm:$0xff] %vm5885_vm12, %v5876_v11 }
 0x6b3   : > { %v5797_v12 = vpop.f32.mrf.mxu3 }
 0x6b4   : > { %v5845_v5 = vmul.f32 %v5797_v12, %v11161_v56 }
 0x6b6   : > { %v5877_v33 = vadd.f32 %v5845_v5, %v11162_v48 }
 0x6b8   : > { %5910 = vst.msk [vmem:[%s10097_s20 + $0xc0] sm:$0xff] %vm5885_vm12, %v5877_v33 }
 0x6bb   : > { %v5800_v4 = vpop.f32.mrf.mxu3 }
 0x6bc   : > { %v5846_v28 = vmul.f32 %v5800_v4, %v11163_v49 }
 0x6be   : > { %v5878_v0 = vadd.f32 %v5846_v28, %v11164_v36 }
 0x6c0   : > { %5911 = vst.msk [vmem:[%s10097_s20 + $0xc8] sm:$0xff] %vm5885_vm12, %v5878_v0 }
 0x6c3   : > { %v5803_v8 = vpop.f32.mrf.mxu3 }
 0x6c4   : > { %v5847_v9 = vmul.f32 %v5803_v8, %v11165_v30 }
 0x6c6   : > { %v5879_v51 = vadd.f32 %v5847_v9, %v11166_v20 }
 0x6c8   : > { %5912 = vst.msk [vmem:[%s10097_s20 + $0xd0] sm:$0xff] %vm5885_vm12, %v5879_v51 }
 0x6cb   : > { %v5806_v29 = vpop.f32.mrf.mxu3 }
 0x6cc   : > { %v5848_v31 = vmul.f32 %v5806_v29, %v11167_v23 }
 0x6ce   : > { %v5880_v45 = vadd.f32 %v5848_v31, %v11168_v52 }
 0x6d0   : > { %5913 = vst.msk [vmem:[%s10097_s20 + $0xd8] sm:$0xff] %vm5885_vm12, %v5880_v45 }
 0x6d3   : > { %v5809_v24 = vpop.f32.mrf.mxu3 }
 0x6d4   : > { %v5849_v50 = vmul.f32 %v5809_v24, %v11169_v18 }
 0x6d6   : > { %v5881_v54 = vadd.f32 %v5849_v50, %v11170_v57 }
 0x6d8   : > { %5914 = vst.msk [vmem:[%s10097_s20 + $0xe0] sm:$0xff] %vm5885_vm12, %v5881_v54 }
 0x6db   : > { %v5812_v42 = vpop.f32.mrf.mxu3 }
 0x6dc   : > { %v5850_v3 = vmul.f32 %v5812_v42, %v11171_v14 }
 0x6de   : > { %v5882_v61 = vadd.f32 %v5850_v3, %v11172_v19 }
 0x6e0   : > { %5915 = vst.msk [vmem:[%s10097_s20 + $0xe8] sm:$0xff] %vm5885_vm12, %v5882_v61 }
 0x6e3   : > { %v5815_v40 = vpop.f32.mrf.mxu3 }
 0x6e4   : > { %v5851_v13 = vmul.f32 %v5815_v40, %v11173_v63 }
 0x6e6   : > { %v5883_v62 = vadd.f32 %v5851_v13, %v11174_v35 }
 0x6e8   : > { %5916 = vst.msk [vmem:[%s10097_s20 + $0xf0] sm:$0xff] %vm5885_vm12, %v5883_v62 }
 0x6eb   : > { %v5818_v21 = vpop.f32.mrf.mxu3 }
 0x6ec   : > { %v5852_v55 = vmul.f32 %v5818_v21, %v11175_v58 }
 0x6ee   : > { %v5884_v53 = vadd.f32 %v5852_v55, %v11176_v7 }
 0x6f0   : > { %5917 = vst.msk [vmem:[%s10097_s20 + $0xf8] sm:$0xff] %vm5885_vm12, %v5884_v53 }
 0x6f1 PF: > { %s28_s27 = sadd.s32 1, %s6600_s27  }
 0x6f2   : > { %p25_p4 = scmp.ge.s32.totalorder %s28_s27, 4  }
 0x6f4   :  { %27 = sbr.rel (!%p25_p4) target bundleno = 4 (0x4), region = 130 }

</bundles_post_ra>
